<compile_context>
chip_gen: v5e
topology: v5e:2x2
jax: 0.10.0
libtpu: 0.0.40
codegen_flags: <defaults>
</compile_context>

<pallas_src>
import math
import functools

import jax
import jax.numpy as jnp
from jax.experimental import pallas as pl
from jax.experimental.pallas import tpu as pltpu

# ---- hyperparameters (match the PyTorch module) ----
INPUT_SIZE = 4          # len(feature_cols)
D_MODEL = 64
NHEAD = 4
NUM_LAYERS = 3
D_FF = 2048             # nn.TransformerEncoderLayer default dim_feedforward
HEAD_DIM = D_MODEL // NHEAD
LN_EPS = 1e-5


def _layernorm(x, w, b):
    mu = jnp.mean(x, axis=-1, keepdims=True)
    var = jnp.mean((x - mu) ** 2, axis=-1, keepdims=True)
    return (x - mu) * jax.lax.rsqrt(var + LN_EPS) * w + b


def transformer_kernel(
    src_ref, pe_ref,
    in_w_ref, in_b_ref,
    wq_ref, bq_ref, wk_ref, bk_ref, wv_ref, bv_ref,
    wo_ref, bo_ref,
    ln1_w_ref, ln1_b_ref,
    ff1_w_ref, ff1_b_ref, ff2_w_ref, ff2_b_ref,
    ln2_w_ref, ln2_b_ref,
    dec_w_ref, dec_b_ref,
    out_ref,
):
    """One grid step == one batch element.  src_ref: (S, F); out_ref: (1, 1)."""
    S, F = src_ref.shape
    D, H, Dh = D_MODEL, NHEAD, HEAD_DIM

    src = src_ref[...]                       # (S, F)
    in_w = in_w_ref[...]                     # (F, D)

    # --- input linear on the VPU (K=4 is far too small for the MXU) ---
    x = jnp.zeros((S, D), jnp.float32)
    for f in range(F):                       # F = 4 broadcast-FMA terms
        x = x + src[:, f:f + 1] * in_w[f:f + 1, :]
    # (x @ W + b) * sqrt(d_model) + positional encoding (dropout = identity)
    x = (x + in_b_ref[...]) * jnp.float32(math.sqrt(D)) + pe_ref[...]   # (S, D)

    inv_sqrt_dh = jnp.float32(1.0 / math.sqrt(Dh))

    for l in range(NUM_LAYERS):
        # ---------- self attention (post-norm encoder layer), heads batched ----------
        q = jnp.dot(x, wq_ref[l], preferred_element_type=jnp.float32) + bq_ref[l]
        k = jnp.dot(x, wk_ref[l], preferred_element_type=jnp.float32) + bk_ref[l]
        v = jnp.dot(x, wv_ref[l], preferred_element_type=jnp.float32) + bv_ref[l]

        qh = q.reshape(S, H, Dh)
        kh = k.reshape(S, H, Dh)
        vh = v.reshape(S, H, Dh)

        scores = jnp.einsum('qhd,khd->hqk', qh, kh,
                            preferred_element_type=jnp.float32) * inv_sqrt_dh
        scores = scores - jnp.max(scores, axis=-1, keepdims=True)
        p = jnp.exp(scores)
        p = p * pl.reciprocal(jnp.sum(p, axis=-1, keepdims=True), approx=True)

        ctx = jnp.einsum('hqk,khd->qhd', p, vh,
                         preferred_element_type=jnp.float32).reshape(S, D)

        attn_out = jnp.dot(ctx, wo_ref[l],
                           preferred_element_type=jnp.float32) + bo_ref[l]
        x = _layernorm(x + attn_out, ln1_w_ref[l], ln1_b_ref[l])

        # ---------- feed-forward ----------
        h1 = jnp.dot(x, ff1_w_ref[l],
                     preferred_element_type=jnp.float32) + ff1_b_ref[l]
        h1 = jnp.maximum(h1, jnp.float32(0.0))                          # ReLU
        h2 = jnp.dot(h1, ff2_w_ref[l],
                     preferred_element_type=jnp.float32) + ff2_b_ref[l]
        x = _layernorm(x + h2, ln2_w_ref[l], ln2_b_ref[l])

    # --- decoder (N=1) on the VPU: last timestep, elementwise mul + lane reduce ---
    last = x[S - 1:S, :]                                                # (1, D)
    out_ref[...] = (jnp.sum(last * dec_w_ref[...], axis=-1, keepdims=True)
                    + dec_b_ref[...])                                   # (1, 1)


def make_positional_encoding(seq, d_model):
    pos = jnp.arange(seq, dtype=jnp.float32)[:, None]
    div = jnp.exp(jnp.arange(0, d_model, 2, dtype=jnp.float32)
                  * (-math.log(10000.0) / d_model))
    pe = jnp.zeros((seq, d_model), dtype=jnp.float32)
    pe = pe.at[:, 0::2].set(jnp.sin(pos * div))
    pe = pe.at[:, 1::2].set(jnp.cos(pos * div))
    return pe


def init_params(key):
    """Deterministic synthetic parameters (shapes match the PyTorch module).

    Weight matrices are stored pre-transposed as (in_features, out_features);
    the decoder weight is stored as a (1, D) row so the kernel can do a
    VPU multiply + lane-reduce instead of an N=1 MXU matmul.
    """
    ks = jax.random.split(key, 16)
    s = 0.05
    L, D, F = NUM_LAYERS, D_MODEL, INPUT_SIZE
    return dict(
        in_w=jax.random.normal(ks[0], (F, D), jnp.float32) * s,
        in_b=jax.random.normal(ks[1], (1, D), jnp.float32) * s,
        wq=jax.random.normal(ks[2], (L, D, D), jnp.float32) * s,
        bq=jax.random.normal(ks[3], (L, 1, D), jnp.float32) * s,
        wk=jax.random.normal(ks[4], (L, D, D), jnp.float32) * s,
        bk=jax.random.normal(ks[5], (L, 1, D), jnp.float32) * s,
        wv=jax.random.normal(ks[6], (L, D, D), jnp.float32) * s,
        bv=jax.random.normal(ks[7], (L, 1, D), jnp.float32) * s,
        wo=jax.random.normal(ks[8], (L, D, D), jnp.float32) * s,
        bo=jax.random.normal(ks[9], (L, 1, D), jnp.float32) * s,
        ln1_w=jnp.ones((L, 1, D), jnp.float32),
        ln1_b=jnp.zeros((L, 1, D), jnp.float32),
        ff1_w=jax.random.normal(ks[10], (L, D, D_FF), jnp.float32) * s,
        ff1_b=jax.random.normal(ks[11], (L, 1, D_FF), jnp.float32) * s,
        ff2_w=jax.random.normal(ks[12], (L, D_FF, D), jnp.float32) * s,
        ff2_b=jax.random.normal(ks[13], (L, 1, D), jnp.float32) * s,
        ln2_w=jnp.ones((L, 1, D), jnp.float32),
        ln2_b=jnp.zeros((L, 1, D), jnp.float32),
        dec_w=jax.random.normal(ks[14], (1, D), jnp.float32) * s,
        dec_b=jax.random.normal(ks[15], (1, 1), jnp.float32) * s,
    )


@jax.jit
def transformer_forward(src, params):
    """src: (B, S, INPUT_SIZE) float32  ->  (B,) float32"""
    B, S, F = src.shape
    L, D = NUM_LAYERS, D_MODEL
    pe = make_positional_encoding(S, D)

    def resident(shape):
        # whole array, same block every grid step -> DMA'd once, stays in VMEM
        return pl.BlockSpec(shape, lambda b, _n=len(shape): (0,) * _n)

    in_specs = [
        pl.BlockSpec((None, S, F), lambda b: (b, 0, 0)),   # src: one batch / step
        resident((S, D)),                                  # pe (shared across batch)
        resident((F, D)), resident((1, D)),                # input linear
        resident((L, D, D)), resident((L, 1, D)),          # wq, bq
        resident((L, D, D)), resident((L, 1, D)),          # wk, bk
        resident((L, D, D)), resident((L, 1, D)),          # wv, bv
        resident((L, D, D)), resident((L, 1, D)),          # wo, bo
        resident((L, 1, D)), resident((L, 1, D)),          # ln1 w, b
        resident((L, D, D_FF)), resident((L, 1, D_FF)),    # ff1 w, b
        resident((L, D_FF, D)), resident((L, 1, D)),       # ff2 w, b
        resident((L, 1, D)), resident((L, 1, D)),          # ln2 w, b
        resident((1, D)), resident((1, 1)),                # decoder w, b
    ]

    out = pl.pallas_call(
        transformer_kernel,
        out_shape=jax.ShapeDtypeStruct((B, 1, 1), jnp.float32),
        grid=(B,),
        in_specs=in_specs,
        out_specs=pl.BlockSpec((None, 1, 1), lambda b: (b, 0, 0)),
        compiler_params=pltpu.CompilerParams(
            dimension_semantics=("parallel",),
            vmem_limit_bytes=32 * 1024 * 1024,   # safe on v5e/v6e/v7x (64 MiB phys)
        ),
    )(src, pe,
      params["in_w"], params["in_b"],
      params["wq"], params["bq"], params["wk"], params["bk"],
      params["wv"], params["bv"], params["wo"], params["bo"],
      params["ln1_w"], params["ln1_b"],
      params["ff1_w"], params["ff1_b"], params["ff2_w"], params["ff2_b"],
      params["ln2_w"], params["ln2_b"],
      params["dec_w"], params["dec_b"])
    return out.reshape(B)                                  # squeeze(-1)


if __name__ == "__main__":
    key = jax.random.PRNGKey(0)
    k_src, k_par = jax.random.split(key)

    B, S = 2, 8
    src = jax.random.normal(k_src, (B, S, INPUT_SIZE), dtype=jnp.float32)
    params = init_params(k_par)

    out = transformer_forward(src, params)
    out = jax.block_until_ready(out)
    assert out.shape == (B,)
    print("KERNEL_OK")
</pallas_src>

<mosaic_0001>
module attributes {stable_mosaic.version = 11 : i64} {
  func.func @transformer_kernel(%arg0: i32, %arg1: memref<1x8x4xf32, #tpu.memory_space<vmem>>, %arg2: memref<8x64xf32, #tpu.memory_space<vmem>>, %arg3: memref<4x64xf32, #tpu.memory_space<vmem>>, %arg4: memref<1x64xf32, #tpu.memory_space<vmem>>, %arg5: memref<3x64x64xf32, #tpu.memory_space<vmem>>, %arg6: memref<3x1x64xf32, #tpu.memory_space<vmem>>, %arg7: memref<3x64x64xf32, #tpu.memory_space<vmem>>, %arg8: memref<3x1x64xf32, #tpu.memory_space<vmem>>, %arg9: memref<3x64x64xf32, #tpu.memory_space<vmem>>, %arg10: memref<3x1x64xf32, #tpu.memory_space<vmem>>, %arg11: memref<3x64x64xf32, #tpu.memory_space<vmem>>, %arg12: memref<3x1x64xf32, #tpu.memory_space<vmem>>, %arg13: memref<3x1x64xf32, #tpu.memory_space<vmem>>, %arg14: memref<3x1x64xf32, #tpu.memory_space<vmem>>, %arg15: memref<3x64x2048xf32, #tpu.memory_space<vmem>>, %arg16: memref<3x1x2048xf32, #tpu.memory_space<vmem>>, %arg17: memref<3x2048x64xf32, #tpu.memory_space<vmem>>, %arg18: memref<3x1x64xf32, #tpu.memory_space<vmem>>, %arg19: memref<3x1x64xf32, #tpu.memory_space<vmem>>, %arg20: memref<3x1x64xf32, #tpu.memory_space<vmem>>, %arg21: memref<1x64xf32, #tpu.memory_space<vmem>>, %arg22: memref<1x1xf32, #tpu.memory_space<vmem>>, %arg23: memref<1x1x1xf32, #tpu.memory_space<vmem>>) attributes {dimension_semantics = [#tpu.dimension_semantics<parallel>], iteration_bounds = array<i64: 2>, scalar_prefetch = 0 : i64, scratch_operands = 0 : i64, tpu.core_type = #tpu.core_type<tc>, window_params = [{transform_indices = @transform_0, window_bounds = array<i64: 1, 8, 4>}, {pipeline_mode = #tpu.pipeline_mode<synchronous>, transform_indices = @transform_1, window_bounds = array<i64: 8, 64>}, {pipeline_mode = #tpu.pipeline_mode<synchronous>, transform_indices = @transform_2, window_bounds = array<i64: 4, 64>}, {pipeline_mode = #tpu.pipeline_mode<synchronous>, transform_indices = @transform_3, window_bounds = array<i64: 1, 64>}, {pipeline_mode = #tpu.pipeline_mode<synchronous>, transform_indices = @transform_4, window_bounds = array<i64: 3, 64, 64>}, {pipeline_mode = #tpu.pipeline_mode<synchronous>, transform_indices = @transform_5, window_bounds = array<i64: 3, 1, 64>}, {pipeline_mode = #tpu.pipeline_mode<synchronous>, transform_indices = @transform_6, window_bounds = array<i64: 3, 64, 64>}, {pipeline_mode = #tpu.pipeline_mode<synchronous>, transform_indices = @transform_7, window_bounds = array<i64: 3, 1, 64>}, {pipeline_mode = #tpu.pipeline_mode<synchronous>, transform_indices = @transform_8, window_bounds = array<i64: 3, 64, 64>}, {pipeline_mode = #tpu.pipeline_mode<synchronous>, transform_indices = @transform_9, window_bounds = array<i64: 3, 1, 64>}, {pipeline_mode = #tpu.pipeline_mode<synchronous>, transform_indices = @transform_10, window_bounds = array<i64: 3, 64, 64>}, {pipeline_mode = #tpu.pipeline_mode<synchronous>, transform_indices = @transform_11, window_bounds = array<i64: 3, 1, 64>}, {pipeline_mode = #tpu.pipeline_mode<synchronous>, transform_indices = @transform_12, window_bounds = array<i64: 3, 1, 64>}, {pipeline_mode = #tpu.pipeline_mode<synchronous>, transform_indices = @transform_13, window_bounds = array<i64: 3, 1, 64>}, {pipeline_mode = #tpu.pipeline_mode<synchronous>, transform_indices = @transform_14, window_bounds = array<i64: 3, 64, 2048>}, {pipeline_mode = #tpu.pipeline_mode<synchronous>, transform_indices = @transform_15, window_bounds = array<i64: 3, 1, 2048>}, {pipeline_mode = #tpu.pipeline_mode<synchronous>, transform_indices = @transform_16, window_bounds = array<i64: 3, 2048, 64>}, {pipeline_mode = #tpu.pipeline_mode<synchronous>, transform_indices = @transform_17, window_bounds = array<i64: 3, 1, 64>}, {pipeline_mode = #tpu.pipeline_mode<synchronous>, transform_indices = @transform_18, window_bounds = array<i64: 3, 1, 64>}, {pipeline_mode = #tpu.pipeline_mode<synchronous>, transform_indices = @transform_19, window_bounds = array<i64: 3, 1, 64>}, {pipeline_mode = #tpu.pipeline_mode<synchronous>, transform_indices = @transform_20, window_bounds = array<i64: 1, 64>}, {pipeline_mode = #tpu.pipeline_mode<synchronous>, transform_indices = @transform_21, window_bounds = array<i64: 1, 1>}, {transform_indices = @transform_22, window_bounds = array<i64: 1, 1, 1>}]} {
    %c0 = arith.constant 0 : index
    %c0_0 = arith.constant 0 : index
    %c0_1 = arith.constant 0 : index
    %0 = vector.load %arg1[%c0, %c0_0, %c0_1] : memref<1x8x4xf32, #tpu.memory_space<vmem>>, vector<1x8x4xf32>
    %1 = vector.shape_cast %0 : vector<1x8x4xf32> to vector<8x4xf32>
    %c0_2 = arith.constant 0 : index
    %c0_3 = arith.constant 0 : index
    %2 = vector.load %arg3[%c0_2, %c0_3] : memref<4x64xf32, #tpu.memory_space<vmem>>, vector<4x64xf32>
    %cst = arith.constant 0.000000e+00 : f32
    %3 = vector.broadcast %cst : f32 to vector<8x64xf32>
    %4 = vector.extract_strided_slice %1 {offsets = [0, 0], sizes = [8, 1], strides = [1, 1]} : vector<8x4xf32> to vector<8x1xf32>
    %5 = vector.extract_strided_slice %2 {offsets = [0, 0], sizes = [1, 64], strides = [1, 1]} : vector<4x64xf32> to vector<1x64xf32>
    %6 = vector.broadcast %4 : vector<8x1xf32> to vector<8x64xf32>
    %7 = vector.broadcast %5 : vector<1x64xf32> to vector<8x64xf32>
    %8 = arith.mulf %6, %7 : vector<8x64xf32>
    %9 = arith.addf %3, %8 : vector<8x64xf32>
    %10 = vector.extract_strided_slice %1 {offsets = [0, 1], sizes = [8, 1], strides = [1, 1]} : vector<8x4xf32> to vector<8x1xf32>
    %11 = vector.extract_strided_slice %2 {offsets = [1, 0], sizes = [1, 64], strides = [1, 1]} : vector<4x64xf32> to vector<1x64xf32>
    %12 = vector.broadcast %10 : vector<8x1xf32> to vector<8x64xf32>
    %13 = vector.broadcast %11 : vector<1x64xf32> to vector<8x64xf32>
    %14 = arith.mulf %12, %13 : vector<8x64xf32>
    %15 = arith.addf %9, %14 : vector<8x64xf32>
    %16 = vector.extract_strided_slice %1 {offsets = [0, 2], sizes = [8, 1], strides = [1, 1]} : vector<8x4xf32> to vector<8x1xf32>
    %17 = vector.extract_strided_slice %2 {offsets = [2, 0], sizes = [1, 64], strides = [1, 1]} : vector<4x64xf32> to vector<1x64xf32>
    %18 = vector.broadcast %16 : vector<8x1xf32> to vector<8x64xf32>
    %19 = vector.broadcast %17 : vector<1x64xf32> to vector<8x64xf32>
    %20 = arith.mulf %18, %19 : vector<8x64xf32>
    %21 = arith.addf %15, %20 : vector<8x64xf32>
    %22 = vector.extract_strided_slice %1 {offsets = [0, 3], sizes = [8, 1], strides = [1, 1]} : vector<8x4xf32> to vector<8x1xf32>
    %23 = vector.extract_strided_slice %2 {offsets = [3, 0], sizes = [1, 64], strides = [1, 1]} : vector<4x64xf32> to vector<1x64xf32>
    %24 = vector.broadcast %22 : vector<8x1xf32> to vector<8x64xf32>
    %25 = vector.broadcast %23 : vector<1x64xf32> to vector<8x64xf32>
    %26 = arith.mulf %24, %25 : vector<8x64xf32>
    %27 = arith.addf %21, %26 : vector<8x64xf32>
    %c0_4 = arith.constant 0 : index
    %c0_5 = arith.constant 0 : index
    %28 = vector.load %arg4[%c0_4, %c0_5] : memref<1x64xf32, #tpu.memory_space<vmem>>, vector<1x64xf32>
    %29 = vector.broadcast %28 : vector<1x64xf32> to vector<8x64xf32>
    %30 = arith.addf %27, %29 : vector<8x64xf32>
    %cst_6 = arith.constant 8.000000e+00 : f32
    %31 = vector.broadcast %cst_6 : f32 to vector<8x64xf32>
    %32 = arith.mulf %30, %31 : vector<8x64xf32>
    %c0_7 = arith.constant 0 : index
    %c0_8 = arith.constant 0 : index
    %33 = vector.load %arg2[%c0_7, %c0_8] : memref<8x64xf32, #tpu.memory_space<vmem>>, vector<8x64xf32>
    %34 = arith.addf %32, %33 : vector<8x64xf32>
    %c0_9 = arith.constant 0 : index
    %c0_10 = arith.constant 0 : index
    %c0_11 = arith.constant 0 : index
    %35 = vector.load %arg5[%c0_9, %c0_10, %c0_11] : memref<3x64x64xf32, #tpu.memory_space<vmem>>, vector<1x64x64xf32>
    %36 = vector.shape_cast %35 : vector<1x64x64xf32> to vector<64x64xf32>
    %cst_12 = arith.constant dense<0.000000e+00> : vector<8x64xf32>
    %37 = tpu.matmul %34, %36, %cst_12 {dimension_numbers = #tpu.dot_dimension_numbers<[1], [0], [0], [1], [0, 0, 1, 1], [], []>} : vector<8x64xf32>, vector<64x64xf32>, vector<8x64xf32> -> vector<8x64xf32>
    %c0_13 = arith.constant 0 : index
    %c0_14 = arith.constant 0 : index
    %c0_15 = arith.constant 0 : index
    %38 = vector.load %arg6[%c0_13, %c0_14, %c0_15] : memref<3x1x64xf32, #tpu.memory_space<vmem>>, vector<1x1x64xf32>
    %39 = vector.shape_cast %38 : vector<1x1x64xf32> to vector<1x64xf32>
    %40 = vector.broadcast %39 : vector<1x64xf32> to vector<8x64xf32>
    %41 = arith.addf %37, %40 : vector<8x64xf32>
    %c0_16 = arith.constant 0 : index
    %c0_17 = arith.constant 0 : index
    %c0_18 = arith.constant 0 : index
    %42 = vector.load %arg7[%c0_16, %c0_17, %c0_18] : memref<3x64x64xf32, #tpu.memory_space<vmem>>, vector<1x64x64xf32>
    %43 = vector.shape_cast %42 : vector<1x64x64xf32> to vector<64x64xf32>
    %cst_19 = arith.constant dense<0.000000e+00> : vector<8x64xf32>
    %44 = tpu.matmul %34, %43, %cst_19 {dimension_numbers = #tpu.dot_dimension_numbers<[1], [0], [0], [1], [0, 0, 1, 1], [], []>} : vector<8x64xf32>, vector<64x64xf32>, vector<8x64xf32> -> vector<8x64xf32>
    %c0_20 = arith.constant 0 : index
    %c0_21 = arith.constant 0 : index
    %c0_22 = arith.constant 0 : index
    %45 = vector.load %arg8[%c0_20, %c0_21, %c0_22] : memref<3x1x64xf32, #tpu.memory_space<vmem>>, vector<1x1x64xf32>
    %46 = vector.shape_cast %45 : vector<1x1x64xf32> to vector<1x64xf32>
    %47 = vector.broadcast %46 : vector<1x64xf32> to vector<8x64xf32>
    %48 = arith.addf %44, %47 : vector<8x64xf32>
    %c0_23 = arith.constant 0 : index
    %c0_24 = arith.constant 0 : index
    %c0_25 = arith.constant 0 : index
    %49 = vector.load %arg9[%c0_23, %c0_24, %c0_25] : memref<3x64x64xf32, #tpu.memory_space<vmem>>, vector<1x64x64xf32>
    %50 = vector.shape_cast %49 : vector<1x64x64xf32> to vector<64x64xf32>
    %cst_26 = arith.constant dense<0.000000e+00> : vector<8x64xf32>
    %51 = tpu.matmul %34, %50, %cst_26 {dimension_numbers = #tpu.dot_dimension_numbers<[1], [0], [0], [1], [0, 0, 1, 1], [], []>} : vector<8x64xf32>, vector<64x64xf32>, vector<8x64xf32> -> vector<8x64xf32>
    %c0_27 = arith.constant 0 : index
    %c0_28 = arith.constant 0 : index
    %c0_29 = arith.constant 0 : index
    %52 = vector.load %arg10[%c0_27, %c0_28, %c0_29] : memref<3x1x64xf32, #tpu.memory_space<vmem>>, vector<1x1x64xf32>
    %53 = vector.shape_cast %52 : vector<1x1x64xf32> to vector<1x64xf32>
    %54 = vector.broadcast %53 : vector<1x64xf32> to vector<8x64xf32>
    %55 = arith.addf %51, %54 : vector<8x64xf32>
    %56 = vector.shape_cast %41 : vector<8x64xf32> to vector<8x4x16xf32>
    %57 = vector.shape_cast %48 : vector<8x64xf32> to vector<8x4x16xf32>
    %58 = vector.shape_cast %55 : vector<8x64xf32> to vector<8x4x16xf32>
    "tpu.trace_start"() <{level = 10 : i32, message = "qhd,khd->hqk"}> : () -> ()
    %cst_30 = arith.constant dense<0.000000e+00> : vector<4x8x8xf32>
    %59 = tpu.matmul %56, %57, %cst_30 {dimension_numbers = #tpu.dot_dimension_numbers<[2], [2], [0], [0], [0, 1, 0, 0, 1, 0], [1], [1]>} : vector<8x4x16xf32>, vector<8x4x16xf32>, vector<4x8x8xf32> -> vector<4x8x8xf32>
    "tpu.trace_stop"() : () -> ()
    %cst_31 = arith.constant 2.500000e-01 : f32
    %60 = vector.broadcast %cst_31 : f32 to vector<4x8x8xf32>
    %61 = arith.mulf %59, %60 : vector<4x8x8xf32>
    %cst_32 = arith.constant dense<0xFF800000> : vector<4x8xf32>
    %62 = vector.multi_reduction <maximumf>, %61, %cst_32 [2] : vector<4x8x8xf32> to vector<4x8xf32>
    %63 = vector.shape_cast %62 : vector<4x8xf32> to vector<4x8x1xf32>
    %64 = vector.broadcast %63 : vector<4x8x1xf32> to vector<4x8x8xf32>
    %65 = arith.subf %61, %64 : vector<4x8x8xf32>
    %66 = math.exp %65 : vector<4x8x8xf32>
    %cst_33 = arith.constant dense<0.000000e+00> : vector<4x8xf32>
    %67 = vector.multi_reduction <add>, %66, %cst_33 [2] : vector<4x8x8xf32> to vector<4x8xf32>
    %68 = vector.shape_cast %67 : vector<4x8xf32> to vector<4x8x1xf32>
    %69 = tpu.reciprocal %68 {approx = true} : vector<4x8x1xf32> -> vector<4x8x1xf32>
    %70 = vector.broadcast %69 : vector<4x8x1xf32> to vector<4x8x8xf32>
    %71 = arith.mulf %66, %70 : vector<4x8x8xf32>
    "tpu.trace_start"() <{level = 10 : i32, message = "hqk,khd->qhd"}> : () -> ()
    %cst_34 = arith.constant dense<0.000000e+00> : vector<4x16x8xf32>
    %72 = tpu.matmul %58, %71, %cst_34 {dimension_numbers = #tpu.dot_dimension_numbers<[0], [2], [2], [1], [0, 1, 0, 2, 1, 1], [1], [0]>} : vector<8x4x16xf32>, vector<4x8x8xf32>, vector<4x16x8xf32> -> vector<4x16x8xf32>
    %73 = tpu.transpose %72, [2, 0, 1] : vector<4x16x8xf32> -> vector<8x4x16xf32>
    "tpu.trace_stop"() : () -> ()
    %74 = vector.shape_cast %73 : vector<8x4x16xf32> to vector<8x64xf32>
    %c0_35 = arith.constant 0 : index
    %c0_36 = arith.constant 0 : index
    %c0_37 = arith.constant 0 : index
    %75 = vector.load %arg11[%c0_35, %c0_36, %c0_37] : memref<3x64x64xf32, #tpu.memory_space<vmem>>, vector<1x64x64xf32>
    %76 = vector.shape_cast %75 : vector<1x64x64xf32> to vector<64x64xf32>
    %cst_38 = arith.constant dense<0.000000e+00> : vector<8x64xf32>
    %77 = tpu.matmul %74, %76, %cst_38 {dimension_numbers = #tpu.dot_dimension_numbers<[1], [0], [0], [1], [0, 0, 1, 1], [], []>} : vector<8x64xf32>, vector<64x64xf32>, vector<8x64xf32> -> vector<8x64xf32>
    %c0_39 = arith.constant 0 : index
    %c0_40 = arith.constant 0 : index
    %c0_41 = arith.constant 0 : index
    %78 = vector.load %arg12[%c0_39, %c0_40, %c0_41] : memref<3x1x64xf32, #tpu.memory_space<vmem>>, vector<1x1x64xf32>
    %79 = vector.shape_cast %78 : vector<1x1x64xf32> to vector<1x64xf32>
    %80 = vector.broadcast %79 : vector<1x64xf32> to vector<8x64xf32>
    %81 = arith.addf %77, %80 : vector<8x64xf32>
    %82 = arith.addf %34, %81 : vector<8x64xf32>
    %c0_42 = arith.constant 0 : index
    %c0_43 = arith.constant 0 : index
    %c0_44 = arith.constant 0 : index
    %83 = vector.load %arg13[%c0_42, %c0_43, %c0_44] : memref<3x1x64xf32, #tpu.memory_space<vmem>>, vector<1x1x64xf32>
    %84 = vector.shape_cast %83 : vector<1x1x64xf32> to vector<1x64xf32>
    %c0_45 = arith.constant 0 : index
    %c0_46 = arith.constant 0 : index
    %c0_47 = arith.constant 0 : index
    %85 = vector.load %arg14[%c0_45, %c0_46, %c0_47] : memref<3x1x64xf32, #tpu.memory_space<vmem>>, vector<1x1x64xf32>
    %86 = vector.shape_cast %85 : vector<1x1x64xf32> to vector<1x64xf32>
    %cst_48 = arith.constant dense<0.000000e+00> : vector<8xf32>
    %87 = vector.multi_reduction <add>, %82, %cst_48 [1] : vector<8x64xf32> to vector<8xf32>
    %88 = vector.shape_cast %87 : vector<8xf32> to vector<8x1xf32>
    %cst_49 = arith.constant 6.400000e+01 : f32
    %89 = vector.broadcast %cst_49 : f32 to vector<8x1xf32>
    %90 = arith.divf %88, %89 : vector<8x1xf32>
    %91 = vector.broadcast %90 : vector<8x1xf32> to vector<8x64xf32>
    %92 = arith.subf %82, %91 : vector<8x64xf32>
    %93 = arith.mulf %92, %92 : vector<8x64xf32>
    %cst_50 = arith.constant dense<0.000000e+00> : vector<8xf32>
    %94 = vector.multi_reduction <add>, %93, %cst_50 [1] : vector<8x64xf32> to vector<8xf32>
    %95 = vector.shape_cast %94 : vector<8xf32> to vector<8x1xf32>
    %cst_51 = arith.constant 6.400000e+01 : f32
    %96 = vector.broadcast %cst_51 : f32 to vector<8x1xf32>
    %97 = arith.divf %95, %96 : vector<8x1xf32>
    %98 = vector.broadcast %90 : vector<8x1xf32> to vector<8x64xf32>
    %99 = arith.subf %82, %98 : vector<8x64xf32>
    %cst_52 = arith.constant 9.99999974E-6 : f32
    %100 = vector.broadcast %cst_52 : f32 to vector<8x1xf32>
    %101 = arith.addf %97, %100 : vector<8x1xf32>
    %102 = math.rsqrt %101 : vector<8x1xf32>
    %103 = vector.broadcast %102 : vector<8x1xf32> to vector<8x64xf32>
    %104 = arith.mulf %99, %103 : vector<8x64xf32>
    %105 = vector.broadcast %84 : vector<1x64xf32> to vector<8x64xf32>
    %106 = arith.mulf %104, %105 : vector<8x64xf32>
    %107 = vector.broadcast %86 : vector<1x64xf32> to vector<8x64xf32>
    %108 = arith.addf %106, %107 : vector<8x64xf32>
    %c0_53 = arith.constant 0 : index
    %c0_54 = arith.constant 0 : index
    %c0_55 = arith.constant 0 : index
    %109 = vector.load %arg15[%c0_53, %c0_54, %c0_55] : memref<3x64x2048xf32, #tpu.memory_space<vmem>>, vector<1x64x2048xf32>
    %110 = vector.shape_cast %109 : vector<1x64x2048xf32> to vector<64x2048xf32>
    %cst_56 = arith.constant dense<0.000000e+00> : vector<8x2048xf32>
    %111 = tpu.matmul %108, %110, %cst_56 {dimension_numbers = #tpu.dot_dimension_numbers<[1], [0], [0], [1], [0, 0, 1, 1], [], []>} : vector<8x64xf32>, vector<64x2048xf32>, vector<8x2048xf32> -> vector<8x2048xf32>
    %c0_57 = arith.constant 0 : index
    %c0_58 = arith.constant 0 : index
    %c0_59 = arith.constant 0 : index
    %112 = vector.load %arg16[%c0_57, %c0_58, %c0_59] : memref<3x1x2048xf32, #tpu.memory_space<vmem>>, vector<1x1x2048xf32>
    %113 = vector.shape_cast %112 : vector<1x1x2048xf32> to vector<1x2048xf32>
    %114 = vector.broadcast %113 : vector<1x2048xf32> to vector<8x2048xf32>
    %115 = arith.addf %111, %114 : vector<8x2048xf32>
    %cst_60 = arith.constant 0.000000e+00 : f32
    %116 = vector.broadcast %cst_60 : f32 to vector<8x2048xf32>
    %117 = arith.maximumf %115, %116 : vector<8x2048xf32>
    %c0_61 = arith.constant 0 : index
    %c0_62 = arith.constant 0 : index
    %c0_63 = arith.constant 0 : index
    %118 = vector.load %arg17[%c0_61, %c0_62, %c0_63] : memref<3x2048x64xf32, #tpu.memory_space<vmem>>, vector<1x2048x64xf32>
    %119 = vector.shape_cast %118 : vector<1x2048x64xf32> to vector<2048x64xf32>
    %cst_64 = arith.constant dense<0.000000e+00> : vector<8x64xf32>
    %120 = tpu.matmul %117, %119, %cst_64 {dimension_numbers = #tpu.dot_dimension_numbers<[1], [0], [0], [1], [0, 0, 1, 1], [], []>} : vector<8x2048xf32>, vector<2048x64xf32>, vector<8x64xf32> -> vector<8x64xf32>
    %c0_65 = arith.constant 0 : index
    %c0_66 = arith.constant 0 : index
    %c0_67 = arith.constant 0 : index
    %121 = vector.load %arg18[%c0_65, %c0_66, %c0_67] : memref<3x1x64xf32, #tpu.memory_space<vmem>>, vector<1x1x64xf32>
    %122 = vector.shape_cast %121 : vector<1x1x64xf32> to vector<1x64xf32>
    %123 = vector.broadcast %122 : vector<1x64xf32> to vector<8x64xf32>
    %124 = arith.addf %120, %123 : vector<8x64xf32>
    %125 = arith.addf %108, %124 : vector<8x64xf32>
    %c0_68 = arith.constant 0 : index
    %c0_69 = arith.constant 0 : index
    %c0_70 = arith.constant 0 : index
    %126 = vector.load %arg19[%c0_68, %c0_69, %c0_70] : memref<3x1x64xf32, #tpu.memory_space<vmem>>, vector<1x1x64xf32>
    %127 = vector.shape_cast %126 : vector<1x1x64xf32> to vector<1x64xf32>
    %c0_71 = arith.constant 0 : index
    %c0_72 = arith.constant 0 : index
    %c0_73 = arith.constant 0 : index
    %128 = vector.load %arg20[%c0_71, %c0_72, %c0_73] : memref<3x1x64xf32, #tpu.memory_space<vmem>>, vector<1x1x64xf32>
    %129 = vector.shape_cast %128 : vector<1x1x64xf32> to vector<1x64xf32>
    %cst_74 = arith.constant dense<0.000000e+00> : vector<8xf32>
    %130 = vector.multi_reduction <add>, %125, %cst_74 [1] : vector<8x64xf32> to vector<8xf32>
    %131 = vector.shape_cast %130 : vector<8xf32> to vector<8x1xf32>
    %cst_75 = arith.constant 6.400000e+01 : f32
    %132 = vector.broadcast %cst_75 : f32 to vector<8x1xf32>
    %133 = arith.divf %131, %132 : vector<8x1xf32>
    %134 = vector.broadcast %133 : vector<8x1xf32> to vector<8x64xf32>
    %135 = arith.subf %125, %134 : vector<8x64xf32>
    %136 = arith.mulf %135, %135 : vector<8x64xf32>
    %cst_76 = arith.constant dense<0.000000e+00> : vector<8xf32>
    %137 = vector.multi_reduction <add>, %136, %cst_76 [1] : vector<8x64xf32> to vector<8xf32>
    %138 = vector.shape_cast %137 : vector<8xf32> to vector<8x1xf32>
    %cst_77 = arith.constant 6.400000e+01 : f32
    %139 = vector.broadcast %cst_77 : f32 to vector<8x1xf32>
    %140 = arith.divf %138, %139 : vector<8x1xf32>
    %141 = vector.broadcast %133 : vector<8x1xf32> to vector<8x64xf32>
    %142 = arith.subf %125, %141 : vector<8x64xf32>
    %cst_78 = arith.constant 9.99999974E-6 : f32
    %143 = vector.broadcast %cst_78 : f32 to vector<8x1xf32>
    %144 = arith.addf %140, %143 : vector<8x1xf32>
    %145 = math.rsqrt %144 : vector<8x1xf32>
    %146 = vector.broadcast %145 : vector<8x1xf32> to vector<8x64xf32>
    %147 = arith.mulf %142, %146 : vector<8x64xf32>
    %148 = vector.broadcast %127 : vector<1x64xf32> to vector<8x64xf32>
    %149 = arith.mulf %147, %148 : vector<8x64xf32>
    %150 = vector.broadcast %129 : vector<1x64xf32> to vector<8x64xf32>
    %151 = arith.addf %149, %150 : vector<8x64xf32>
    %c1 = arith.constant 1 : index
    %c0_79 = arith.constant 0 : index
    %c0_80 = arith.constant 0 : index
    %152 = vector.load %arg5[%c1, %c0_79, %c0_80] : memref<3x64x64xf32, #tpu.memory_space<vmem>>, vector<1x64x64xf32>
    %153 = vector.shape_cast %152 : vector<1x64x64xf32> to vector<64x64xf32>
    %cst_81 = arith.constant dense<0.000000e+00> : vector<8x64xf32>
    %154 = tpu.matmul %151, %153, %cst_81 {dimension_numbers = #tpu.dot_dimension_numbers<[1], [0], [0], [1], [0, 0, 1, 1], [], []>} : vector<8x64xf32>, vector<64x64xf32>, vector<8x64xf32> -> vector<8x64xf32>
    %c1_82 = arith.constant 1 : index
    %c0_83 = arith.constant 0 : index
    %c0_84 = arith.constant 0 : index
    %155 = vector.load %arg6[%c1_82, %c0_83, %c0_84] : memref<3x1x64xf32, #tpu.memory_space<vmem>>, vector<1x1x64xf32>
    %156 = vector.shape_cast %155 : vector<1x1x64xf32> to vector<1x64xf32>
    %157 = vector.broadcast %156 : vector<1x64xf32> to vector<8x64xf32>
    %158 = arith.addf %154, %157 : vector<8x64xf32>
    %c1_85 = arith.constant 1 : index
    %c0_86 = arith.constant 0 : index
    %c0_87 = arith.constant 0 : index
    %159 = vector.load %arg7[%c1_85, %c0_86, %c0_87] : memref<3x64x64xf32, #tpu.memory_space<vmem>>, vector<1x64x64xf32>
    %160 = vector.shape_cast %159 : vector<1x64x64xf32> to vector<64x64xf32>
    %cst_88 = arith.constant dense<0.000000e+00> : vector<8x64xf32>
    %161 = tpu.matmul %151, %160, %cst_88 {dimension_numbers = #tpu.dot_dimension_numbers<[1], [0], [0], [1], [0, 0, 1, 1], [], []>} : vector<8x64xf32>, vector<64x64xf32>, vector<8x64xf32> -> vector<8x64xf32>
    %c1_89 = arith.constant 1 : index
    %c0_90 = arith.constant 0 : index
    %c0_91 = arith.constant 0 : index
    %162 = vector.load %arg8[%c1_89, %c0_90, %c0_91] : memref<3x1x64xf32, #tpu.memory_space<vmem>>, vector<1x1x64xf32>
    %163 = vector.shape_cast %162 : vector<1x1x64xf32> to vector<1x64xf32>
    %164 = vector.broadcast %163 : vector<1x64xf32> to vector<8x64xf32>
    %165 = arith.addf %161, %164 : vector<8x64xf32>
    %c1_92 = arith.constant 1 : index
    %c0_93 = arith.constant 0 : index
    %c0_94 = arith.constant 0 : index
    %166 = vector.load %arg9[%c1_92, %c0_93, %c0_94] : memref<3x64x64xf32, #tpu.memory_space<vmem>>, vector<1x64x64xf32>
    %167 = vector.shape_cast %166 : vector<1x64x64xf32> to vector<64x64xf32>
    %cst_95 = arith.constant dense<0.000000e+00> : vector<8x64xf32>
    %168 = tpu.matmul %151, %167, %cst_95 {dimension_numbers = #tpu.dot_dimension_numbers<[1], [0], [0], [1], [0, 0, 1, 1], [], []>} : vector<8x64xf32>, vector<64x64xf32>, vector<8x64xf32> -> vector<8x64xf32>
    %c1_96 = arith.constant 1 : index
    %c0_97 = arith.constant 0 : index
    %c0_98 = arith.constant 0 : index
    %169 = vector.load %arg10[%c1_96, %c0_97, %c0_98] : memref<3x1x64xf32, #tpu.memory_space<vmem>>, vector<1x1x64xf32>
    %170 = vector.shape_cast %169 : vector<1x1x64xf32> to vector<1x64xf32>
    %171 = vector.broadcast %170 : vector<1x64xf32> to vector<8x64xf32>
    %172 = arith.addf %168, %171 : vector<8x64xf32>
    %173 = vector.shape_cast %158 : vector<8x64xf32> to vector<8x4x16xf32>
    %174 = vector.shape_cast %165 : vector<8x64xf32> to vector<8x4x16xf32>
    %175 = vector.shape_cast %172 : vector<8x64xf32> to vector<8x4x16xf32>
    "tpu.trace_start"() <{level = 10 : i32, message = "qhd,khd->hqk"}> : () -> ()
    %cst_99 = arith.constant dense<0.000000e+00> : vector<4x8x8xf32>
    %176 = tpu.matmul %173, %174, %cst_99 {dimension_numbers = #tpu.dot_dimension_numbers<[2], [2], [0], [0], [0, 1, 0, 0, 1, 0], [1], [1]>} : vector<8x4x16xf32>, vector<8x4x16xf32>, vector<4x8x8xf32> -> vector<4x8x8xf32>
    "tpu.trace_stop"() : () -> ()
    %cst_100 = arith.constant 2.500000e-01 : f32
    %177 = vector.broadcast %cst_100 : f32 to vector<4x8x8xf32>
    %178 = arith.mulf %176, %177 : vector<4x8x8xf32>
    %cst_101 = arith.constant dense<0xFF800000> : vector<4x8xf32>
    %179 = vector.multi_reduction <maximumf>, %178, %cst_101 [2] : vector<4x8x8xf32> to vector<4x8xf32>
    %180 = vector.shape_cast %179 : vector<4x8xf32> to vector<4x8x1xf32>
    %181 = vector.broadcast %180 : vector<4x8x1xf32> to vector<4x8x8xf32>
    %182 = arith.subf %178, %181 : vector<4x8x8xf32>
    %183 = math.exp %182 : vector<4x8x8xf32>
    %cst_102 = arith.constant dense<0.000000e+00> : vector<4x8xf32>
    %184 = vector.multi_reduction <add>, %183, %cst_102 [2] : vector<4x8x8xf32> to vector<4x8xf32>
    %185 = vector.shape_cast %184 : vector<4x8xf32> to vector<4x8x1xf32>
    %186 = tpu.reciprocal %185 {approx = true} : vector<4x8x1xf32> -> vector<4x8x1xf32>
    %187 = vector.broadcast %186 : vector<4x8x1xf32> to vector<4x8x8xf32>
    %188 = arith.mulf %183, %187 : vector<4x8x8xf32>
    "tpu.trace_start"() <{level = 10 : i32, message = "hqk,khd->qhd"}> : () -> ()
    %cst_103 = arith.constant dense<0.000000e+00> : vector<4x16x8xf32>
    %189 = tpu.matmul %175, %188, %cst_103 {dimension_numbers = #tpu.dot_dimension_numbers<[0], [2], [2], [1], [0, 1, 0, 2, 1, 1], [1], [0]>} : vector<8x4x16xf32>, vector<4x8x8xf32>, vector<4x16x8xf32> -> vector<4x16x8xf32>
    %190 = tpu.transpose %189, [2, 0, 1] : vector<4x16x8xf32> -> vector<8x4x16xf32>
    "tpu.trace_stop"() : () -> ()
    %191 = vector.shape_cast %190 : vector<8x4x16xf32> to vector<8x64xf32>
    %c1_104 = arith.constant 1 : index
    %c0_105 = arith.constant 0 : index
    %c0_106 = arith.constant 0 : index
    %192 = vector.load %arg11[%c1_104, %c0_105, %c0_106] : memref<3x64x64xf32, #tpu.memory_space<vmem>>, vector<1x64x64xf32>
    %193 = vector.shape_cast %192 : vector<1x64x64xf32> to vector<64x64xf32>
    %cst_107 = arith.constant dense<0.000000e+00> : vector<8x64xf32>
    %194 = tpu.matmul %191, %193, %cst_107 {dimension_numbers = #tpu.dot_dimension_numbers<[1], [0], [0], [1], [0, 0, 1, 1], [], []>} : vector<8x64xf32>, vector<64x64xf32>, vector<8x64xf32> -> vector<8x64xf32>
    %c1_108 = arith.constant 1 : index
    %c0_109 = arith.constant 0 : index
    %c0_110 = arith.constant 0 : index
    %195 = vector.load %arg12[%c1_108, %c0_109, %c0_110] : memref<3x1x64xf32, #tpu.memory_space<vmem>>, vector<1x1x64xf32>
    %196 = vector.shape_cast %195 : vector<1x1x64xf32> to vector<1x64xf32>
    %197 = vector.broadcast %196 : vector<1x64xf32> to vector<8x64xf32>
    %198 = arith.addf %194, %197 : vector<8x64xf32>
    %199 = arith.addf %151, %198 : vector<8x64xf32>
    %c1_111 = arith.constant 1 : index
    %c0_112 = arith.constant 0 : index
    %c0_113 = arith.constant 0 : index
    %200 = vector.load %arg13[%c1_111, %c0_112, %c0_113] : memref<3x1x64xf32, #tpu.memory_space<vmem>>, vector<1x1x64xf32>
    %201 = vector.shape_cast %200 : vector<1x1x64xf32> to vector<1x64xf32>
    %c1_114 = arith.constant 1 : index
    %c0_115 = arith.constant 0 : index
    %c0_116 = arith.constant 0 : index
    %202 = vector.load %arg14[%c1_114, %c0_115, %c0_116] : memref<3x1x64xf32, #tpu.memory_space<vmem>>, vector<1x1x64xf32>
    %203 = vector.shape_cast %202 : vector<1x1x64xf32> to vector<1x64xf32>
    %cst_117 = arith.constant dense<0.000000e+00> : vector<8xf32>
    %204 = vector.multi_reduction <add>, %199, %cst_117 [1] : vector<8x64xf32> to vector<8xf32>
    %205 = vector.shape_cast %204 : vector<8xf32> to vector<8x1xf32>
    %cst_118 = arith.constant 6.400000e+01 : f32
    %206 = vector.broadcast %cst_118 : f32 to vector<8x1xf32>
    %207 = arith.divf %205, %206 : vector<8x1xf32>
    %208 = vector.broadcast %207 : vector<8x1xf32> to vector<8x64xf32>
    %209 = arith.subf %199, %208 : vector<8x64xf32>
    %210 = arith.mulf %209, %209 : vector<8x64xf32>
    %cst_119 = arith.constant dense<0.000000e+00> : vector<8xf32>
    %211 = vector.multi_reduction <add>, %210, %cst_119 [1] : vector<8x64xf32> to vector<8xf32>
    %212 = vector.shape_cast %211 : vector<8xf32> to vector<8x1xf32>
    %cst_120 = arith.constant 6.400000e+01 : f32
    %213 = vector.broadcast %cst_120 : f32 to vector<8x1xf32>
    %214 = arith.divf %212, %213 : vector<8x1xf32>
    %215 = vector.broadcast %207 : vector<8x1xf32> to vector<8x64xf32>
    %216 = arith.subf %199, %215 : vector<8x64xf32>
    %cst_121 = arith.constant 9.99999974E-6 : f32
    %217 = vector.broadcast %cst_121 : f32 to vector<8x1xf32>
    %218 = arith.addf %214, %217 : vector<8x1xf32>
    %219 = math.rsqrt %218 : vector<8x1xf32>
    %220 = vector.broadcast %219 : vector<8x1xf32> to vector<8x64xf32>
    %221 = arith.mulf %216, %220 : vector<8x64xf32>
    %222 = vector.broadcast %201 : vector<1x64xf32> to vector<8x64xf32>
    %223 = arith.mulf %221, %222 : vector<8x64xf32>
    %224 = vector.broadcast %203 : vector<1x64xf32> to vector<8x64xf32>
    %225 = arith.addf %223, %224 : vector<8x64xf32>
    %c1_122 = arith.constant 1 : index
    %c0_123 = arith.constant 0 : index
    %c0_124 = arith.constant 0 : index
    %226 = vector.load %arg15[%c1_122, %c0_123, %c0_124] : memref<3x64x2048xf32, #tpu.memory_space<vmem>>, vector<1x64x2048xf32>
    %227 = vector.shape_cast %226 : vector<1x64x2048xf32> to vector<64x2048xf32>
    %cst_125 = arith.constant dense<0.000000e+00> : vector<8x2048xf32>
    %228 = tpu.matmul %225, %227, %cst_125 {dimension_numbers = #tpu.dot_dimension_numbers<[1], [0], [0], [1], [0, 0, 1, 1], [], []>} : vector<8x64xf32>, vector<64x2048xf32>, vector<8x2048xf32> -> vector<8x2048xf32>
    %c1_126 = arith.constant 1 : index
    %c0_127 = arith.constant 0 : index
    %c0_128 = arith.constant 0 : index
    %229 = vector.load %arg16[%c1_126, %c0_127, %c0_128] : memref<3x1x2048xf32, #tpu.memory_space<vmem>>, vector<1x1x2048xf32>
    %230 = vector.shape_cast %229 : vector<1x1x2048xf32> to vector<1x2048xf32>
    %231 = vector.broadcast %230 : vector<1x2048xf32> to vector<8x2048xf32>
    %232 = arith.addf %228, %231 : vector<8x2048xf32>
    %cst_129 = arith.constant 0.000000e+00 : f32
    %233 = vector.broadcast %cst_129 : f32 to vector<8x2048xf32>
    %234 = arith.maximumf %232, %233 : vector<8x2048xf32>
    %c1_130 = arith.constant 1 : index
    %c0_131 = arith.constant 0 : index
    %c0_132 = arith.constant 0 : index
    %235 = vector.load %arg17[%c1_130, %c0_131, %c0_132] : memref<3x2048x64xf32, #tpu.memory_space<vmem>>, vector<1x2048x64xf32>
    %236 = vector.shape_cast %235 : vector<1x2048x64xf32> to vector<2048x64xf32>
    %cst_133 = arith.constant dense<0.000000e+00> : vector<8x64xf32>
    %237 = tpu.matmul %234, %236, %cst_133 {dimension_numbers = #tpu.dot_dimension_numbers<[1], [0], [0], [1], [0, 0, 1, 1], [], []>} : vector<8x2048xf32>, vector<2048x64xf32>, vector<8x64xf32> -> vector<8x64xf32>
    %c1_134 = arith.constant 1 : index
    %c0_135 = arith.constant 0 : index
    %c0_136 = arith.constant 0 : index
    %238 = vector.load %arg18[%c1_134, %c0_135, %c0_136] : memref<3x1x64xf32, #tpu.memory_space<vmem>>, vector<1x1x64xf32>
    %239 = vector.shape_cast %238 : vector<1x1x64xf32> to vector<1x64xf32>
    %240 = vector.broadcast %239 : vector<1x64xf32> to vector<8x64xf32>
    %241 = arith.addf %237, %240 : vector<8x64xf32>
    %242 = arith.addf %225, %241 : vector<8x64xf32>
    %c1_137 = arith.constant 1 : index
    %c0_138 = arith.constant 0 : index
    %c0_139 = arith.constant 0 : index
    %243 = vector.load %arg19[%c1_137, %c0_138, %c0_139] : memref<3x1x64xf32, #tpu.memory_space<vmem>>, vector<1x1x64xf32>
    %244 = vector.shape_cast %243 : vector<1x1x64xf32> to vector<1x64xf32>
    %c1_140 = arith.constant 1 : index
    %c0_141 = arith.constant 0 : index
    %c0_142 = arith.constant 0 : index
    %245 = vector.load %arg20[%c1_140, %c0_141, %c0_142] : memref<3x1x64xf32, #tpu.memory_space<vmem>>, vector<1x1x64xf32>
    %246 = vector.shape_cast %245 : vector<1x1x64xf32> to vector<1x64xf32>
    %cst_143 = arith.constant dense<0.000000e+00> : vector<8xf32>
    %247 = vector.multi_reduction <add>, %242, %cst_143 [1] : vector<8x64xf32> to vector<8xf32>
    %248 = vector.shape_cast %247 : vector<8xf32> to vector<8x1xf32>
    %cst_144 = arith.constant 6.400000e+01 : f32
    %249 = vector.broadcast %cst_144 : f32 to vector<8x1xf32>
    %250 = arith.divf %248, %249 : vector<8x1xf32>
    %251 = vector.broadcast %250 : vector<8x1xf32> to vector<8x64xf32>
    %252 = arith.subf %242, %251 : vector<8x64xf32>
    %253 = arith.mulf %252, %252 : vector<8x64xf32>
    %cst_145 = arith.constant dense<0.000000e+00> : vector<8xf32>
    %254 = vector.multi_reduction <add>, %253, %cst_145 [1] : vector<8x64xf32> to vector<8xf32>
    %255 = vector.shape_cast %254 : vector<8xf32> to vector<8x1xf32>
    %cst_146 = arith.constant 6.400000e+01 : f32
    %256 = vector.broadcast %cst_146 : f32 to vector<8x1xf32>
    %257 = arith.divf %255, %256 : vector<8x1xf32>
    %258 = vector.broadcast %250 : vector<8x1xf32> to vector<8x64xf32>
    %259 = arith.subf %242, %258 : vector<8x64xf32>
    %cst_147 = arith.constant 9.99999974E-6 : f32
    %260 = vector.broadcast %cst_147 : f32 to vector<8x1xf32>
    %261 = arith.addf %257, %260 : vector<8x1xf32>
    %262 = math.rsqrt %261 : vector<8x1xf32>
    %263 = vector.broadcast %262 : vector<8x1xf32> to vector<8x64xf32>
    %264 = arith.mulf %259, %263 : vector<8x64xf32>
    %265 = vector.broadcast %244 : vector<1x64xf32> to vector<8x64xf32>
    %266 = arith.mulf %264, %265 : vector<8x64xf32>
    %267 = vector.broadcast %246 : vector<1x64xf32> to vector<8x64xf32>
    %268 = arith.addf %266, %267 : vector<8x64xf32>
    %c2 = arith.constant 2 : index
    %c0_148 = arith.constant 0 : index
    %c0_149 = arith.constant 0 : index
    %269 = vector.load %arg5[%c2, %c0_148, %c0_149] : memref<3x64x64xf32, #tpu.memory_space<vmem>>, vector<1x64x64xf32>
    %270 = vector.shape_cast %269 : vector<1x64x64xf32> to vector<64x64xf32>
    %cst_150 = arith.constant dense<0.000000e+00> : vector<8x64xf32>
    %271 = tpu.matmul %268, %270, %cst_150 {dimension_numbers = #tpu.dot_dimension_numbers<[1], [0], [0], [1], [0, 0, 1, 1], [], []>} : vector<8x64xf32>, vector<64x64xf32>, vector<8x64xf32> -> vector<8x64xf32>
    %c2_151 = arith.constant 2 : index
    %c0_152 = arith.constant 0 : index
    %c0_153 = arith.constant 0 : index
    %272 = vector.load %arg6[%c2_151, %c0_152, %c0_153] : memref<3x1x64xf32, #tpu.memory_space<vmem>>, vector<1x1x64xf32>
    %273 = vector.shape_cast %272 : vector<1x1x64xf32> to vector<1x64xf32>
    %274 = vector.broadcast %273 : vector<1x64xf32> to vector<8x64xf32>
    %275 = arith.addf %271, %274 : vector<8x64xf32>
    %c2_154 = arith.constant 2 : index
    %c0_155 = arith.constant 0 : index
    %c0_156 = arith.constant 0 : index
    %276 = vector.load %arg7[%c2_154, %c0_155, %c0_156] : memref<3x64x64xf32, #tpu.memory_space<vmem>>, vector<1x64x64xf32>
    %277 = vector.shape_cast %276 : vector<1x64x64xf32> to vector<64x64xf32>
    %cst_157 = arith.constant dense<0.000000e+00> : vector<8x64xf32>
    %278 = tpu.matmul %268, %277, %cst_157 {dimension_numbers = #tpu.dot_dimension_numbers<[1], [0], [0], [1], [0, 0, 1, 1], [], []>} : vector<8x64xf32>, vector<64x64xf32>, vector<8x64xf32> -> vector<8x64xf32>
    %c2_158 = arith.constant 2 : index
    %c0_159 = arith.constant 0 : index
    %c0_160 = arith.constant 0 : index
    %279 = vector.load %arg8[%c2_158, %c0_159, %c0_160] : memref<3x1x64xf32, #tpu.memory_space<vmem>>, vector<1x1x64xf32>
    %280 = vector.shape_cast %279 : vector<1x1x64xf32> to vector<1x64xf32>
    %281 = vector.broadcast %280 : vector<1x64xf32> to vector<8x64xf32>
    %282 = arith.addf %278, %281 : vector<8x64xf32>
    %c2_161 = arith.constant 2 : index
    %c0_162 = arith.constant 0 : index
    %c0_163 = arith.constant 0 : index
    %283 = vector.load %arg9[%c2_161, %c0_162, %c0_163] : memref<3x64x64xf32, #tpu.memory_space<vmem>>, vector<1x64x64xf32>
    %284 = vector.shape_cast %283 : vector<1x64x64xf32> to vector<64x64xf32>
    %cst_164 = arith.constant dense<0.000000e+00> : vector<8x64xf32>
    %285 = tpu.matmul %268, %284, %cst_164 {dimension_numbers = #tpu.dot_dimension_numbers<[1], [0], [0], [1], [0, 0, 1, 1], [], []>} : vector<8x64xf32>, vector<64x64xf32>, vector<8x64xf32> -> vector<8x64xf32>
    %c2_165 = arith.constant 2 : index
    %c0_166 = arith.constant 0 : index
    %c0_167 = arith.constant 0 : index
    %286 = vector.load %arg10[%c2_165, %c0_166, %c0_167] : memref<3x1x64xf32, #tpu.memory_space<vmem>>, vector<1x1x64xf32>
    %287 = vector.shape_cast %286 : vector<1x1x64xf32> to vector<1x64xf32>
    %288 = vector.broadcast %287 : vector<1x64xf32> to vector<8x64xf32>
    %289 = arith.addf %285, %288 : vector<8x64xf32>
    %290 = vector.shape_cast %275 : vector<8x64xf32> to vector<8x4x16xf32>
    %291 = vector.shape_cast %282 : vector<8x64xf32> to vector<8x4x16xf32>
    %292 = vector.shape_cast %289 : vector<8x64xf32> to vector<8x4x16xf32>
    "tpu.trace_start"() <{level = 10 : i32, message = "qhd,khd->hqk"}> : () -> ()
    %cst_168 = arith.constant dense<0.000000e+00> : vector<4x8x8xf32>
    %293 = tpu.matmul %290, %291, %cst_168 {dimension_numbers = #tpu.dot_dimension_numbers<[2], [2], [0], [0], [0, 1, 0, 0, 1, 0], [1], [1]>} : vector<8x4x16xf32>, vector<8x4x16xf32>, vector<4x8x8xf32> -> vector<4x8x8xf32>
    "tpu.trace_stop"() : () -> ()
    %cst_169 = arith.constant 2.500000e-01 : f32
    %294 = vector.broadcast %cst_169 : f32 to vector<4x8x8xf32>
    %295 = arith.mulf %293, %294 : vector<4x8x8xf32>
    %cst_170 = arith.constant dense<0xFF800000> : vector<4x8xf32>
    %296 = vector.multi_reduction <maximumf>, %295, %cst_170 [2] : vector<4x8x8xf32> to vector<4x8xf32>
    %297 = vector.shape_cast %296 : vector<4x8xf32> to vector<4x8x1xf32>
    %298 = vector.broadcast %297 : vector<4x8x1xf32> to vector<4x8x8xf32>
    %299 = arith.subf %295, %298 : vector<4x8x8xf32>
    %300 = math.exp %299 : vector<4x8x8xf32>
    %cst_171 = arith.constant dense<0.000000e+00> : vector<4x8xf32>
    %301 = vector.multi_reduction <add>, %300, %cst_171 [2] : vector<4x8x8xf32> to vector<4x8xf32>
    %302 = vector.shape_cast %301 : vector<4x8xf32> to vector<4x8x1xf32>
    %303 = tpu.reciprocal %302 {approx = true} : vector<4x8x1xf32> -> vector<4x8x1xf32>
    %304 = vector.broadcast %303 : vector<4x8x1xf32> to vector<4x8x8xf32>
    %305 = arith.mulf %300, %304 : vector<4x8x8xf32>
    "tpu.trace_start"() <{level = 10 : i32, message = "hqk,khd->qhd"}> : () -> ()
    %cst_172 = arith.constant dense<0.000000e+00> : vector<4x16x8xf32>
    %306 = tpu.matmul %292, %305, %cst_172 {dimension_numbers = #tpu.dot_dimension_numbers<[0], [2], [2], [1], [0, 1, 0, 2, 1, 1], [1], [0]>} : vector<8x4x16xf32>, vector<4x8x8xf32>, vector<4x16x8xf32> -> vector<4x16x8xf32>
    %307 = tpu.transpose %306, [2, 0, 1] : vector<4x16x8xf32> -> vector<8x4x16xf32>
    "tpu.trace_stop"() : () -> ()
    %308 = vector.shape_cast %307 : vector<8x4x16xf32> to vector<8x64xf32>
    %c2_173 = arith.constant 2 : index
    %c0_174 = arith.constant 0 : index
    %c0_175 = arith.constant 0 : index
    %309 = vector.load %arg11[%c2_173, %c0_174, %c0_175] : memref<3x64x64xf32, #tpu.memory_space<vmem>>, vector<1x64x64xf32>
    %310 = vector.shape_cast %309 : vector<1x64x64xf32> to vector<64x64xf32>
    %cst_176 = arith.constant dense<0.000000e+00> : vector<8x64xf32>
    %311 = tpu.matmul %308, %310, %cst_176 {dimension_numbers = #tpu.dot_dimension_numbers<[1], [0], [0], [1], [0, 0, 1, 1], [], []>} : vector<8x64xf32>, vector<64x64xf32>, vector<8x64xf32> -> vector<8x64xf32>
    %c2_177 = arith.constant 2 : index
    %c0_178 = arith.constant 0 : index
    %c0_179 = arith.constant 0 : index
    %312 = vector.load %arg12[%c2_177, %c0_178, %c0_179] : memref<3x1x64xf32, #tpu.memory_space<vmem>>, vector<1x1x64xf32>
    %313 = vector.shape_cast %312 : vector<1x1x64xf32> to vector<1x64xf32>
    %314 = vector.broadcast %313 : vector<1x64xf32> to vector<8x64xf32>
    %315 = arith.addf %311, %314 : vector<8x64xf32>
    %316 = arith.addf %268, %315 : vector<8x64xf32>
    %c2_180 = arith.constant 2 : index
    %c0_181 = arith.constant 0 : index
    %c0_182 = arith.constant 0 : index
    %317 = vector.load %arg13[%c2_180, %c0_181, %c0_182] : memref<3x1x64xf32, #tpu.memory_space<vmem>>, vector<1x1x64xf32>
    %318 = vector.shape_cast %317 : vector<1x1x64xf32> to vector<1x64xf32>
    %c2_183 = arith.constant 2 : index
    %c0_184 = arith.constant 0 : index
    %c0_185 = arith.constant 0 : index
    %319 = vector.load %arg14[%c2_183, %c0_184, %c0_185] : memref<3x1x64xf32, #tpu.memory_space<vmem>>, vector<1x1x64xf32>
    %320 = vector.shape_cast %319 : vector<1x1x64xf32> to vector<1x64xf32>
    %cst_186 = arith.constant dense<0.000000e+00> : vector<8xf32>
    %321 = vector.multi_reduction <add>, %316, %cst_186 [1] : vector<8x64xf32> to vector<8xf32>
    %322 = vector.shape_cast %321 : vector<8xf32> to vector<8x1xf32>
    %cst_187 = arith.constant 6.400000e+01 : f32
    %323 = vector.broadcast %cst_187 : f32 to vector<8x1xf32>
    %324 = arith.divf %322, %323 : vector<8x1xf32>
    %325 = vector.broadcast %324 : vector<8x1xf32> to vector<8x64xf32>
    %326 = arith.subf %316, %325 : vector<8x64xf32>
    %327 = arith.mulf %326, %326 : vector<8x64xf32>
    %cst_188 = arith.constant dense<0.000000e+00> : vector<8xf32>
    %328 = vector.multi_reduction <add>, %327, %cst_188 [1] : vector<8x64xf32> to vector<8xf32>
    %329 = vector.shape_cast %328 : vector<8xf32> to vector<8x1xf32>
    %cst_189 = arith.constant 6.400000e+01 : f32
    %330 = vector.broadcast %cst_189 : f32 to vector<8x1xf32>
    %331 = arith.divf %329, %330 : vector<8x1xf32>
    %332 = vector.broadcast %324 : vector<8x1xf32> to vector<8x64xf32>
    %333 = arith.subf %316, %332 : vector<8x64xf32>
    %cst_190 = arith.constant 9.99999974E-6 : f32
    %334 = vector.broadcast %cst_190 : f32 to vector<8x1xf32>
    %335 = arith.addf %331, %334 : vector<8x1xf32>
    %336 = math.rsqrt %335 : vector<8x1xf32>
    %337 = vector.broadcast %336 : vector<8x1xf32> to vector<8x64xf32>
    %338 = arith.mulf %333, %337 : vector<8x64xf32>
    %339 = vector.broadcast %318 : vector<1x64xf32> to vector<8x64xf32>
    %340 = arith.mulf %338, %339 : vector<8x64xf32>
    %341 = vector.broadcast %320 : vector<1x64xf32> to vector<8x64xf32>
    %342 = arith.addf %340, %341 : vector<8x64xf32>
    %c2_191 = arith.constant 2 : index
    %c0_192 = arith.constant 0 : index
    %c0_193 = arith.constant 0 : index
    %343 = vector.load %arg15[%c2_191, %c0_192, %c0_193] : memref<3x64x2048xf32, #tpu.memory_space<vmem>>, vector<1x64x2048xf32>
    %344 = vector.shape_cast %343 : vector<1x64x2048xf32> to vector<64x2048xf32>
    %cst_194 = arith.constant dense<0.000000e+00> : vector<8x2048xf32>
    %345 = tpu.matmul %342, %344, %cst_194 {dimension_numbers = #tpu.dot_dimension_numbers<[1], [0], [0], [1], [0, 0, 1, 1], [], []>} : vector<8x64xf32>, vector<64x2048xf32>, vector<8x2048xf32> -> vector<8x2048xf32>
    %c2_195 = arith.constant 2 : index
    %c0_196 = arith.constant 0 : index
    %c0_197 = arith.constant 0 : index
    %346 = vector.load %arg16[%c2_195, %c0_196, %c0_197] : memref<3x1x2048xf32, #tpu.memory_space<vmem>>, vector<1x1x2048xf32>
    %347 = vector.shape_cast %346 : vector<1x1x2048xf32> to vector<1x2048xf32>
    %348 = vector.broadcast %347 : vector<1x2048xf32> to vector<8x2048xf32>
    %349 = arith.addf %345, %348 : vector<8x2048xf32>
    %cst_198 = arith.constant 0.000000e+00 : f32
    %350 = vector.broadcast %cst_198 : f32 to vector<8x2048xf32>
    %351 = arith.maximumf %349, %350 : vector<8x2048xf32>
    %c2_199 = arith.constant 2 : index
    %c0_200 = arith.constant 0 : index
    %c0_201 = arith.constant 0 : index
    %352 = vector.load %arg17[%c2_199, %c0_200, %c0_201] : memref<3x2048x64xf32, #tpu.memory_space<vmem>>, vector<1x2048x64xf32>
    %353 = vector.shape_cast %352 : vector<1x2048x64xf32> to vector<2048x64xf32>
    %cst_202 = arith.constant dense<0.000000e+00> : vector<8x64xf32>
    %354 = tpu.matmul %351, %353, %cst_202 {dimension_numbers = #tpu.dot_dimension_numbers<[1], [0], [0], [1], [0, 0, 1, 1], [], []>} : vector<8x2048xf32>, vector<2048x64xf32>, vector<8x64xf32> -> vector<8x64xf32>
    %c2_203 = arith.constant 2 : index
    %c0_204 = arith.constant 0 : index
    %c0_205 = arith.constant 0 : index
    %355 = vector.load %arg18[%c2_203, %c0_204, %c0_205] : memref<3x1x64xf32, #tpu.memory_space<vmem>>, vector<1x1x64xf32>
    %356 = vector.shape_cast %355 : vector<1x1x64xf32> to vector<1x64xf32>
    %357 = vector.broadcast %356 : vector<1x64xf32> to vector<8x64xf32>
    %358 = arith.addf %354, %357 : vector<8x64xf32>
    %359 = arith.addf %342, %358 : vector<8x64xf32>
    %c2_206 = arith.constant 2 : index
    %c0_207 = arith.constant 0 : index
    %c0_208 = arith.constant 0 : index
    %360 = vector.load %arg19[%c2_206, %c0_207, %c0_208] : memref<3x1x64xf32, #tpu.memory_space<vmem>>, vector<1x1x64xf32>
    %361 = vector.shape_cast %360 : vector<1x1x64xf32> to vector<1x64xf32>
    %c2_209 = arith.constant 2 : index
    %c0_210 = arith.constant 0 : index
    %c0_211 = arith.constant 0 : index
    %362 = vector.load %arg20[%c2_209, %c0_210, %c0_211] : memref<3x1x64xf32, #tpu.memory_space<vmem>>, vector<1x1x64xf32>
    %363 = vector.shape_cast %362 : vector<1x1x64xf32> to vector<1x64xf32>
    %cst_212 = arith.constant dense<0.000000e+00> : vector<8xf32>
    %364 = vector.multi_reduction <add>, %359, %cst_212 [1] : vector<8x64xf32> to vector<8xf32>
    %365 = vector.shape_cast %364 : vector<8xf32> to vector<8x1xf32>
    %cst_213 = arith.constant 6.400000e+01 : f32
    %366 = vector.broadcast %cst_213 : f32 to vector<8x1xf32>
    %367 = arith.divf %365, %366 : vector<8x1xf32>
    %368 = vector.broadcast %367 : vector<8x1xf32> to vector<8x64xf32>
    %369 = arith.subf %359, %368 : vector<8x64xf32>
    %370 = arith.mulf %369, %369 : vector<8x64xf32>
    %cst_214 = arith.constant dense<0.000000e+00> : vector<8xf32>
    %371 = vector.multi_reduction <add>, %370, %cst_214 [1] : vector<8x64xf32> to vector<8xf32>
    %372 = vector.shape_cast %371 : vector<8xf32> to vector<8x1xf32>
    %cst_215 = arith.constant 6.400000e+01 : f32
    %373 = vector.broadcast %cst_215 : f32 to vector<8x1xf32>
    %374 = arith.divf %372, %373 : vector<8x1xf32>
    %375 = vector.broadcast %367 : vector<8x1xf32> to vector<8x64xf32>
    %376 = arith.subf %359, %375 : vector<8x64xf32>
    %cst_216 = arith.constant 9.99999974E-6 : f32
    %377 = vector.broadcast %cst_216 : f32 to vector<8x1xf32>
    %378 = arith.addf %374, %377 : vector<8x1xf32>
    %379 = math.rsqrt %378 : vector<8x1xf32>
    %380 = vector.broadcast %379 : vector<8x1xf32> to vector<8x64xf32>
    %381 = arith.mulf %376, %380 : vector<8x64xf32>
    %382 = vector.broadcast %361 : vector<1x64xf32> to vector<8x64xf32>
    %383 = arith.mulf %381, %382 : vector<8x64xf32>
    %384 = vector.broadcast %363 : vector<1x64xf32> to vector<8x64xf32>
    %385 = arith.addf %383, %384 : vector<8x64xf32>
    %386 = vector.extract_strided_slice %385 {offsets = [7, 0], sizes = [1, 64], strides = [1, 1]} : vector<8x64xf32> to vector<1x64xf32>
    %c0_217 = arith.constant 0 : index
    %c0_218 = arith.constant 0 : index
    %387 = vector.load %arg21[%c0_217, %c0_218] : memref<1x64xf32, #tpu.memory_space<vmem>>, vector<1x64xf32>
    %388 = arith.mulf %386, %387 : vector<1x64xf32>
    %cst_219 = arith.constant dense<0.000000e+00> : vector<1xf32>
    %389 = vector.multi_reduction <add>, %388, %cst_219 [1] : vector<1x64xf32> to vector<1xf32>
    %390 = vector.shape_cast %389 : vector<1xf32> to vector<1x1xf32>
    %c0_220 = arith.constant 0 : index
    %c0_221 = arith.constant 0 : index
    %391 = vector.load %arg22[%c0_220, %c0_221] : memref<1x1xf32, #tpu.memory_space<vmem>>, vector<1x1xf32>
    %392 = arith.addf %390, %391 : vector<1x1xf32>
    %c0_222 = arith.constant 0 : index
    %c0_223 = arith.constant 0 : index
    %c0_224 = arith.constant 0 : index
    %393 = vector.load %arg23[%c0_222, %c0_223, %c0_224] : memref<1x1x1xf32, #tpu.memory_space<vmem>>, vector<1x1x1xf32>
    %394 = vector.shape_cast %393 : vector<1x1x1xf32> to vector<1x1xf32>
    %395 = vector.shape_cast %392 : vector<1x1xf32> to vector<1x1x1xf32>
    tpu.vector_store %arg23[%c0_222, %c0_223, %c0_224], %395 {strides = array<i32>} : memref<1x1x1xf32, #tpu.memory_space<vmem>>, vector<1x1x1xf32>,
    return
  }
  func.func @transform_0(%arg0: i32) -> (i32, i32, i32) {
    %c0_i32 = arith.constant 0 : i32
    %c0_i32_0 = arith.constant 0 : i32
    %c0_i32_1 = arith.constant 0 : i32
    return %arg0, %c0_i32, %c0_i32_0 : i32, i32, i32
  }
  func.func @transform_1(%arg0: i32) -> (i32, i32) {
    %c0_i32 = arith.constant 0 : i32
    %c0_i32_0 = arith.constant 0 : i32
    %c0_i32_1 = arith.constant 0 : i32
    return %c0_i32, %c0_i32_0 : i32, i32
  }
  func.func @transform_2(%arg0: i32) -> (i32, i32) {
    %c0_i32 = arith.constant 0 : i32
    %c0_i32_0 = arith.constant 0 : i32
    %c0_i32_1 = arith.constant 0 : i32
    return %c0_i32, %c0_i32_0 : i32, i32
  }
  func.func @transform_3(%arg0: i32) -> (i32, i32) {
    %c0_i32 = arith.constant 0 : i32
    %c0_i32_0 = arith.constant 0 : i32
    %c0_i32_1 = arith.constant 0 : i32
    return %c0_i32, %c0_i32_0 : i32, i32
  }
  func.func @transform_4(%arg0: i32) -> (i32, i32, i32) {
    %c0_i32 = arith.constant 0 : i32
    %c0_i32_0 = arith.constant 0 : i32
    %c0_i32_1 = arith.constant 0 : i32
    %c0_i32_2 = arith.constant 0 : i32
    return %c0_i32, %c0_i32_0, %c0_i32_1 : i32, i32, i32
  }
  func.func @transform_5(%arg0: i32) -> (i32, i32, i32) {
    %c0_i32 = arith.constant 0 : i32
    %c0_i32_0 = arith.constant 0 : i32
    %c0_i32_1 = arith.constant 0 : i32
    %c0_i32_2 = arith.constant 0 : i32
    return %c0_i32, %c0_i32_0, %c0_i32_1 : i32, i32, i32
  }
  func.func @transform_6(%arg0: i32) -> (i32, i32, i32) {
    %c0_i32 = arith.constant 0 : i32
    %c0_i32_0 = arith.constant 0 : i32
    %c0_i32_1 = arith.constant 0 : i32
    %c0_i32_2 = arith.constant 0 : i32
    return %c0_i32, %c0_i32_0, %c0_i32_1 : i32, i32, i32
  }
  func.func @transform_7(%arg0: i32) -> (i32, i32, i32) {
    %c0_i32 = arith.constant 0 : i32
    %c0_i32_0 = arith.constant 0 : i32
    %c0_i32_1 = arith.constant 0 : i32
    %c0_i32_2 = arith.constant 0 : i32
    return %c0_i32, %c0_i32_0, %c0_i32_1 : i32, i32, i32
  }
  func.func @transform_8(%arg0: i32) -> (i32, i32, i32) {
    %c0_i32 = arith.constant 0 : i32
    %c0_i32_0 = arith.constant 0 : i32
    %c0_i32_1 = arith.constant 0 : i32
    %c0_i32_2 = arith.constant 0 : i32
    return %c0_i32, %c0_i32_0, %c0_i32_1 : i32, i32, i32
  }
  func.func @transform_9(%arg0: i32) -> (i32, i32, i32) {
    %c0_i32 = arith.constant 0 : i32
    %c0_i32_0 = arith.constant 0 : i32
    %c0_i32_1 = arith.constant 0 : i32
    %c0_i32_2 = arith.constant 0 : i32
    return %c0_i32, %c0_i32_0, %c0_i32_1 : i32, i32, i32
  }
  func.func @transform_10(%arg0: i32) -> (i32, i32, i32) {
    %c0_i32 = arith.constant 0 : i32
    %c0_i32_0 = arith.constant 0 : i32
    %c0_i32_1 = arith.constant 0 : i32
    %c0_i32_2 = arith.constant 0 : i32
    return %c0_i32, %c0_i32_0, %c0_i32_1 : i32, i32, i32
  }
  func.func @transform_11(%arg0: i32) -> (i32, i32, i32) {
    %c0_i32 = arith.constant 0 : i32
    %c0_i32_0 = arith.constant 0 : i32
    %c0_i32_1 = arith.constant 0 : i32
    %c0_i32_2 = arith.constant 0 : i32
    return %c0_i32, %c0_i32_0, %c0_i32_1 : i32, i32, i32
  }
  func.func @transform_12(%arg0: i32) -> (i32, i32, i32) {
    %c0_i32 = arith.constant 0 : i32
    %c0_i32_0 = arith.constant 0 : i32
    %c0_i32_1 = arith.constant 0 : i32
    %c0_i32_2 = arith.constant 0 : i32
    return %c0_i32, %c0_i32_0, %c0_i32_1 : i32, i32, i32
  }
  func.func @transform_13(%arg0: i32) -> (i32, i32, i32) {
    %c0_i32 = arith.constant 0 : i32
    %c0_i32_0 = arith.constant 0 : i32
    %c0_i32_1 = arith.constant 0 : i32
    %c0_i32_2 = arith.constant 0 : i32
    return %c0_i32, %c0_i32_0, %c0_i32_1 : i32, i32, i32
  }
  func.func @transform_14(%arg0: i32) -> (i32, i32, i32) {
    %c0_i32 = arith.constant 0 : i32
    %c0_i32_0 = arith.constant 0 : i32
    %c0_i32_1 = arith.constant 0 : i32
    %c0_i32_2 = arith.constant 0 : i32
    return %c0_i32, %c0_i32_0, %c0_i32_1 : i32, i32, i32
  }
  func.func @transform_15(%arg0: i32) -> (i32, i32, i32) {
    %c0_i32 = arith.constant 0 : i32
    %c0_i32_0 = arith.constant 0 : i32
    %c0_i32_1 = arith.constant 0 : i32
    %c0_i32_2 = arith.constant 0 : i32
    return %c0_i32, %c0_i32_0, %c0_i32_1 : i32, i32, i32
  }
  func.func @transform_16(%arg0: i32) -> (i32, i32, i32) {
    %c0_i32 = arith.constant 0 : i32
    %c0_i32_0 = arith.constant 0 : i32
    %c0_i32_1 = arith.constant 0 : i32
    %c0_i32_2 = arith.constant 0 : i32
    return %c0_i32, %c0_i32_0, %c0_i32_1 : i32, i32, i32
  }
  func.func @transform_17(%arg0: i32) -> (i32, i32, i32) {
    %c0_i32 = arith.constant 0 : i32
    %c0_i32_0 = arith.constant 0 : i32
    %c0_i32_1 = arith.constant 0 : i32
    %c0_i32_2 = arith.constant 0 : i32
    return %c0_i32, %c0_i32_0, %c0_i32_1 : i32, i32, i32
  }
  func.func @transform_18(%arg0: i32) -> (i32, i32, i32) {
    %c0_i32 = arith.constant 0 : i32
    %c0_i32_0 = arith.constant 0 : i32
    %c0_i32_1 = arith.constant 0 : i32
    %c0_i32_2 = arith.constant 0 : i32
    return %c0_i32, %c0_i32_0, %c0_i32_1 : i32, i32, i32
  }
  func.func @transform_19(%arg0: i32) -> (i32, i32, i32) {
    %c0_i32 = arith.constant 0 : i32
    %c0_i32_0 = arith.constant 0 : i32
    %c0_i32_1 = arith.constant 0 : i32
    %c0_i32_2 = arith.constant 0 : i32
    return %c0_i32, %c0_i32_0, %c0_i32_1 : i32, i32, i32
  }
  func.func @transform_20(%arg0: i32) -> (i32, i32) {
    %c0_i32 = arith.constant 0 : i32
    %c0_i32_0 = arith.constant 0 : i32
    %c0_i32_1 = arith.constant 0 : i32
    return %c0_i32, %c0_i32_0 : i32, i32
  }
  func.func @transform_21(%arg0: i32) -> (i32, i32) {
    %c0_i32 = arith.constant 0 : i32
    %c0_i32_0 = arith.constant 0 : i32
    %c0_i32_1 = arith.constant 0 : i32
    return %c0_i32, %c0_i32_0 : i32, i32
  }
  func.func @transform_22(%arg0: i32) -> (i32, i32, i32) {
    %c0_i32 = arith.constant 0 : i32
    %c0_i32_0 = arith.constant 0 : i32
    %c0_i32_1 = arith.constant 0 : i32
    return %arg0, %c0_i32, %c0_i32_0 : i32, i32, i32
  }
}

</mosaic_0001>

<bundles_post_ra>
// kernel: transformer_forward.1
= control target key start
LH: loop header
LB: loop body
LE: loop exit
PB: predicated region body
PF: predicated region fallthrough
CT: control target
= control target key end

     0   :  { %s8351_s29 = smov 0   ;;  %s12722_s0 = inlined_call_operand.vmem [shape: f32[2,8,4], index: 0, kind: input, shape index: {}]   ;;  %s12723_s1 = inlined_call_operand.vmem [shape: f32[8,64], index: 1, kind: input, shape index: {}]   ;;  %s12724_s2 = inlined_call_operand.vmem [shape: f32[4,64], index: 2, kind: input, shape index: {}]   ;;  %s12725_s3 = inlined_call_operand.vmem [shape: f32[1,64], index: 3, kind: input, shape index: {}]   ;;  %s12726_s4 = inlined_call_operand.vmem [shape: f32[3,64,64], index: 4, kind: input, shape index: {}]   ;;  %s12727_s5 = inlined_call_operand.vmem [shape: f32[3,1,64], index: 5, kind: input, shape index: {}]   ;;  %s12728_s6 = inlined_call_operand.vmem [shape: f32[3,64,64], index: 6, kind: input, shape index: {}]   ;;  %s12729_s7 = inlined_call_operand.vmem [shape: f32[3,1,64], index: 7, kind: input, shape index: {}]   ;;  %s12730_s8 = inlined_call_operand.vmem [shape: f32[3,64,64], index: 8, kind: input, shape index: {}]   ;;  %s12731_s9 = inlined_call_operand.vmem [shape: f32[3,1,64], index: 9, kind: input, shape index: {}]   ;;  %s12732_s10 = inlined_call_operand.vmem [shape: f32[3,64,64], index: 10, kind: input, shape index: {}]   ;;  %s12733_s11 = inlined_call_operand.vmem [shape: f32[3,1,64], index: 11, kind: input, shape index: {}]   ;;  %s12734_s12 = inlined_call_operand.vmem [shape: f32[3,1,64], index: 12, kind: input, shape index: {}]   ;;  %s12735_s13 = inlined_call_operand.vmem [shape: f32[3,1,64], index: 13, kind: input, shape index: {}]   ;;  %s12736_s14 = inlined_call_operand.vmem [shape: f32[3,64,2048], index: 14, kind: input, shape index: {}]   ;;  %s12737_s15 = inlined_call_operand.vmem [shape: f32[3,1,2048], index: 15, kind: input, shape index: {}]   ;;  %s12738_s16 = inlined_call_operand.vmem [shape: f32[3,2048,64], index: 16, kind: input, shape index: {}]   ;;  %s12739_s17 = inlined_call_operand.vmem [shape: f32[3,1,64], index: 17, kind: input, shape index: {}]   ;;  %s12740_s18 = inlined_call_operand.vmem [shape: f32[3,1,64], index: 18, kind: input, shape index: {}]   ;;  %s12741_s19 = inlined_call_operand.vmem [shape: f32[3,1,64], index: 19, kind: input, shape index: {}]   ;;  %s12742_s20 = inlined_call_operand.vmem [shape: f32[1,64], index: 20, kind: input, shape index: {}]   ;;  %s12743_s21 = inlined_call_operand.<no memory space> [shape: f32[1,1], index: 21, kind: input, shape index: {}]   ;;  %s12744_s22 = inlined_call_operand.vmem [shape: f32[2,1,1], index: 22, kind: output, shape index: {}]  }
   0x1   :  { %12762 = sst [smem:[#allocation5_spill]] %s12722_s0  ;;  %v27_v0 = vstv %s12743_s21 }
   0x2   :  { %12763 = sst [smem:[#allocation6_spill]] %s12723_s1  ;;  %28 = vst [vmem:[#allocation2] sm:$0x1] %v27_v0 }
   0x3   :  { %12764 = sst [smem:[#allocation7_spill]] %s12724_s2 }
   0x4   :  { %12765 = sst [smem:[#allocation8_spill]] %s12725_s3 }
   0x5   :  { %12766 = sst [smem:[#allocation9_spill]] %s12726_s4 }
   0x6   :  { %12767 = sst [smem:[#allocation10_spill]] %s12727_s5 }
   0x7   :  { %12768 = sst [smem:[#allocation11_spill]] %s12728_s6 }
   0x8   :  { %12769 = sst [smem:[#allocation12_spill]] %s12742_s20 }
   0x9   :  { %12770 = sst [smem:[#allocation13_spill]] %s12744_s22 }
   0xa LB: > { %12771 = sst [smem:[#allocation3_spill]] %s8218_s29  ;;  %s7075_s30 = sadd.s32 4294967295, %s8218_s29   ;;  %s8218_s29 = sphi %s8351_s29, %s34_s29  }
   0xb   : > { %p7079_p0 = scmp.ge.s32.totalorder %s8218_s29, 1  ;;  %p613_p1 = scmp.lt.s32.totalorder %s8218_s29, 3 }
   0xd   : > { %p614_p2 = pnand %p7079_p0, %p613_p1 }
   0xf   : > { %617 = sbr.rel (%p614_p2) target bundleno = 7627 (0x1dcb), region = 108 }
  0x14   : > { %p672_p3 = scmp.lt.s32.totalorder %s7075_s30, 1  ;;  %v8220_v1 = vmov 0   ;;  %v8221_v2 = vmov 2   ;;  %s12773_s23 = sld [smem:[#allocation5_spill]]  ;;  %v8222_v4 = vmov 1   ;;  %v8223_v5 = vmov 3  }
  0x15   : > { %8067 = vset.pattern.permute.xlu0 %v8220_v1  ;;  %8069 = vset.pattern.permute.xlu1 %v8221_v2  ;;  %s12774_s6 = sld [smem:[#allocation9_spill]]  ;;  %v793_v8 = vld [vmem:[%s12730_s8 + $0x38] sm:$0xff]  ;;  %v792_v11 = vld [vmem:[%s12730_s8 + $0x30] sm:$0xff]  ;;  %v791_v14 = vld [vmem:[%s12730_s8 + $0x28] sm:$0xff]  ;;  %vm730_vm0 = vcmask 523264   ;;  %s12752_s26 = smov 96  }
  0x16   : > { %s12791_s30 = smov (!%p672_p3, %s7075_s30), 1  ;;  %s12775_s2 = sld [smem:[#allocation11_spill]]  ;;  %806 = vmatpush.msra.mxu2 %v793_v8  ;;  %v790_v17 = vld [vmem:[%s12730_s8 + $0x20] sm:$0xff]  ;;  %v789_v20 = vld [vmem:[%s12730_s8 + $0x18] sm:$0xff]  ;;  %v788_v23 = vld [vmem:[%s12730_s8 + $0x10] sm:$0xff]  ;;  %vm973_vm1 = vcmask 130048  }
  0x17   : > { %12772 = sst [smem:[#allocation4_spill]] %s12791_s30  ;;  %s7080_s21 = sshll.u32 %s12791_s30, 3  ;;  %v787_v26 = vld [vmem:[%s12730_s8 + $0x8] sm:$0xff]  ;;  %v786_v29 = vld [vmem:[%s12730_s8] sm:$0xff]  ;;  %vm1066_vm2 = vcmask 64512   ;;  %vm1496_vm3 = vcmask 1047556  }
  0x18   : > { %807 = vmatpush.msra.mxu2 %v792_v11  ;;  %s12776_s25 = sld [smem:[#allocation7_spill]]  ;;  %v8122_v52 = vld [vmem:[%s12729_s7] ss:$0 sm:$0xff]  ;;  %s12758_s27 = smov 80   ;;  %vm1619_vm4 = vcmask 261120   ;;  %vm1621_vm5 = vcmask 392192  }
  0x19   : > { %s12777_s3 = sld [smem:[#allocation8_spill]]  ;;  %s12754_s0 = smov 16  }
  0x1a   : > { %s675_s1 = scalar_lea.vmem %s12773_s23, %s7080_s21  ;;  %808 = vmatpush.msra.mxu2 %v791_v14  ;;  %s12778_s4 = sld [smem:[#allocation6_spill]] }
  0x1b   : > { %v679_v3 = vld [vmem:[%s675_s1] sm:$0xff]  ;;  %v725_v6 = vld [vmem:[%s12774_s6 + $0x38] sm:$0xff]  ;;  %v724_v9 = vld [vmem:[%s12774_s6 + $0x30] sm:$0xff]  ;;  %s12779_s1 = sld [smem:[#allocation10_spill]]  ;;  %s12748_s21 = smov 32  }
  0x1c   : > { %683 = vperm.xlu0 %8067, %v679_v3   ;;  %697 = vperm.xlu1 %8069, %v679_v3   ;;  %v761_v7 = vld [vmem:[%s12775_s2 + $0x38] sm:$0xff]  ;;  %v760_v10 = vld [vmem:[%s12775_s2 + $0x30] sm:$0xff]  ;;  %v723_v12 = vld [vmem:[%s12774_s6 + $0x28] sm:$0xff]  ;;  %s12780_s23 = smov 112   ;;  %s12781_s5 = smov 96  }
  0x1d   : > { %742 = vmatpush.msra.mxu0 %v725_v6  ;;  %774 = vmatpush.msra.mxu1 %v761_v7  ;;  %v759_v13 = vld [vmem:[%s12775_s2 + $0x28] sm:$0xff]  ;;  %v722_v15 = vld [vmem:[%s12774_s6 + $0x20] sm:$0xff]  ;;  %v721_v18 = vld [vmem:[%s12774_s6 + $0x18] sm:$0xff]  ;;  %s12788_s24 = sld [smem:[#allocation13_spill]] }
  0x1e   : > { %v758_v16 = vld [vmem:[%s12775_s2 + $0x20] sm:$0xff]  ;;  %809 = vmatpush.msra.mxu2 %v790_v17  ;;  %v757_v19 = vld [vmem:[%s12775_s2 + $0x18] sm:$0xff]  ;;  %v720_v21 = vld [vmem:[%s12774_s6 + $0x10] sm:$0xff] }
  0x1f   : > { %743 = vmatpush.msra.mxu0 %v724_v9  ;;  %775 = vmatpush.msra.mxu1 %v760_v10  ;;  %v756_v22 = vld [vmem:[%s12775_s2 + $0x10] sm:$0xff]  ;;  %v719_v24 = vld [vmem:[%s12774_s6 + $0x8] sm:$0xff]  ;;  %v718_v27 = vld [vmem:[%s12774_s6] sm:$0xff] }
  0x20   : > { %810 = vmatpush.msra.mxu2 %v789_v20  ;;  %v755_v25 = vld [vmem:[%s12775_s2 + $0x8] sm:$0xff]  ;;  %v754_v28 = vld [vmem:[%s12775_s2] sm:$0xff] }
  0x21   : > { %744 = vmatpush.msra.mxu0 %v723_v12  ;;  %776 = vmatpush.msra.mxu1 %v759_v13  ;;  %v680_v32 = vld [vmem:[%s12776_s25] sm:$0xf]  ;;  %s12756_s25 = smov 112  }
  0x22   : > { %811 = vmatpush.msra.mxu2 %v788_v23  ;;  %v686_v33 = vperm.slane %v680_v32, 0  ;;  %v693_v34 = vperm.slane %v680_v32, 1  ;;  %v700_v35 = vperm.slane %v680_v32, 2  ;;  %v707_v36 = vperm.slane %v680_v32, 3  ;;  %v8120_v44 = vld [vmem:[%s12777_s3] ss:$0 sm:$0xff] }
  0x23   : > { %745 = vmatpush.msra.mxu0 %v722_v15  ;;  %777 = vmatpush.msra.mxu1 %v758_v16  ;;  %v716_v48 = vld [vmem:[%s12778_s4] sm:$0xff]  ;;  %s12750_s4 = smov 48   ;;  %s12785_s3 = smov 80  }
  0x24   : > { %8068 = vset.pattern.permute.xlu0 %v8222_v4  ;;  %8070 = vset.pattern.permute.xlu1 %v8223_v5  ;;  %v8121_v51 = vld [vmem:[%s12779_s1] ss:$0 sm:$0xff] }
  0x25   : > { %690 = vperm.xlu0 %8068, %v679_v3   ;;  %704 = vperm.xlu1 %8070, %v679_v3  }
  0x26   : > { %746 = vmatpush.msra.mxu0 %v721_v18  ;;  %778 = vmatpush.msra.mxu1 %v757_v19  ;;  %v8123_v18 = vld [vmem:[%s12731_s9] ss:$0 sm:$0xff] }
  0x27   : > { %812 = vmatpush.msra.mxu2 %v787_v26 }
  0x28   : > { %747 = vmatpush.msra.mxu0 %v720_v21  ;;  %779 = vmatpush.msra.mxu1 %v756_v22 }
  0x29   : > { %813 = vmatpush.msra.mxu2 %v786_v29 }
  0x2a   : > { %748 = vmatpush.msra.mxu0 %v719_v24  ;;  %780 = vmatpush.msra.mxu1 %v755_v25 }
  0x2c   : > { %749 = vmatpush.msra.mxu0 %v718_v27  ;;  %781 = vmatpush.msra.mxu1 %v754_v28 }
  0x8e   : > { %v684_v30 = vpop.permute.xlu0 %683  ;;  %v698_v31 = vpop.permute.xlu1 %697 }
  0x8f   : > { %v687_v39 = vmul.f32 %v686_v33, %v684_v30  ;;  %v701_v41 = vmul.f32 %v700_v35, %v698_v31 }
  0x97   : > { %v691_v37 = vpop.permute.xlu0 %690  ;;  %v705_v38 = vpop.permute.xlu1 %704 }
  0x98   : > { %v694_v40 = vmul.f32 %v693_v34, %v691_v37  ;;  %v708_v43 = vmul.f32 %v707_v36, %v705_v38 }
  0x9a   : > { %v695_v42 = vadd.f32 %v694_v40, %v687_v39 }
  0x9c   : > { %v702_v45 = vadd.f32 %v701_v41, %v695_v42 }
  0x9e   : > { %v709_v46 = vadd.f32 %v708_v43, %v702_v45 }
  0xa0   : > { %v714_v47 = vadd.f32 %v8120_v44, %v709_v46 }
  0xa2   : > { %v715_v49 = vmul.f32 8.0, %v714_v47 }
  0xa4   : > { %v8447_v50 = vadd.f32 %v716_v48, %v715_v49 }
  0xa6   : > { %7081 = vmatmul.msk.f32.vlgmr.msra.gmra.mxu0 %vm730_vm0, %v8447_v50  ;;  %7082 = vmatmul.msk.f32.vlgmr.msra.gmra.mxu1 %vm730_vm0, %v8447_v50 }
  0xa7   : > { %7083 = vmatmul.msk.f32.vlgmr.msra.gmra.mxu2 %vm730_vm0, %v8447_v50 }
 0x123   : > { %v751_v53 = vpop.f32.mrf.mxu0  ;;  %v783_v54 = vpop.f32.mrf.mxu1 }
 0x124   : > { %v752_v55 = vadd.f32 %v8121_v51, %v751_v53  ;;  %v784_v56 = vadd.f32 %v8122_v52, %v783_v54 }
 0x126   : > { %826 = vrot.lane.b32.xlu2 %v784_v56, %s12756_s25  ;;  %821 = vrot.lane.b32.xlu0 %v752_v55, %s12752_s26 }
 0x127   : > { %819 = vrot.lane.b32.xlu1 %v752_v55, %s12756_s25 }
 0x12a   : > { %v815_v19 = vpop.f32.mrf.mxu2 }
 0x12b   : > { %v816_v20 = vadd.f32 %v8123_v18, %v815_v19  ;;  %v8227_v18 = vmov 1983009808  }
 0x12c   : > { %v1501_v19 = vunpack.c.l.s4 %v8227_v18 }
 0x12e   : > { %829 = vrot.lane.b32.xlu2 %v784_v56, %s12752_s26 }
 0x136   : > { %832 = vrot.lane.b32.xlu2 %v784_v56, %s12758_s27 }
 0x13e   : > { %823 = vrot.lane.b32.xlu2 %v752_v55, %s12758_s27 }
 0x180   : > { %v827_v57 = vpop.permute.xlu2 %826 }
 0x181   : > { %v8071_v58 = vpack.i.bf16 %v827_v57, %v784_v56 }
 0x183   : > { %8072 = vxpose.xlu1.b32.start.end [1/1] (short) (narrow) %v8071_v58, 16 }
 0x188   : > { %v830_v59 = vpop.permute.xlu2 %829 }
 0x189   : > { %909 = vxpose.xlu0.b32.start.end [1/1] (short) (narrow) %v830_v59, 16 }
 0x190   : > { %v833_v60 = vpop.permute.xlu2 %832 }
 0x191   : > { %941 = vxpose.xlu2.b32.start.end [1/1] (short) (narrow) %v833_v60, 16 }
 0x198   : > { %v824_v62 = vpop.permute.xlu2 %823  ;;  %v822_v63 = vpop.permute.xlu0 %821 }
 0x199   : > { %v820_v61 = vpop.permute.xlu1 %819 }
 0x227   : > { %v8073_v0 = vpop.trf.xlu1 }
 0x228   : > { %v8074_v7 = vunpack.i.l.bf16 %v8073_v0  ;;  %v8077_v10 = vunpack.i.h.bf16 %v8073_v0 }
 0x22a   : > { %v957_v1 = vpop.trf.xlu2 }
 0x22d   : > { %v925_v2 = vpop.trf.xlu0 }
 0x22f   : > { %v8078_v3 = vpop.trf.xlu1 }
 0x230   : > { %v8079_v4 = vunpack.i.l.bf16 %v8078_v3  ;;  %v8082_v8 = vunpack.i.h.bf16 %v8078_v3 }
 0x232   : > { %v958_v6 = vpop.trf.xlu2  ;;  %990 = vmatpush.msra.mxu3 %v8079_v4 }
 0x233   : > { %1056 = vmatpush.msrb.mxu0 %v958_v6 }
 0x234   : > { %991 = vmatpush.msra.mxu3 %v8074_v7 }
 0x235   : > { %7084 = vmatmul.msk.f32.vlgmr.msra.gmra.mxu3 %vm973_vm1, %v752_v55  ;;  %1057 = vmatpush.msrb.mxu0 %v957_v1  ;;  %v926_v9 = vpop.trf.xlu0 }
 0x236   : > { %1012 = vmatpush.msrb.mxu3 %v8082_v8  ;;  %7087 = vmatmul.msk.f32.vlgmr.msrb.gmra.mxu0 %vm973_vm1, %v824_v62 }
 0x238   : > { %1013 = vmatpush.msrb.mxu3 %v8077_v10 }
 0x23a   : > { %1034 = vmatpush.msra.mxu3 %v926_v9 }
 0x23c   : > { %1035 = vmatpush.msra.mxu3 %v925_v2 }
 0x23d   : > { %7085 = vmatmul.msk.f32.vlgmr.msrb.gmra.mxu3 %vm973_vm1, %v820_v61 }
 0x245   : > { %7086 = vmatmul.msk.f32.vlgmr.msra.gmra.mxu3 %vm973_vm1, %v822_v63 }
 0x2b3   : > { %v1059_v25 = vpop.f32.mrf.mxu0 }
 0x2b4   : > { %v1065_v26 = vmul.f32 0.25, %v1059_v25 }
 0x2b6   : > { %v1076_v27 = vsel %vm1066_vm2, %v1065_v26, -inf }
 0x2b8   : > { %v993_v11 = vpop.f32.mrf.mxu3 }
 0x2b9   : > { %v1062_v23 = vmul.f32 0.25, %v993_v11 }
 0x2bb   : > { %v1067_v24 = vsel %vm1066_vm2, %v1062_v23, -inf }
 0x2c0   : > { %v1015_v12 = vpop.f32.mrf.mxu3 }
 0x2c1   : > { %v1063_v13 = vmul.f32 0.25, %v1015_v12 }
 0x2c3   : > { %v1070_v14 = vsel %vm1066_vm2, %v1063_v13, -inf }
 0x2c4   : > { %1071 = vmax.xlane.f32.xlu2 %v1070_v14 }
 0x2c8   : > { %v1037_v15 = vpop.f32.mrf.mxu3 }
 0x2c9   : > { %v1064_v16 = vmul.f32 0.25, %v1037_v15 }
 0x2cb   : > { %v1073_v17 = vsel %vm1066_vm2, %v1064_v16, -inf }
 0x2cc   : > { %1074 = vmax.xlane.f32.xlu0 %v1073_v17 }
 0x2dc   : > { %836 = vrot.lane.b32.xlu2 %v816_v20, %s12756_s25  ;;  %s12782_s25 = smov 32  }
 0x2e0   : > { %839 = vrot.lane.b32.xlu0 %v816_v20, %s12752_s26 }
 0x337   : > { %v1072_v28 = vpop.xlane.xlu2 %1071 }
 0x338   : > { %v1080_v29 = vsub.f32 %v1063_v13, %v1072_v28 }
 0x33a   : > { %v1085_v30 = vmul.f32 1.442695, %v1080_v29 }
 0x33c   : > { %8150 = vpow2.f32 %v1085_v30 }
 0x33f   : > { %v1075_v21 = vpop.xlane.xlu0 %1074  ;;  %v837_v51 = vpop.permute.xlu2 %836 }
 0x340   : > { %v1081_v31 = vsub.f32 %v1064_v16, %v1075_v21 }
 0x342   : > { %v1087_v32 = vmul.f32 1.442695, %v1081_v31  ;;  %v8151_v33 = vpop.eup %8150 }
 0x343   : > { %v1094_v34 = vsel %vm1066_vm2, %v8151_v33, 0.0 }
 0x344   : > { %8152 = vpow2.f32 %v1087_v32 }
 0x34a   : > { %v8153_v35 = vpop.eup %8152 }
 0x34b   : > { %v1097_v36 = vsel %vm1066_vm2, %v8153_v35, 0.0 }
 0x352   : > { %v840_v22 = vpop.permute.xlu0 %839 }
 0x353   : > { %1175 = vxpose.xlu1.b32.start.end [1/1] (short) (narrow) %v840_v22, 16 }
 0x3bb   : > { %1068 = vmax.xlane.f32.xlu1 %v1067_v24 }
 0x3c3   : > { %1077 = vmax.xlane.f32.xlu1 %v1076_v27 }
 0x3dc   : > { %842 = vrot.lane.b32.xlu1 %v816_v20, %s12758_s27 }
 0x3f7   : > { %v1191_v37 = vpop.trf.xlu1 }
 0x3ff   : > { %v1192_v38 = vpop.trf.xlu1 }
 0x406   : > { %1095 = vadd.xlane.f32.xlu1 %v1094_v34 }
 0x40e   : > { %1098 = vadd.xlane.f32.xlu1 %v1097_v36 }
 0x42e   : > { %v1069_v39 = vpop.xlane.xlu1 %1068 }
 0x42f   : > { %v1079_v40 = vsub.f32 %v1062_v23, %v1069_v39  ;;  %v8498_v23 = vunpack.c.0.s8 %v1501_v19 }
 0x431   : > { %v1083_v41 = vmul.f32 1.442695, %v1079_v40 }
 0x433   : > { %8154 = vpow2.f32 %v1083_v41 }
 0x436   : > { %v1078_v42 = vpop.xlane.xlu1 %1077 }
 0x437   : > { %v1082_v43 = vsub.f32 %v1065_v26, %v1078_v42  ;;  %v8228_v26 = vmov 1934713408  }
 0x438   : > { %v1525_v27 = vunpack.c.l.s4 %v8228_v26  ;;  %v1630_v26 = vld [vmem:[%s12732_s10 + $0x38] sm:$0xff] }
 0x439   : > { %v8155_v44 = vpop.eup %8154  ;;  %v1089_v45 = vmul.f32 1.442695, %v1082_v43 }
 0x43a   : > { %v1091_v46 = vsel %vm1066_vm2, %v8155_v44, 0.0  ;;  %v8503_v31 = vunpack.c.0.s8 %v1525_v27  ;;  %v1629_v27 = vld [vmem:[%s12732_s10 + $0x30] sm:$0xff] }
 0x43b   : > { %8156 = vpow2.f32 %v1089_v45  ;;  %1092 = vadd.xlane.f32.xlu0 %v1091_v46 }
 0x441   : > { %v8157_v47 = vpop.eup %8156 }
 0x442   : > { %v1100_v48 = vsel %vm1066_vm2, %v8157_v47, 0.0 }
 0x443   : > { %1101 = vadd.xlane.f32.xlu2 %v1100_v48 }
 0x44e   : > { %v843_v49 = vpop.permute.xlu1 %842 }
 0x44f   : > { %1207 = vxpose.xlu1.b32.start.end [1/1] (short) (narrow) %v843_v49, 16 }
 0x464   : > { %1143 = vxpose.xlu0.b32.start.end [1/1] (short) (narrow) %v837_v51, 16 }
 0x46c   : > { %1111 = vxpose.xlu2.b32.start.end [1/1] (short) (narrow) %v816_v20, 16 }
 0x479   : > { %v1096_v52 = vpop.xlane.xlu1 %1095 }
 0x47a   : > { %8158 = vrcp.f32 %v1096_v52 }
 0x480   : > { %v8159_v53 = vpop.eup %8158 }
 0x481   : > { %v1099_v54 = vpop.xlane.xlu1 %1098  ;;  %v1108_v55 = vmul.f32 %v8159_v53, %v8151_v33 }
 0x482   : > { %8160 = vrcp.f32 %v1099_v54 }
 0x483   : > { %7091 = vmatpush.xpose.msk.msrb.mxu2 %vm1066_vm2, %v1108_v55 }
 0x488   : > { %v8161_v56 = vpop.eup %8160 }
 0x489   : > { %v1109_v57 = vmul.f32 %v8161_v56, %v8153_v35 }
 0x48b   : > { %7094 = vmatpush.xpose.msk.msrb.mxu3 %vm1066_vm2, %v1109_v57 }
 0x48e   : > { %7095 = vmatmul.msk.f32.vlgmr.msrb.gmra.mxu3 %vm1066_vm2, %v1191_v37 }
 0x496   : > { %7096 = vmatmul.msk.f32.gmra.mxu3 %vm1066_vm2, %v1192_v38 }
 0x4ae   : > { %v1093_v58 = vpop.xlane.xlu0 %1092 }
 0x4af   : > { %8162 = vrcp.f32 %v1093_v58 }
 0x4b5   : > { %v8163_v59 = vpop.eup %8162 }
 0x4b6   : > { %v1102_v60 = vpop.xlane.xlu2 %1101  ;;  %v1107_v61 = vmul.f32 %v8163_v59, %v8155_v44 }
 0x4b7   : > { %8164 = vrcp.f32 %v1102_v60 }
 0x4b8   : > { %7088 = vmatpush.xpose.msk.msrb.mxu1 %vm1066_vm2, %v1107_v61 }
 0x4bc   : > { %1646 = vmatpush.msra.mxu1 %v1630_v26  ;;  %v1700_v26 = vld [vmem:[%s12736_s14 + $0x10] sm:$0xff] }
 0x4bd   : > { %v8165_v62 = vpop.eup %8164 }
 0x4be   : > { %v1110_v63 = vmul.f32 %v8165_v62, %v8157_v47  ;;  %1647 = vmatpush.msra.mxu1 %v1629_v27  ;;  %v1701_v27 = vld [vmem:[%s12736_s14 + $0x18] sm:$0xff] }
 0x4c0   : > { %7097 = vmatpush.xpose.msk.msra.mxu0 %vm1066_vm2, %v1110_v63 }
 0x4f3   : > { %v1223_v0 = vpop.trf.xlu1 }
 0x4f4   : > { %7098 = vmatmul.msk.f32.vlgmr.msra.gmra.mxu0 %vm1066_vm2, %v1223_v0 }
 0x4fb   : > { %v1224_v1 = vpop.trf.xlu1 }
 0x4fc   : > { %7099 = vmatmul.msk.f32.gmra.mxu0 %vm1066_vm2, %v1224_v1 }
 0x505   : > { %v1127_v2 = vpop.trf.xlu2 }
 0x506   : > { %7089 = vmatmul.msk.f32.vlgmr.msrb.gmra.mxu1 %vm1066_vm2, %v1127_v2 }
 0x508   : > { %v1159_v3 = vpop.trf.xlu0 }
 0x509   : > { %7092 = vmatmul.msk.f32.vlgmr.msrb.gmra.mxu2 %vm1066_vm2, %v1159_v3 }
 0x50d   : > { %v1128_v4 = vpop.trf.xlu2 }
 0x50e   : > { %7090 = vmatmul.msk.f32.gmra.mxu1 %vm1066_vm2, %v1128_v4 }
 0x510   : > { %v1160_v6 = vpop.trf.xlu0 }
 0x511   : > { %7093 = vmatmul.msk.f32.gmra.mxu2 %vm1066_vm2, %v1160_v6  ;;  %v1329_v13 = vpop.f32.mrf.mxu3 }
 0x519   : > { %v1332_v14 = vpop.f32.mrf.mxu3 }
 0x571   : > { %v1361_v7 = vpop.f32.mrf.mxu0 }
 0x572   : > { %1463 = vxpose.xlu1.b32.start [1/2] (short) (narrow) %v1361_v7, 8 }
 0x579   : > { %v1364_v8 = vpop.f32.mrf.mxu0 }
 0x57a   : > { %1464 = vxpose.xlu1.b32.end [2/2] (short) (narrow) %v1364_v8, 8 }
 0x583   : > { %v1265_v9 = vpop.f32.mrf.mxu1 }
 0x584   : > { %1367 = vxpose.xlu2.b32.start [1/2] (short) (narrow) %v1265_v9, 8 }
 0x58b   : > { %v1268_v10 = vpop.f32.mrf.mxu1 }
 0x58c   : > { %v1297_v11 = vpop.f32.mrf.mxu2  ;;  %1368 = vxpose.xlu2.b32.end [2/2] (short) (narrow) %v1268_v10, 8 }
 0x58d   : > { %1399 = vxpose.xlu0.b32.start [1/2] (short) (narrow) %v1297_v11, 8 }
 0x594   : > { %v1300_v12 = vpop.f32.mrf.mxu2 }
 0x595   : > { %1400 = vxpose.xlu0.b32.end [2/2] (short) (narrow) %v1300_v12, 8 }
 0x59d   : > { %1431 = vxpose.xlu0.b32.start [1/2] (short) (narrow) %v1329_v13, 8 }
 0x5a5   : > { %1432 = vxpose.xlu0.b32.end [2/2] (short) (narrow) %v1332_v14, 8 }
 0x616   : > { %v1479_v16 = vpop.trf.xlu1 }
 0x617   : > { %v1508_v20 = vrot.slane %v1479_v16, 4 }
 0x61d   : > { %v1383_v21 = vpop.trf.xlu2 }
 0x61e   : > { %v1498_v25 = vrot.slane %v1383_v21, 4 }
 0x631   : > { %v1415_v15 = vpop.trf.xlu0 }
 0x632   : > { %v1510_v17 = vrot.slane %v1415_v15, 4  ;;  %v1509_v24 = vsel %vm1496_vm3, %v1508_v20, %v1415_v15 }
 0x633   : > { %v1515_v29 = vperm.slane %v1509_v24, %v8498_v23 }
 0x634   : > { %v1511_v22 = vsel %vm1496_vm3, %v1479_v16, %v1510_v17 }
 0x635   : > { %v1519_v28 = vperm.slane %v1511_v22, %v8498_v23  ;;  %v1520_v37 = vrot.slane %v1515_v29, 4 }
 0x637   : > { %v1532_v34 = vrot.slane %v1519_v28, 4 }
 0x641   : > { %v1447_v30 = vpop.trf.xlu0 }
 0x642   : > { %v1495_v32 = vrot.slane %v1447_v30, 4  ;;  %v1499_v33 = vsel %vm1496_vm3, %v1447_v30, %v1498_v25  ;;  %v1626_v30 = vld [vmem:[%s12732_s10 + $0x18] sm:$0xff] }
 0x643   : > { %v1507_v35 = vperm.slane %v1499_v33, %v8498_v23  ;;  %v1624_v33 = vld [vmem:[%s12732_s10 + $0x8] sm:$0xff] }
 0x644   : > { %v1497_v36 = vsel %vm1496_vm3, %v1495_v32, %v1383_v21  ;;  %v1625_v32 = vld [vmem:[%s12732_s10 + $0x10] sm:$0xff] }
 0x645   : > { %v1503_v38 = vperm.slane %v1497_v36, %v8498_v23  ;;  %v1533_v39 = vsel %vm1496_vm3, %v1532_v34, %v1507_v35  ;;  %v1534_v40 = vrot.slane %v1507_v35, 4  ;;  %v1623_v34 = vld [vmem:[%s12732_s10] sm:$0xff] }
 0x646   : > { %v1539_v41 = vperm.slane %v1533_v39, %v8503_v31 }
 0x647   : > { %v1521_v42 = vsel %vm1496_vm3, %v1520_v37, %v1503_v38  ;;  %v1522_v43 = vrot.slane %v1503_v38, 4  ;;  %v1535_v44 = vsel %vm1496_vm3, %v1519_v28, %v1534_v40  ;;  %v1628_v28 = vld [vmem:[%s12732_s10 + $0x28] sm:$0xff] }
 0x648   : > { %v1527_v45 = vperm.slane %v1521_v42, %v8503_v31  ;;  %v1543_v46 = vperm.slane %v1535_v44, %v8503_v31  ;;  %v1548_v49 = vrot.slane %v1539_v41, 4  ;;  %1648 = vmatpush.msra.mxu1 %v1628_v28  ;;  %v1814_v28 = vld [vmem:[%s12736_s14 + $0x3a0] sm:$0xff] }
 0x649   : > { %v1523_v47 = vsel %vm1496_vm3, %v1515_v29, %v1522_v43  ;;  %v1627_v29 = vld [vmem:[%s12732_s10 + $0x20] sm:$0xff] }
 0x64a   : > { %v1531_v48 = vperm.slane %v1523_v47, %v8503_v31  ;;  %v1550_v51 = vrot.slane %v1543_v46, 4  ;;  %v1544_v52 = vrot.slane %v1527_v45, 4  ;;  %v1549_v59 = vsel %vm1496_vm3, 0.0, %v1548_v49  ;;  %1649 = vmatpush.msra.mxu1 %v1627_v29  ;;  %v1810_v47 = vld [vmem:[%s12736_s14 + $0x380] sm:$0xff]  ;;  %v1812_v49 = vld [vmem:[%s12736_s14 + $0x390] sm:$0xff]  ;;  %v1815_v29 = vld [vmem:[%s12736_s14 + $0x3a8] sm:$0xff] }
 0x64b   : > { %v8232_v46 = vmov 64.0   ;;  %1873 = vmatpush.msra.mxu2 %v1810_v47  ;;  %1913 = vmatpush.msrb.mxu0 %v1812_v49  ;;  %v1752_v47 = vld [vmem:[%s12736_s14 + $0x1b0] sm:$0xff]  ;;  %v1734_v49 = vld [vmem:[%s12736_s14 + $0x120] sm:$0xff] }
 0x64c   : > { %v1546_v53 = vrot.slane %v1531_v48, 4  ;;  %v1551_v54 = vsel %vm1496_vm3, 0.0, %v1550_v51  ;;  %v1563_v55 = vsel %vm1496_vm3, %v1550_v51, %v1539_v41  ;;  %v1545_v1 = vsel %vm1496_vm3, 0.0, %v1544_v52  ;;  %1650 = vmatpush.msra.mxu1 %v1626_v30  ;;  %v8124_v41 = vld [vmem:[%s12733_s11] ss:$0 sm:$0xff]  ;;  %v1811_v48 = vld [vmem:[%s12736_s14 + $0x388] sm:$0xff] }
 0x64d   : > { %v1567_v56 = vperm.slane %v1563_v55, %v8498_v23  ;;  %v1568_v57 = vrot.slane %v1551_v54, 4  ;;  %8166 = vrcp.f32 %v8232_v46  ;;  %1893 = vmatpush.msra.mxu3 %v1811_v48  ;;  %v1816_v30 = vld [vmem:[%s12736_s14 + $0x3b0] sm:$0xff]  ;;  %v1751_v46 = vld [vmem:[%s12736_s14 + $0x1a8] sm:$0xff]  ;;  %v1753_v48 = vld [vmem:[%s12736_s14 + $0x1b8] sm:$0xff] }
 0x64e   : > { %v1547_v58 = vsel %vm1496_vm3, 0.0, %v1546_v53  ;;  %v1552_v60 = vsel %vm1496_vm3, %v1546_v53, %v1527_v45  ;;  %1651 = vmatpush.msra.mxu1 %v1625_v32  ;;  %v1817_v32 = vld [vmem:[%s12736_s14 + $0x3b8] sm:$0xff] }
 0x64f   : > { %v1569_v61 = vsel %vm1496_vm3, %v1568_v57, %v1549_v59  ;;  %v1556_v62 = vperm.slane %v1552_v60, %v8498_v23  ;;  %v1557_v63 = vrot.slane %v1547_v58, 4  ;;  %v1588_v0 = vrot.slane %v1567_v56, 4 }
 0x650   : > { %v1573_v2 = vperm.slane %v1569_v61, %v8498_v23  ;;  %1652 = vmatpush.msra.mxu1 %v1624_v33  ;;  %v1798_v33 = vld [vmem:[%s12736_s14 + $0x320] sm:$0xff] }
 0x651   : > { %v1558_v3 = vsel %vm1496_vm3, %v1557_v63, %v1545_v1  ;;  %v1576_v4 = vrot.slane %v1556_v62, 4  ;;  %v1795_v63 = vld [vmem:[%s12736_s14 + $0x308] sm:$0xff]  ;;  %v1797_v1 = vld [vmem:[%s12736_s14 + $0x318] sm:$0xff] }
 0x652   : > { %v1562_v6 = vperm.slane %v1558_v3, %v8498_v23  ;;  %v1589_v7 = vsel %vm1496_vm3, %v1573_v2, %v1588_v0  ;;  %v1586_v8 = vrot.slane %v1573_v2, 4  ;;  %1653 = vmatpush.msra.mxu1 %v1623_v34  ;;  %v1796_v0 = vld [vmem:[%s12736_s14 + $0x310] sm:$0xff]  ;;  %1894 = vmatpush.msra.mxu3 %v1795_v63  ;;  %v1778_v2 = vld [vmem:[%s12736_s14 + $0x280] sm:$0xff]  ;;  %v1779_v3 = vld [vmem:[%s12736_s14 + $0x288] sm:$0xff] }
 0x653   : > { %v1597_v9 = vperm.slane %v1589_v7, %v8503_v31  ;;  %v8167_v51 = vpop.eup %8166  ;;  %1914 = vmatpush.msrb.mxu0 %v1796_v0  ;;  %v1762_v7 = vld [vmem:[%s12736_s14 + $0x200] sm:$0xff]  ;;  %v1799_v34 = vld [vmem:[%s12736_s14 + $0x328] sm:$0xff] }
 0x654   : > { %v1577_v10 = vsel %vm1496_vm3, %v1562_v6, %v1576_v4  ;;  %v1574_v11 = vrot.slane %v1562_v6, 4  ;;  %v1587_v12 = vsel %vm1496_vm3, %v1586_v8, %v1567_v56  ;;  %v1665_v52 = vmul.f32 64.0, %v8167_v51  ;;  %v1780_v4 = vld [vmem:[%s12736_s14 + $0x290] sm:$0xff]  ;;  %1895 = vmatpush.msra.mxu3 %v1779_v3  ;;  %v1781_v6 = vld [vmem:[%s12736_s14 + $0x298] sm:$0xff]  ;;  %v1763_v8 = vld [vmem:[%s12736_s14 + $0x208] sm:$0xff] }
 0x655   : > { %v1585_v13 = vperm.slane %v1577_v10, %v8503_v31  ;;  %v1602_v14 = vrot.slane %v1597_v9, 4  ;;  %v1593_v15 = vperm.slane %v1587_v12, %v8503_v31  ;;  %vm1669_vm6 = vweird.f32 %v8167_v51  ;;  %1915 = vmatpush.msrb.mxu0 %v1780_v4  ;;  %v1765_v10 = vld [vmem:[%s12736_s14 + $0x218] sm:$0xff]  ;;  %v1747_v12 = vld [vmem:[%s12736_s14 + $0x188] sm:$0xff] }
 0x656   : > { %v1575_v16 = vsel %vm1496_vm3, %v1574_v11, %v1556_v62  ;;  %v1666_v53 = vsub.f32 1.0, %v1665_v52  ;;  %v1794_v62 = vld [vmem:[%s12736_s14 + $0x300] sm:$0xff]  ;;  %1896 = vmatpush.msra.mxu3 %v1763_v8  ;;  %v1737_v52 = vld [vmem:[%s12736_s14 + $0x138] sm:$0xff] }
 0x657   : > { %v1603_v17 = vsel %vm1496_vm3, %v1602_v14, %v1585_v13  ;;  %v1604_v18 = vrot.slane %v1585_v13, 4  ;;  %v1581_v19 = vperm.slane %v1575_v16, %v8503_v31  ;;  %v1598_v20 = vrot.slane %v1593_v15, 4  ;;  %1874 = vmatpush.msra.mxu2 %v1794_v62  ;;  %v1746_v11 = vld [vmem:[%s12736_s14 + $0x180] sm:$0xff]  ;;  %v1748_v13 = vld [vmem:[%s12736_s14 + $0x190] sm:$0xff]  ;;  %v1749_v14 = vld [vmem:[%s12736_s14 + $0x198] sm:$0xff] }
 0x658   : > { %1611 = vrot.lane.b32.xlu1 %v1603_v17, %s12748_s21  ;;  %v1667_v54 = vmul.f32 %v8167_v51, %v1666_v53  ;;  %1897 = vmatpush.msra.mxu3 %v1747_v12  ;;  %v1731_v16 = vld [vmem:[%s12736_s14 + $0x108] sm:$0xff]  ;;  %v1732_v17 = vld [vmem:[%s12736_s14 + $0x110] sm:$0xff]  ;;  %v1718_v53 = vld [vmem:[%s12736_s14 + $0xa0] sm:$0xff] }
 0x659   : > { %v1605_v21 = vsel %vm1496_vm3, %v1597_v9, %v1604_v18  ;;  %v1600_v22 = vrot.slane %v1581_v19, 4  ;;  %v1599_v24 = vsel %vm1496_vm3, %v1598_v20, %v1581_v19  ;;  %1875 = vmatpush.msra.mxu2 %v1778_v2  ;;  %v1764_v9 = vld [vmem:[%s12736_s14 + $0x210] sm:$0xff]  ;;  %v1733_v18 = vld [vmem:[%s12736_s14 + $0x118] sm:$0xff]  ;;  %v1714_v19 = vld [vmem:[%s12736_s14 + $0x80] sm:$0xff] }
 0x65a   : > { %1615 = vrot.lane.b32.xlu0 %v1605_v21, %s12750_s4  ;;  %v1668_v55 = vadd.f32 %v8167_v51, %v1667_v54  ;;  %1916 = vmatpush.msrb.mxu0 %v1764_v9  ;;  %v1715_v20 = vld [vmem:[%s12736_s14 + $0x88] sm:$0xff]  ;;  %v1716_v21 = vld [vmem:[%s12736_s14 + $0x90] sm:$0xff]  ;;  %v1705_v62 = vld [vmem:[%s12736_s14 + $0x38] sm:$0xff]  ;;  %s12783_s4 = smov 48  }
 0x65b   : > { %v1601_v25 = vsel %vm1496_vm3, %v1593_v15, %v1600_v22  ;;  %1876 = vmatpush.msra.mxu2 %v1762_v7  ;;  %v1730_v15 = vld [vmem:[%s12736_s14 + $0x100] sm:$0xff]  ;;  %1898 = vmatpush.msra.mxu3 %v1731_v16  ;;  %v1717_v22 = vld [vmem:[%s12736_s14 + $0x98] sm:$0xff]  ;;  %v1719_v54 = vld [vmem:[%s12736_s14 + $0xa8] sm:$0xff] }
 0x65c   : > { %1607 = vrot.lane.b32.xlu2 %v1601_v25, %s12754_s0  ;;  %v8589_v56 = vsel %vm1669_vm6, %v8167_v51, %v1668_v55  ;;  %1917 = vmatpush.msrb.mxu0 %v1748_v13  ;;  %v1699_v25 = vld [vmem:[%s12736_s14 + $0x8] sm:$0xff]  ;;  %v1736_v51 = vld [vmem:[%s12736_s14 + $0x130] sm:$0xff]  ;;  %v8125_v9 = vld [vmem:[%s12734_s12] ss:$0 sm:$0xff]  ;;  %s12784_s0 = smov 16  }
 0x65d   : > { %1877 = vmatpush.msra.mxu2 %v1746_v11  ;;  %1899 = vmatpush.msra.mxu3 %v1715_v20  ;;  %v1720_v55 = vld [vmem:[%s12736_s14 + $0xb0] sm:$0xff]  ;;  %v8126_v11 = vld [vmem:[%s12735_s13] ss:$0 sm:$0xff]  ;;  %v1819_v16 = vld [vmem:[%s12736_s14 + $0x3c8] sm:$0xff] }
 0x65e   : > { %1918 = vmatpush.msrb.mxu0 %v1732_v17  ;;  %v1821_v17 = vld [vmem:[%s12736_s14 + $0x3d8] sm:$0xff]  ;;  %v1804_v20 = vld [vmem:[%s12736_s14 + $0x350] sm:$0xff] }
 0x65f   : > { %1878 = vmatpush.msra.mxu2 %v1730_v15  ;;  %1900 = vmatpush.msra.mxu3 %v1699_v25  ;;  %v1818_v15 = vld [vmem:[%s12736_s14 + $0x3c0] sm:$0xff]  ;;  %v1788_v25 = vld [vmem:[%s12736_s14 + $0x2d0] sm:$0xff] }
 0x660   : > { %1919 = vmatpush.msrb.mxu0 %v1716_v21  ;;  %v1805_v21 = vld [vmem:[%s12736_s14 + $0x358] sm:$0xff] }
 0x661   : > { %1879 = vmatpush.msra.mxu2 %v1714_v19  ;;  %1973 = vmatpush.msrb.mxu3 %v1815_v29  ;;  %v1803_v19 = vld [vmem:[%s12736_s14 + $0x348] sm:$0xff]  ;;  %v1772_v29 = vld [vmem:[%s12736_s14 + $0x250] sm:$0xff] }
 0x662   : > { %1920 = vmatpush.msrb.mxu0 %v1700_v26  ;;  %v1789_v26 = vld [vmem:[%s12736_s14 + $0x2d8] sm:$0xff] }
 0x663   : > { %1974 = vmatpush.msrb.mxu3 %v1799_v34  ;;  %v1756_v34 = vld [vmem:[%s12736_s14 + $0x1d0] sm:$0xff] }
 0x664   : > { %1993 = vmatpush.msra.mxu0 %v1816_v30  ;;  %v1773_v30 = vld [vmem:[%s12736_s14 + $0x258] sm:$0xff] }
 0x6b6   : > { %v1608_v35 = vpop.permute.xlu2 %1607 }
 0x6b7   : > { %v1618_v36 = vsel %vm973_vm1, %v1599_v24, %v1608_v35  ;;  %v1698_v24 = vld [vmem:[%s12736_s14] sm:$0xff]  ;;  %v1800_v35 = vld [vmem:[%s12736_s14 + $0x330] sm:$0xff] }
 0x6b8   : > { %1880 = vmatpush.msra.mxu2 %v1698_v24  ;;  %1994 = vmatpush.msra.mxu0 %v1800_v35  ;;  %v1787_v24 = vld [vmem:[%s12736_s14 + $0x2c8] sm:$0xff]  ;;  %v1757_v35 = vld [vmem:[%s12736_s14 + $0x1d8] sm:$0xff] }
 0x6ba   : > { %1953 = vmatpush.msrb.mxu2 %v1814_v28  ;;  %v1771_v28 = vld [vmem:[%s12736_s14 + $0x248] sm:$0xff] }
 0x6bc   : > { %1954 = vmatpush.msrb.mxu2 %v1798_v33  ;;  %v1755_v33 = vld [vmem:[%s12736_s14 + $0x1c8] sm:$0xff] }
 0x6ca   : > { %v1612_v37 = vpop.permute.xlu1 %1611 }
 0x6cb   : > { %v1620_v38 = vsel %vm1619_vm4, %v1618_v36, %v1612_v37  ;;  %v1801_v36 = vld [vmem:[%s12736_s14 + $0x338] sm:$0xff]  ;;  %v1782_v37 = vld [vmem:[%s12736_s14 + $0x2a0] sm:$0xff] }
 0x6cc   : > { %v1616_v39 = vpop.permute.xlu0 %1615  ;;  %1955 = vmatpush.msrb.mxu2 %v1782_v37  ;;  %v1739_v37 = vld [vmem:[%s12736_s14 + $0x148] sm:$0xff] }
 0x6cd   : > { %v1622_v40 = vsel %vm1621_vm5, %v1620_v38, %v1616_v39  ;;  %v1783_v38 = vld [vmem:[%s12736_s14 + $0x2a8] sm:$0xff]  ;;  %v1784_v39 = vld [vmem:[%s12736_s14 + $0x2b0] sm:$0xff] }
 0x6ce   : > { %7100 = vmatmul.msk.f32.vlgmr.msra.gmra.mxu1 %vm730_vm0, %v1622_v40  ;;  %v1785_v40 = vld [vmem:[%s12736_s14 + $0x2b8] sm:$0xff]  ;;  %1975 = vmatpush.msrb.mxu3 %v1783_v38  ;;  %v1740_v38 = vld [vmem:[%s12736_s14 + $0x150] sm:$0xff] }
 0x6cf   : > { %1995 = vmatpush.msra.mxu0 %v1784_v39  ;;  %v1741_v39 = vld [vmem:[%s12736_s14 + $0x158] sm:$0xff] }
 0x74b   : > { %v1655_v42 = vpop.f32.mrf.mxu1 }
 0x74c   : > { %v1656_v43 = vadd.f32 %v8124_v41, %v1655_v42  ;;  %v1766_v41 = vld [vmem:[%s12736_s14 + $0x220] sm:$0xff]  ;;  %v1767_v42 = vld [vmem:[%s12736_s14 + $0x228] sm:$0xff] }
 0x74d   : > { %1956 = vmatpush.msrb.mxu2 %v1766_v41  ;;  %1976 = vmatpush.msrb.mxu3 %v1767_v42  ;;  %v1723_v41 = vld [vmem:[%s12736_s14 + $0xc8] sm:$0xff]  ;;  %v1724_v42 = vld [vmem:[%s12736_s14 + $0xd0] sm:$0xff] }
 0x74e   : > { %v1658_v44 = vadd.f32 %v1656_v43, %v8447_v50  ;;  %v1813_v50 = vld [vmem:[%s12736_s14 + $0x398] sm:$0xff]  ;;  %v1768_v43 = vld [vmem:[%s12736_s14 + $0x230] sm:$0xff] }
 0x74f   : > { %1933 = vmatpush.msrb.mxu1 %v1813_v50  ;;  %1996 = vmatpush.msra.mxu0 %v1768_v43  ;;  %v1735_v50 = vld [vmem:[%s12736_s14 + $0x128] sm:$0xff]  ;;  %v1725_v43 = vld [vmem:[%s12736_s14 + $0xd8] sm:$0xff] }
 0x750   : > { %v1661_v45 = vsel %vm730_vm0, %v1658_v44, 0.0  ;;  %1977 = vmatpush.msrb.mxu3 %v1751_v46  ;;  %v1708_v46 = vld [vmem:[%s12736_s14 + $0x50] sm:$0xff] }
 0x751   : > { %1662 = vadd.xlane.f32.xlu1 %v1661_v45  ;;  %1934 = vmatpush.msrb.mxu1 %v1797_v1  ;;  %v1750_v45 = vld [vmem:[%s12736_s14 + $0x1a0] sm:$0xff] }
 0x752   : > { %1957 = vmatpush.msrb.mxu2 %v1750_v45  ;;  %1997 = vmatpush.msra.mxu0 %v1752_v47  ;;  %v1707_v45 = vld [vmem:[%s12736_s14 + $0x48] sm:$0xff]  ;;  %v1709_v47 = vld [vmem:[%s12736_s14 + $0x58] sm:$0xff] }
 0x753   : > { %1935 = vmatpush.msrb.mxu1 %v1781_v6  ;;  %1978 = vmatpush.msrb.mxu3 %v1735_v50  ;;  %v1824_v50 = vld [vmem:[%s12736_s14 + $0x3f0] sm:$0xff] }
 0x754   : > { %1958 = vmatpush.msrb.mxu2 %v1734_v49  ;;  %1998 = vmatpush.msra.mxu0 %v1736_v51  ;;  %v1823_v49 = vld [vmem:[%s12736_s14 + $0x3e8] sm:$0xff]  ;;  %v1825_v51 = vld [vmem:[%s12736_s14 + $0x3f8] sm:$0xff] }
 0x755   : > { %1936 = vmatpush.msrb.mxu1 %v1765_v10  ;;  %1979 = vmatpush.msrb.mxu3 %v1719_v54  ;;  %v1808_v54 = vld [vmem:[%s12736_s14 + $0x370] sm:$0xff] }
 0x756   : > { %1959 = vmatpush.msrb.mxu2 %v1718_v53  ;;  %1999 = vmatpush.msra.mxu0 %v1720_v55  ;;  %v1807_v53 = vld [vmem:[%s12736_s14 + $0x368] sm:$0xff]  ;;  %v1809_v55 = vld [vmem:[%s12736_s14 + $0x378] sm:$0xff] }
 0x757   : > { %1937 = vmatpush.msrb.mxu1 %v1749_v14 }
 0x759   : > { %1938 = vmatpush.msrb.mxu1 %v1733_v18  ;;  %v1802_v18 = vld [vmem:[%s12736_s14 + $0x340] sm:$0xff] }
 0x75b   : > { %1939 = vmatpush.msrb.mxu1 %v1717_v22  ;;  %v1786_v22 = vld [vmem:[%s12736_s14 + $0x2c0] sm:$0xff] }
 0x75d   : > { %1940 = vmatpush.msrb.mxu1 %v1701_v27  ;;  %v1770_v27 = vld [vmem:[%s12736_s14 + $0x240] sm:$0xff] }
 0x75f   : > { %2013 = vmatpush.msra.mxu1 %v1817_v32  ;;  %v1754_v32 = vld [vmem:[%s12736_s14 + $0x1c0] sm:$0xff] }
 0x761   : > { %2014 = vmatpush.msra.mxu1 %v1801_v36  ;;  %v1738_v36 = vld [vmem:[%s12736_s14 + $0x140] sm:$0xff] }
 0x763   : > { %2015 = vmatpush.msra.mxu1 %v1785_v40  ;;  %v1722_v40 = vld [vmem:[%s12736_s14 + $0xc0] sm:$0xff] }
 0x7c4   : > { %v1663_v57 = vpop.xlane.xlu1 %1662 }
 0x7c5   : > { %v1671_v58 = vmul.f32 %v8589_v56, %v1663_v57  ;;  %v1721_v57 = vld [vmem:[%s12736_s14 + $0xb8] sm:$0xff] }
 0x7c7   : > { %v8592_v59 = vsub.f32 %v1658_v44, %v1671_v58  ;;  %v1769_v44 = vld [vmem:[%s12736_s14 + $0x238] sm:$0xff]  ;;  %v1702_v58 = vld [vmem:[%s12736_s14 + $0x20] sm:$0xff] }
 0x7c8   : > { %2016 = vmatpush.msra.mxu1 %v1769_v44  ;;  %1960 = vmatpush.msrb.mxu2 %v1702_v58  ;;  %v1706_v44 = vld [vmem:[%s12736_s14 + $0x40] sm:$0xff]  ;;  %v1791_v58 = vld [vmem:[%s12736_s14 + $0x2e8] sm:$0xff] }
 0x7c9   : > { %v1673_v60 = vmul.f32 %v8592_v59, %v8592_v59 }
 0x7ca   : > { %2017 = vmatpush.msra.mxu1 %v1753_v48  ;;  %v1822_v48 = vld [vmem:[%s12736_s14 + $0x3e0] sm:$0xff] }
 0x7cb   : > { %v1674_v61 = vsel %vm730_vm0, %v1673_v60, 0.0  ;;  %v1703_v60 = vld [vmem:[%s12736_s14 + $0x28] sm:$0xff] }
 0x7cc   : > { %1675 = vadd.xlane.f32.xlu2 %v1674_v61  ;;  %2018 = vmatpush.msra.mxu1 %v1737_v52  ;;  %v1704_v61 = vld [vmem:[%s12736_s14 + $0x30] sm:$0xff]  ;;  %v1806_v52 = vld [vmem:[%s12736_s14 + $0x360] sm:$0xff] }
 0x7cd   : > { %1980 = vmatpush.msrb.mxu3 %v1703_v60  ;;  %2000 = vmatpush.msra.mxu0 %v1704_v61  ;;  %v1792_v60 = vld [vmem:[%s12736_s14 + $0x2f0] sm:$0xff]  ;;  %v1793_v61 = vld [vmem:[%s12736_s14 + $0x2f8] sm:$0xff] }
 0x7ce   : > { %2019 = vmatpush.msra.mxu1 %v1721_v57  ;;  %v1790_v57 = vld [vmem:[%s12736_s14 + $0x2e0] sm:$0xff] }
 0x7d0   : > { %2020 = vmatpush.msra.mxu1 %v1705_v62  ;;  %v1774_v62 = vld [vmem:[%s12736_s14 + $0x260] sm:$0xff] }
 0x83f   : > { %v1676_v63 = vpop.xlane.xlu2 %1675 }
 0x840   : > { %v1677_v0 = vmul.f32 %v1676_v63, %v8589_v56  ;;  %v1775_v63 = vld [vmem:[%s12736_s14 + $0x268] sm:$0xff] }
 0x842   : > { %v1678_v1 = vadd.f32 1e-05, %v1677_v0  ;;  %v1776_v0 = vld [vmem:[%s12736_s14 + $0x270] sm:$0xff] }
 0x844   : > { %8168 = vrsqrt.f32 %v1678_v1  ;;  %vm1685_vm8 = vweird.f32 %v1678_v1 }
 0x84a   : > { %v8169_v2 = vpop.eup %8168 }
 0x84b   : > { %v1680_v3 = vmul.f32 %v8169_v2, %v1678_v1  ;;  %vm1686_vm7 = vweird.f32 %v8169_v2  ;;  %v1777_v1 = vld [vmem:[%s12736_s14 + $0x278] sm:$0xff] }
 0x84c   : > { %vm1687_vm9 = vmor %vm1685_vm8, %vm1686_vm7 }
 0x84d   : > { %v1681_v4 = vmul.f32 %v8169_v2, %v1680_v3  ;;  %v1759_v3 = vld [vmem:[%s12736_s14 + $0x1e8] sm:$0xff] }
 0x84f   : > { %v1682_v6 = vmul.f32 0.5, %v1681_v4  ;;  %v1760_v4 = vld [vmem:[%s12736_s14 + $0x1f0] sm:$0xff] }
 0x851   : > { %v1683_v7 = vsub.f32 1.5, %v1682_v6  ;;  %v1761_v6 = vld [vmem:[%s12736_s14 + $0x1f8] sm:$0xff] }
 0x853   : > { %v1684_v8 = vmul.f32 %v8169_v2, %v1683_v7  ;;  %v1742_v7 = vld [vmem:[%s12736_s14 + $0x160] sm:$0xff] }
 0x855   : > { %v1688_v10 = vsel %vm1687_vm9, %v8169_v2, %v1684_v8  ;;  %v1758_v2 = vld [vmem:[%s12736_s14 + $0x1e0] sm:$0xff]  ;;  %v1743_v8 = vld [vmem:[%s12736_s14 + $0x168] sm:$0xff] }
 0x856   : > { %v1689_v12 = vmul.f32 %v1688_v10, %v8592_v59  ;;  %v1820_v59 = vld [vmem:[%s12736_s14 + $0x3d0] sm:$0xff]  ;;  %v1745_v10 = vld [vmem:[%s12736_s14 + $0x178] sm:$0xff] }
 0x858   : > { %v1693_v13 = vmul.f32 %v8125_v9, %v1689_v12  ;;  %v1744_v9 = vld [vmem:[%s12736_s14 + $0x170] sm:$0xff]  ;;  %v1727_v12 = vld [vmem:[%s12736_s14 + $0xe8] sm:$0xff] }
 0x85a   : > { %v8785_v14 = vadd.f32 %v8126_v11, %v1693_v13  ;;  %v1726_v11 = vld [vmem:[%s12736_s14 + $0xe0] sm:$0xff]  ;;  %v1728_v13 = vld [vmem:[%s12736_s14 + $0xf0] sm:$0xff] }
 0x85c   : > { %7101 = vmatmul.msk.f32.vlgmr.msra.gmra.mxu2 %vm730_vm0, %v8785_v14  ;;  %7102 = vmatmul.msk.f32.vlgmr.msra.gmra.mxu3 %vm730_vm0, %v8785_v14 }
 0x85d   : > { %7103 = vmatmul.msk.f32.vlgmr.msrb.gmra.mxu0 %vm730_vm0, %v8785_v14  ;;  %7104 = vmatmul.msk.f32.vlgmr.msrb.gmra.mxu1 %vm730_vm0, %v8785_v14 }
 0x85e   : > { %2033 = vmatpush.msra.mxu2 %v1818_v15  ;;  %2053 = vmatpush.msra.mxu3 %v1819_v16  ;;  %v1729_v15 = vld [vmem:[%s12736_s14 + $0xf8] sm:$0xff]  ;;  %v1710_v16 = vld [vmem:[%s12736_s14 + $0x60] sm:$0xff] }
 0x85f   : > { %2073 = vmatpush.msrb.mxu0 %v1820_v59  ;;  %2093 = vmatpush.msrb.mxu1 %v1821_v17  ;;  %v1711_v59 = vld [vmem:[%s12736_s14 + $0x68] sm:$0xff]  ;;  %v1712_v17 = vld [vmem:[%s12736_s14 + $0x70] sm:$0xff] }
 0x860   : > { %2034 = vmatpush.msra.mxu2 %v1802_v18  ;;  %2054 = vmatpush.msra.mxu3 %v1803_v19  ;;  %v1713_v18 = vld [vmem:[%s12736_s14 + $0x78] sm:$0xff] }
 0x861   : > { %2074 = vmatpush.msrb.mxu0 %v1804_v20  ;;  %2094 = vmatpush.msrb.mxu1 %v1805_v21  ;;  %v2248_v19 = vld [vmem:[%s12738_s16 + $0x178] sm:$0xff] }
 0x862   : > { %2035 = vmatpush.msra.mxu2 %v1786_v22  ;;  %2055 = vmatpush.msra.mxu3 %v1787_v24  ;;  %v2264_v20 = vld [vmem:[%s12738_s16 + $0x1f8] sm:$0xff]  ;;  %v2247_v24 = vld [vmem:[%s12738_s16 + $0x170] sm:$0xff] }
 0x863   : > { %2075 = vmatpush.msrb.mxu0 %v1788_v25  ;;  %2095 = vmatpush.msrb.mxu1 %v1789_v26  ;;  %v2216_v21 = vld [vmem:[%s12738_s16 + $0x78] sm:$0xff]  ;;  %v2263_v25 = vld [vmem:[%s12738_s16 + $0x1f0] sm:$0xff] }
 0x864   : > { %2036 = vmatpush.msra.mxu2 %v1770_v27  ;;  %2056 = vmatpush.msra.mxu3 %v1771_v28  ;;  %v2232_v22 = vld [vmem:[%s12738_s16 + $0xf8] sm:$0xff]  ;;  %v2215_v26 = vld [vmem:[%s12738_s16 + $0x70] sm:$0xff]  ;;  %v2246_v28 = vld [vmem:[%s12738_s16 + $0x168] sm:$0xff] }
 0x865   : > { %2076 = vmatpush.msrb.mxu0 %v1772_v29  ;;  %2096 = vmatpush.msrb.mxu1 %v1773_v30  ;;  %v2231_v27 = vld [vmem:[%s12738_s16 + $0xf0] sm:$0xff]  ;;  %v2262_v29 = vld [vmem:[%s12738_s16 + $0x1e8] sm:$0xff] }
 0x866   : > { %7105 = vmatmul.msk.f32.vlgmr.msrb.gmra.mxu2 %vm730_vm0, %v8785_v14  ;;  %7106 = vmatmul.msk.f32.vlgmr.msrb.gmra.mxu3 %vm730_vm0, %v8785_v14  ;;  %v2214_v30 = vld [vmem:[%s12738_s16 + $0x68] sm:$0xff] }
 0x867   : > { %7107 = vmatmul.msk.f32.vlgmr.msra.gmra.mxu0 %vm730_vm0, %v8785_v14  ;;  %7108 = vmatmul.msk.f32.vlgmr.msra.gmra.mxu1 %vm730_vm0, %v8785_v14 }
 0x868   : > { %2037 = vmatpush.msra.mxu2 %v1754_v32  ;;  %2057 = vmatpush.msra.mxu3 %v1755_v33  ;;  %v2230_v32 = vld [vmem:[%s12738_s16 + $0xe8] sm:$0xff]  ;;  %v2245_v33 = vld [vmem:[%s12738_s16 + $0x160] sm:$0xff] }
 0x869   : > { %2077 = vmatpush.msrb.mxu0 %v1756_v34  ;;  %2097 = vmatpush.msrb.mxu1 %v1757_v35  ;;  %v2261_v34 = vld [vmem:[%s12738_s16 + $0x1e0] sm:$0xff] }
 0x86a   : > { %2038 = vmatpush.msra.mxu2 %v1738_v36  ;;  %2058 = vmatpush.msra.mxu3 %v1739_v37  ;;  %v2213_v35 = vld [vmem:[%s12738_s16 + $0x60] sm:$0xff]  ;;  %v2244_v37 = vld [vmem:[%s12738_s16 + $0x158] sm:$0xff] }
 0x86b   : > { %2078 = vmatpush.msrb.mxu0 %v1740_v38  ;;  %2098 = vmatpush.msrb.mxu1 %v1741_v39  ;;  %v2229_v36 = vld [vmem:[%s12738_s16 + $0xe0] sm:$0xff]  ;;  %v2260_v38 = vld [vmem:[%s12738_s16 + $0x1d8] sm:$0xff] }
 0x86c   : > { %2039 = vmatpush.msra.mxu2 %v1722_v40  ;;  %2059 = vmatpush.msra.mxu3 %v1723_v41  ;;  %v2212_v39 = vld [vmem:[%s12738_s16 + $0x58] sm:$0xff]  ;;  %v2243_v41 = vld [vmem:[%s12738_s16 + $0x150] sm:$0xff] }
 0x86d   : > { %2079 = vmatpush.msrb.mxu0 %v1724_v42  ;;  %2099 = vmatpush.msrb.mxu1 %v1725_v43  ;;  %v2228_v40 = vld [vmem:[%s12738_s16 + $0xd8] sm:$0xff]  ;;  %v2259_v42 = vld [vmem:[%s12738_s16 + $0x1d0] sm:$0xff] }
 0x86e   : > { %2040 = vmatpush.msra.mxu2 %v1706_v44  ;;  %2060 = vmatpush.msra.mxu3 %v1707_v45  ;;  %v2211_v43 = vld [vmem:[%s12738_s16 + $0x50] sm:$0xff]  ;;  %v2242_v45 = vld [vmem:[%s12738_s16 + $0x148] sm:$0xff] }
 0x86f   : > { %2080 = vmatpush.msrb.mxu0 %v1708_v46  ;;  %2100 = vmatpush.msrb.mxu1 %v1709_v47  ;;  %v2227_v44 = vld [vmem:[%s12738_s16 + $0xd0] sm:$0xff]  ;;  %v2258_v46 = vld [vmem:[%s12738_s16 + $0x1c8] sm:$0xff] }
 0x870   : > { %2113 = vmatpush.msrb.mxu2 %v1822_v48  ;;  %2133 = vmatpush.msrb.mxu3 %v1823_v49  ;;  %v2210_v47 = vld [vmem:[%s12738_s16 + $0x48] sm:$0xff]  ;;  %v2241_v49 = vld [vmem:[%s12738_s16 + $0x140] sm:$0xff] }
 0x871   : > { %2153 = vmatpush.msra.mxu0 %v1824_v50  ;;  %2173 = vmatpush.msra.mxu1 %v1825_v51  ;;  %v2226_v48 = vld [vmem:[%s12738_s16 + $0xc8] sm:$0xff]  ;;  %v2257_v50 = vld [vmem:[%s12738_s16 + $0x1c0] sm:$0xff] }
 0x872   : > { %7109 = vmatmul.msk.f32.vlgmr.msra.gmra.mxu2 %vm730_vm0, %v8785_v14  ;;  %7110 = vmatmul.msk.f32.vlgmr.msra.gmra.mxu3 %vm730_vm0, %v8785_v14  ;;  %v2209_v51 = vld [vmem:[%s12738_s16 + $0x40] sm:$0xff] }
 0x873   : > { %7111 = vmatmul.msk.f32.vlgmr.msrb.gmra.mxu0 %vm730_vm0, %v8785_v14  ;;  %7112 = vmatmul.msk.f32.vlgmr.msrb.gmra.mxu1 %vm730_vm0, %v8785_v14 }
 0x874   : > { %2114 = vmatpush.msrb.mxu2 %v1806_v52  ;;  %2134 = vmatpush.msrb.mxu3 %v1807_v53  ;;  %v2225_v52 = vld [vmem:[%s12738_s16 + $0xc0] sm:$0xff]  ;;  %v2240_v53 = vld [vmem:[%s12738_s16 + $0x138] sm:$0xff] }
 0x875   : > { %2154 = vmatpush.msra.mxu0 %v1808_v54  ;;  %2174 = vmatpush.msra.mxu1 %v1809_v55  ;;  %v2256_v54 = vld [vmem:[%s12738_s16 + $0x1b8] sm:$0xff] }
 0x876   : > { %2115 = vmatpush.msrb.mxu2 %v1790_v57  ;;  %2135 = vmatpush.msrb.mxu3 %v1791_v58  ;;  %v2208_v55 = vld [vmem:[%s12738_s16 + $0x38] sm:$0xff]  ;;  %v2239_v58 = vld [vmem:[%s12738_s16 + $0x130] sm:$0xff] }
 0x877   : > { %2155 = vmatpush.msra.mxu0 %v1792_v60  ;;  %2175 = vmatpush.msra.mxu1 %v1793_v61  ;;  %v2224_v57 = vld [vmem:[%s12738_s16 + $0xb8] sm:$0xff]  ;;  %v2255_v60 = vld [vmem:[%s12738_s16 + $0x1b0] sm:$0xff] }
 0x878   : > { %2116 = vmatpush.msrb.mxu2 %v1774_v62  ;;  %2136 = vmatpush.msrb.mxu3 %v1775_v63  ;;  %v2207_v61 = vld [vmem:[%s12738_s16 + $0x30] sm:$0xff]  ;;  %v2238_v63 = vld [vmem:[%s12738_s16 + $0x128] sm:$0xff] }
 0x879   : > { %2156 = vmatpush.msra.mxu0 %v1776_v0  ;;  %2176 = vmatpush.msra.mxu1 %v1777_v1  ;;  %v2223_v62 = vld [vmem:[%s12738_s16 + $0xb0] sm:$0xff]  ;;  %v2254_v0 = vld [vmem:[%s12738_s16 + $0x1a8] sm:$0xff] }
 0x87a   : > { %2117 = vmatpush.msrb.mxu2 %v1758_v2  ;;  %2137 = vmatpush.msrb.mxu3 %v1759_v3  ;;  %v2206_v1 = vld [vmem:[%s12738_s16 + $0x28] sm:$0xff]  ;;  %v2237_v3 = vld [vmem:[%s12738_s16 + $0x120] sm:$0xff] }
 0x87b   : > { %2157 = vmatpush.msra.mxu0 %v1760_v4  ;;  %2177 = vmatpush.msra.mxu1 %v1761_v6  ;;  %v2222_v2 = vld [vmem:[%s12738_s16 + $0xa8] sm:$0xff]  ;;  %v2253_v4 = vld [vmem:[%s12738_s16 + $0x1a0] sm:$0xff] }
 0x87c   : > { %2118 = vmatpush.msrb.mxu2 %v1742_v7  ;;  %2138 = vmatpush.msrb.mxu3 %v1743_v8  ;;  %v2205_v6 = vld [vmem:[%s12738_s16 + $0x20] sm:$0xff]  ;;  %v2236_v8 = vld [vmem:[%s12738_s16 + $0x118] sm:$0xff] }
 0x87d   : > { %2158 = vmatpush.msra.mxu0 %v1744_v9  ;;  %2178 = vmatpush.msra.mxu1 %v1745_v10  ;;  %v2221_v7 = vld [vmem:[%s12738_s16 + $0xa0] sm:$0xff]  ;;  %v2252_v9 = vld [vmem:[%s12738_s16 + $0x198] sm:$0xff] }
 0x87e   : > { %2119 = vmatpush.msrb.mxu2 %v1726_v11  ;;  %2139 = vmatpush.msrb.mxu3 %v1727_v12  ;;  %v2204_v10 = vld [vmem:[%s12738_s16 + $0x18] sm:$0xff]  ;;  %v2235_v12 = vld [vmem:[%s12738_s16 + $0x110] sm:$0xff] }
 0x87f   : > { %2159 = vmatpush.msra.mxu0 %v1728_v13  ;;  %2179 = vmatpush.msra.mxu1 %v1729_v15  ;;  %v2220_v11 = vld [vmem:[%s12738_s16 + $0x98] sm:$0xff]  ;;  %v2251_v13 = vld [vmem:[%s12738_s16 + $0x190] sm:$0xff] }
 0x880   : > { %2120 = vmatpush.msrb.mxu2 %v1710_v16  ;;  %2140 = vmatpush.msrb.mxu3 %v1711_v59  ;;  %v2203_v15 = vld [vmem:[%s12738_s16 + $0x10] sm:$0xff]  ;;  %v2234_v59 = vld [vmem:[%s12738_s16 + $0x108] sm:$0xff] }
 0x881   : > { %2160 = vmatpush.msra.mxu0 %v1712_v17  ;;  %2180 = vmatpush.msra.mxu1 %v1713_v18  ;;  %v2219_v16 = vld [vmem:[%s12738_s16 + $0x90] sm:$0xff]  ;;  %v2250_v17 = vld [vmem:[%s12738_s16 + $0x188] sm:$0xff] }
 0x882   : > { %7113 = vmatmul.msk.f32.vlgmr.msrb.gmra.mxu2 %vm730_vm0, %v8785_v14  ;;  %7114 = vmatmul.msk.f32.vlgmr.msrb.gmra.mxu3 %vm730_vm0, %v8785_v14  ;;  %v2202_v18 = vld [vmem:[%s12738_s16 + $0x8] sm:$0xff] }
 0x883   : > { %7115 = vmatmul.msk.f32.vlgmr.msra.gmra.mxu0 %vm730_vm0, %v8785_v14  ;;  %7116 = vmatmul.msk.f32.vlgmr.msra.gmra.mxu1 %vm730_vm0, %v8785_v14 }
 0x884   : > { %2501 = vmatpush.msrb.mxu0 %v2248_v19  ;;  %2521 = vmatpush.msrb.mxu1 %v2264_v20  ;;  %v2218_v19 = vld [vmem:[%s12738_s16 + $0x88] sm:$0xff]  ;;  %v2233_v20 = vld [vmem:[%s12738_s16 + $0x100] sm:$0xff] }
 0x885   : > { %2461 = vmatpush.msra.mxu2 %v2216_v21  ;;  %2481 = vmatpush.msra.mxu3 %v2232_v22  ;;  %v2249_v21 = vld [vmem:[%s12738_s16 + $0x180] sm:$0xff]  ;;  %v2312_v22 = vld [vmem:[%s12738_s16 + $0x378] sm:$0xff] }
 0x886   : > { %2502 = vmatpush.msrb.mxu0 %v2247_v24  ;;  %2522 = vmatpush.msrb.mxu1 %v2263_v25  ;;  %v2328_v24 = vld [vmem:[%s12738_s16 + $0x3f8] sm:$0xff]  ;;  %v2201_v25 = vld [vmem:[%s12738_s16] sm:$0xff] }
 0x887   : > { %2462 = vmatpush.msra.mxu2 %v2215_v26  ;;  %2482 = vmatpush.msra.mxu3 %v2231_v27  ;;  %v2217_v26 = vld [vmem:[%s12738_s16 + $0x80] sm:$0xff]  ;;  %v2311_v27 = vld [vmem:[%s12738_s16 + $0x370] sm:$0xff] }
 0x888   : > { %2503 = vmatpush.msrb.mxu0 %v2246_v28  ;;  %2523 = vmatpush.msrb.mxu1 %v2262_v29  ;;  %v2327_v28 = vld [vmem:[%s12738_s16 + $0x3f0] sm:$0xff]  ;;  %v2280_v29 = vld [vmem:[%s12738_s16 + $0x278] sm:$0xff] }
 0x889   : > { %2463 = vmatpush.msra.mxu2 %v2214_v30  ;;  %2483 = vmatpush.msra.mxu3 %v2230_v32  ;;  %v2296_v30 = vld [vmem:[%s12738_s16 + $0x2f8] sm:$0xff]  ;;  %v2310_v32 = vld [vmem:[%s12738_s16 + $0x368] sm:$0xff] }
 0x88a   : > { %2504 = vmatpush.msrb.mxu0 %v2245_v33  ;;  %2524 = vmatpush.msrb.mxu1 %v2261_v34  ;;  %v2326_v33 = vld [vmem:[%s12738_s16 + $0x3e8] sm:$0xff]  ;;  %v2279_v34 = vld [vmem:[%s12738_s16 + $0x270] sm:$0xff] }
 0x88b   : > { %2464 = vmatpush.msra.mxu2 %v2213_v35  ;;  %2484 = vmatpush.msra.mxu3 %v2229_v36  ;;  %v2295_v35 = vld [vmem:[%s12738_s16 + $0x2f0] sm:$0xff]  ;;  %v2309_v36 = vld [vmem:[%s12738_s16 + $0x360] sm:$0xff] }
 0x88c   : > { %2505 = vmatpush.msrb.mxu0 %v2244_v37  ;;  %2525 = vmatpush.msrb.mxu1 %v2260_v38  ;;  %v2325_v37 = vld [vmem:[%s12738_s16 + $0x3e0] sm:$0xff]  ;;  %v2278_v38 = vld [vmem:[%s12738_s16 + $0x268] sm:$0xff] }
 0x88d   : > { %2465 = vmatpush.msra.mxu2 %v2212_v39  ;;  %2485 = vmatpush.msra.mxu3 %v2228_v40  ;;  %v2294_v39 = vld [vmem:[%s12738_s16 + $0x2e8] sm:$0xff]  ;;  %v2308_v40 = vld [vmem:[%s12738_s16 + $0x358] sm:$0xff] }
 0x88e   : > { %2506 = vmatpush.msrb.mxu0 %v2243_v41  ;;  %2526 = vmatpush.msrb.mxu1 %v2259_v42  ;;  %v2324_v41 = vld [vmem:[%s12738_s16 + $0x3d8] sm:$0xff]  ;;  %v2277_v42 = vld [vmem:[%s12738_s16 + $0x260] sm:$0xff] }
 0x88f   : > { %2466 = vmatpush.msra.mxu2 %v2211_v43  ;;  %2486 = vmatpush.msra.mxu3 %v2227_v44  ;;  %v2293_v43 = vld [vmem:[%s12738_s16 + $0x2e0] sm:$0xff]  ;;  %v2307_v44 = vld [vmem:[%s12738_s16 + $0x350] sm:$0xff] }
 0x890   : > { %2507 = vmatpush.msrb.mxu0 %v2242_v45  ;;  %2527 = vmatpush.msrb.mxu1 %v2258_v46  ;;  %v2323_v45 = vld [vmem:[%s12738_s16 + $0x3d0] sm:$0xff]  ;;  %v2276_v46 = vld [vmem:[%s12738_s16 + $0x258] sm:$0xff] }
 0x891   : > { %2467 = vmatpush.msra.mxu2 %v2210_v47  ;;  %2487 = vmatpush.msra.mxu3 %v2226_v48  ;;  %v2292_v47 = vld [vmem:[%s12738_s16 + $0x2d8] sm:$0xff]  ;;  %v2306_v48 = vld [vmem:[%s12738_s16 + $0x348] sm:$0xff] }
 0x892   : > { %2508 = vmatpush.msrb.mxu0 %v2241_v49  ;;  %2528 = vmatpush.msrb.mxu1 %v2257_v50  ;;  %v2322_v49 = vld [vmem:[%s12738_s16 + $0x3c8] sm:$0xff]  ;;  %v2275_v50 = vld [vmem:[%s12738_s16 + $0x250] sm:$0xff] }
 0x893   : > { %2468 = vmatpush.msra.mxu2 %v2209_v51  ;;  %2488 = vmatpush.msra.mxu3 %v2225_v52  ;;  %v2291_v51 = vld [vmem:[%s12738_s16 + $0x2d0] sm:$0xff]  ;;  %v2305_v52 = vld [vmem:[%s12738_s16 + $0x340] sm:$0xff] }
 0x894   : > { %2509 = vmatpush.msrb.mxu0 %v2240_v53  ;;  %2529 = vmatpush.msrb.mxu1 %v2256_v54  ;;  %v2321_v53 = vld [vmem:[%s12738_s16 + $0x3c0] sm:$0xff]  ;;  %v2274_v54 = vld [vmem:[%s12738_s16 + $0x248] sm:$0xff] }
 0x895   : > { %2469 = vmatpush.msra.mxu2 %v2208_v55  ;;  %2489 = vmatpush.msra.mxu3 %v2224_v57  ;;  %v2290_v55 = vld [vmem:[%s12738_s16 + $0x2c8] sm:$0xff]  ;;  %v2304_v57 = vld [vmem:[%s12738_s16 + $0x338] sm:$0xff] }
 0x896   : > { %2510 = vmatpush.msrb.mxu0 %v2239_v58  ;;  %2530 = vmatpush.msrb.mxu1 %v2255_v60  ;;  %v2320_v58 = vld [vmem:[%s12738_s16 + $0x3b8] sm:$0xff]  ;;  %v2273_v60 = vld [vmem:[%s12738_s16 + $0x240] sm:$0xff] }
 0x897   : > { %2470 = vmatpush.msra.mxu2 %v2207_v61  ;;  %2490 = vmatpush.msra.mxu3 %v2223_v62  ;;  %v2289_v61 = vld [vmem:[%s12738_s16 + $0x2c0] sm:$0xff]  ;;  %v2303_v62 = vld [vmem:[%s12738_s16 + $0x330] sm:$0xff] }
 0x898   : > { %2511 = vmatpush.msrb.mxu0 %v2238_v63  ;;  %2531 = vmatpush.msrb.mxu1 %v2254_v0  ;;  %v2319_v63 = vld [vmem:[%s12738_s16 + $0x3b0] sm:$0xff]  ;;  %v2272_v0 = vld [vmem:[%s12738_s16 + $0x238] sm:$0xff] }
 0x899   : > { %2471 = vmatpush.msra.mxu2 %v2206_v1  ;;  %2491 = vmatpush.msra.mxu3 %v2222_v2  ;;  %v2288_v1 = vld [vmem:[%s12738_s16 + $0x2b8] sm:$0xff]  ;;  %v2302_v2 = vld [vmem:[%s12738_s16 + $0x328] sm:$0xff] }
 0x89a   : > { %2512 = vmatpush.msrb.mxu0 %v2237_v3  ;;  %2532 = vmatpush.msrb.mxu1 %v2253_v4  ;;  %v2318_v3 = vld [vmem:[%s12738_s16 + $0x3a8] sm:$0xff]  ;;  %v2271_v4 = vld [vmem:[%s12738_s16 + $0x230] sm:$0xff] }
 0x89b   : > { %2472 = vmatpush.msra.mxu2 %v2205_v6  ;;  %2492 = vmatpush.msra.mxu3 %v2221_v7  ;;  %v2287_v6 = vld [vmem:[%s12738_s16 + $0x2b0] sm:$0xff]  ;;  %v2301_v7 = vld [vmem:[%s12738_s16 + $0x320] sm:$0xff] }
 0x89c   : > { %2513 = vmatpush.msrb.mxu0 %v2236_v8  ;;  %2533 = vmatpush.msrb.mxu1 %v2252_v9  ;;  %v2317_v8 = vld [vmem:[%s12738_s16 + $0x3a0] sm:$0xff]  ;;  %v2300_v9 = vld [vmem:[%s12738_s16 + $0x318] sm:$0xff] }
 0x89d   : > { %2473 = vmatpush.msra.mxu2 %v2204_v10  ;;  %2493 = vmatpush.msra.mxu3 %v2220_v11  ;;  %v2316_v10 = vld [vmem:[%s12738_s16 + $0x398] sm:$0xff]  ;;  %v2270_v11 = vld [vmem:[%s12738_s16 + $0x228] sm:$0xff] }
 0x89e   : > { %2514 = vmatpush.msrb.mxu0 %v2235_v12  ;;  %2534 = vmatpush.msrb.mxu1 %v2251_v13  ;;  %v2286_v12 = vld [vmem:[%s12738_s16 + $0x2a8] sm:$0xff]  ;;  %v2299_v13 = vld [vmem:[%s12738_s16 + $0x310] sm:$0xff] }
 0x89f   : > { %2474 = vmatpush.msra.mxu2 %v2203_v15  ;;  %2494 = vmatpush.msra.mxu3 %v2219_v16  ;;  %v2315_v15 = vld [vmem:[%s12738_s16 + $0x390] sm:$0xff]  ;;  %v2269_v16 = vld [vmem:[%s12738_s16 + $0x220] sm:$0xff] }
 0x8a0   : > { %2515 = vmatpush.msrb.mxu0 %v2234_v59  ;;  %2535 = vmatpush.msrb.mxu1 %v2250_v17  ;;  %v2285_v59 = vld [vmem:[%s12738_s16 + $0x2a0] sm:$0xff]  ;;  %v2298_v17 = vld [vmem:[%s12738_s16 + $0x308] sm:$0xff] }
 0x8a1   : > { %2475 = vmatpush.msra.mxu2 %v2202_v18  ;;  %2495 = vmatpush.msra.mxu3 %v2218_v19  ;;  %v2314_v18 = vld [vmem:[%s12738_s16 + $0x388] sm:$0xff]  ;;  %v2268_v19 = vld [vmem:[%s12738_s16 + $0x218] sm:$0xff] }
 0x8a2   : > { %2516 = vmatpush.msrb.mxu0 %v2233_v20  ;;  %2536 = vmatpush.msrb.mxu1 %v2249_v21  ;;  %v2284_v20 = vld [vmem:[%s12738_s16 + $0x298] sm:$0xff]  ;;  %v2297_v21 = vld [vmem:[%s12738_s16 + $0x300] sm:$0xff] }
 0x8a3   : > { %2476 = vmatpush.msra.mxu2 %v2201_v25  ;;  %2496 = vmatpush.msra.mxu3 %v2217_v26  ;;  %v2283_v25 = vld [vmem:[%s12738_s16 + $0x290] sm:$0xff]  ;;  %v2266_v26 = vld [vmem:[%s12738_s16 + $0x208] sm:$0xff] }
 0x8a4   : > { %2581 = vmatpush.msra.mxu0 %v2312_v22  ;;  %2601 = vmatpush.msra.mxu1 %v2328_v24  ;;  %v2313_v22 = vld [vmem:[%s12738_s16 + $0x380] sm:$0xff]  ;;  %v2267_v24 = vld [vmem:[%s12738_s16 + $0x210] sm:$0xff] }
 0x8a5   : > { %2541 = vmatpush.msrb.mxu2 %v2280_v29  ;;  %2561 = vmatpush.msrb.mxu3 %v2296_v30  ;;  %v2281_v29 = vld [vmem:[%s12738_s16 + $0x280] sm:$0xff] }
 0x8a6   : > { %2582 = vmatpush.msra.mxu0 %v2311_v27  ;;  %2602 = vmatpush.msra.mxu1 %v2327_v28  ;;  %v2282_v27 = vld [vmem:[%s12738_s16 + $0x288] sm:$0xff]  ;;  %v2265_v28 = vld [vmem:[%s12738_s16 + $0x200] sm:$0xff] }
 0x8a7   : > { %2542 = vmatpush.msrb.mxu2 %v2279_v34  ;;  %2562 = vmatpush.msrb.mxu3 %v2295_v35  ;;  %v9398_v30 = vld [vmem:[%s12737_s15] sm:$0xff] }
 0x8a8   : > { %2583 = vmatpush.msra.mxu0 %v2310_v32  ;;  %2603 = vmatpush.msra.mxu1 %v2326_v33  ;;  %v1832_v32 = vperm.slane %v9398_v30, 2  ;;  %v1833_v33 = vperm.slane %v9398_v30, 3 }
 0x8a9   : > { %2543 = vmatpush.msrb.mxu2 %v2278_v38  ;;  %2563 = vmatpush.msrb.mxu3 %v2294_v39  ;;  %v1830_v38 = vperm.slane %v9398_v30, 0  ;;  %v1831_v39 = vperm.slane %v9398_v30, 1 }
 0x8aa   : > { %2584 = vmatpush.msra.mxu0 %v2309_v36  ;;  %2604 = vmatpush.msra.mxu1 %v2325_v37 }
 0x8ab   : > { %2544 = vmatpush.msrb.mxu2 %v2277_v42  ;;  %2564 = vmatpush.msrb.mxu3 %v2293_v43  ;;  %v2376_v42 = vld [vmem:[%s12738_s16 + $0x578] sm:$0xff] }
 0x8ac   : > { %2585 = vmatpush.msra.mxu0 %v2308_v40  ;;  %2605 = vmatpush.msra.mxu1 %v2324_v41  ;;  %v2392_v43 = vld [vmem:[%s12738_s16 + $0x5f8] sm:$0xff] }
 0x8ad   : > { %2545 = vmatpush.msrb.mxu2 %v2276_v46  ;;  %2565 = vmatpush.msrb.mxu3 %v2292_v47  ;;  %v2375_v46 = vld [vmem:[%s12738_s16 + $0x570] sm:$0xff] }
 0x8ae   : > { %2586 = vmatpush.msra.mxu0 %v2307_v44  ;;  %2606 = vmatpush.msra.mxu1 %v2323_v45  ;;  %v2391_v47 = vld [vmem:[%s12738_s16 + $0x5f0] sm:$0xff] }
 0x8af   : > { %2546 = vmatpush.msrb.mxu2 %v2275_v50  ;;  %2566 = vmatpush.msrb.mxu3 %v2291_v51  ;;  %v1836_v50 = vperm.slane %v9398_v30, 6  ;;  %v1837_v51 = vperm.slane %v9398_v30, 7 }
 0x8b0   : > { %2587 = vmatpush.msra.mxu0 %v2306_v48  ;;  %2607 = vmatpush.msra.mxu1 %v2322_v49 }
 0x8b1   : > { %2547 = vmatpush.msrb.mxu2 %v2274_v54  ;;  %2567 = vmatpush.msrb.mxu3 %v2290_v55 }
 0x8b2   : > { %2588 = vmatpush.msra.mxu0 %v2305_v52  ;;  %2608 = vmatpush.msra.mxu1 %v2321_v53  ;;  %v2374_v52 = vld [vmem:[%s12738_s16 + $0x568] sm:$0xff] }
 0x8b3   : > { %2548 = vmatpush.msrb.mxu2 %v2273_v60  ;;  %2568 = vmatpush.msrb.mxu3 %v2289_v61  ;;  %v2390_v53 = vld [vmem:[%s12738_s16 + $0x5e8] sm:$0xff] }
 0x8b4   : > { %2589 = vmatpush.msra.mxu0 %v2304_v57  ;;  %2609 = vmatpush.msra.mxu1 %v2320_v58  ;;  %v2344_v57 = vld [vmem:[%s12738_s16 + $0x478] sm:$0xff] }
 0x8b5   : > { %2549 = vmatpush.msrb.mxu2 %v2272_v0  ;;  %2569 = vmatpush.msrb.mxu3 %v2288_v1  ;;  %v2360_v58 = vld [vmem:[%s12738_s16 + $0x4f8] sm:$0xff] }
 0x8b6   : > { %2590 = vmatpush.msra.mxu0 %v2303_v62  ;;  %2610 = vmatpush.msra.mxu1 %v2319_v63  ;;  %v2373_v62 = vld [vmem:[%s12738_s16 + $0x560] sm:$0xff] }
 0x8b7   : > { %2550 = vmatpush.msrb.mxu2 %v2271_v4  ;;  %2570 = vmatpush.msrb.mxu3 %v2287_v6  ;;  %v2389_v63 = vld [vmem:[%s12738_s16 + $0x5e0] sm:$0xff]  ;;  %v1834_v4 = vperm.slane %v9398_v30, 4  ;;  %v1835_v6 = vperm.slane %v9398_v30, 5  ;;  %v2339_v30 = vld [vmem:[%s12738_s16 + $0x450] sm:$0xff] }
 0x8b8   : > { %2591 = vmatpush.msra.mxu0 %v2302_v2  ;;  %2611 = vmatpush.msra.mxu1 %v2318_v3  ;;  %v2343_v2 = vld [vmem:[%s12738_s16 + $0x470] sm:$0xff] }
 0x8b9   : > { %2551 = vmatpush.msrb.mxu2 %v2270_v11  ;;  %2571 = vmatpush.msrb.mxu3 %v2286_v12  ;;  %v2359_v3 = vld [vmem:[%s12738_s16 + $0x4f0] sm:$0xff]  ;;  %v2342_v11 = vld [vmem:[%s12738_s16 + $0x468] sm:$0xff] }
 0x8ba   : > { %2592 = vmatpush.msra.mxu0 %v2301_v7  ;;  %2612 = vmatpush.msra.mxu1 %v2317_v8  ;;  %v2358_v12 = vld [vmem:[%s12738_s16 + $0x4e8] sm:$0xff] }
 0x8bb   : > { %2552 = vmatpush.msrb.mxu2 %v2269_v16  ;;  %2572 = vmatpush.msrb.mxu3 %v2285_v59  ;;  %v2371_v16 = vld [vmem:[%s12738_s16 + $0x550] sm:$0xff] }
 0x8bc   : > { %2593 = vmatpush.msra.mxu0 %v2300_v9  ;;  %2613 = vmatpush.msra.mxu1 %v2316_v10  ;;  %v2372_v9 = vld [vmem:[%s12738_s16 + $0x558] sm:$0xff]  ;;  %v2387_v59 = vld [vmem:[%s12738_s16 + $0x5d0] sm:$0xff] }
 0x8bd   : > { %2553 = vmatpush.msrb.mxu2 %v2268_v19  ;;  %2573 = vmatpush.msrb.mxu3 %v2284_v20  ;;  %v2388_v10 = vld [vmem:[%s12738_s16 + $0x5d8] sm:$0xff]  ;;  %v2341_v19 = vld [vmem:[%s12738_s16 + $0x460] sm:$0xff] }
 0x8be   : > { %2594 = vmatpush.msra.mxu0 %v2299_v13  ;;  %2614 = vmatpush.msra.mxu1 %v2315_v15  ;;  %v2357_v20 = vld [vmem:[%s12738_s16 + $0x4e0] sm:$0xff] }
 0x8bf   : > { %2554 = vmatpush.msrb.mxu2 %v2267_v24  ;;  %2574 = vmatpush.msrb.mxu3 %v2283_v25 }
 0x8c0   : > { %2595 = vmatpush.msra.mxu0 %v2298_v17  ;;  %2615 = vmatpush.msra.mxu1 %v2314_v18 }
 0x8c1   : > { %2555 = vmatpush.msrb.mxu2 %v2266_v26  ;;  %2575 = vmatpush.msrb.mxu3 %v2282_v27  ;;  %v2340_v26 = vld [vmem:[%s12738_s16 + $0x458] sm:$0xff] }
 0x8c2   : > { %2596 = vmatpush.msra.mxu0 %v2297_v21  ;;  %2616 = vmatpush.msra.mxu1 %v2313_v22  ;;  %v2370_v21 = vld [vmem:[%s12738_s16 + $0x548] sm:$0xff]  ;;  %v2356_v27 = vld [vmem:[%s12738_s16 + $0x4d8] sm:$0xff] }
 0x8c3   : > { %2556 = vmatpush.msrb.mxu2 %v2265_v28  ;;  %2576 = vmatpush.msrb.mxu3 %v2281_v29  ;;  %v2386_v22 = vld [vmem:[%s12738_s16 + $0x5c8] sm:$0xff]  ;;  %v2369_v28 = vld [vmem:[%s12738_s16 + $0x540] sm:$0xff] }
 0x8c4   : > { %v2385_v29 = vld [vmem:[%s12738_s16 + $0x5c0] sm:$0xff] }
 0x8da   : > { %v1922_v34 = vpop.f32.mrf.mxu0  ;;  %v1942_v35 = vpop.f32.mrf.mxu1 }
 0x8db   : > { %v1923_v36 = vadd.f32 %v1922_v34, %v1832_v32  ;;  %v1943_v37 = vadd.f32 %v1942_v35, %v1833_v33  ;;  %v2355_v32 = vld [vmem:[%s12738_s16 + $0x4d0] sm:$0xff]  ;;  %v2368_v33 = vld [vmem:[%s12738_s16 + $0x538] sm:$0xff]  ;;  %v2338_v35 = vld [vmem:[%s12738_s16 + $0x448] sm:$0xff] }
 0x8dc   : > { %v2384_v34 = vld [vmem:[%s12738_s16 + $0x5b8] sm:$0xff] }
 0x8dd   : > { %v2187_v40 = vmax.f32 %v1923_v36, 0.0  ;;  %v2188_v41 = vmax.f32 %v1943_v37, 0.0  ;;  %v2354_v36 = vld [vmem:[%s12738_s16 + $0x4c8] sm:$0xff]  ;;  %v2367_v37 = vld [vmem:[%s12738_s16 + $0x530] sm:$0xff] }
 0x8df   : > { %2517 = vmatmul.f32.vlgmr.msrb.gmra.mxu0 %v2187_v40  ;;  %2537 = vmatmul.f32.vlgmr.msrb.gmra.mxu1 %v2188_v41  ;;  %v1882_v44 = vpop.f32.mrf.mxu2  ;;  %v1902_v45 = vpop.f32.mrf.mxu3  ;;  %v2353_v40 = vld [vmem:[%s12738_s16 + $0x4c0] sm:$0xff]  ;;  %v2366_v41 = vld [vmem:[%s12738_s16 + $0x528] sm:$0xff] }
 0x8e0   : > { %2661 = vmatpush.msrb.mxu0 %v2376_v42  ;;  %2681 = vmatpush.msrb.mxu1 %v2392_v43  ;;  %v1883_v48 = vadd.f32 %v1882_v44, %v1830_v38  ;;  %v1903_v49 = vadd.f32 %v1902_v45, %v1831_v39  ;;  %v2383_v38 = vld [vmem:[%s12738_s16 + $0x5b0] sm:$0xff]  ;;  %v2337_v39 = vld [vmem:[%s12738_s16 + $0x440] sm:$0xff]  ;;  %v2382_v42 = vld [vmem:[%s12738_s16 + $0x5a8] sm:$0xff] }
 0x8e1   : > { %v9525_v43 = vld [vmem:[%s12737_s15 + $0x8] sm:$0xff]  ;;  %v2336_v44 = vld [vmem:[%s12738_s16 + $0x438] sm:$0xff] }
 0x8e2   : > { %v2185_v54 = vmax.f32 %v1883_v48, 0.0  ;;  %v2186_v55 = vmax.f32 %v1903_v49, 0.0  ;;  %2662 = vmatpush.msrb.mxu0 %v2375_v46  ;;  %2682 = vmatpush.msrb.mxu1 %v2391_v47  ;;  %v2352_v45 = vld [vmem:[%s12738_s16 + $0x4b8] sm:$0xff]  ;;  %v2365_v46 = vld [vmem:[%s12738_s16 + $0x520] sm:$0xff]  ;;  %v2335_v48 = vld [vmem:[%s12738_s16 + $0x430] sm:$0xff] }
 0x8e3   : > { %v2381_v47 = vld [vmem:[%s12738_s16 + $0x5a0] sm:$0xff]  ;;  %v2351_v49 = vld [vmem:[%s12738_s16 + $0x4b0] sm:$0xff] }
 0x8e4   : > { %v2002_v60 = vpop.f32.mrf.mxu0  ;;  %v2022_v61 = vpop.f32.mrf.mxu1  ;;  %2663 = vmatpush.msrb.mxu0 %v2374_v52  ;;  %2683 = vmatpush.msrb.mxu1 %v2390_v53  ;;  %v2364_v52 = vld [vmem:[%s12738_s16 + $0x518] sm:$0xff] }
 0x8e5   : > { %v2003_v0 = vadd.f32 %v2002_v60, %v1836_v50  ;;  %v2023_v1 = vadd.f32 %v2022_v61, %v1837_v51  ;;  %2477 = vmatmul.f32.vlgmr.msra.gmra.mxu2 %v2185_v54  ;;  %2497 = vmatmul.f32.vlgmr.msra.gmra.mxu3 %v2186_v55  ;;  %v1840_v50 = vperm.slane %v9525_v43, 2  ;;  %v1841_v51 = vperm.slane %v9525_v43, 3  ;;  %v2380_v53 = vld [vmem:[%s12738_s16 + $0x598] sm:$0xff]  ;;  %v2363_v60 = vld [vmem:[%s12738_s16 + $0x510] sm:$0xff] }
 0x8e6   : > { %2621 = vmatpush.msra.mxu2 %v2344_v57  ;;  %2641 = vmatpush.msra.mxu3 %v2360_v58  ;;  %v2334_v57 = vld [vmem:[%s12738_s16 + $0x428] sm:$0xff]  ;;  %v2379_v61 = vld [vmem:[%s12738_s16 + $0x590] sm:$0xff] }
 0x8e7   : > { %v2191_v7 = vmax.f32 %v2003_v0, 0.0  ;;  %v2192_v8 = vmax.f32 %v2023_v1, 0.0  ;;  %2664 = vmatpush.msrb.mxu0 %v2373_v62  ;;  %2684 = vmatpush.msrb.mxu1 %v2389_v63  ;;  %v2350_v58 = vld [vmem:[%s12738_s16 + $0x4a8] sm:$0xff]  ;;  %v2333_v62 = vld [vmem:[%s12738_s16 + $0x420] sm:$0xff] }
 0x8e8   : > { %2622 = vmatpush.msra.mxu2 %v2343_v2  ;;  %2642 = vmatpush.msra.mxu3 %v2359_v3  ;;  %v2349_v63 = vld [vmem:[%s12738_s16 + $0x4a0] sm:$0xff]  ;;  %v2362_v2 = vld [vmem:[%s12738_s16 + $0x508] sm:$0xff] }
 0x8e9   : > { %2597 = vmatmul.f32.vlgmr.msra.gmra.mxu0 %v2191_v7  ;;  %2617 = vmatmul.f32.vlgmr.msra.gmra.mxu1 %v2192_v8  ;;  %v1962_v13 = vpop.f32.mrf.mxu2  ;;  %v1982_v15 = vpop.f32.mrf.mxu3  ;;  %v2378_v3 = vld [vmem:[%s12738_s16 + $0x588] sm:$0xff]  ;;  %v2361_v7 = vld [vmem:[%s12738_s16 + $0x500] sm:$0xff] }
 0x8ea   : > { %2665 = vmatpush.msrb.mxu0 %v2372_v9  ;;  %2685 = vmatpush.msrb.mxu1 %v2388_v10  ;;  %v1963_v17 = vadd.f32 %v1962_v13, %v1834_v4  ;;  %v1983_v18 = vadd.f32 %v1982_v15, %v1835_v6  ;;  %v2332_v4 = vld [vmem:[%s12738_s16 + $0x418] sm:$0xff]  ;;  %v2377_v8 = vld [vmem:[%s12738_s16 + $0x580] sm:$0xff]  ;;  %v1838_v9 = vperm.slane %v9525_v43, 0  ;;  %v1839_v10 = vperm.slane %v9525_v43, 1 }
 0x8eb   : > { %2623 = vmatpush.msra.mxu2 %v2342_v11  ;;  %2643 = vmatpush.msra.mxu3 %v2358_v12  ;;  %v2348_v6 = vld [vmem:[%s12738_s16 + $0x498] sm:$0xff] }
 0x8ec   : > { %v2189_v24 = vmax.f32 %v1963_v17, 0.0  ;;  %v2190_v25 = vmax.f32 %v1983_v18, 0.0  ;;  %2666 = vmatpush.msrb.mxu0 %v2371_v16  ;;  %2686 = vmatpush.msrb.mxu1 %v2387_v59  ;;  %v2440_v16 = vld [vmem:[%s12738_s16 + $0x778] sm:$0xff]  ;;  %v2331_v17 = vld [vmem:[%s12738_s16 + $0x410] sm:$0xff] }
 0x8ed   : > { %2624 = vmatpush.msra.mxu2 %v2341_v19  ;;  %2644 = vmatpush.msra.mxu3 %v2357_v20  ;;  %v2456_v59 = vld [vmem:[%s12738_s16 + $0x7f8] sm:$0xff]  ;;  %v2347_v18 = vld [vmem:[%s12738_s16 + $0x490] sm:$0xff] }
 0x8ee   : > { %2667 = vmatpush.msrb.mxu0 %v2370_v21  ;;  %2687 = vmatpush.msrb.mxu1 %v2386_v22  ;;  %v2439_v19 = vld [vmem:[%s12738_s16 + $0x770] sm:$0xff] }
 0x8ef   : > { %2557 = vmatmul.f32.vlgmr.msrb.gmra.mxu2 %v2189_v24  ;;  %2577 = vmatmul.f32.vlgmr.msrb.gmra.mxu3 %v2190_v25  ;;  %v2455_v20 = vld [vmem:[%s12738_s16 + $0x7f0] sm:$0xff]  ;;  %v2330_v24 = vld [vmem:[%s12738_s16 + $0x408] sm:$0xff] }
 0x8f0   : > { %2625 = vmatpush.msra.mxu2 %v2340_v26  ;;  %2645 = vmatpush.msra.mxu3 %v2356_v27  ;;  %v2082_v54 = vpop.f32.mrf.mxu0  ;;  %v2102_v55 = vpop.f32.mrf.mxu1  ;;  %v2346_v25 = vld [vmem:[%s12738_s16 + $0x488] sm:$0xff] }
 0x8f1   : > { %2668 = vmatpush.msrb.mxu0 %v2369_v28  ;;  %2688 = vmatpush.msrb.mxu1 %v2385_v29  ;;  %v2083_v0 = vadd.f32 %v2082_v54, %v1840_v50  ;;  %v2103_v1 = vadd.f32 %v2102_v55, %v1841_v51  ;;  %v2438_v26 = vld [vmem:[%s12738_s16 + $0x768] sm:$0xff]  ;;  %v2329_v28 = vld [vmem:[%s12738_s16 + $0x400] sm:$0xff]  ;;  %v2404_v50 = vld [vmem:[%s12738_s16 + $0x658] sm:$0xff] }
 0x8f2   : > { %2626 = vmatpush.msra.mxu2 %v2339_v30  ;;  %2646 = vmatpush.msra.mxu3 %v2355_v32  ;;  %v2454_v27 = vld [vmem:[%s12738_s16 + $0x7e8] sm:$0xff]  ;;  %v2345_v29 = vld [vmem:[%s12738_s16 + $0x480] sm:$0xff]  ;;  %v2420_v51 = vld [vmem:[%s12738_s16 + $0x6d8] sm:$0xff] }
 0x8f3   : > { %2669 = vmatpush.msrb.mxu0 %v2368_v33  ;;  %2689 = vmatpush.msrb.mxu1 %v2384_v34  ;;  %v2195_v11 = vmax.f32 %v2083_v0, 0.0  ;;  %v2196_v12 = vmax.f32 %v2103_v1, 0.0  ;;  %v2408_v33 = vld [vmem:[%s12738_s16 + $0x678] sm:$0xff]  ;;  %v2403_v54 = vld [vmem:[%s12738_s16 + $0x650] sm:$0xff]  ;;  %v2401_v0 = vld [vmem:[%s12738_s16 + $0x640] sm:$0xff] }
 0x8f4   : > { %2627 = vmatpush.msra.mxu2 %v2338_v35  ;;  %2647 = vmatpush.msra.mxu3 %v2354_v36  ;;  %v2424_v34 = vld [vmem:[%s12738_s16 + $0x6f8] sm:$0xff]  ;;  %v2437_v35 = vld [vmem:[%s12738_s16 + $0x760] sm:$0xff]  ;;  %v2419_v55 = vld [vmem:[%s12738_s16 + $0x6d0] sm:$0xff] }
 0x8f5   : > { %2670 = vmatpush.msrb.mxu0 %v2367_v37  ;;  %2690 = vmatpush.msrb.mxu1 %v2383_v38  ;;  %v2042_v13 = vpop.f32.mrf.mxu2  ;;  %v2062_v15 = vpop.f32.mrf.mxu3  ;;  %v2453_v36 = vld [vmem:[%s12738_s16 + $0x7e0] sm:$0xff]  ;;  %v2407_v37 = vld [vmem:[%s12738_s16 + $0x670] sm:$0xff] }
 0x8f6   : > { %2628 = vmatpush.msra.mxu2 %v2337_v39  ;;  %2648 = vmatpush.msra.mxu3 %v2353_v40  ;;  %v2043_v21 = vadd.f32 %v2042_v13, %v1838_v9  ;;  %v2063_v22 = vadd.f32 %v2062_v15, %v1839_v10  ;;  %v2423_v38 = vld [vmem:[%s12738_s16 + $0x6f0] sm:$0xff]  ;;  %v2436_v39 = vld [vmem:[%s12738_s16 + $0x758] sm:$0xff]  ;;  %v2417_v1 = vld [vmem:[%s12738_s16 + $0x6c0] sm:$0xff] }
 0x8f7   : > { %2671 = vmatpush.msrb.mxu0 %v2366_v41  ;;  %2691 = vmatpush.msrb.mxu1 %v2382_v42  ;;  %v2452_v40 = vld [vmem:[%s12738_s16 + $0x7d8] sm:$0xff]  ;;  %v2406_v41 = vld [vmem:[%s12738_s16 + $0x668] sm:$0xff]  ;;  %v2399_v9 = vld [vmem:[%s12738_s16 + $0x630] sm:$0xff] }
 0x8f8   : > { %2629 = vmatpush.msra.mxu2 %v2336_v44  ;;  %2649 = vmatpush.msra.mxu3 %v2352_v45  ;;  %v2193_v30 = vmax.f32 %v2043_v21, 0.0  ;;  %v2194_v32 = vmax.f32 %v2063_v22, 0.0  ;;  %v2422_v42 = vld [vmem:[%s12738_s16 + $0x6e8] sm:$0xff]  ;;  %v2435_v44 = vld [vmem:[%s12738_s16 + $0x750] sm:$0xff]  ;;  %v2428_v13 = vld [vmem:[%s12738_s16 + $0x718] sm:$0xff] }
 0x8f9   : > { %2672 = vmatpush.msrb.mxu0 %v2365_v46  ;;  %2692 = vmatpush.msrb.mxu1 %v2381_v47  ;;  %v2451_v45 = vld [vmem:[%s12738_s16 + $0x7d0] sm:$0xff]  ;;  %v2405_v46 = vld [vmem:[%s12738_s16 + $0x660] sm:$0xff]  ;;  %v2444_v15 = vld [vmem:[%s12738_s16 + $0x798] sm:$0xff] }
 0x8fa   : > { %2630 = vmatpush.msra.mxu2 %v2335_v48  ;;  %2650 = vmatpush.msra.mxu3 %v2351_v49  ;;  %v2421_v47 = vld [vmem:[%s12738_s16 + $0x6e0] sm:$0xff]  ;;  %v2434_v48 = vld [vmem:[%s12738_s16 + $0x748] sm:$0xff]  ;;  %v2415_v10 = vld [vmem:[%s12738_s16 + $0x6b0] sm:$0xff] }
 0x8fb   : > { %2673 = vmatpush.msrb.mxu0 %v2364_v52  ;;  %2693 = vmatpush.msrb.mxu1 %v2380_v53  ;;  %v2450_v49 = vld [vmem:[%s12738_s16 + $0x7c8] sm:$0xff]  ;;  %v2433_v52 = vld [vmem:[%s12738_s16 + $0x740] sm:$0xff] }
 0x8fc   : > { %2631 = vmatpush.msra.mxu2 %v2334_v57  ;;  %2651 = vmatpush.msra.mxu3 %v2350_v58  ;;  %v2449_v53 = vld [vmem:[%s12738_s16 + $0x7c0] sm:$0xff]  ;;  %v2432_v57 = vld [vmem:[%s12738_s16 + $0x738] sm:$0xff] }
 0x8fd   : > { %2674 = vmatpush.msrb.mxu0 %v2363_v60  ;;  %2694 = vmatpush.msrb.mxu1 %v2379_v61  ;;  %v2448_v58 = vld [vmem:[%s12738_s16 + $0x7b8] sm:$0xff]  ;;  %v2402_v60 = vld [vmem:[%s12738_s16 + $0x648] sm:$0xff]  ;;  %v2397_v21 = vld [vmem:[%s12738_s16 + $0x620] sm:$0xff] }
 0x8fe   : > { %2632 = vmatpush.msra.mxu2 %v2333_v62  ;;  %2652 = vmatpush.msra.mxu3 %v2349_v63  ;;  %v2418_v61 = vld [vmem:[%s12738_s16 + $0x6c8] sm:$0xff]  ;;  %v2431_v62 = vld [vmem:[%s12738_s16 + $0x730] sm:$0xff]  ;;  %v2413_v22 = vld [vmem:[%s12738_s16 + $0x6a0] sm:$0xff] }
 0x8ff   : > { %2675 = vmatpush.msrb.mxu0 %v2362_v2  ;;  %2695 = vmatpush.msrb.mxu1 %v2378_v3  ;;  %v2447_v63 = vld [vmem:[%s12738_s16 + $0x7b0] sm:$0xff]  ;;  %v2430_v2 = vld [vmem:[%s12738_s16 + $0x728] sm:$0xff] }
 0x900   : > { %2633 = vmatpush.msra.mxu2 %v2332_v4  ;;  %2653 = vmatpush.msra.mxu3 %v2348_v6  ;;  %v2446_v3 = vld [vmem:[%s12738_s16 + $0x7a8] sm:$0xff]  ;;  %v2400_v4 = vld [vmem:[%s12738_s16 + $0x638] sm:$0xff] }
 0x901   : > { %2676 = vmatpush.msrb.mxu0 %v2361_v7  ;;  %2696 = vmatpush.msrb.mxu1 %v2377_v8  ;;  %v2416_v6 = vld [vmem:[%s12738_s16 + $0x6b8] sm:$0xff]  ;;  %v2429_v7 = vld [vmem:[%s12738_s16 + $0x720] sm:$0xff] }
 0x902   : > { %2677 = vmatmul.f32.vlgmr.msrb.gmra.mxu0 %v2195_v11  ;;  %2697 = vmatmul.f32.vlgmr.msrb.gmra.mxu1 %v2196_v12  ;;  %v2445_v8 = vld [vmem:[%s12738_s16 + $0x7a0] sm:$0xff]  ;;  %v1844_v11 = vperm.slane %v9525_v43, 6  ;;  %v1845_v12 = vperm.slane %v9525_v43, 7 }
 0x903   : > { %2741 = vmatpush.msra.mxu0 %v2440_v16  ;;  %2761 = vmatpush.msra.mxu1 %v2456_v59  ;;  %v2162_v16 = vpop.f32.mrf.mxu0  ;;  %v2182_v59 = vpop.f32.mrf.mxu1 }
 0x904   : > { %2634 = vmatpush.msra.mxu2 %v2331_v17  ;;  %2654 = vmatpush.msra.mxu3 %v2347_v18  ;;  %v2398_v17 = vld [vmem:[%s12738_s16 + $0x628] sm:$0xff] }
 0x905   : > { %2742 = vmatpush.msra.mxu0 %v2439_v19  ;;  %2762 = vmatpush.msra.mxu1 %v2455_v20  ;;  %v2414_v18 = vld [vmem:[%s12738_s16 + $0x6a8] sm:$0xff]  ;;  %v2427_v19 = vld [vmem:[%s12738_s16 + $0x710] sm:$0xff] }
 0x906   : > { %2635 = vmatpush.msra.mxu2 %v2330_v24  ;;  %2655 = vmatpush.msra.mxu3 %v2346_v25  ;;  %v2443_v20 = vld [vmem:[%s12738_s16 + $0x790] sm:$0xff]  ;;  %v2163_v24 = vadd.f32 %v2162_v16, %v1844_v11  ;;  %v2183_v25 = vadd.f32 %v2182_v59, %v1845_v12 }
 0x907   : > { %2743 = vmatpush.msra.mxu0 %v2438_v26  ;;  %2763 = vmatpush.msra.mxu1 %v2454_v27  ;;  %v2426_v26 = vld [vmem:[%s12738_s16 + $0x708] sm:$0xff] }
 0x908   : > { %2636 = vmatpush.msra.mxu2 %v2329_v28  ;;  %2656 = vmatpush.msra.mxu3 %v2345_v29  ;;  %v2442_v27 = vld [vmem:[%s12738_s16 + $0x788] sm:$0xff]  ;;  %v2396_v28 = vld [vmem:[%s12738_s16 + $0x618] sm:$0xff] }
 0x909   : > { %2637 = vmatmul.f32.vlgmr.msra.gmra.mxu2 %v2193_v30  ;;  %2657 = vmatmul.f32.vlgmr.msra.gmra.mxu3 %v2194_v32  ;;  %v2412_v29 = vld [vmem:[%s12738_s16 + $0x698] sm:$0xff]  ;;  %v1842_v30 = vperm.slane %v9525_v43, 4  ;;  %v1843_v32 = vperm.slane %v9525_v43, 5  ;;  %v2395_v43 = vld [vmem:[%s12738_s16 + $0x610] sm:$0xff] }
 0x90a   : > { %2701 = vmatpush.msrb.mxu2 %v2408_v33  ;;  %2721 = vmatpush.msrb.mxu3 %v2424_v34  ;;  %v2425_v33 = vld [vmem:[%s12738_s16 + $0x700] sm:$0xff] }
 0x90b   : > { %2744 = vmatpush.msra.mxu0 %v2437_v35  ;;  %2764 = vmatpush.msra.mxu1 %v2453_v36  ;;  %v2441_v34 = vld [vmem:[%s12738_s16 + $0x780] sm:$0xff]  ;;  %v2122_v35 = vpop.f32.mrf.mxu2  ;;  %v2142_v36 = vpop.f32.mrf.mxu3 }
 0x90c   : > { %2702 = vmatpush.msrb.mxu2 %v2407_v37  ;;  %2722 = vmatpush.msrb.mxu3 %v2423_v38  ;;  %v2199_v37 = vmax.f32 %v2163_v24, 0.0  ;;  %v2200_v38 = vmax.f32 %v2183_v25, 0.0 }
 0x90d   : > { %2745 = vmatpush.msra.mxu0 %v2436_v39  ;;  %2765 = vmatpush.msra.mxu1 %v2452_v40  ;;  %v2411_v39 = vld [vmem:[%s12738_s16 + $0x690] sm:$0xff]  ;;  %v2123_v40 = vadd.f32 %v2122_v35, %v1842_v30  ;;  %v7144_v30 = vld [vmem:[%s12730_s8 + $0x78] sm:$0xff]  ;;  %v7122_v35 = vld [vmem:[%s12774_s6 + $0x68] sm:$0xff] }
 0x90e   : > { %2703 = vmatpush.msrb.mxu2 %v2406_v41  ;;  %2723 = vmatpush.msrb.mxu3 %v2422_v42  ;;  %v2143_v41 = vadd.f32 %v2142_v36, %v1843_v32  ;;  %v2394_v42 = vld [vmem:[%s12738_s16 + $0x608] sm:$0xff]  ;;  %v7123_v32 = vld [vmem:[%s12774_s6 + $0x70] sm:$0xff] }
 0x90f   : > { %2746 = vmatpush.msra.mxu0 %v2435_v44  ;;  %2766 = vmatpush.msra.mxu1 %v2451_v45  ;;  %v2410_v44 = vld [vmem:[%s12738_s16 + $0x688] sm:$0xff]  ;;  %v2393_v45 = vld [vmem:[%s12738_s16 + $0x600] sm:$0xff] }
 0x910   : > { %2704 = vmatpush.msrb.mxu2 %v2405_v46  ;;  %2724 = vmatpush.msrb.mxu3 %v2421_v47  ;;  %v2409_v46 = vld [vmem:[%s12738_s16 + $0x680] sm:$0xff]  ;;  %v2197_v47 = vmax.f32 %v2123_v40, 0.0  ;;  %v7132_v36 = vld [vmem:[%s12775_s2 + $0x68] sm:$0xff]  ;;  %v7120_v40 = vld [vmem:[%s12774_s6 + $0x58] sm:$0xff] }
 0x911   : > { %2747 = vmatpush.msra.mxu0 %v2434_v48  ;;  %2767 = vmatpush.msra.mxu1 %v2450_v49  ;;  %v2198_v48 = vmax.f32 %v2143_v41, 0.0  ;;  %v8127_v49 = vld [vmem:[%s12739_s17] ss:$0 sm:$0xff]  ;;  %v7130_v41 = vld [vmem:[%s12775_s2 + $0x58] sm:$0xff] }
 0x912   : > { %2705 = vmatpush.msrb.mxu2 %v2404_v50  ;;  %2725 = vmatpush.msrb.mxu3 %v2420_v51 }
 0x913   : > { %2748 = vmatpush.msra.mxu0 %v2433_v52  ;;  %2768 = vmatpush.msra.mxu1 %v2449_v53 }
 0x914   : > { %2706 = vmatpush.msrb.mxu2 %v2403_v54  ;;  %2726 = vmatpush.msrb.mxu3 %v2419_v55 }
 0x915   : > { %2749 = vmatpush.msra.mxu0 %v2432_v57  ;;  %2769 = vmatpush.msra.mxu1 %v2448_v58 }
 0x916   : > { %2707 = vmatpush.msrb.mxu2 %v2402_v60  ;;  %2727 = vmatpush.msrb.mxu3 %v2418_v61 }
 0x917   : > { %2750 = vmatpush.msra.mxu0 %v2431_v62  ;;  %2770 = vmatpush.msra.mxu1 %v2447_v63 }
 0x918   : > { %2708 = vmatpush.msrb.mxu2 %v2401_v0  ;;  %2728 = vmatpush.msrb.mxu3 %v2417_v1 }
 0x919   : > { %2751 = vmatpush.msra.mxu0 %v2430_v2  ;;  %2771 = vmatpush.msra.mxu1 %v2446_v3 }
 0x91a   : > { %2709 = vmatpush.msrb.mxu2 %v2400_v4  ;;  %2729 = vmatpush.msrb.mxu3 %v2416_v6 }
 0x91b   : > { %2752 = vmatpush.msra.mxu0 %v2429_v7  ;;  %2772 = vmatpush.msra.mxu1 %v2445_v8 }
 0x91c   : > { %2710 = vmatpush.msrb.mxu2 %v2399_v9  ;;  %2730 = vmatpush.msrb.mxu3 %v2415_v10 }
 0x91d   : > { %2753 = vmatpush.msra.mxu0 %v2428_v13  ;;  %2773 = vmatpush.msra.mxu1 %v2444_v15 }
 0x91e   : > { %2711 = vmatpush.msrb.mxu2 %v2398_v17  ;;  %2731 = vmatpush.msrb.mxu3 %v2414_v18 }
 0x91f   : > { %2754 = vmatpush.msra.mxu0 %v2427_v19  ;;  %2774 = vmatpush.msra.mxu1 %v2443_v20 }
 0x920   : > { %2712 = vmatpush.msrb.mxu2 %v2397_v21  ;;  %2732 = vmatpush.msrb.mxu3 %v2413_v22 }
 0x921   : > { %2755 = vmatpush.msra.mxu0 %v2426_v26  ;;  %2775 = vmatpush.msra.mxu1 %v2442_v27 }
 0x922   : > { %2713 = vmatpush.msrb.mxu2 %v2396_v28  ;;  %2733 = vmatpush.msrb.mxu3 %v2412_v29  ;;  %v7124_v29 = vld [vmem:[%s12774_s6 + $0x78] sm:$0xff] }
 0x923   : > { %2756 = vmatpush.msra.mxu0 %v2425_v33  ;;  %2776 = vmatpush.msra.mxu1 %v2441_v34  ;;  %v7133_v33 = vld [vmem:[%s12775_s2 + $0x70] sm:$0xff] }
 0x924   : > { %2757 = vmatmul.f32.vlgmr.msra.gmra.mxu0 %v2199_v37  ;;  %2777 = vmatmul.f32.vlgmr.msra.gmra.mxu1 %v2200_v38  ;;  %v7143_v34 = vld [vmem:[%s12730_s8 + $0x70] sm:$0xff]  ;;  %v7142_v37 = vld [vmem:[%s12730_s8 + $0x68] sm:$0xff]  ;;  %v7121_v38 = vld [vmem:[%s12774_s6 + $0x60] sm:$0xff] }
 0x925   : > { %2714 = vmatpush.msrb.mxu2 %v2395_v43  ;;  %2734 = vmatpush.msrb.mxu3 %v2411_v39  ;;  %v7131_v43 = vld [vmem:[%s12775_s2 + $0x60] sm:$0xff] }
 0x926   : > { %2907 = vmatpush.msrb.mxu0 %v7144_v30  ;;  %v7141_v39 = vld [vmem:[%s12730_s8 + $0x60] sm:$0xff] }
 0x927   : > { %2715 = vmatpush.msrb.mxu2 %v2394_v42  ;;  %2735 = vmatpush.msrb.mxu3 %v2410_v44  ;;  %v7140_v42 = vld [vmem:[%s12730_s8 + $0x58] sm:$0xff]  ;;  %v7119_v44 = vld [vmem:[%s12774_s6 + $0x50] sm:$0xff] }
 0x928   : > { %2908 = vmatpush.msrb.mxu0 %v7143_v34 }
 0x929   : > { %2716 = vmatpush.msrb.mxu2 %v2393_v45  ;;  %2736 = vmatpush.msrb.mxu3 %v2409_v46  ;;  %v7129_v45 = vld [vmem:[%s12775_s2 + $0x50] sm:$0xff] }
 0x92a   : > { %2717 = vmatmul.f32.vlgmr.msrb.gmra.mxu2 %v2197_v47  ;;  %2737 = vmatmul.f32.vlgmr.msrb.gmra.mxu3 %v2198_v48  ;;  %v7139_v46 = vld [vmem:[%s12730_s8 + $0x50] sm:$0xff]  ;;  %v7118_v47 = vld [vmem:[%s12774_s6 + $0x48] sm:$0xff] }
 0x92b   : > { %2839 = vmatpush.msra.mxu2 %v7124_v29  ;;  %2909 = vmatpush.msrb.mxu0 %v7142_v37  ;;  %v7128_v48 = vld [vmem:[%s12775_s2 + $0x48] sm:$0xff] }
 0x92d   : > { %2840 = vmatpush.msra.mxu2 %v7123_v32  ;;  %2910 = vmatpush.msrb.mxu0 %v7141_v39 }
 0x92f   : > { %2841 = vmatpush.msra.mxu2 %v7122_v35  ;;  %2911 = vmatpush.msrb.mxu0 %v7140_v42 }
 0x931   : > { %2842 = vmatpush.msra.mxu2 %v7121_v38  ;;  %2912 = vmatpush.msrb.mxu0 %v7139_v46 }
 0x933   : > { %2843 = vmatpush.msra.mxu2 %v7120_v40 }
 0x935   : > { %2844 = vmatpush.msra.mxu2 %v7119_v44 }
 0x937   : > { %2845 = vmatpush.msra.mxu2 %v7118_v47 }
 0x95c   : > { %v2518_v54 = vpop.f32.mrf.mxu0  ;;  %v2538_v57 = vpop.f32.mrf.mxu1 }
 0x966   : > { %v2598_v0 = vpop.f32.mrf.mxu0  ;;  %v2618_v2 = vpop.f32.mrf.mxu1 }
 0x968   : > { %v2478_v50 = vpop.f32.mrf.mxu2  ;;  %v2498_v52 = vpop.f32.mrf.mxu3 }
 0x969   : > { %v2479_v51 = vadd.f32 %v8127_v49, %v2478_v50  ;;  %v7138_v49 = vld [vmem:[%s12730_s8 + $0x48] sm:$0xff]  ;;  %v7117_v50 = vld [vmem:[%s12774_s6 + $0x40] sm:$0xff] }
 0x96a   : > { %2913 = vmatpush.msrb.mxu0 %v7138_v49  ;;  %2846 = vmatpush.msra.mxu2 %v7117_v50 }
 0x96b   : > { %v2499_v53 = vadd.f32 %v2498_v52, %v2479_v51  ;;  %v7127_v51 = vld [vmem:[%s12775_s2 + $0x40] sm:$0xff] }
 0x96c   : > { %v7137_v52 = vld [vmem:[%s12730_s8 + $0x40] sm:$0xff] }
 0x96d   : > { %v2519_v55 = vadd.f32 %v2518_v54, %v2499_v53  ;;  %2914 = vmatpush.msrb.mxu0 %v7137_v52 }
 0x96f   : > { %v2539_v58 = vadd.f32 %v2538_v57, %v2519_v55 }
 0x972   : > { %v2558_v60 = vpop.f32.mrf.mxu2  ;;  %v2578_v62 = vpop.f32.mrf.mxu3 }
 0x973   : > { %v2559_v61 = vadd.f32 %v2558_v60, %v2539_v58 }
 0x975   : > { %v2579_v63 = vadd.f32 %v2578_v62, %v2559_v61 }
 0x977   : > { %v2599_v1 = vadd.f32 %v2598_v0, %v2579_v63  ;;  %v8128_v0 = vld [vmem:[%s12740_s18] ss:$0 sm:$0xff] }
 0x979   : > { %v2619_v4 = vadd.f32 %v2618_v2, %v2599_v1 }
 0x97f   : > { %v2678_v9 = vpop.f32.mrf.mxu0  ;;  %v2698_v11 = vpop.f32.mrf.mxu1 }
 0x98c   : > { %v2638_v3 = vpop.f32.mrf.mxu2  ;;  %v2658_v7 = vpop.f32.mrf.mxu3 }
 0x98d   : > { %v2639_v6 = vadd.f32 %v2638_v3, %v2619_v4  ;;  %v8129_v3 = vld [vmem:[%s12741_s19] ss:$0 sm:$0xff] }
 0x98f   : > { %v2659_v8 = vadd.f32 %v2658_v7, %v2639_v6  ;;  %v8132_v7 = vld [vmem:[%s12729_s7 + $0x1] ss:$0 sm:$0xff] }
 0x991   : > { %v2679_v10 = vadd.f32 %v2678_v9, %v2659_v8 }
 0x993   : > { %v2699_v12 = vadd.f32 %v2698_v11, %v2679_v10  ;;  %v8131_v10 = vld [vmem:[%s12779_s1 + $0x1] ss:$0 sm:$0xff] }
 0x9a1   : > { %v2758_v17 = vpop.f32.mrf.mxu0  ;;  %v2778_v19 = vpop.f32.mrf.mxu1 }
 0x9ad   : > { %v2718_v13 = vpop.f32.mrf.mxu2  ;;  %v2738_v16 = vpop.f32.mrf.mxu3 }
 0x9ae   : > { %v2719_v15 = vadd.f32 %v2718_v13, %v2699_v12 }
 0x9b0   : > { %v2739_v59 = vadd.f32 %v2738_v16, %v2719_v15 }
 0x9b2   : > { %v2759_v18 = vadd.f32 %v2758_v17, %v2739_v59  ;;  %v8130_v17 = vld [vmem:[%s12731_s9 + $0x1] ss:$0 sm:$0xff] }
 0x9b4   : > { %v2779_v20 = vadd.f32 %v2778_v19, %v2759_v18 }
 0x9b6   : > { %v2781_v21 = vadd.f32 %v2779_v20, %v8785_v14  ;;  %v7134_v14 = vld [vmem:[%s12775_s2 + $0x78] sm:$0xff] }
 0x9b7   : > { %2873 = vmatpush.msra.mxu3 %v7134_v14 }
 0x9b8   : > { %v2784_v22 = vsel %vm730_vm0, %v2781_v21, 0.0 }
 0x9b9   : > { %2785 = vadd.xlane.f32.xlu0 %v2784_v22  ;;  %2874 = vmatpush.msra.mxu3 %v7133_v33 }
 0x9bb   : > { %2875 = vmatpush.msra.mxu3 %v7132_v36 }
 0x9bd   : > { %2876 = vmatpush.msra.mxu3 %v7131_v43 }
 0x9bf   : > { %2877 = vmatpush.msra.mxu3 %v7130_v41 }
 0x9c1   : > { %2878 = vmatpush.msra.mxu3 %v7129_v45 }
 0x9c3   : > { %2879 = vmatpush.msra.mxu3 %v7128_v48 }
 0x9c5   : > { %2880 = vmatpush.msra.mxu3 %v7127_v51 }
 0xa2c   : > { %v2786_v24 = vpop.xlane.xlu0 %2785 }
 0xa2d   : > { %v2787_v25 = vmul.f32 %v2786_v24, %v8589_v56 }
 0xa2f   : > { %v9811_v26 = vsub.f32 %v2781_v21, %v2787_v25 }
 0xa31   : > { %v2789_v27 = vmul.f32 %v9811_v26, %v9811_v26 }
 0xa33   : > { %v2790_v28 = vsel %vm730_vm0, %v2789_v27, 0.0 }
 0xa34   : > { %2791 = vadd.xlane.f32.xlu1 %v2790_v28 }
 0xaa7   : > { %v2792_v53 = vpop.xlane.xlu1 %2791 }
 0xaa8   : > { %v2793_v54 = vmul.f32 %v2792_v53, %v8589_v56 }
 0xaaa   : > { %v2794_v55 = vadd.f32 1e-05, %v2793_v54 }
 0xaac   : > { %8170 = vrsqrt.f32 %v2794_v55  ;;  %vm2801_vm11 = vweird.f32 %v2794_v55 }
 0xab2   : > { %v8171_v57 = vpop.eup %8170 }
 0xab3   : > { %v2796_v58 = vmul.f32 %v8171_v57, %v2794_v55  ;;  %vm2802_vm10 = vweird.f32 %v8171_v57 }
 0xab4   : > { %vm2803_vm12 = vmor %vm2801_vm11, %vm2802_vm10  ;;  %vm7026_vm10 = vcmask 7175  }
 0xab5   : > { %v2797_v60 = vmul.f32 %v8171_v57, %v2796_v58 }
 0xab7   : > { %v2798_v61 = vmul.f32 0.5, %v2797_v60 }
 0xab9   : > { %v2799_v62 = vsub.f32 1.5, %v2798_v61 }
 0xabb   : > { %v2800_v63 = vmul.f32 %v8171_v57, %v2799_v62 }
 0xabd   : > { %v2804_v1 = vsel %vm2803_vm12, %v8171_v57, %v2800_v63 }
 0xabe   : > { %v2805_v2 = vmul.f32 %v2804_v1, %v9811_v26 }
 0xac0   : > { %v2809_v4 = vmul.f32 %v8128_v0, %v2805_v2 }
 0xac2   : > { %v9896_v6 = vadd.f32 %v8129_v3, %v2809_v4 }
 0xac4   : > { %7126 = vmatmul.msk.f32.vlgmr.msra.gmra.mxu2 %vm730_vm0, %v9896_v6  ;;  %7136 = vmatmul.msk.f32.vlgmr.msra.gmra.mxu3 %vm730_vm0, %v9896_v6 }
 0xac5   : > { %7146 = vmatmul.msk.f32.vlgmr.msrb.gmra.mxu0 %vm730_vm0, %v9896_v6 }
 0xb42   : > { %v2916_v18 = vpop.f32.mrf.mxu0 }
 0xb43   : > { %v9919_v19 = vadd.f32 %v8130_v17, %v2916_v18 }
 0xb47   : > { %v2882_v8 = vpop.f32.mrf.mxu3  ;;  %v2848_v11 = vpop.f32.mrf.mxu2 }
 0xb48   : > { %v2883_v9 = vadd.f32 %v8132_v7, %v2882_v8  ;;  %v2849_v12 = vadd.f32 %v8131_v10, %v2848_v11 }
 0xb4a   : > { %2933 = vrot.lane.b32.xlu0 %v2883_v9, %s12758_s27  ;;  %2927 = vrot.lane.b32.xlu2 %v2883_v9, %s12780_s23 }
 0xb4b   : > { %2930 = vrot.lane.b32.xlu1 %v2883_v9, %s12781_s5 }
 0xb52   : > { %2920 = vrot.lane.b32.xlu2 %v2849_v12, %s12780_s23 }
 0xb53   : > { %2922 = vrot.lane.b32.xlu1 %v2849_v12, %s12781_s5 }
 0xb5a   : > { %2924 = vrot.lane.b32.xlu2 %v2849_v12, %s12758_s27 }
 0xba4   : > { %v2928_v13 = vpop.permute.xlu2 %2927 }
 0xba5   : > { %2978 = vxpose.xlu0.b32.start.end [1/1] (short) (narrow) %v2928_v13, 16 }
 0xbac   : > { %v2921_v20 = vpop.permute.xlu2 %2920 }
 0xbb4   : > { %v2925_v21 = vpop.permute.xlu2 %2924 }
 0xbbc   : > { %v2934_v15 = vpop.permute.xlu0 %2933 }
 0xbbd   : > { %v2931_v16 = vpop.permute.xlu1 %2930  ;;  %3042 = vxpose.xlu2.b32.start.end [1/1] (short) (narrow) %v2934_v15, 16 }
 0xbbe   : > { %v8083_v59 = vpack.i.bf16 %v2931_v16, %v2883_v9 }
 0xbc0   : > { %8084 = vxpose.xlu1.b32.start.end [1/1] (short) (narrow) %v8083_v59, 16 }
 0xbc5   : > { %v2923_v24 = vpop.permute.xlu1 %2922 }
 0xc1b   : > { %2940 = vrot.lane.b32.xlu0 %v9919_v19, %s12781_s5 }
 0xc49   : > { %v2994_v27 = vpop.trf.xlu0 }
 0xc51   : > { %v2995_v33 = vpop.trf.xlu0 }
 0xc56   : > { %v3058_v22 = vpop.trf.xlu2 }
 0xc5e   : > { %v3059_v25 = vpop.trf.xlu2 }
 0xc5f   : > { %3156 = vmatpush.msra.mxu0 %v3059_v25 }
 0xc61   : > { %3157 = vmatpush.msra.mxu0 %v3058_v22 }
 0xc62   : > { %7150 = vmatmul.msk.f32.vlgmr.msra.gmra.mxu0 %vm973_vm1, %v2925_v21 }
 0xc64   : > { %v8085_v26 = vpop.trf.xlu1 }
 0xc65   : > { %v8086_v30 = vunpack.i.l.bf16 %v8085_v26  ;;  %v8089_v32 = vunpack.i.h.bf16 %v8085_v26 }
 0xc6c   : > { %v8090_v28 = vpop.trf.xlu1 }
 0xc6d   : > { %v8094_v29 = vunpack.i.h.bf16 %v8090_v28  ;;  %v8091_v14 = vunpack.i.l.bf16 %v8090_v28 }
 0xc6f   : > { %3090 = vmatpush.msrb.mxu2 %v8091_v14  ;;  %3134 = vmatpush.msrb.mxu3 %v8094_v29 }
 0xc71   : > { %3091 = vmatpush.msrb.mxu2 %v8086_v30  ;;  %3135 = vmatpush.msrb.mxu3 %v8089_v32 }
 0xc72   : > { %7147 = vmatmul.msk.f32.vlgmr.msrb.gmra.mxu2 %vm973_vm1, %v2849_v12  ;;  %7149 = vmatmul.msk.f32.vlgmr.msrb.gmra.mxu3 %vm973_vm1, %v2923_v24 }
 0xc73   : > { %3112 = vmatpush.msra.mxu2 %v2995_v33 }
 0xc75   : > { %3113 = vmatpush.msra.mxu2 %v2994_v27 }
 0xc7a   : > { %7148 = vmatmul.msk.f32.vlgmr.msra.gmra.mxu2 %vm973_vm1, %v2921_v20 }
 0xc8d   : > { %v2941_v46 = vpop.permute.xlu0 %2940 }
 0xcdf   : > { %v3159_v39 = vpop.f32.mrf.mxu0 }
 0xce0   : > { %v3165_v40 = vmul.f32 0.25, %v3159_v39 }
 0xce2   : > { %v3175_v44 = vsel %vm1066_vm2, %v3165_v40, -inf }
 0xcf5   : > { %v3093_v34 = vpop.f32.mrf.mxu2  ;;  %v3137_v35 = vpop.f32.mrf.mxu3 }
 0xcf6   : > { %v3162_v36 = vmul.f32 0.25, %v3093_v34  ;;  %v3164_v37 = vmul.f32 0.25, %v3137_v35 }
 0xcf8   : > { %v3172_v38 = vsel %vm1066_vm2, %v3164_v37, -inf  ;;  %v3166_v43 = vsel %vm1066_vm2, %v3162_v36, -inf }
 0xcf9   : > { %3173 = vmax.xlane.f32.xlu0 %v3172_v38  ;;  %3167 = vmax.xlane.f32.xlu1 %v3166_v43 }
 0xcfd   : > { %v3115_v41 = vpop.f32.mrf.mxu2 }
 0xcfe   : > { %v3163_v42 = vmul.f32 0.25, %v3115_v41 }
 0xd00   : > { %v3169_v45 = vsel %vm1066_vm2, %v3163_v42, -inf }
 0xd01   : > { %3176 = vmax.xlane.f32.xlu1 %v3175_v44  ;;  %3170 = vmax.xlane.f32.xlu2 %v3169_v45 }
 0xd0d   : > { %2943 = vrot.lane.b32.xlu0 %v9919_v19, %s12758_s27 }
 0xd19   : > { %2937 = vrot.lane.b32.xlu2 %v9919_v19, %s12780_s23 }
 0xd6c   : > { %v3168_v47 = vpop.xlane.xlu1 %3167  ;;  %v3174_v48 = vpop.xlane.xlu0 %3173 }
 0xd6d   : > { %v3178_v49 = vsub.f32 %v3162_v36, %v3168_v47  ;;  %v3180_v51 = vsub.f32 %v3164_v37, %v3174_v48 }
 0xd6f   : > { %v3182_v50 = vmul.f32 1.442695, %v3178_v49  ;;  %v3186_v52 = vmul.f32 1.442695, %v3180_v51 }
 0xd71   : > { %8172 = vpow2.f32 %v3182_v50 }
 0xd72   : > { %8174 = vpow2.f32 %v3186_v52 }
 0xd74   : > { %v3177_v53 = vpop.xlane.xlu1 %3176  ;;  %v3171_v54 = vpop.xlane.xlu2 %3170 }
 0xd75   : > { %v3181_v55 = vsub.f32 %v3165_v40, %v3177_v53  ;;  %v3179_v60 = vsub.f32 %v3163_v42, %v3171_v54 }
 0xd77   : > { %v3188_v57 = vmul.f32 1.442695, %v3181_v55  ;;  %v8173_v58 = vpop.eup %8172  ;;  %v3184_v62 = vmul.f32 1.442695, %v3179_v60 }
 0xd78   : > { %v3190_v61 = vsel %vm1066_vm2, %v8173_v58, 0.0  ;;  %v8175_v0 = vpop.eup %8174 }
 0xd79   : > { %8176 = vpow2.f32 %v3188_v57  ;;  %3191 = vadd.xlane.f32.xlu1 %v3190_v61  ;;  %v3196_v3 = vsel %vm1066_vm2, %v8175_v0, 0.0 }
 0xd7a   : > { %8178 = vpow2.f32 %v3184_v62 }
 0xd7c   : > { %v2938_v63 = vpop.permute.xlu2 %2937 }
 0xd7d   : > { %3242 = vxpose.xlu2.b32.start.end [1/1] (short) (narrow) %v2938_v63, 16 }
 0xd7f   : > { %v8177_v1 = vpop.eup %8176  ;;  %v2944_v8 = vpop.permute.xlu0 %2943 }
 0xd80   : > { %v3199_v2 = vsel %vm1066_vm2, %v8177_v1, 0.0  ;;  %v8179_v4 = vpop.eup %8178 }
 0xd81   : > { %3200 = vadd.xlane.f32.xlu0 %v3199_v2  ;;  %3197 = vadd.xlane.f32.xlu1 %v3196_v3  ;;  %v3193_v7 = vsel %vm1066_vm2, %v8179_v4, 0.0 }
 0xd89   : > { %3194 = vadd.xlane.f32.xlu1 %v3193_v7 }
 0xd8d   : > { %3306 = vxpose.xlu2.b32.start.end [1/1] (short) (narrow) %v2944_v8, 16 }
 0xdaa   : > { %3210 = vxpose.xlu0.b32.start.end [1/1] (short) (narrow) %v9919_v19, 16 }
 0xdc3   : > { %3274 = vxpose.xlu1.b32.start.end [1/1] (short) (narrow) %v2941_v46, 16 }
 0xdec   : > { %v3192_v9 = vpop.xlane.xlu1 %3191 }
 0xded   : > { %8180 = vrcp.f32 %v3192_v9 }
 0xdf3   : > { %v8181_v10 = vpop.eup %8180 }
 0xdf4   : > { %v3201_v11 = vpop.xlane.xlu0 %3200  ;;  %v3206_v12 = vmul.f32 %v8181_v10, %v8173_v58  ;;  %v3198_v13 = vpop.xlane.xlu1 %3197 }
 0xdf5   : > { %8182 = vrcp.f32 %v3201_v11 }
 0xdf6   : > { %8184 = vrcp.f32 %v3198_v13  ;;  %7151 = vmatpush.xpose.msk.msrb.mxu1 %vm1066_vm2, %v3206_v12 }
 0xdfb   : > { %v8183_v15 = vpop.eup %8182 }
 0xdfc   : > { %v8185_v16 = vpop.eup %8184  ;;  %v3209_v59 = vmul.f32 %v8183_v15, %v8177_v1  ;;  %v3195_v18 = vpop.xlane.xlu1 %3194 }
 0xdfd   : > { %v3208_v17 = vmul.f32 %v8185_v16, %v8175_v0  ;;  %8186 = vrcp.f32 %v3195_v18 }
 0xdfe   : > { %7160 = vmatpush.xpose.msk.msrb.mxu0 %vm1066_vm2, %v3209_v59 }
 0xdff   : > { %7157 = vmatpush.xpose.msk.msra.mxu3 %vm1066_vm2, %v3208_v17 }
 0xe03   : > { %v8187_v19 = vpop.eup %8186 }
 0xe04   : > { %v3207_v20 = vmul.f32 %v8187_v19, %v8179_v4 }
 0xe06   : > { %7154 = vmatpush.xpose.msk.msrb.mxu2 %vm1066_vm2, %v3207_v20 }
 0xe16   : > { %v3258_v21 = vpop.trf.xlu2 }
 0xe17   : > { %7155 = vmatmul.msk.f32.vlgmr.msrb.gmra.mxu2 %vm1066_vm2, %v3258_v21 }
 0xe1e   : > { %v3259_v22 = vpop.trf.xlu2 }
 0xe1f   : > { %7156 = vmatmul.msk.f32.gmra.mxu2 %vm1066_vm2, %v3259_v22 }
 0xe26   : > { %v3322_v24 = vpop.trf.xlu2 }
 0xe27   : > { %7161 = vmatmul.msk.f32.vlgmr.msrb.gmra.mxu0 %vm1066_vm2, %v3322_v24 }
 0xe2e   : > { %v3323_v25 = vpop.trf.xlu2 }
 0xe2f   : > { %7162 = vmatmul.msk.f32.gmra.mxu0 %vm1066_vm2, %v3323_v25 }
 0xe4e   : > { %v3226_v26 = vpop.trf.xlu0 }
 0xe4f   : > { %7152 = vmatmul.msk.f32.vlgmr.msrb.gmra.mxu1 %vm1066_vm2, %v3226_v26 }
 0xe56   : > { %v3227_v27 = vpop.trf.xlu0 }
 0xe57   : > { %7153 = vmatmul.msk.f32.gmra.mxu1 %vm1066_vm2, %v3227_v27 }
 0xe67   : > { %v3290_v28 = vpop.trf.xlu1 }
 0xe68   : > { %7158 = vmatmul.msk.f32.vlgmr.msra.gmra.mxu3 %vm1066_vm2, %v3290_v28 }
 0xe6f   : > { %v3291_v29 = vpop.trf.xlu1 }
 0xe70   : > { %7159 = vmatmul.msk.f32.gmra.mxu3 %vm1066_vm2, %v3291_v29 }
 0xe9a   : > { %v3396_v14 = vpop.f32.mrf.mxu2 }
 0xe9b   : > { %3498 = vxpose.xlu0.b32.start [1/2] (short) (narrow) %v3396_v14, 8 }
 0xea2   : > { %v3399_v30 = vpop.f32.mrf.mxu2 }
 0xea3   : > { %3499 = vxpose.xlu0.b32.end [2/2] (short) (narrow) %v3399_v30, 8 }
 0xea4   : > { %v3460_v32 = vpop.f32.mrf.mxu0 }
 0xea5   : > { %3562 = vxpose.xlu1.b32.start [1/2] (short) (narrow) %v3460_v32, 8 }
 0xeac   : > { %v3463_v33 = vpop.f32.mrf.mxu0 }
 0xead   : > { %3563 = vxpose.xlu1.b32.end [2/2] (short) (narrow) %v3463_v33, 8 }
 0xecc   : > { %v3364_v34 = vpop.f32.mrf.mxu1 }
 0xecd   : > { %3466 = vxpose.xlu2.b32.start [1/2] (short) (narrow) %v3364_v34, 8 }
 0xed4   : > { %v3367_v35 = vpop.f32.mrf.mxu1 }
 0xed5   : > { %3467 = vxpose.xlu2.b32.end [2/2] (short) (narrow) %v3367_v35, 8 }
 0xeeb   : > { %v3428_v36 = vpop.f32.mrf.mxu3 }
 0xeec   : > { %3530 = vxpose.xlu1.b32.start [1/2] (short) (narrow) %v3428_v36, 8 }
 0xef3   : > { %v3431_v37 = vpop.f32.mrf.mxu3 }
 0xef4   : > { %3531 = vxpose.xlu1.b32.end [2/2] (short) (narrow) %v3431_v37, 8 }
 0xf3f   : > { %v3514_v38 = vpop.trf.xlu0 }
 0xf40   : > { %v3608_v39 = vrot.slane %v3514_v38, 4 }
 0xf49   : > { %v3578_v43 = vpop.trf.xlu1 }
 0xf4a   : > { %v3606_v40 = vrot.slane %v3578_v43, 4  ;;  %v3609_v42 = vsel %vm1496_vm3, %v3578_v43, %v3608_v39 }
 0xf4b   : > { %v3617_v46 = vperm.slane %v3609_v42, %v8498_v23 }
 0xf4c   : > { %v3607_v44 = vsel %vm1496_vm3, %v3606_v40, %v3514_v38 }
 0xf4d   : > { %v3613_v47 = vperm.slane %v3607_v44, %v8498_v23  ;;  %v3630_v51 = vrot.slane %v3617_v46, 4 }
 0xf4f   : > { %v3618_v54 = vrot.slane %v3613_v47, 4 }
 0xf66   : > { %v3482_v41 = vpop.trf.xlu2 }
 0xf67   : > { %v3596_v45 = vrot.slane %v3482_v41, 4 }
 0xf90   : > { %v3546_v48 = vpop.trf.xlu1 }
 0xf91   : > { %v3594_v49 = vrot.slane %v3546_v48, 4  ;;  %v3597_v50 = vsel %vm1496_vm3, %v3546_v48, %v3596_v45  ;;  %v7170_v45 = vld [vmem:[%s12732_s10 + $0x78] sm:$0xff]  ;;  %v7167_v48 = vld [vmem:[%s12732_s10 + $0x60] sm:$0xff] }
 0xf92   : > { %v3605_v52 = vperm.slane %v3597_v50, %v8498_v23  ;;  %3744 = vmatpush.msra.mxu1 %v7170_v45  ;;  %v7165_v50 = vld [vmem:[%s12732_s10 + $0x50] sm:$0xff]  ;;  %v7275_v45 = vld [vmem:[%s12736_s14 + $0x720] sm:$0xff] }
 0xf93   : > { %v3595_v53 = vsel %vm1496_vm3, %v3594_v49, %v3482_v41  ;;  %v7166_v49 = vld [vmem:[%s12732_s10 + $0x58] sm:$0xff] }
 0xf94   : > { %v3601_v55 = vperm.slane %v3595_v53, %v8498_v23  ;;  %v3631_v57 = vsel %vm1496_vm3, %v3630_v51, %v3605_v52  ;;  %v3632_v58 = vrot.slane %v3605_v52, 4  ;;  %v7164_v51 = vld [vmem:[%s12732_s10 + $0x48] sm:$0xff]  ;;  %v7163_v52 = vld [vmem:[%s12732_s10 + $0x40] sm:$0xff] }
 0xf95   : > { %v3637_v60 = vperm.slane %v3631_v57, %v8503_v31 }
 0xf96   : > { %v3619_v61 = vsel %vm1496_vm3, %v3618_v54, %v3601_v55  ;;  %v3620_v62 = vrot.slane %v3601_v55, 4  ;;  %v3633_v63 = vsel %vm1496_vm3, %v3617_v46, %v3632_v58  ;;  %v7169_v46 = vld [vmem:[%s12732_s10 + $0x70] sm:$0xff] }
 0xf97   : > { %v3625_v0 = vperm.slane %v3619_v61, %v8503_v31  ;;  %v3641_v1 = vperm.slane %v3633_v63, %v8503_v31  ;;  %v3646_v4 = vrot.slane %v3637_v60, 4  ;;  %3745 = vmatpush.msra.mxu1 %v7169_v46  ;;  %v8133_v61 = vld [vmem:[%s12733_s11 + $0x1] ss:$0 sm:$0xff]  ;;  %v7276_v46 = vld [vmem:[%s12736_s14 + $0x728] sm:$0xff] }
 0xf98   : > { %v3621_v2 = vsel %vm1496_vm3, %v3613_v47, %v3620_v62  ;;  %v7168_v47 = vld [vmem:[%s12732_s10 + $0x68] sm:$0xff] }
 0xf99   : > { %v3629_v3 = vperm.slane %v3621_v2, %v8503_v31  ;;  %v3648_v7 = vrot.slane %v3641_v1, 4  ;;  %v3642_v8 = vrot.slane %v3625_v0, 4  ;;  %v3647_v16 = vsel %vm1496_vm3, 0.0, %v3646_v4  ;;  %3746 = vmatpush.msra.mxu1 %v7168_v47  ;;  %v7287_v2 = vld [vmem:[%s12736_s14 + $0x780] sm:$0xff]  ;;  %v7289_v4 = vld [vmem:[%s12736_s14 + $0x790] sm:$0xff] }
 0xf9a   : > { %3968 = vmatpush.msra.mxu2 %v7287_v2  ;;  %4008 = vmatpush.msra.mxu0 %v7289_v4  ;;  %v7277_v47 = vld [vmem:[%s12736_s14 + $0x730] sm:$0xff]  ;;  %v7214_v2 = vld [vmem:[%s12736_s14 + $0x538] sm:$0xff]  ;;  %v7196_v4 = vld [vmem:[%s12736_s14 + $0x4a8] sm:$0xff] }
 0xf9b   : > { %v3644_v9 = vrot.slane %v3629_v3, 4  ;;  %v3649_v10 = vsel %vm1496_vm3, 0.0, %v3648_v7  ;;  %v3661_v11 = vsel %vm1496_vm3, %v3648_v7, %v3637_v60  ;;  %v3643_v21 = vsel %vm1496_vm3, 0.0, %v3642_v8  ;;  %3747 = vmatpush.msra.mxu1 %v7167_v48  ;;  %v7288_v3 = vld [vmem:[%s12736_s14 + $0x788] sm:$0xff]  ;;  %v7278_v48 = vld [vmem:[%s12736_s14 + $0x738] sm:$0xff] }
 0xf9c   : > { %v3665_v12 = vperm.slane %v3661_v11, %v8498_v23  ;;  %v3666_v13 = vrot.slane %v3649_v10, 4  ;;  %3988 = vmatpush.msrb.mxu3 %v7288_v3  ;;  %v7195_v3 = vld [vmem:[%s12736_s14 + $0x4a0] sm:$0xff] }
 0xf9d   : > { %v3645_v15 = vsel %vm1496_vm3, 0.0, %v3644_v9  ;;  %v3650_v59 = vsel %vm1496_vm3, %v3644_v9, %v3625_v0  ;;  %3748 = vmatpush.msra.mxu1 %v7166_v49  ;;  %v7259_v49 = vld [vmem:[%s12736_s14 + $0x6a0] sm:$0xff] }
 0xf9e   : > { %v3667_v17 = vsel %vm1496_vm3, %v3666_v13, %v3647_v16  ;;  %v3654_v18 = vperm.slane %v3650_v59, %v8498_v23  ;;  %v3655_v19 = vrot.slane %v3645_v15, 4  ;;  %v3686_v20 = vrot.slane %v3665_v12, 4  ;;  %v7272_v13 = vld [vmem:[%s12736_s14 + $0x708] sm:$0xff]  ;;  %v7273_v15 = vld [vmem:[%s12736_s14 + $0x710] sm:$0xff]  ;;  %v7274_v16 = vld [vmem:[%s12736_s14 + $0x718] sm:$0xff] }
 0xf9f   : > { %v3671_v22 = vperm.slane %v3667_v17, %v8498_v23  ;;  %3749 = vmatpush.msra.mxu1 %v7165_v50  ;;  %3989 = vmatpush.msrb.mxu3 %v7272_v13  ;;  %v7255_v59 = vld [vmem:[%s12736_s14 + $0x680] sm:$0xff]  ;;  %v7256_v17 = vld [vmem:[%s12736_s14 + $0x688] sm:$0xff] }
 0xfa0   : > { %v3656_v24 = vsel %vm1496_vm3, %v3655_v19, %v3643_v21  ;;  %v3674_v25 = vrot.slane %v3654_v18, 4  ;;  %4009 = vmatpush.msra.mxu0 %v7273_v15  ;;  %v7258_v19 = vld [vmem:[%s12736_s14 + $0x698] sm:$0xff]  ;;  %v7240_v21 = vld [vmem:[%s12736_s14 + $0x608] sm:$0xff] }
 0xfa1   : > { %v3660_v26 = vperm.slane %v3656_v24, %v8498_v23  ;;  %v3687_v27 = vsel %vm1496_vm3, %v3671_v22, %v3686_v20  ;;  %v3684_v28 = vrot.slane %v3671_v22, 4  ;;  %3750 = vmatpush.msra.mxu1 %v7164_v51  ;;  %3990 = vmatpush.msrb.mxu3 %v7256_v17  ;;  %v7239_v20 = vld [vmem:[%s12736_s14 + $0x600] sm:$0xff]  ;;  %v7241_v22 = vld [vmem:[%s12736_s14 + $0x610] sm:$0xff]  ;;  %v7242_v24 = vld [vmem:[%s12736_s14 + $0x618] sm:$0xff] }
 0xfa2   : > { %v3695_v29 = vperm.slane %v3687_v27, %v8503_v31  ;;  %v7225_v27 = vld [vmem:[%s12736_s14 + $0x590] sm:$0xff]  ;;  %v7260_v50 = vld [vmem:[%s12736_s14 + $0x6a8] sm:$0xff] }
 0xfa3   : > { %v3675_v14 = vsel %vm1496_vm3, %v3660_v26, %v3674_v25  ;;  %v3672_v30 = vrot.slane %v3660_v26, 4  ;;  %v3685_v32 = vsel %vm1496_vm3, %v3684_v28, %v3665_v12  ;;  %3751 = vmatpush.msra.mxu1 %v7163_v52  ;;  %v7271_v12 = vld [vmem:[%s12736_s14 + $0x700] sm:$0xff]  ;;  %3991 = vmatpush.msrb.mxu3 %v7240_v21  ;;  %v7224_v26 = vld [vmem:[%s12736_s14 + $0x588] sm:$0xff]  ;;  %v7226_v28 = vld [vmem:[%s12736_s14 + $0x598] sm:$0xff] }
 0xfa4   : > { %v3683_v33 = vperm.slane %v3675_v14, %v8503_v31  ;;  %v3700_v34 = vrot.slane %v3695_v29, 4  ;;  %v3691_v35 = vperm.slane %v3685_v32, %v8503_v31  ;;  %3969 = vmatpush.msra.mxu2 %v7271_v12  ;;  %v7223_v25 = vld [vmem:[%s12736_s14 + $0x580] sm:$0xff]  ;;  %v7208_v14 = vld [vmem:[%s12736_s14 + $0x508] sm:$0xff]  ;;  %v7210_v32 = vld [vmem:[%s12736_s14 + $0x518] sm:$0xff] }
 0xfa5   : > { %v3673_v36 = vsel %vm1496_vm3, %v3672_v30, %v3654_v18  ;;  %v7257_v18 = vld [vmem:[%s12736_s14 + $0x690] sm:$0xff]  ;;  %3992 = vmatpush.msrb.mxu3 %v7224_v26  ;;  %v7262_v52 = vld [vmem:[%s12736_s14 + $0x6b8] sm:$0xff] }
 0xfa6   : > { %v3701_v37 = vsel %vm1496_vm3, %v3700_v34, %v3683_v33  ;;  %v3702_v38 = vrot.slane %v3683_v33, 4  ;;  %v3679_v43 = vperm.slane %v3673_v36, %v8503_v31  ;;  %v3696_v39 = vrot.slane %v3691_v35, 4  ;;  %3970 = vmatpush.msra.mxu2 %v7255_v59  ;;  %4010 = vmatpush.msra.mxu0 %v7257_v18  ;;  %v7209_v30 = vld [vmem:[%s12736_s14 + $0x510] sm:$0xff]  ;;  %v7191_v33 = vld [vmem:[%s12736_s14 + $0x480] sm:$0xff]  ;;  %v7192_v34 = vld [vmem:[%s12736_s14 + $0x488] sm:$0xff] }
 0xfa7   : > { %3709 = vrot.lane.b32.xlu1 %v3701_v37, %s12782_s25  ;;  %3993 = vmatpush.msrb.mxu3 %v7208_v14  ;;  %v7194_v36 = vld [vmem:[%s12736_s14 + $0x498] sm:$0xff]  ;;  %v7175_v37 = vld [vmem:[%s12736_s14 + $0x400] sm:$0xff]  ;;  %v7261_v51 = vld [vmem:[%s12736_s14 + $0x6b0] sm:$0xff] }
 0xfa8   : > { %v3703_v40 = vsel %vm1496_vm3, %v3695_v29, %v3702_v38  ;;  %v3698_v41 = vrot.slane %v3679_v43, 4  ;;  %v3697_v42 = vsel %vm1496_vm3, %v3696_v39, %v3679_v43  ;;  %3971 = vmatpush.msra.mxu2 %v7239_v20  ;;  %4011 = vmatpush.msra.mxu0 %v7241_v22  ;;  %v7207_v29 = vld [vmem:[%s12736_s14 + $0x500] sm:$0xff]  ;;  %v7176_v38 = vld [vmem:[%s12736_s14 + $0x408] sm:$0xff]  ;;  %v7177_v43 = vld [vmem:[%s12736_s14 + $0x410] sm:$0xff] }
 0xfa9   : > { %3713 = vrot.lane.b32.xlu0 %v3703_v40, %s12783_s4  ;;  %3994 = vmatpush.msrb.mxu3 %v7192_v34  ;;  %v7178_v39 = vld [vmem:[%s12736_s14 + $0x418] sm:$0xff]  ;;  %v7291_v40 = vld [vmem:[%s12736_s14 + $0x7a0] sm:$0xff]  ;;  %v7296_v14 = vld [vmem:[%s12736_s14 + $0x7c8] sm:$0xff] }
 0xfaa   : > { %v3699_v44 = vsel %vm1496_vm3, %v3691_v35, %v3698_v41  ;;  %3972 = vmatpush.msra.mxu2 %v7223_v25  ;;  %4012 = vmatpush.msra.mxu0 %v7225_v27  ;;  %v7193_v35 = vld [vmem:[%s12736_s14 + $0x490] sm:$0xff]  ;;  %v7292_v41 = vld [vmem:[%s12736_s14 + $0x7a8] sm:$0xff]  ;;  %v7182_v12 = vld [vmem:[%s12736_s14 + $0x438] sm:$0xff] }
 0xfab   : > { %3705 = vrot.lane.b32.xlu2 %v3699_v44, %s12784_s0  ;;  %3995 = vmatpush.msrb.mxu3 %v7176_v38  ;;  %v7294_v44 = vld [vmem:[%s12736_s14 + $0x7b8] sm:$0xff]  ;;  %v8134_v22 = vld [vmem:[%s12734_s12 + $0x1] ss:$0 sm:$0xff]  ;;  %v7281_v34 = vld [vmem:[%s12736_s14 + $0x750] sm:$0xff] }
 0xfac   : > { %3973 = vmatpush.msra.mxu2 %v7207_v29  ;;  %4013 = vmatpush.msra.mxu0 %v7209_v30  ;;  %v8135_v25 = vld [vmem:[%s12735_s13 + $0x1] ss:$0 sm:$0xff]  ;;  %v7298_v30 = vld [vmem:[%s12736_s14 + $0x7d8] sm:$0xff]  ;;  %v7265_v38 = vld [vmem:[%s12736_s14 + $0x6d0] sm:$0xff] }
 0xfad   : > { %4068 = vmatpush.msra.mxu3 %v7292_v41  ;;  %v7295_v29 = vld [vmem:[%s12736_s14 + $0x7c0] sm:$0xff]  ;;  %v7249_v41 = vld [vmem:[%s12736_s14 + $0x650] sm:$0xff] }
 0xfae   : > { %3974 = vmatpush.msra.mxu2 %v7191_v33  ;;  %4014 = vmatpush.msra.mxu0 %v7193_v35  ;;  %v7280_v33 = vld [vmem:[%s12736_s14 + $0x748] sm:$0xff]  ;;  %v7282_v35 = vld [vmem:[%s12736_s14 + $0x758] sm:$0xff] }
 0xfaf   : > { %4069 = vmatpush.msra.mxu3 %v7276_v46  ;;  %v7233_v46 = vld [vmem:[%s12736_s14 + $0x5d0] sm:$0xff] }
 0xfb0   : > { %3975 = vmatpush.msra.mxu2 %v7175_v37  ;;  %4015 = vmatpush.msra.mxu0 %v7177_v43  ;;  %v7264_v37 = vld [vmem:[%s12736_s14 + $0x6c8] sm:$0xff]  ;;  %v7266_v43 = vld [vmem:[%s12736_s14 + $0x6d8] sm:$0xff] }
 0xfb1   : > { %4070 = vmatpush.msra.mxu3 %v7260_v50  ;;  %v7217_v50 = vld [vmem:[%s12736_s14 + $0x550] sm:$0xff] }
 0xfb2   : > { %4048 = vmatpush.msrb.mxu2 %v7291_v40  ;;  %v7248_v40 = vld [vmem:[%s12736_s14 + $0x648] sm:$0xff] }
 0xfb4   : > { %4049 = vmatpush.msrb.mxu2 %v7275_v45  ;;  %v7232_v45 = vld [vmem:[%s12736_s14 + $0x5c8] sm:$0xff] }
 0xfb6   : > { %4050 = vmatpush.msrb.mxu2 %v7259_v49  ;;  %v7216_v49 = vld [vmem:[%s12736_s14 + $0x548] sm:$0xff] }
0x1005   : > { %v3706_v53 = vpop.permute.xlu2 %3705 }
0x1006   : > { %v3716_v54 = vsel %vm973_vm1, %v3697_v42, %v3706_v53  ;;  %v7293_v42 = vld [vmem:[%s12736_s14 + $0x7b0] sm:$0xff]  ;;  %v7243_v53 = vld [vmem:[%s12736_s14 + $0x620] sm:$0xff] }
0x1007   : > { %4088 = vmatpush.msrb.mxu0 %v7293_v42  ;;  %4051 = vmatpush.msrb.mxu2 %v7243_v53  ;;  %v7250_v42 = vld [vmem:[%s12736_s14 + $0x658] sm:$0xff]  ;;  %v7200_v53 = vld [vmem:[%s12736_s14 + $0x4c8] sm:$0xff] }
0x1009   : > { %4089 = vmatpush.msrb.mxu0 %v7277_v47  ;;  %v7234_v47 = vld [vmem:[%s12736_s14 + $0x5d8] sm:$0xff] }
0x100b   : > { %4090 = vmatpush.msrb.mxu0 %v7261_v51  ;;  %v7218_v51 = vld [vmem:[%s12736_s14 + $0x558] sm:$0xff] }
0x1019   : > { %v3710_v55 = vpop.permute.xlu1 %3709 }
0x101a   : > { %v3717_v57 = vsel %vm1619_vm4, %v3716_v54, %v3710_v55  ;;  %v7244_v54 = vld [vmem:[%s12736_s14 + $0x628] sm:$0xff]  ;;  %v7245_v55 = vld [vmem:[%s12736_s14 + $0x630] sm:$0xff] }
0x101b   : > { %v3714_v58 = vpop.permute.xlu0 %3713  ;;  %4071 = vmatpush.msra.mxu3 %v7244_v54  ;;  %4091 = vmatpush.msrb.mxu0 %v7245_v55  ;;  %v7201_v54 = vld [vmem:[%s12736_s14 + $0x4d0] sm:$0xff]  ;;  %v7202_v55 = vld [vmem:[%s12736_s14 + $0x4d8] sm:$0xff] }
0x101c   : > { %v3718_v60 = vsel %vm1621_vm5, %v3717_v57, %v3714_v58  ;;  %v7246_v57 = vld [vmem:[%s12736_s14 + $0x638] sm:$0xff]  ;;  %v7227_v58 = vld [vmem:[%s12736_s14 + $0x5a0] sm:$0xff] }
0x101d   : > { %7172 = vmatmul.msk.f32.vlgmr.msra.gmra.mxu1 %vm730_vm0, %v3718_v60  ;;  %v7228_v60 = vld [vmem:[%s12736_s14 + $0x5a8] sm:$0xff]  ;;  %4052 = vmatpush.msrb.mxu2 %v7227_v58 }
0x101e   : > { %4072 = vmatpush.msra.mxu3 %v7228_v60  ;;  %v7184_v58 = vld [vmem:[%s12736_s14 + $0x448] sm:$0xff]  ;;  %v7185_v60 = vld [vmem:[%s12736_s14 + $0x450] sm:$0xff] }
0x109a   : > { %v3753_v62 = vpop.f32.mrf.mxu1 }
0x109b   : > { %v3754_v63 = vadd.f32 %v8133_v61, %v3753_v62  ;;  %v7229_v61 = vld [vmem:[%s12736_s14 + $0x5b0] sm:$0xff]  ;;  %v7230_v62 = vld [vmem:[%s12736_s14 + $0x5b8] sm:$0xff] }
0x109c   : > { %4092 = vmatpush.msrb.mxu0 %v7229_v61  ;;  %v7186_v61 = vld [vmem:[%s12736_s14 + $0x458] sm:$0xff] }
0x109d   : > { %v3756_v0 = vadd.f32 %v3754_v63, %v9896_v6  ;;  %v7290_v6 = vld [vmem:[%s12736_s14 + $0x798] sm:$0xff]  ;;  %v7211_v63 = vld [vmem:[%s12736_s14 + $0x520] sm:$0xff] }
0x109e   : > { %4028 = vmatpush.msrb.mxu1 %v7290_v6  ;;  %4053 = vmatpush.msrb.mxu2 %v7211_v63  ;;  %v7197_v6 = vld [vmem:[%s12736_s14 + $0x4b0] sm:$0xff]  ;;  %v7300_v63 = vld [vmem:[%s12736_s14 + $0x7e8] sm:$0xff] }
0x109f   : > { %v3761_v1 = vsel %vm730_vm0, %v3756_v0, 0.0 }
0x10a0   : > { %3762 = vadd.xlane.f32.xlu1 %v3761_v1  ;;  %4029 = vmatpush.msrb.mxu1 %v7274_v16  ;;  %v7213_v1 = vld [vmem:[%s12736_s14 + $0x530] sm:$0xff] }
0x10a1   : > { %4093 = vmatpush.msrb.mxu0 %v7213_v1  ;;  %4054 = vmatpush.msrb.mxu2 %v7195_v3  ;;  %v7302_v1 = vld [vmem:[%s12736_s14 + $0x7f8] sm:$0xff]  ;;  %v7284_v3 = vld [vmem:[%s12736_s14 + $0x768] sm:$0xff] }
0x10a2   : > { %4030 = vmatpush.msrb.mxu1 %v7258_v19 }
0x10a3   : > { %4094 = vmatpush.msrb.mxu0 %v7197_v6  ;;  %v7286_v6 = vld [vmem:[%s12736_s14 + $0x778] sm:$0xff] }
0x10a4   : > { %4031 = vmatpush.msrb.mxu1 %v7242_v24 }
0x10a6   : > { %4032 = vmatpush.msrb.mxu1 %v7226_v28 }
0x10a8   : > { %4033 = vmatpush.msrb.mxu1 %v7210_v32  ;;  %v7279_v32 = vld [vmem:[%s12736_s14 + $0x740] sm:$0xff] }
0x10aa   : > { %4034 = vmatpush.msrb.mxu1 %v7194_v36  ;;  %v7263_v36 = vld [vmem:[%s12736_s14 + $0x6c0] sm:$0xff] }
0x10ac   : > { %4035 = vmatpush.msrb.mxu1 %v7178_v39  ;;  %v7247_v39 = vld [vmem:[%s12736_s14 + $0x640] sm:$0xff] }
0x10ae   : > { %4108 = vmatpush.msra.mxu1 %v7294_v44  ;;  %v7231_v44 = vld [vmem:[%s12736_s14 + $0x5c0] sm:$0xff] }
0x10b0   : > { %4109 = vmatpush.msra.mxu1 %v7278_v48  ;;  %v7215_v48 = vld [vmem:[%s12736_s14 + $0x540] sm:$0xff] }
0x10b2   : > { %4110 = vmatpush.msra.mxu1 %v7262_v52  ;;  %v7199_v52 = vld [vmem:[%s12736_s14 + $0x4c0] sm:$0xff] }
0x10b4   : > { %4111 = vmatpush.msra.mxu1 %v7246_v57  ;;  %v7183_v57 = vld [vmem:[%s12736_s14 + $0x440] sm:$0xff] }
0x10b6   : > { %4112 = vmatpush.msra.mxu1 %v7230_v62  ;;  %v7299_v62 = vld [vmem:[%s12736_s14 + $0x7e0] sm:$0xff] }
0x10b8   : > { %4113 = vmatpush.msra.mxu1 %v7214_v2  ;;  %v7283_v2 = vld [vmem:[%s12736_s14 + $0x760] sm:$0xff] }
0x1113   : > { %v3763_v7 = vpop.xlane.xlu1 %3762 }
0x1114   : > { %v3764_v8 = vmul.f32 %v3763_v7, %v8589_v56  ;;  %v7198_v7 = vld [vmem:[%s12736_s14 + $0x4b8] sm:$0xff] }
0x1115   : > { %4114 = vmatpush.msra.mxu1 %v7198_v7  ;;  %v7267_v7 = vld [vmem:[%s12736_s14 + $0x6e0] sm:$0xff] }
0x1116   : > { %v10041_v9 = vsub.f32 %v3756_v0, %v3764_v8  ;;  %v7212_v0 = vld [vmem:[%s12736_s14 + $0x528] sm:$0xff]  ;;  %v7179_v8 = vld [vmem:[%s12736_s14 + $0x420] sm:$0xff] }
0x1117   : > { %4073 = vmatpush.msra.mxu3 %v7212_v0  ;;  %4055 = vmatpush.msrb.mxu2 %v7179_v8  ;;  %v7301_v0 = vld [vmem:[%s12736_s14 + $0x7f0] sm:$0xff]  ;;  %v7268_v8 = vld [vmem:[%s12736_s14 + $0x6e8] sm:$0xff] }
0x1118   : > { %v3766_v10 = vmul.f32 %v10041_v9, %v10041_v9  ;;  %4115 = vmatpush.msra.mxu1 %v7182_v12  ;;  %v7251_v12 = vld [vmem:[%s12736_s14 + $0x660] sm:$0xff] }
0x1119   : > { %4074 = vmatpush.msra.mxu3 %v7196_v4  ;;  %v7285_v4 = vld [vmem:[%s12736_s14 + $0x770] sm:$0xff] }
0x111a   : > { %v3767_v11 = vsel %vm730_vm0, %v3766_v10, 0.0  ;;  %v7180_v10 = vld [vmem:[%s12736_s14 + $0x428] sm:$0xff] }
0x111b   : > { %3768 = vadd.xlane.f32.xlu2 %v3767_v11  ;;  %v7181_v11 = vld [vmem:[%s12736_s14 + $0x430] sm:$0xff]  ;;  %4075 = vmatpush.msra.mxu3 %v7180_v10 }
0x111c   : > { %4095 = vmatpush.msrb.mxu0 %v7181_v11  ;;  %v7269_v10 = vld [vmem:[%s12736_s14 + $0x6f0] sm:$0xff]  ;;  %v7270_v11 = vld [vmem:[%s12736_s14 + $0x6f8] sm:$0xff] }
0x118e   : > { %v3769_v13 = vpop.xlane.xlu2 %3768 }
0x118f   : > { %v3770_v15 = vmul.f32 %v3769_v13, %v8589_v56  ;;  %v7252_v13 = vld [vmem:[%s12736_s14 + $0x668] sm:$0xff] }
0x1191   : > { %v3771_v16 = vadd.f32 1e-05, %v3770_v15  ;;  %v7253_v15 = vld [vmem:[%s12736_s14 + $0x670] sm:$0xff] }
0x1193   : > { %8188 = vrsqrt.f32 %v3771_v16  ;;  %vm3778_vm14 = vweird.f32 %v3771_v16 }
0x1199   : > { %v8189_v59 = vpop.eup %8188 }
0x119a   : > { %v3773_v17 = vmul.f32 %v8189_v59, %v3771_v16  ;;  %vm3779_vm13 = vweird.f32 %v8189_v59  ;;  %v7254_v16 = vld [vmem:[%s12736_s14 + $0x678] sm:$0xff] }
0x119b   : > { %vm3780_vm15 = vmor %vm3778_vm14, %vm3779_vm13 }
0x119c   : > { %v3774_v18 = vmul.f32 %v8189_v59, %v3773_v17  ;;  %v7236_v17 = vld [vmem:[%s12736_s14 + $0x5e8] sm:$0xff] }
0x119e   : > { %v3775_v19 = vmul.f32 0.5, %v3774_v18  ;;  %v7237_v18 = vld [vmem:[%s12736_s14 + $0x5f0] sm:$0xff] }
0x11a0   : > { %v3776_v20 = vsub.f32 1.5, %v3775_v19  ;;  %v7238_v19 = vld [vmem:[%s12736_s14 + $0x5f8] sm:$0xff] }
0x11a2   : > { %v3777_v21 = vmul.f32 %v8189_v59, %v3776_v20  ;;  %v7219_v20 = vld [vmem:[%s12736_s14 + $0x560] sm:$0xff] }
0x11a4   : > { %v3781_v24 = vsel %vm3780_vm15, %v8189_v59, %v3777_v21  ;;  %v7235_v59 = vld [vmem:[%s12736_s14 + $0x5e0] sm:$0xff]  ;;  %v7220_v21 = vld [vmem:[%s12736_s14 + $0x568] sm:$0xff] }
0x11a5   : > { %v3782_v26 = vmul.f32 %v3781_v24, %v10041_v9  ;;  %v7297_v9 = vld [vmem:[%s12736_s14 + $0x7d0] sm:$0xff]  ;;  %v7222_v24 = vld [vmem:[%s12736_s14 + $0x578] sm:$0xff] }
0x11a7   : > { %v3786_v27 = vmul.f32 %v8134_v22, %v3782_v26  ;;  %v7221_v22 = vld [vmem:[%s12736_s14 + $0x570] sm:$0xff]  ;;  %v7204_v26 = vld [vmem:[%s12736_s14 + $0x4e8] sm:$0xff] }
0x11a9   : > { %v10234_v28 = vadd.f32 %v8135_v25, %v3786_v27  ;;  %v7203_v25 = vld [vmem:[%s12736_s14 + $0x4e0] sm:$0xff]  ;;  %v7205_v27 = vld [vmem:[%s12736_s14 + $0x4f0] sm:$0xff] }
0x11ab   : > { %7305 = vmatmul.msk.f32.vlgmr.msra.gmra.mxu2 %vm730_vm0, %v10234_v28  ;;  %7306 = vmatmul.msk.f32.vlgmr.msrb.gmra.mxu3 %vm730_vm0, %v10234_v28 }
0x11ac   : > { %7307 = vmatmul.msk.f32.vlgmr.msra.gmra.mxu0 %vm730_vm0, %v10234_v28  ;;  %7308 = vmatmul.msk.f32.vlgmr.msrb.gmra.mxu1 %vm730_vm0, %v10234_v28 }
0x11ad   : > { %4128 = vmatpush.msra.mxu2 %v7295_v29  ;;  %4148 = vmatpush.msrb.mxu3 %v7296_v14  ;;  %v7206_v29 = vld [vmem:[%s12736_s14 + $0x4f8] sm:$0xff]  ;;  %v7187_v14 = vld [vmem:[%s12736_s14 + $0x460] sm:$0xff] }
0x11ae   : > { %4168 = vmatpush.msra.mxu0 %v7297_v9  ;;  %4188 = vmatpush.msrb.mxu1 %v7298_v30  ;;  %v7188_v9 = vld [vmem:[%s12736_s14 + $0x468] sm:$0xff]  ;;  %v7189_v30 = vld [vmem:[%s12736_s14 + $0x470] sm:$0xff] }
0x11af   : > { %4129 = vmatpush.msra.mxu2 %v7279_v32  ;;  %4149 = vmatpush.msrb.mxu3 %v7280_v33  ;;  %v7190_v32 = vld [vmem:[%s12736_s14 + $0x478] sm:$0xff] }
0x11b0   : > { %4169 = vmatpush.msra.mxu0 %v7281_v34  ;;  %4189 = vmatpush.msrb.mxu1 %v7282_v35  ;;  %v7368_v33 = vld [vmem:[%s12738_s16 + $0x978] sm:$0xff] }
0x11b1   : > { %4130 = vmatpush.msra.mxu2 %v7263_v36  ;;  %4150 = vmatpush.msrb.mxu3 %v7264_v37  ;;  %v7384_v34 = vld [vmem:[%s12738_s16 + $0x9f8] sm:$0xff]  ;;  %v7367_v37 = vld [vmem:[%s12738_s16 + $0x970] sm:$0xff] }
0x11b2   : > { %4170 = vmatpush.msra.mxu0 %v7265_v38  ;;  %4190 = vmatpush.msrb.mxu1 %v7266_v43  ;;  %v7336_v35 = vld [vmem:[%s12738_s16 + $0x878] sm:$0xff]  ;;  %v7383_v38 = vld [vmem:[%s12738_s16 + $0x9f0] sm:$0xff] }
0x11b3   : > { %4131 = vmatpush.msra.mxu2 %v7247_v39  ;;  %4151 = vmatpush.msrb.mxu3 %v7248_v40  ;;  %v7352_v36 = vld [vmem:[%s12738_s16 + $0x8f8] sm:$0xff]  ;;  %v7335_v43 = vld [vmem:[%s12738_s16 + $0x870] sm:$0xff]  ;;  %v7366_v40 = vld [vmem:[%s12738_s16 + $0x968] sm:$0xff] }
0x11b4   : > { %4171 = vmatpush.msra.mxu0 %v7249_v41  ;;  %4191 = vmatpush.msrb.mxu1 %v7250_v42  ;;  %v7351_v39 = vld [vmem:[%s12738_s16 + $0x8f0] sm:$0xff]  ;;  %v7382_v41 = vld [vmem:[%s12738_s16 + $0x9e8] sm:$0xff] }
0x11b5   : > { %7309 = vmatmul.msk.f32.vlgmr.msrb.gmra.mxu2 %vm730_vm0, %v10234_v28  ;;  %7310 = vmatmul.msk.f32.vlgmr.msra.gmra.mxu3 %vm730_vm0, %v10234_v28  ;;  %v7334_v42 = vld [vmem:[%s12738_s16 + $0x868] sm:$0xff] }
0x11b6   : > { %7311 = vmatmul.msk.f32.vlgmr.msrb.gmra.mxu0 %vm730_vm0, %v10234_v28  ;;  %7312 = vmatmul.msk.f32.vlgmr.msra.gmra.mxu1 %vm730_vm0, %v10234_v28 }
0x11b7   : > { %4132 = vmatpush.msra.mxu2 %v7231_v44  ;;  %4152 = vmatpush.msrb.mxu3 %v7232_v45  ;;  %v7350_v44 = vld [vmem:[%s12738_s16 + $0x8e8] sm:$0xff]  ;;  %v7365_v45 = vld [vmem:[%s12738_s16 + $0x960] sm:$0xff] }
0x11b8   : > { %4172 = vmatpush.msra.mxu0 %v7233_v46  ;;  %4192 = vmatpush.msrb.mxu1 %v7234_v47  ;;  %v7381_v46 = vld [vmem:[%s12738_s16 + $0x9e0] sm:$0xff] }
0x11b9   : > { %4133 = vmatpush.msra.mxu2 %v7215_v48  ;;  %4153 = vmatpush.msrb.mxu3 %v7216_v49  ;;  %v7333_v47 = vld [vmem:[%s12738_s16 + $0x860] sm:$0xff]  ;;  %v7364_v49 = vld [vmem:[%s12738_s16 + $0x958] sm:$0xff] }
0x11ba   : > { %4173 = vmatpush.msra.mxu0 %v7217_v50  ;;  %4193 = vmatpush.msrb.mxu1 %v7218_v51  ;;  %v7349_v48 = vld [vmem:[%s12738_s16 + $0x8e0] sm:$0xff]  ;;  %v7380_v50 = vld [vmem:[%s12738_s16 + $0x9d8] sm:$0xff] }
0x11bb   : > { %4134 = vmatpush.msra.mxu2 %v7199_v52  ;;  %4154 = vmatpush.msrb.mxu3 %v7200_v53  ;;  %v7332_v51 = vld [vmem:[%s12738_s16 + $0x858] sm:$0xff]  ;;  %v7363_v53 = vld [vmem:[%s12738_s16 + $0x950] sm:$0xff] }
0x11bc   : > { %4174 = vmatpush.msra.mxu0 %v7201_v54  ;;  %4194 = vmatpush.msrb.mxu1 %v7202_v55  ;;  %v7348_v52 = vld [vmem:[%s12738_s16 + $0x8d8] sm:$0xff]  ;;  %v7379_v54 = vld [vmem:[%s12738_s16 + $0x9d0] sm:$0xff] }
0x11bd   : > { %4135 = vmatpush.msra.mxu2 %v7183_v57  ;;  %4155 = vmatpush.msrb.mxu3 %v7184_v58  ;;  %v7331_v55 = vld [vmem:[%s12738_s16 + $0x850] sm:$0xff]  ;;  %v7362_v58 = vld [vmem:[%s12738_s16 + $0x948] sm:$0xff] }
0x11be   : > { %4175 = vmatpush.msra.mxu0 %v7185_v60  ;;  %4195 = vmatpush.msrb.mxu1 %v7186_v61  ;;  %v7347_v57 = vld [vmem:[%s12738_s16 + $0x8d0] sm:$0xff]  ;;  %v7378_v60 = vld [vmem:[%s12738_s16 + $0x9c8] sm:$0xff] }
0x11bf   : > { %4208 = vmatpush.msrb.mxu2 %v7299_v62  ;;  %4228 = vmatpush.msra.mxu3 %v7300_v63  ;;  %v7330_v61 = vld [vmem:[%s12738_s16 + $0x848] sm:$0xff]  ;;  %v7361_v63 = vld [vmem:[%s12738_s16 + $0x940] sm:$0xff] }
0x11c0   : > { %4248 = vmatpush.msrb.mxu0 %v7301_v0  ;;  %4268 = vmatpush.msra.mxu1 %v7302_v1  ;;  %v7346_v62 = vld [vmem:[%s12738_s16 + $0x8c8] sm:$0xff]  ;;  %v7377_v0 = vld [vmem:[%s12738_s16 + $0x9c0] sm:$0xff] }
0x11c1   : > { %7313 = vmatmul.msk.f32.vlgmr.msra.gmra.mxu2 %vm730_vm0, %v10234_v28  ;;  %7314 = vmatmul.msk.f32.vlgmr.msrb.gmra.mxu3 %vm730_vm0, %v10234_v28  ;;  %v7329_v1 = vld [vmem:[%s12738_s16 + $0x840] sm:$0xff] }
0x11c2   : > { %7315 = vmatmul.msk.f32.vlgmr.msra.gmra.mxu0 %vm730_vm0, %v10234_v28  ;;  %7316 = vmatmul.msk.f32.vlgmr.msrb.gmra.mxu1 %vm730_vm0, %v10234_v28 }
0x11c3   : > { %4209 = vmatpush.msrb.mxu2 %v7283_v2  ;;  %4229 = vmatpush.msra.mxu3 %v7284_v3  ;;  %v7345_v2 = vld [vmem:[%s12738_s16 + $0x8c0] sm:$0xff]  ;;  %v7360_v3 = vld [vmem:[%s12738_s16 + $0x938] sm:$0xff] }
0x11c4   : > { %4249 = vmatpush.msrb.mxu0 %v7285_v4  ;;  %4269 = vmatpush.msra.mxu1 %v7286_v6  ;;  %v7376_v4 = vld [vmem:[%s12738_s16 + $0x9b8] sm:$0xff] }
0x11c5   : > { %4210 = vmatpush.msrb.mxu2 %v7267_v7  ;;  %4230 = vmatpush.msra.mxu3 %v7268_v8  ;;  %v7328_v6 = vld [vmem:[%s12738_s16 + $0x838] sm:$0xff]  ;;  %v7359_v8 = vld [vmem:[%s12738_s16 + $0x930] sm:$0xff] }
0x11c6   : > { %4250 = vmatpush.msrb.mxu0 %v7269_v10  ;;  %4270 = vmatpush.msra.mxu1 %v7270_v11  ;;  %v7344_v7 = vld [vmem:[%s12738_s16 + $0x8b8] sm:$0xff]  ;;  %v7375_v10 = vld [vmem:[%s12738_s16 + $0x9b0] sm:$0xff] }
0x11c7   : > { %4211 = vmatpush.msrb.mxu2 %v7251_v12  ;;  %4231 = vmatpush.msra.mxu3 %v7252_v13  ;;  %v7327_v11 = vld [vmem:[%s12738_s16 + $0x830] sm:$0xff]  ;;  %v7358_v13 = vld [vmem:[%s12738_s16 + $0x928] sm:$0xff] }
0x11c8   : > { %4251 = vmatpush.msrb.mxu0 %v7253_v15  ;;  %4271 = vmatpush.msra.mxu1 %v7254_v16  ;;  %v7343_v12 = vld [vmem:[%s12738_s16 + $0x8b0] sm:$0xff]  ;;  %v7374_v15 = vld [vmem:[%s12738_s16 + $0x9a8] sm:$0xff] }
0x11c9   : > { %4212 = vmatpush.msrb.mxu2 %v7235_v59  ;;  %4232 = vmatpush.msra.mxu3 %v7236_v17  ;;  %v7326_v16 = vld [vmem:[%s12738_s16 + $0x828] sm:$0xff]  ;;  %v7357_v17 = vld [vmem:[%s12738_s16 + $0x920] sm:$0xff] }
0x11ca   : > { %4252 = vmatpush.msrb.mxu0 %v7237_v18  ;;  %4272 = vmatpush.msra.mxu1 %v7238_v19  ;;  %v7342_v59 = vld [vmem:[%s12738_s16 + $0x8a8] sm:$0xff]  ;;  %v7373_v18 = vld [vmem:[%s12738_s16 + $0x9a0] sm:$0xff] }
0x11cb   : > { %4213 = vmatpush.msrb.mxu2 %v7219_v20  ;;  %4233 = vmatpush.msra.mxu3 %v7220_v21  ;;  %v7325_v19 = vld [vmem:[%s12738_s16 + $0x820] sm:$0xff]  ;;  %v7356_v21 = vld [vmem:[%s12738_s16 + $0x918] sm:$0xff] }
0x11cc   : > { %4253 = vmatpush.msrb.mxu0 %v7221_v22  ;;  %4273 = vmatpush.msra.mxu1 %v7222_v24  ;;  %v7341_v20 = vld [vmem:[%s12738_s16 + $0x8a0] sm:$0xff]  ;;  %v7372_v22 = vld [vmem:[%s12738_s16 + $0x998] sm:$0xff] }
0x11cd   : > { %4214 = vmatpush.msrb.mxu2 %v7203_v25  ;;  %4234 = vmatpush.msra.mxu3 %v7204_v26  ;;  %v7324_v24 = vld [vmem:[%s12738_s16 + $0x818] sm:$0xff]  ;;  %v7355_v26 = vld [vmem:[%s12738_s16 + $0x910] sm:$0xff] }
0x11ce   : > { %4254 = vmatpush.msrb.mxu0 %v7205_v27  ;;  %4274 = vmatpush.msra.mxu1 %v7206_v29  ;;  %v7340_v25 = vld [vmem:[%s12738_s16 + $0x898] sm:$0xff]  ;;  %v7371_v27 = vld [vmem:[%s12738_s16 + $0x990] sm:$0xff] }
0x11cf   : > { %4215 = vmatpush.msrb.mxu2 %v7187_v14  ;;  %4235 = vmatpush.msra.mxu3 %v7188_v9  ;;  %v7323_v29 = vld [vmem:[%s12738_s16 + $0x810] sm:$0xff]  ;;  %v7354_v9 = vld [vmem:[%s12738_s16 + $0x908] sm:$0xff] }
0x11d0   : > { %4255 = vmatpush.msrb.mxu0 %v7189_v30  ;;  %4275 = vmatpush.msra.mxu1 %v7190_v32  ;;  %v7339_v14 = vld [vmem:[%s12738_s16 + $0x890] sm:$0xff]  ;;  %v7370_v30 = vld [vmem:[%s12738_s16 + $0x988] sm:$0xff] }
0x11d1   : > { %7317 = vmatmul.msk.f32.vlgmr.msrb.gmra.mxu2 %vm730_vm0, %v10234_v28  ;;  %7318 = vmatmul.msk.f32.vlgmr.msra.gmra.mxu3 %vm730_vm0, %v10234_v28  ;;  %v7322_v32 = vld [vmem:[%s12738_s16 + $0x808] sm:$0xff] }
0x11d2   : > { %7319 = vmatmul.msk.f32.vlgmr.msrb.gmra.mxu0 %vm730_vm0, %v10234_v28  ;;  %7320 = vmatmul.msk.f32.vlgmr.msra.gmra.mxu1 %vm730_vm0, %v10234_v28 }
0x11d3   : > { %4598 = vmatpush.msra.mxu0 %v7368_v33  ;;  %4618 = vmatpush.msrb.mxu1 %v7384_v34  ;;  %v7338_v33 = vld [vmem:[%s12738_s16 + $0x888] sm:$0xff]  ;;  %v7353_v34 = vld [vmem:[%s12738_s16 + $0x900] sm:$0xff] }
0x11d4   : > { %4558 = vmatpush.msra.mxu2 %v7336_v35  ;;  %4578 = vmatpush.msrb.mxu3 %v7352_v36  ;;  %v7369_v35 = vld [vmem:[%s12738_s16 + $0x980] sm:$0xff]  ;;  %v7432_v36 = vld [vmem:[%s12738_s16 + $0xb78] sm:$0xff] }
0x11d5   : > { %4599 = vmatpush.msra.mxu0 %v7367_v37  ;;  %4619 = vmatpush.msrb.mxu1 %v7383_v38  ;;  %v7448_v37 = vld [vmem:[%s12738_s16 + $0xbf8] sm:$0xff]  ;;  %v7321_v38 = vld [vmem:[%s12738_s16 + $0x800] sm:$0xff] }
0x11d6   : > { %4559 = vmatpush.msra.mxu2 %v7335_v43  ;;  %4579 = vmatpush.msrb.mxu3 %v7351_v39  ;;  %v7337_v43 = vld [vmem:[%s12738_s16 + $0x880] sm:$0xff]  ;;  %v7431_v39 = vld [vmem:[%s12738_s16 + $0xb70] sm:$0xff] }
0x11d7   : > { %4600 = vmatpush.msra.mxu0 %v7366_v40  ;;  %4620 = vmatpush.msrb.mxu1 %v7382_v41  ;;  %v7447_v40 = vld [vmem:[%s12738_s16 + $0xbf0] sm:$0xff]  ;;  %v7400_v41 = vld [vmem:[%s12738_s16 + $0xa78] sm:$0xff] }
0x11d8   : > { %4560 = vmatpush.msra.mxu2 %v7334_v42  ;;  %4580 = vmatpush.msrb.mxu3 %v7350_v44  ;;  %v7416_v42 = vld [vmem:[%s12738_s16 + $0xaf8] sm:$0xff]  ;;  %v7430_v44 = vld [vmem:[%s12738_s16 + $0xb68] sm:$0xff] }
0x11d9   : > { %4601 = vmatpush.msra.mxu0 %v7365_v45  ;;  %4621 = vmatpush.msrb.mxu1 %v7381_v46  ;;  %v7446_v45 = vld [vmem:[%s12738_s16 + $0xbe8] sm:$0xff]  ;;  %v7399_v46 = vld [vmem:[%s12738_s16 + $0xa70] sm:$0xff] }
0x11da   : > { %4561 = vmatpush.msra.mxu2 %v7333_v47  ;;  %4581 = vmatpush.msrb.mxu3 %v7349_v48  ;;  %v7415_v47 = vld [vmem:[%s12738_s16 + $0xaf0] sm:$0xff]  ;;  %v7429_v48 = vld [vmem:[%s12738_s16 + $0xb60] sm:$0xff] }
0x11db   : > { %4602 = vmatpush.msra.mxu0 %v7364_v49  ;;  %4622 = vmatpush.msrb.mxu1 %v7380_v50  ;;  %v7445_v49 = vld [vmem:[%s12738_s16 + $0xbe0] sm:$0xff]  ;;  %v7398_v50 = vld [vmem:[%s12738_s16 + $0xa68] sm:$0xff] }
0x11dc   : > { %4562 = vmatpush.msra.mxu2 %v7332_v51  ;;  %4582 = vmatpush.msrb.mxu3 %v7348_v52  ;;  %v7414_v51 = vld [vmem:[%s12738_s16 + $0xae8] sm:$0xff]  ;;  %v7428_v52 = vld [vmem:[%s12738_s16 + $0xb58] sm:$0xff] }
0x11dd   : > { %4603 = vmatpush.msra.mxu0 %v7363_v53  ;;  %4623 = vmatpush.msrb.mxu1 %v7379_v54  ;;  %v7444_v53 = vld [vmem:[%s12738_s16 + $0xbd8] sm:$0xff]  ;;  %v7397_v54 = vld [vmem:[%s12738_s16 + $0xa60] sm:$0xff] }
0x11de   : > { %4563 = vmatpush.msra.mxu2 %v7331_v55  ;;  %4583 = vmatpush.msrb.mxu3 %v7347_v57  ;;  %v7413_v55 = vld [vmem:[%s12738_s16 + $0xae0] sm:$0xff]  ;;  %v7427_v57 = vld [vmem:[%s12738_s16 + $0xb50] sm:$0xff] }
0x11df   : > { %4604 = vmatpush.msra.mxu0 %v7362_v58  ;;  %4624 = vmatpush.msrb.mxu1 %v7378_v60  ;;  %v7443_v58 = vld [vmem:[%s12738_s16 + $0xbd0] sm:$0xff]  ;;  %v7396_v60 = vld [vmem:[%s12738_s16 + $0xa58] sm:$0xff] }
0x11e0   : > { %4564 = vmatpush.msra.mxu2 %v7330_v61  ;;  %4584 = vmatpush.msrb.mxu3 %v7346_v62  ;;  %v7412_v61 = vld [vmem:[%s12738_s16 + $0xad8] sm:$0xff]  ;;  %v7426_v62 = vld [vmem:[%s12738_s16 + $0xb48] sm:$0xff] }
0x11e1   : > { %4605 = vmatpush.msra.mxu0 %v7361_v63  ;;  %4625 = vmatpush.msrb.mxu1 %v7377_v0  ;;  %v7442_v63 = vld [vmem:[%s12738_s16 + $0xbc8] sm:$0xff]  ;;  %v7395_v0 = vld [vmem:[%s12738_s16 + $0xa50] sm:$0xff] }
0x11e2   : > { %4565 = vmatpush.msra.mxu2 %v7329_v1  ;;  %4585 = vmatpush.msrb.mxu3 %v7345_v2  ;;  %v7411_v1 = vld [vmem:[%s12738_s16 + $0xad0] sm:$0xff]  ;;  %v7425_v2 = vld [vmem:[%s12738_s16 + $0xb40] sm:$0xff] }
0x11e3   : > { %4606 = vmatpush.msra.mxu0 %v7360_v3  ;;  %4626 = vmatpush.msrb.mxu1 %v7376_v4  ;;  %v7441_v3 = vld [vmem:[%s12738_s16 + $0xbc0] sm:$0xff]  ;;  %v7394_v4 = vld [vmem:[%s12738_s16 + $0xa48] sm:$0xff] }
0x11e4   : > { %4566 = vmatpush.msra.mxu2 %v7328_v6  ;;  %4586 = vmatpush.msrb.mxu3 %v7344_v7  ;;  %v7410_v6 = vld [vmem:[%s12738_s16 + $0xac8] sm:$0xff]  ;;  %v7424_v7 = vld [vmem:[%s12738_s16 + $0xb38] sm:$0xff] }
0x11e5   : > { %4607 = vmatpush.msra.mxu0 %v7359_v8  ;;  %4627 = vmatpush.msrb.mxu1 %v7375_v10  ;;  %v7440_v8 = vld [vmem:[%s12738_s16 + $0xbb8] sm:$0xff]  ;;  %v7393_v10 = vld [vmem:[%s12738_s16 + $0xa40] sm:$0xff] }
0x11e6   : > { %4567 = vmatpush.msra.mxu2 %v7327_v11  ;;  %4587 = vmatpush.msrb.mxu3 %v7343_v12  ;;  %v7409_v11 = vld [vmem:[%s12738_s16 + $0xac0] sm:$0xff]  ;;  %v7423_v12 = vld [vmem:[%s12738_s16 + $0xb30] sm:$0xff] }
0x11e7   : > { %4608 = vmatpush.msra.mxu0 %v7358_v13  ;;  %4628 = vmatpush.msrb.mxu1 %v7374_v15  ;;  %v7439_v13 = vld [vmem:[%s12738_s16 + $0xbb0] sm:$0xff]  ;;  %v7392_v15 = vld [vmem:[%s12738_s16 + $0xa38] sm:$0xff] }
0x11e8   : > { %4568 = vmatpush.msra.mxu2 %v7326_v16  ;;  %4588 = vmatpush.msrb.mxu3 %v7342_v59  ;;  %v7408_v16 = vld [vmem:[%s12738_s16 + $0xab8] sm:$0xff]  ;;  %v7422_v59 = vld [vmem:[%s12738_s16 + $0xb28] sm:$0xff] }
0x11e9   : > { %4609 = vmatpush.msra.mxu0 %v7357_v17  ;;  %4629 = vmatpush.msrb.mxu1 %v7373_v18  ;;  %v7438_v17 = vld [vmem:[%s12738_s16 + $0xba8] sm:$0xff]  ;;  %v7391_v18 = vld [vmem:[%s12738_s16 + $0xa30] sm:$0xff] }
0x11ea   : > { %4569 = vmatpush.msra.mxu2 %v7325_v19  ;;  %4589 = vmatpush.msrb.mxu3 %v7341_v20  ;;  %v7407_v19 = vld [vmem:[%s12738_s16 + $0xab0] sm:$0xff]  ;;  %v7421_v20 = vld [vmem:[%s12738_s16 + $0xb20] sm:$0xff] }
0x11eb   : > { %4610 = vmatpush.msra.mxu0 %v7356_v21  ;;  %4630 = vmatpush.msrb.mxu1 %v7372_v22  ;;  %v7437_v21 = vld [vmem:[%s12738_s16 + $0xba0] sm:$0xff]  ;;  %v7420_v22 = vld [vmem:[%s12738_s16 + $0xb18] sm:$0xff] }
0x11ec   : > { %4570 = vmatpush.msra.mxu2 %v7324_v24  ;;  %4590 = vmatpush.msrb.mxu3 %v7340_v25  ;;  %v7436_v24 = vld [vmem:[%s12738_s16 + $0xb98] sm:$0xff]  ;;  %v7390_v25 = vld [vmem:[%s12738_s16 + $0xa28] sm:$0xff] }
0x11ed   : > { %4611 = vmatpush.msra.mxu0 %v7355_v26  ;;  %4631 = vmatpush.msrb.mxu1 %v7371_v27  ;;  %v7406_v26 = vld [vmem:[%s12738_s16 + $0xaa8] sm:$0xff]  ;;  %v7419_v27 = vld [vmem:[%s12738_s16 + $0xb10] sm:$0xff] }
0x11ee   : > { %4571 = vmatpush.msra.mxu2 %v7323_v29  ;;  %4591 = vmatpush.msrb.mxu3 %v7339_v14  ;;  %v7435_v29 = vld [vmem:[%s12738_s16 + $0xb90] sm:$0xff]  ;;  %v7389_v14 = vld [vmem:[%s12738_s16 + $0xa20] sm:$0xff] }
0x11ef   : > { %4612 = vmatpush.msra.mxu0 %v7354_v9  ;;  %4632 = vmatpush.msrb.mxu1 %v7370_v30  ;;  %v7405_v9 = vld [vmem:[%s12738_s16 + $0xaa0] sm:$0xff]  ;;  %v7418_v30 = vld [vmem:[%s12738_s16 + $0xb08] sm:$0xff] }
0x11f0   : > { %4572 = vmatpush.msra.mxu2 %v7322_v32  ;;  %4592 = vmatpush.msrb.mxu3 %v7338_v33  ;;  %v7434_v32 = vld [vmem:[%s12738_s16 + $0xb88] sm:$0xff]  ;;  %v7388_v33 = vld [vmem:[%s12738_s16 + $0xa18] sm:$0xff] }
0x11f1   : > { %4613 = vmatpush.msra.mxu0 %v7353_v34  ;;  %4633 = vmatpush.msrb.mxu1 %v7369_v35  ;;  %v7404_v34 = vld [vmem:[%s12738_s16 + $0xa98] sm:$0xff]  ;;  %v7417_v35 = vld [vmem:[%s12738_s16 + $0xb00] sm:$0xff] }
0x11f2   : > { %4573 = vmatpush.msra.mxu2 %v7321_v38  ;;  %4593 = vmatpush.msrb.mxu3 %v7337_v43  ;;  %v7403_v38 = vld [vmem:[%s12738_s16 + $0xa90] sm:$0xff]  ;;  %v7386_v43 = vld [vmem:[%s12738_s16 + $0xa08] sm:$0xff] }
0x11f3   : > { %4678 = vmatpush.msrb.mxu0 %v7432_v36  ;;  %4698 = vmatpush.msra.mxu1 %v7448_v37  ;;  %v7433_v36 = vld [vmem:[%s12738_s16 + $0xb80] sm:$0xff]  ;;  %v7387_v37 = vld [vmem:[%s12738_s16 + $0xa10] sm:$0xff] }
0x11f4   : > { %4638 = vmatpush.msrb.mxu2 %v7400_v41  ;;  %4658 = vmatpush.msra.mxu3 %v7416_v42  ;;  %v7401_v41 = vld [vmem:[%s12738_s16 + $0xa80] sm:$0xff]  ;;  %v10847_v42 = vld [vmem:[%s12737_s15 + $0x10] sm:$0xff] }
0x11f5   : > { %4679 = vmatpush.msrb.mxu0 %v7431_v39  ;;  %4699 = vmatpush.msra.mxu1 %v7447_v40  ;;  %v7402_v39 = vld [vmem:[%s12738_s16 + $0xa88] sm:$0xff]  ;;  %v7385_v40 = vld [vmem:[%s12738_s16 + $0xa00] sm:$0xff] }
0x11f6   : > { %4639 = vmatpush.msrb.mxu2 %v7399_v46  ;;  %4659 = vmatpush.msra.mxu3 %v7415_v47 }
0x11f7   : > { %4680 = vmatpush.msrb.mxu0 %v7430_v44  ;;  %4700 = vmatpush.msra.mxu1 %v7446_v45  ;;  %v3927_v44 = vperm.slane %v10847_v42, 2  ;;  %v3928_v45 = vperm.slane %v10847_v42, 3 }
0x11f8   : > { %4640 = vmatpush.msrb.mxu2 %v7398_v50  ;;  %4660 = vmatpush.msra.mxu3 %v7414_v51  ;;  %v3925_v50 = vperm.slane %v10847_v42, 0  ;;  %v3926_v51 = vperm.slane %v10847_v42, 1 }
0x11f9   : > { %4681 = vmatpush.msrb.mxu0 %v7429_v48  ;;  %4701 = vmatpush.msra.mxu1 %v7445_v49 }
0x11fa   : > { %4641 = vmatpush.msrb.mxu2 %v7397_v54  ;;  %4661 = vmatpush.msra.mxu3 %v7413_v55  ;;  %v7496_v54 = vld [vmem:[%s12738_s16 + $0xd78] sm:$0xff] }
0x11fb   : > { %4682 = vmatpush.msrb.mxu0 %v7428_v52  ;;  %4702 = vmatpush.msra.mxu1 %v7444_v53  ;;  %v7512_v55 = vld [vmem:[%s12738_s16 + $0xdf8] sm:$0xff] }
0x11fc   : > { %4642 = vmatpush.msrb.mxu2 %v7396_v60  ;;  %4662 = vmatpush.msra.mxu3 %v7412_v61  ;;  %v7495_v60 = vld [vmem:[%s12738_s16 + $0xd70] sm:$0xff] }
0x11fd   : > { %4683 = vmatpush.msrb.mxu0 %v7427_v57  ;;  %4703 = vmatpush.msra.mxu1 %v7443_v58  ;;  %v7511_v61 = vld [vmem:[%s12738_s16 + $0xdf0] sm:$0xff] }
0x11fe   : > { %4643 = vmatpush.msrb.mxu2 %v7395_v0  ;;  %4663 = vmatpush.msra.mxu3 %v7411_v1  ;;  %v3931_v0 = vperm.slane %v10847_v42, 6  ;;  %v3932_v1 = vperm.slane %v10847_v42, 7 }
0x11ff   : > { %4684 = vmatpush.msrb.mxu0 %v7426_v62  ;;  %4704 = vmatpush.msra.mxu1 %v7442_v63 }
0x1200   : > { %4644 = vmatpush.msrb.mxu2 %v7394_v4  ;;  %4664 = vmatpush.msra.mxu3 %v7410_v6 }
0x1201   : > { %4685 = vmatpush.msrb.mxu0 %v7425_v2  ;;  %4705 = vmatpush.msra.mxu1 %v7441_v3  ;;  %v7494_v2 = vld [vmem:[%s12738_s16 + $0xd68] sm:$0xff] }
0x1202   : > { %4645 = vmatpush.msrb.mxu2 %v7393_v10  ;;  %4665 = vmatpush.msra.mxu3 %v7409_v11  ;;  %v7510_v3 = vld [vmem:[%s12738_s16 + $0xde8] sm:$0xff] }
0x1203   : > { %4686 = vmatpush.msrb.mxu0 %v7424_v7  ;;  %4706 = vmatpush.msra.mxu1 %v7440_v8  ;;  %v7464_v7 = vld [vmem:[%s12738_s16 + $0xc78] sm:$0xff] }
0x1204   : > { %4646 = vmatpush.msrb.mxu2 %v7392_v15  ;;  %4666 = vmatpush.msra.mxu3 %v7408_v16  ;;  %v7480_v8 = vld [vmem:[%s12738_s16 + $0xcf8] sm:$0xff] }
0x1205   : > { %4687 = vmatpush.msrb.mxu0 %v7423_v12  ;;  %4707 = vmatpush.msra.mxu1 %v7439_v13  ;;  %v7493_v12 = vld [vmem:[%s12738_s16 + $0xd60] sm:$0xff] }
0x1206   : > { %4647 = vmatpush.msrb.mxu2 %v7391_v18  ;;  %4667 = vmatpush.msra.mxu3 %v7407_v19  ;;  %v7509_v13 = vld [vmem:[%s12738_s16 + $0xde0] sm:$0xff]  ;;  %v3929_v18 = vperm.slane %v10847_v42, 4  ;;  %v3930_v19 = vperm.slane %v10847_v42, 5  ;;  %v7459_v42 = vld [vmem:[%s12738_s16 + $0xc50] sm:$0xff] }
0x1207   : > { %4688 = vmatpush.msrb.mxu0 %v7422_v59  ;;  %4708 = vmatpush.msra.mxu1 %v7438_v17  ;;  %v7463_v59 = vld [vmem:[%s12738_s16 + $0xc70] sm:$0xff] }
0x1208   : > { %4648 = vmatpush.msrb.mxu2 %v7390_v25  ;;  %4668 = vmatpush.msra.mxu3 %v7406_v26  ;;  %v7479_v17 = vld [vmem:[%s12738_s16 + $0xcf0] sm:$0xff]  ;;  %v7462_v25 = vld [vmem:[%s12738_s16 + $0xc68] sm:$0xff] }
0x1209   : > { %4689 = vmatpush.msrb.mxu0 %v7421_v20  ;;  %4709 = vmatpush.msra.mxu1 %v7437_v21  ;;  %v7478_v26 = vld [vmem:[%s12738_s16 + $0xce8] sm:$0xff] }
0x120a   : > { %4649 = vmatpush.msrb.mxu2 %v7389_v14  ;;  %4669 = vmatpush.msra.mxu3 %v7405_v9  ;;  %v7491_v14 = vld [vmem:[%s12738_s16 + $0xd50] sm:$0xff] }
0x120b   : > { %4690 = vmatpush.msrb.mxu0 %v7420_v22  ;;  %4710 = vmatpush.msra.mxu1 %v7436_v24  ;;  %v7492_v22 = vld [vmem:[%s12738_s16 + $0xd58] sm:$0xff]  ;;  %v7507_v9 = vld [vmem:[%s12738_s16 + $0xdd0] sm:$0xff] }
0x120c   : > { %4650 = vmatpush.msrb.mxu2 %v7388_v33  ;;  %4670 = vmatpush.msra.mxu3 %v7404_v34  ;;  %v7508_v24 = vld [vmem:[%s12738_s16 + $0xdd8] sm:$0xff]  ;;  %v7461_v33 = vld [vmem:[%s12738_s16 + $0xc60] sm:$0xff] }
0x120d   : > { %4691 = vmatpush.msrb.mxu0 %v7419_v27  ;;  %4711 = vmatpush.msra.mxu1 %v7435_v29  ;;  %v7477_v34 = vld [vmem:[%s12738_s16 + $0xce0] sm:$0xff] }
0x120e   : > { %4651 = vmatpush.msrb.mxu2 %v7387_v37  ;;  %4671 = vmatpush.msra.mxu3 %v7403_v38 }
0x120f   : > { %4692 = vmatpush.msrb.mxu0 %v7418_v30  ;;  %4712 = vmatpush.msra.mxu1 %v7434_v32 }
0x1210   : > { %4652 = vmatpush.msrb.mxu2 %v7386_v43  ;;  %4672 = vmatpush.msra.mxu3 %v7402_v39  ;;  %v7460_v43 = vld [vmem:[%s12738_s16 + $0xc58] sm:$0xff] }
0x1211   : > { %4693 = vmatpush.msrb.mxu0 %v7417_v35  ;;  %4713 = vmatpush.msra.mxu1 %v7433_v36  ;;  %v7490_v35 = vld [vmem:[%s12738_s16 + $0xd48] sm:$0xff]  ;;  %v7476_v39 = vld [vmem:[%s12738_s16 + $0xcd8] sm:$0xff] }
0x1212   : > { %4653 = vmatpush.msrb.mxu2 %v7385_v40  ;;  %4673 = vmatpush.msra.mxu3 %v7401_v41  ;;  %v7506_v36 = vld [vmem:[%s12738_s16 + $0xdc8] sm:$0xff]  ;;  %v7489_v40 = vld [vmem:[%s12738_s16 + $0xd40] sm:$0xff] }
0x1213   : > { %v7505_v41 = vld [vmem:[%s12738_s16 + $0xdc0] sm:$0xff] }
0x1229   : > { %v4017_v46 = vpop.f32.mrf.mxu0  ;;  %v4037_v47 = vpop.f32.mrf.mxu1 }
0x122a   : > { %v4018_v48 = vadd.f32 %v4017_v46, %v3927_v44  ;;  %v4038_v49 = vadd.f32 %v4037_v47, %v3928_v45  ;;  %v7475_v44 = vld [vmem:[%s12738_s16 + $0xcd0] sm:$0xff]  ;;  %v7488_v45 = vld [vmem:[%s12738_s16 + $0xd38] sm:$0xff]  ;;  %v7458_v47 = vld [vmem:[%s12738_s16 + $0xc48] sm:$0xff] }
0x122b   : > { %v7504_v46 = vld [vmem:[%s12738_s16 + $0xdb8] sm:$0xff] }
0x122c   : > { %v4282_v52 = vmax.f32 %v4018_v48, 0.0  ;;  %v4283_v53 = vmax.f32 %v4038_v49, 0.0  ;;  %v7474_v48 = vld [vmem:[%s12738_s16 + $0xcc8] sm:$0xff]  ;;  %v7487_v49 = vld [vmem:[%s12738_s16 + $0xd30] sm:$0xff] }
0x122e   : > { %4614 = vmatmul.f32.vlgmr.msra.gmra.mxu0 %v4282_v52  ;;  %4634 = vmatmul.f32.vlgmr.msrb.gmra.mxu1 %v4283_v53  ;;  %v3977_v57 = vpop.f32.mrf.mxu2  ;;  %v3997_v58 = vpop.f32.mrf.mxu3  ;;  %v7473_v52 = vld [vmem:[%s12738_s16 + $0xcc0] sm:$0xff]  ;;  %v7486_v53 = vld [vmem:[%s12738_s16 + $0xd28] sm:$0xff] }
0x122f   : > { %4758 = vmatpush.msra.mxu0 %v7496_v54  ;;  %4778 = vmatpush.msrb.mxu1 %v7512_v55  ;;  %v3978_v62 = vadd.f32 %v3977_v57, %v3925_v50  ;;  %v3998_v63 = vadd.f32 %v3997_v58, %v3926_v51  ;;  %v7503_v50 = vld [vmem:[%s12738_s16 + $0xdb0] sm:$0xff]  ;;  %v7457_v51 = vld [vmem:[%s12738_s16 + $0xc40] sm:$0xff]  ;;  %v7502_v54 = vld [vmem:[%s12738_s16 + $0xda8] sm:$0xff] }
0x1230   : > { %v10974_v55 = vld [vmem:[%s12737_s15 + $0x18] sm:$0xff] }
0x1231   : > { %v4280_v4 = vmax.f32 %v3978_v62, 0.0  ;;  %v4281_v6 = vmax.f32 %v3998_v63, 0.0  ;;  %4759 = vmatpush.msra.mxu0 %v7495_v60  ;;  %4779 = vmatpush.msrb.mxu1 %v7511_v61  ;;  %v7456_v57 = vld [vmem:[%s12738_s16 + $0xc38] sm:$0xff]  ;;  %v7485_v60 = vld [vmem:[%s12738_s16 + $0xd20] sm:$0xff]  ;;  %v7455_v62 = vld [vmem:[%s12738_s16 + $0xc30] sm:$0xff] }
0x1232   : > { %v7472_v58 = vld [vmem:[%s12738_s16 + $0xcb8] sm:$0xff]  ;;  %v7501_v61 = vld [vmem:[%s12738_s16 + $0xda0] sm:$0xff]  ;;  %v7471_v63 = vld [vmem:[%s12738_s16 + $0xcb0] sm:$0xff] }
0x1233   : > { %v4097_v10 = vpop.f32.mrf.mxu0  ;;  %v4117_v11 = vpop.f32.mrf.mxu1  ;;  %4760 = vmatpush.msra.mxu0 %v7494_v2  ;;  %4780 = vmatpush.msrb.mxu1 %v7510_v3  ;;  %v7484_v2 = vld [vmem:[%s12738_s16 + $0xd18] sm:$0xff] }
0x1234   : > { %v4098_v15 = vadd.f32 %v4097_v10, %v3931_v0  ;;  %v4118_v16 = vadd.f32 %v4117_v11, %v3932_v1  ;;  %4574 = vmatmul.f32.vlgmr.msra.gmra.mxu2 %v4280_v4  ;;  %4594 = vmatmul.f32.vlgmr.msrb.gmra.mxu3 %v4281_v6  ;;  %v3935_v0 = vperm.slane %v10974_v55, 2  ;;  %v3936_v1 = vperm.slane %v10974_v55, 3  ;;  %v7500_v3 = vld [vmem:[%s12738_s16 + $0xd98] sm:$0xff]  ;;  %v7483_v10 = vld [vmem:[%s12738_s16 + $0xd10] sm:$0xff] }
0x1235   : > { %4718 = vmatpush.msra.mxu2 %v7464_v7  ;;  %4738 = vmatpush.msrb.mxu3 %v7480_v8  ;;  %v7454_v7 = vld [vmem:[%s12738_s16 + $0xc28] sm:$0xff]  ;;  %v7499_v11 = vld [vmem:[%s12738_s16 + $0xd90] sm:$0xff] }
0x1236   : > { %v4286_v20 = vmax.f32 %v4098_v15, 0.0  ;;  %v4287_v21 = vmax.f32 %v4118_v16, 0.0  ;;  %4761 = vmatpush.msra.mxu0 %v7493_v12  ;;  %4781 = vmatpush.msrb.mxu1 %v7509_v13  ;;  %v7470_v8 = vld [vmem:[%s12738_s16 + $0xca8] sm:$0xff]  ;;  %v7453_v12 = vld [vmem:[%s12738_s16 + $0xc20] sm:$0xff] }
0x1237   : > { %4719 = vmatpush.msra.mxu2 %v7463_v59  ;;  %4739 = vmatpush.msrb.mxu3 %v7479_v17  ;;  %v7469_v13 = vld [vmem:[%s12738_s16 + $0xca0] sm:$0xff]  ;;  %v7482_v59 = vld [vmem:[%s12738_s16 + $0xd08] sm:$0xff] }
0x1238   : > { %4694 = vmatmul.f32.vlgmr.msrb.gmra.mxu0 %v4286_v20  ;;  %4714 = vmatmul.f32.vlgmr.msra.gmra.mxu1 %v4287_v21  ;;  %v4057_v27 = vpop.f32.mrf.mxu2  ;;  %v4077_v29 = vpop.f32.mrf.mxu3  ;;  %v7498_v17 = vld [vmem:[%s12738_s16 + $0xd88] sm:$0xff]  ;;  %v7481_v20 = vld [vmem:[%s12738_s16 + $0xd00] sm:$0xff] }
0x1239   : > { %4762 = vmatpush.msra.mxu0 %v7492_v22  ;;  %4782 = vmatpush.msrb.mxu1 %v7508_v24  ;;  %v4058_v30 = vadd.f32 %v4057_v27, %v3929_v18  ;;  %v4078_v32 = vadd.f32 %v4077_v29, %v3930_v19  ;;  %v7452_v18 = vld [vmem:[%s12738_s16 + $0xc18] sm:$0xff]  ;;  %v7497_v21 = vld [vmem:[%s12738_s16 + $0xd80] sm:$0xff]  ;;  %v3933_v22 = vperm.slane %v10974_v55, 0  ;;  %v3934_v24 = vperm.slane %v10974_v55, 1 }
0x123a   : > { %4720 = vmatpush.msra.mxu2 %v7462_v25  ;;  %4740 = vmatpush.msrb.mxu3 %v7478_v26  ;;  %v7468_v19 = vld [vmem:[%s12738_s16 + $0xc98] sm:$0xff] }
0x123b   : > { %v4284_v37 = vmax.f32 %v4058_v30, 0.0  ;;  %v4285_v38 = vmax.f32 %v4078_v32, 0.0  ;;  %4763 = vmatpush.msra.mxu0 %v7491_v14  ;;  %4783 = vmatpush.msrb.mxu1 %v7507_v9  ;;  %v7560_v14 = vld [vmem:[%s12738_s16 + $0xf78] sm:$0xff]  ;;  %v7451_v30 = vld [vmem:[%s12738_s16 + $0xc10] sm:$0xff] }
0x123c   : > { %4721 = vmatpush.msra.mxu2 %v7461_v33  ;;  %4741 = vmatpush.msrb.mxu3 %v7477_v34  ;;  %v7576_v9 = vld [vmem:[%s12738_s16 + $0xff8] sm:$0xff]  ;;  %v7467_v32 = vld [vmem:[%s12738_s16 + $0xc90] sm:$0xff] }
0x123d   : > { %4764 = vmatpush.msra.mxu0 %v7490_v35  ;;  %4784 = vmatpush.msrb.mxu1 %v7506_v36  ;;  %v7559_v33 = vld [vmem:[%s12738_s16 + $0xf70] sm:$0xff] }
0x123e   : > { %4654 = vmatmul.f32.vlgmr.msrb.gmra.mxu2 %v4284_v37  ;;  %4674 = vmatmul.f32.vlgmr.msra.gmra.mxu3 %v4285_v38  ;;  %v7575_v34 = vld [vmem:[%s12738_s16 + $0xff0] sm:$0xff]  ;;  %v7450_v37 = vld [vmem:[%s12738_s16 + $0xc08] sm:$0xff] }
0x123f   : > { %4722 = vmatpush.msra.mxu2 %v7460_v43  ;;  %4742 = vmatpush.msrb.mxu3 %v7476_v39  ;;  %v4177_v4 = vpop.f32.mrf.mxu0  ;;  %v4197_v6 = vpop.f32.mrf.mxu1  ;;  %v7466_v38 = vld [vmem:[%s12738_s16 + $0xc88] sm:$0xff] }
0x1240   : > { %4765 = vmatpush.msra.mxu0 %v7489_v40  ;;  %4785 = vmatpush.msrb.mxu1 %v7505_v41  ;;  %v4178_v15 = vadd.f32 %v4177_v4, %v3935_v0  ;;  %v4198_v16 = vadd.f32 %v4197_v6, %v3936_v1  ;;  %v7558_v43 = vld [vmem:[%s12738_s16 + $0xf68] sm:$0xff]  ;;  %v7449_v40 = vld [vmem:[%s12738_s16 + $0xc00] sm:$0xff]  ;;  %v7524_v0 = vld [vmem:[%s12738_s16 + $0xe58] sm:$0xff] }
0x1241   : > { %4723 = vmatpush.msra.mxu2 %v7459_v42  ;;  %4743 = vmatpush.msrb.mxu3 %v7475_v44  ;;  %v7574_v39 = vld [vmem:[%s12738_s16 + $0xfe8] sm:$0xff]  ;;  %v7465_v41 = vld [vmem:[%s12738_s16 + $0xc80] sm:$0xff]  ;;  %v7540_v1 = vld [vmem:[%s12738_s16 + $0xed8] sm:$0xff] }
0x1242   : > { %4766 = vmatpush.msra.mxu0 %v7488_v45  ;;  %4786 = vmatpush.msrb.mxu1 %v7504_v46  ;;  %v4290_v25 = vmax.f32 %v4178_v15, 0.0  ;;  %v4291_v26 = vmax.f32 %v4198_v16, 0.0  ;;  %v7528_v45 = vld [vmem:[%s12738_s16 + $0xe78] sm:$0xff]  ;;  %v7523_v4 = vld [vmem:[%s12738_s16 + $0xe50] sm:$0xff]  ;;  %v7521_v15 = vld [vmem:[%s12738_s16 + $0xe40] sm:$0xff] }
0x1243   : > { %4724 = vmatpush.msra.mxu2 %v7458_v47  ;;  %4744 = vmatpush.msrb.mxu3 %v7474_v48  ;;  %v7544_v46 = vld [vmem:[%s12738_s16 + $0xef8] sm:$0xff]  ;;  %v7557_v47 = vld [vmem:[%s12738_s16 + $0xf60] sm:$0xff]  ;;  %v7539_v6 = vld [vmem:[%s12738_s16 + $0xed0] sm:$0xff] }
0x1244   : > { %4767 = vmatpush.msra.mxu0 %v7487_v49  ;;  %4787 = vmatpush.msrb.mxu1 %v7503_v50  ;;  %v4137_v27 = vpop.f32.mrf.mxu2  ;;  %v4157_v29 = vpop.f32.mrf.mxu3  ;;  %v7573_v48 = vld [vmem:[%s12738_s16 + $0xfe0] sm:$0xff]  ;;  %v7527_v49 = vld [vmem:[%s12738_s16 + $0xe70] sm:$0xff] }
0x1245   : > { %4725 = vmatpush.msra.mxu2 %v7457_v51  ;;  %4745 = vmatpush.msrb.mxu3 %v7473_v52  ;;  %v4138_v35 = vadd.f32 %v4137_v27, %v3933_v22  ;;  %v4158_v36 = vadd.f32 %v4157_v29, %v3934_v24  ;;  %v7543_v50 = vld [vmem:[%s12738_s16 + $0xef0] sm:$0xff]  ;;  %v7556_v51 = vld [vmem:[%s12738_s16 + $0xf58] sm:$0xff]  ;;  %v7537_v16 = vld [vmem:[%s12738_s16 + $0xec0] sm:$0xff] }
0x1246   : > { %4768 = vmatpush.msra.mxu0 %v7486_v53  ;;  %4788 = vmatpush.msrb.mxu1 %v7502_v54  ;;  %v7572_v52 = vld [vmem:[%s12738_s16 + $0xfd8] sm:$0xff]  ;;  %v7526_v53 = vld [vmem:[%s12738_s16 + $0xe68] sm:$0xff]  ;;  %v7519_v22 = vld [vmem:[%s12738_s16 + $0xe30] sm:$0xff] }
0x1247   : > { %4726 = vmatpush.msra.mxu2 %v7456_v57  ;;  %4746 = vmatpush.msrb.mxu3 %v7472_v58  ;;  %v4288_v42 = vmax.f32 %v4138_v35, 0.0  ;;  %v4289_v44 = vmax.f32 %v4158_v36, 0.0  ;;  %v7542_v54 = vld [vmem:[%s12738_s16 + $0xee8] sm:$0xff]  ;;  %v7555_v57 = vld [vmem:[%s12738_s16 + $0xf50] sm:$0xff]  ;;  %v7548_v27 = vld [vmem:[%s12738_s16 + $0xf18] sm:$0xff] }
0x1248   : > { %4769 = vmatpush.msra.mxu0 %v7485_v60  ;;  %4789 = vmatpush.msrb.mxu1 %v7501_v61  ;;  %v7571_v58 = vld [vmem:[%s12738_s16 + $0xfd0] sm:$0xff]  ;;  %v7525_v60 = vld [vmem:[%s12738_s16 + $0xe60] sm:$0xff]  ;;  %v7564_v29 = vld [vmem:[%s12738_s16 + $0xf98] sm:$0xff] }
0x1249   : > { %4727 = vmatpush.msra.mxu2 %v7455_v62  ;;  %4747 = vmatpush.msrb.mxu3 %v7471_v63  ;;  %v7541_v61 = vld [vmem:[%s12738_s16 + $0xee0] sm:$0xff]  ;;  %v7554_v62 = vld [vmem:[%s12738_s16 + $0xf48] sm:$0xff]  ;;  %v7535_v24 = vld [vmem:[%s12738_s16 + $0xeb0] sm:$0xff] }
0x124a   : > { %4770 = vmatpush.msra.mxu0 %v7484_v2  ;;  %4790 = vmatpush.msrb.mxu1 %v7500_v3  ;;  %v7570_v63 = vld [vmem:[%s12738_s16 + $0xfc8] sm:$0xff]  ;;  %v7553_v2 = vld [vmem:[%s12738_s16 + $0xf40] sm:$0xff] }
0x124b   : > { %4728 = vmatpush.msra.mxu2 %v7454_v7  ;;  %4748 = vmatpush.msrb.mxu3 %v7470_v8  ;;  %v7569_v3 = vld [vmem:[%s12738_s16 + $0xfc0] sm:$0xff]  ;;  %v7552_v7 = vld [vmem:[%s12738_s16 + $0xf38] sm:$0xff] }
0x124c   : > { %4771 = vmatpush.msra.mxu0 %v7483_v10  ;;  %4791 = vmatpush.msrb.mxu1 %v7499_v11  ;;  %v7568_v8 = vld [vmem:[%s12738_s16 + $0xfb8] sm:$0xff]  ;;  %v7522_v10 = vld [vmem:[%s12738_s16 + $0xe48] sm:$0xff]  ;;  %v7517_v35 = vld [vmem:[%s12738_s16 + $0xe20] sm:$0xff] }
0x124d   : > { %4729 = vmatpush.msra.mxu2 %v7453_v12  ;;  %4749 = vmatpush.msrb.mxu3 %v7469_v13  ;;  %v7538_v11 = vld [vmem:[%s12738_s16 + $0xec8] sm:$0xff]  ;;  %v7551_v12 = vld [vmem:[%s12738_s16 + $0xf30] sm:$0xff]  ;;  %v7533_v36 = vld [vmem:[%s12738_s16 + $0xea0] sm:$0xff] }
0x124e   : > { %4772 = vmatpush.msra.mxu0 %v7482_v59  ;;  %4792 = vmatpush.msrb.mxu1 %v7498_v17  ;;  %v7567_v13 = vld [vmem:[%s12738_s16 + $0xfb0] sm:$0xff]  ;;  %v7550_v59 = vld [vmem:[%s12738_s16 + $0xf28] sm:$0xff] }
0x124f   : > { %4730 = vmatpush.msra.mxu2 %v7452_v18  ;;  %4750 = vmatpush.msrb.mxu3 %v7468_v19  ;;  %v7566_v17 = vld [vmem:[%s12738_s16 + $0xfa8] sm:$0xff]  ;;  %v7520_v18 = vld [vmem:[%s12738_s16 + $0xe38] sm:$0xff] }
0x1250   : > { %4773 = vmatpush.msra.mxu0 %v7481_v20  ;;  %4793 = vmatpush.msrb.mxu1 %v7497_v21  ;;  %v7536_v19 = vld [vmem:[%s12738_s16 + $0xeb8] sm:$0xff]  ;;  %v7549_v20 = vld [vmem:[%s12738_s16 + $0xf20] sm:$0xff] }
0x1251   : > { %4774 = vmatmul.f32.vlgmr.msra.gmra.mxu0 %v4290_v25  ;;  %4794 = vmatmul.f32.vlgmr.msrb.gmra.mxu1 %v4291_v26  ;;  %v7565_v21 = vld [vmem:[%s12738_s16 + $0xfa0] sm:$0xff]  ;;  %v3939_v25 = vperm.slane %v10974_v55, 6  ;;  %v3940_v26 = vperm.slane %v10974_v55, 7 }
0x1252   : > { %4838 = vmatpush.msrb.mxu0 %v7560_v14  ;;  %4858 = vmatpush.msra.mxu1 %v7576_v9  ;;  %v4257_v14 = vpop.f32.mrf.mxu0  ;;  %v4277_v9 = vpop.f32.mrf.mxu1 }
0x1253   : > { %4731 = vmatpush.msra.mxu2 %v7451_v30  ;;  %4751 = vmatpush.msrb.mxu3 %v7467_v32  ;;  %v7518_v30 = vld [vmem:[%s12738_s16 + $0xe28] sm:$0xff] }
0x1254   : > { %4839 = vmatpush.msrb.mxu0 %v7559_v33  ;;  %4859 = vmatpush.msra.mxu1 %v7575_v34  ;;  %v7534_v32 = vld [vmem:[%s12738_s16 + $0xea8] sm:$0xff]  ;;  %v7547_v33 = vld [vmem:[%s12738_s16 + $0xf10] sm:$0xff] }
0x1255   : > { %4732 = vmatpush.msra.mxu2 %v7450_v37  ;;  %4752 = vmatpush.msrb.mxu3 %v7466_v38  ;;  %v7563_v34 = vld [vmem:[%s12738_s16 + $0xf90] sm:$0xff]  ;;  %v4258_v37 = vadd.f32 %v4257_v14, %v3939_v25  ;;  %v4278_v38 = vadd.f32 %v4277_v9, %v3940_v26 }
0x1256   : > { %4840 = vmatpush.msrb.mxu0 %v7558_v43  ;;  %4860 = vmatpush.msra.mxu1 %v7574_v39  ;;  %v7546_v43 = vld [vmem:[%s12738_s16 + $0xf08] sm:$0xff] }
0x1257   : > { %4733 = vmatpush.msra.mxu2 %v7449_v40  ;;  %4753 = vmatpush.msrb.mxu3 %v7465_v41  ;;  %v7562_v39 = vld [vmem:[%s12738_s16 + $0xf88] sm:$0xff]  ;;  %v7516_v40 = vld [vmem:[%s12738_s16 + $0xe18] sm:$0xff] }
0x1258   : > { %4734 = vmatmul.f32.vlgmr.msra.gmra.mxu2 %v4288_v42  ;;  %4754 = vmatmul.f32.vlgmr.msrb.gmra.mxu3 %v4289_v44  ;;  %v7532_v41 = vld [vmem:[%s12738_s16 + $0xe98] sm:$0xff]  ;;  %v3937_v42 = vperm.slane %v10974_v55, 4  ;;  %v3938_v44 = vperm.slane %v10974_v55, 5  ;;  %v7515_v55 = vld [vmem:[%s12738_s16 + $0xe10] sm:$0xff] }
0x1259   : > { %4798 = vmatpush.msrb.mxu2 %v7528_v45  ;;  %4818 = vmatpush.msra.mxu3 %v7544_v46  ;;  %v7545_v45 = vld [vmem:[%s12738_s16 + $0xf00] sm:$0xff] }
0x125a   : > { %4841 = vmatpush.msrb.mxu0 %v7557_v47  ;;  %4861 = vmatpush.msra.mxu1 %v7573_v48  ;;  %v7561_v46 = vld [vmem:[%s12738_s16 + $0xf80] sm:$0xff]  ;;  %v4217_v47 = vpop.f32.mrf.mxu2  ;;  %v4237_v48 = vpop.f32.mrf.mxu3 }
0x125b   : > { %4799 = vmatpush.msrb.mxu2 %v7527_v49  ;;  %4819 = vmatpush.msra.mxu3 %v7543_v50  ;;  %v4294_v49 = vmax.f32 %v4258_v37, 0.0  ;;  %v4295_v50 = vmax.f32 %v4278_v38, 0.0 }
0x125c   : > { %4842 = vmatpush.msrb.mxu0 %v7556_v51  ;;  %4862 = vmatpush.msra.mxu1 %v7572_v52  ;;  %v7531_v51 = vld [vmem:[%s12738_s16 + $0xe90] sm:$0xff]  ;;  %v4218_v52 = vadd.f32 %v4217_v47, %v3937_v42  ;;  %v7607_v42 = vld [vmem:[%s12730_s8 + $0xb8] sm:$0xff]  ;;  %v7585_v47 = vld [vmem:[%s12774_s6 + $0xa8] sm:$0xff] }
0x125d   : > { %4800 = vmatpush.msrb.mxu2 %v7526_v53  ;;  %4820 = vmatpush.msra.mxu3 %v7542_v54  ;;  %v4238_v53 = vadd.f32 %v4237_v48, %v3938_v44  ;;  %v7514_v54 = vld [vmem:[%s12738_s16 + $0xe08] sm:$0xff]  ;;  %v7586_v44 = vld [vmem:[%s12774_s6 + $0xb0] sm:$0xff] }
0x125e   : > { %4843 = vmatpush.msrb.mxu0 %v7555_v57  ;;  %4863 = vmatpush.msra.mxu1 %v7571_v58  ;;  %v7530_v57 = vld [vmem:[%s12738_s16 + $0xe88] sm:$0xff]  ;;  %v7513_v58 = vld [vmem:[%s12738_s16 + $0xe00] sm:$0xff] }
0x125f   : > { %4801 = vmatpush.msrb.mxu2 %v7525_v60  ;;  %4821 = vmatpush.msra.mxu3 %v7541_v61  ;;  %v7529_v60 = vld [vmem:[%s12738_s16 + $0xe80] sm:$0xff]  ;;  %v4292_v61 = vmax.f32 %v4218_v52, 0.0  ;;  %v7595_v48 = vld [vmem:[%s12775_s2 + $0xa8] sm:$0xff]  ;;  %v7583_v52 = vld [vmem:[%s12774_s6 + $0x98] sm:$0xff] }
0x1260   : > { %4844 = vmatpush.msrb.mxu0 %v7554_v62  ;;  %4864 = vmatpush.msra.mxu1 %v7570_v63  ;;  %v4293_v62 = vmax.f32 %v4238_v53, 0.0  ;;  %v8136_v63 = vld [vmem:[%s12739_s17 + $0x1] ss:$0 sm:$0xff]  ;;  %v7593_v53 = vld [vmem:[%s12775_s2 + $0x98] sm:$0xff] }
0x1261   : > { %4802 = vmatpush.msrb.mxu2 %v7524_v0  ;;  %4822 = vmatpush.msra.mxu3 %v7540_v1 }
0x1262   : > { %4845 = vmatpush.msrb.mxu0 %v7553_v2  ;;  %4865 = vmatpush.msra.mxu1 %v7569_v3 }
0x1263   : > { %4803 = vmatpush.msrb.mxu2 %v7523_v4  ;;  %4823 = vmatpush.msra.mxu3 %v7539_v6 }
0x1264   : > { %4846 = vmatpush.msrb.mxu0 %v7552_v7  ;;  %4866 = vmatpush.msra.mxu1 %v7568_v8 }
0x1265   : > { %4804 = vmatpush.msrb.mxu2 %v7522_v10  ;;  %4824 = vmatpush.msra.mxu3 %v7538_v11 }
0x1266   : > { %4847 = vmatpush.msrb.mxu0 %v7551_v12  ;;  %4867 = vmatpush.msra.mxu1 %v7567_v13 }
0x1267   : > { %4805 = vmatpush.msrb.mxu2 %v7521_v15  ;;  %4825 = vmatpush.msra.mxu3 %v7537_v16 }
0x1268   : > { %4848 = vmatpush.msrb.mxu0 %v7550_v59  ;;  %4868 = vmatpush.msra.mxu1 %v7566_v17 }
0x1269   : > { %4806 = vmatpush.msrb.mxu2 %v7520_v18  ;;  %4826 = vmatpush.msra.mxu3 %v7536_v19 }
0x126a   : > { %4849 = vmatpush.msrb.mxu0 %v7549_v20  ;;  %4869 = vmatpush.msra.mxu1 %v7565_v21 }
0x126b   : > { %4807 = vmatpush.msrb.mxu2 %v7519_v22  ;;  %4827 = vmatpush.msra.mxu3 %v7535_v24 }
0x126c   : > { %4850 = vmatpush.msrb.mxu0 %v7548_v27  ;;  %4870 = vmatpush.msra.mxu1 %v7564_v29 }
0x126d   : > { %4808 = vmatpush.msrb.mxu2 %v7518_v30  ;;  %4828 = vmatpush.msra.mxu3 %v7534_v32 }
0x126e   : > { %4851 = vmatpush.msrb.mxu0 %v7547_v33  ;;  %4871 = vmatpush.msra.mxu1 %v7563_v34 }
0x126f   : > { %4809 = vmatpush.msrb.mxu2 %v7517_v35  ;;  %4829 = vmatpush.msra.mxu3 %v7533_v36 }
0x1270   : > { %4852 = vmatpush.msrb.mxu0 %v7546_v43  ;;  %4872 = vmatpush.msra.mxu1 %v7562_v39 }
0x1271   : > { %4810 = vmatpush.msrb.mxu2 %v7516_v40  ;;  %4830 = vmatpush.msra.mxu3 %v7532_v41  ;;  %v7587_v41 = vld [vmem:[%s12774_s6 + $0xb8] sm:$0xff] }
0x1272   : > { %4853 = vmatpush.msrb.mxu0 %v7545_v45  ;;  %4873 = vmatpush.msra.mxu1 %v7561_v46  ;;  %v7596_v45 = vld [vmem:[%s12775_s2 + $0xb0] sm:$0xff] }
0x1273   : > { %4854 = vmatmul.f32.vlgmr.msrb.gmra.mxu0 %v4294_v49  ;;  %4874 = vmatmul.f32.vlgmr.msra.gmra.mxu1 %v4295_v50  ;;  %v7606_v46 = vld [vmem:[%s12730_s8 + $0xb0] sm:$0xff]  ;;  %v7605_v49 = vld [vmem:[%s12730_s8 + $0xa8] sm:$0xff]  ;;  %v7584_v50 = vld [vmem:[%s12774_s6 + $0xa0] sm:$0xff] }
0x1274   : > { %4811 = vmatpush.msrb.mxu2 %v7515_v55  ;;  %4831 = vmatpush.msra.mxu3 %v7531_v51  ;;  %v7594_v55 = vld [vmem:[%s12775_s2 + $0xa0] sm:$0xff] }
0x1275   : > { %5006 = vmatpush.msra.mxu0 %v7607_v42  ;;  %v7604_v51 = vld [vmem:[%s12730_s8 + $0xa0] sm:$0xff] }
0x1276   : > { %4812 = vmatpush.msrb.mxu2 %v7514_v54  ;;  %4832 = vmatpush.msra.mxu3 %v7530_v57  ;;  %v7603_v54 = vld [vmem:[%s12730_s8 + $0x98] sm:$0xff]  ;;  %v7582_v57 = vld [vmem:[%s12774_s6 + $0x90] sm:$0xff] }
0x1277   : > { %5007 = vmatpush.msra.mxu0 %v7606_v46 }
0x1278   : > { %4813 = vmatpush.msrb.mxu2 %v7513_v58  ;;  %4833 = vmatpush.msra.mxu3 %v7529_v60  ;;  %v7592_v58 = vld [vmem:[%s12775_s2 + $0x90] sm:$0xff] }
0x1279   : > { %4814 = vmatmul.f32.vlgmr.msrb.gmra.mxu2 %v4292_v61  ;;  %4834 = vmatmul.f32.vlgmr.msra.gmra.mxu3 %v4293_v62  ;;  %v7602_v60 = vld [vmem:[%s12730_s8 + $0x90] sm:$0xff]  ;;  %v7581_v61 = vld [vmem:[%s12774_s6 + $0x88] sm:$0xff] }
0x127a   : > { %4938 = vmatpush.msra.mxu2 %v7587_v41  ;;  %5008 = vmatpush.msra.mxu0 %v7605_v49  ;;  %v7591_v62 = vld [vmem:[%s12775_s2 + $0x88] sm:$0xff] }
0x127c   : > { %4939 = vmatpush.msra.mxu2 %v7586_v44  ;;  %5009 = vmatpush.msra.mxu0 %v7604_v51 }
0x127e   : > { %4940 = vmatpush.msra.mxu2 %v7585_v47  ;;  %5010 = vmatpush.msra.mxu0 %v7603_v54 }
0x1280   : > { %4941 = vmatpush.msra.mxu2 %v7584_v50  ;;  %5011 = vmatpush.msra.mxu0 %v7602_v60 }
0x1282   : > { %4942 = vmatpush.msra.mxu2 %v7583_v52 }
0x1284   : > { %4943 = vmatpush.msra.mxu2 %v7582_v57 }
0x1286   : > { %4944 = vmatpush.msra.mxu2 %v7581_v61 }
0x12ab   : > { %v4615_v4 = vpop.f32.mrf.mxu0  ;;  %v4635_v7 = vpop.f32.mrf.mxu1 }
0x12b5   : > { %v4695_v15 = vpop.f32.mrf.mxu0  ;;  %v4715_v59 = vpop.f32.mrf.mxu1 }
0x12b7   : > { %v4575_v0 = vpop.f32.mrf.mxu2  ;;  %v4595_v2 = vpop.f32.mrf.mxu3 }
0x12b8   : > { %v4576_v1 = vadd.f32 %v8136_v63, %v4575_v0  ;;  %v7601_v63 = vld [vmem:[%s12730_s8 + $0x88] sm:$0xff]  ;;  %v7580_v0 = vld [vmem:[%s12774_s6 + $0x80] sm:$0xff] }
0x12b9   : > { %5012 = vmatpush.msra.mxu0 %v7601_v63  ;;  %4945 = vmatpush.msra.mxu2 %v7580_v0 }
0x12ba   : > { %v4596_v3 = vadd.f32 %v4595_v2, %v4576_v1  ;;  %v7590_v1 = vld [vmem:[%s12775_s2 + $0x80] sm:$0xff] }
0x12bb   : > { %v7600_v2 = vld [vmem:[%s12730_s8 + $0x80] sm:$0xff] }
0x12bc   : > { %v4616_v6 = vadd.f32 %v4615_v4, %v4596_v3  ;;  %5013 = vmatpush.msra.mxu0 %v7600_v2 }
0x12be   : > { %v4636_v8 = vadd.f32 %v4635_v7, %v4616_v6 }
0x12c1   : > { %v4655_v10 = vpop.f32.mrf.mxu2  ;;  %v4675_v12 = vpop.f32.mrf.mxu3 }
0x12c2   : > { %v4656_v11 = vadd.f32 %v4655_v10, %v4636_v8 }
0x12c4   : > { %v4676_v13 = vadd.f32 %v4675_v12, %v4656_v11 }
0x12c6   : > { %v4696_v16 = vadd.f32 %v4695_v15, %v4676_v13  ;;  %v8137_v15 = vld [vmem:[%s12740_s18 + $0x1] ss:$0 sm:$0xff] }
0x12c8   : > { %v4716_v18 = vadd.f32 %v4715_v59, %v4696_v16  ;;  %v8138_v59 = vld [vmem:[%s12741_s19 + $0x1] ss:$0 sm:$0xff] }
0x12ce   : > { %v4775_v22 = vpop.f32.mrf.mxu0  ;;  %v4795_v25 = vpop.f32.mrf.mxu1 }
0x12db   : > { %v4735_v17 = vpop.f32.mrf.mxu2  ;;  %v4755_v20 = vpop.f32.mrf.mxu3 }
0x12dc   : > { %v4736_v19 = vadd.f32 %v4735_v17, %v4716_v18 }
0x12de   : > { %v4756_v21 = vadd.f32 %v4755_v20, %v4736_v19  ;;  %v8140_v20 = vld [vmem:[%s12779_s1 + $0x2] ss:$0 sm:$0xff] }
0x12e0   : > { %v4776_v24 = vadd.f32 %v4775_v22, %v4756_v21  ;;  %v8141_v21 = vld [vmem:[%s12729_s7 + $0x2] ss:$0 sm:$0xff] }
0x12e2   : > { %v4796_v26 = vadd.f32 %v4795_v25, %v4776_v24 }
0x12f0   : > { %v4855_v30 = vpop.f32.mrf.mxu0  ;;  %v4875_v33 = vpop.f32.mrf.mxu1 }
0x12fc   : > { %v4815_v27 = vpop.f32.mrf.mxu2  ;;  %v4835_v14 = vpop.f32.mrf.mxu3 }
0x12fd   : > { %v4816_v29 = vadd.f32 %v4815_v27, %v4796_v26  ;;  %v8139_v27 = vld [vmem:[%s12731_s9 + $0x2] ss:$0 sm:$0xff] }
0x12ff   : > { %v4836_v9 = vadd.f32 %v4835_v14, %v4816_v29 }
0x1301   : > { %v4856_v32 = vadd.f32 %v4855_v30, %v4836_v9 }
0x1303   : > { %v4876_v34 = vadd.f32 %v4875_v33, %v4856_v32 }
0x1305   : > { %v4878_v35 = vadd.f32 %v4876_v34, %v10234_v28  ;;  %v7597_v28 = vld [vmem:[%s12775_s2 + $0xb8] sm:$0xff] }
0x1306   : > { %4972 = vmatpush.msrb.mxu3 %v7597_v28 }
0x1307   : > { %v4883_v36 = vsel %vm730_vm0, %v4878_v35, 0.0 }
0x1308   : > { %4884 = vadd.xlane.f32.xlu0 %v4883_v36  ;;  %4973 = vmatpush.msrb.mxu3 %v7596_v45 }
0x130a   : > { %4974 = vmatpush.msrb.mxu3 %v7595_v48 }
0x130c   : > { %4975 = vmatpush.msrb.mxu3 %v7594_v55 }
0x130e   : > { %4976 = vmatpush.msrb.mxu3 %v7593_v53 }
0x1310   : > { %4977 = vmatpush.msrb.mxu3 %v7592_v58 }
0x1312   : > { %4978 = vmatpush.msrb.mxu3 %v7591_v62 }
0x1314   : > { %4979 = vmatpush.msrb.mxu3 %v7590_v1 }
0x137b   : > { %v4885_v37 = vpop.xlane.xlu0 %4884 }
0x137c   : > { %v4886_v38 = vmul.f32 %v4885_v37, %v8589_v56 }
0x137e   : > { %v11260_v43 = vsub.f32 %v4878_v35, %v4886_v38 }
0x1380   : > { %v4888_v39 = vmul.f32 %v11260_v43, %v11260_v43 }
0x1382   : > { %v4889_v40 = vsel %vm730_vm0, %v4888_v39, 0.0 }
0x1383   : > { %4890 = vadd.xlane.f32.xlu2 %v4889_v40 }
0x13f6   : > { %v4891_v3 = vpop.xlane.xlu2 %4890 }
0x13f7   : > { %v4892_v4 = vmul.f32 %v4891_v3, %v8589_v56 }
0x13f9   : > { %v4893_v6 = vadd.f32 1e-05, %v4892_v4 }
0x13fb   : > { %8190 = vrsqrt.f32 %v4893_v6  ;;  %vm4900_vm7 = vweird.f32 %v4893_v6 }
0x1401   : > { %v8191_v7 = vpop.eup %8190 }
0x1402   : > { %v4895_v8 = vmul.f32 %v8191_v7, %v4893_v6  ;;  %vm4901_vm6 = vweird.f32 %v8191_v7 }
0x1403   : > { %vm4902_vm8 = vmor %vm4900_vm7, %vm4901_vm6 }
0x1404   : > { %v4896_v10 = vmul.f32 %v8191_v7, %v4895_v8 }
0x1406   : > { %v4897_v11 = vmul.f32 0.5, %v4896_v10 }
0x1408   : > { %v4898_v12 = vsub.f32 1.5, %v4897_v11 }
0x140a   : > { %v4899_v13 = vmul.f32 %v8191_v7, %v4898_v12 }
0x140c   : > { %v4903_v16 = vsel %vm4902_vm8, %v8191_v7, %v4899_v13 }
0x140d   : > { %v4904_v17 = vmul.f32 %v4903_v16, %v11260_v43 }
0x140f   : > { %v4908_v18 = vmul.f32 %v8137_v15, %v4904_v17 }
0x1411   : > { %v11345_v19 = vadd.f32 %v8138_v59, %v4908_v18 }
0x1413   : > { %7589 = vmatmul.msk.f32.vlgmr.msra.gmra.mxu2 %vm730_vm0, %v11345_v19  ;;  %7599 = vmatmul.msk.f32.vlgmr.msrb.gmra.mxu3 %vm730_vm0, %v11345_v19 }
0x1414   : > { %7609 = vmatmul.msk.f32.vlgmr.msra.gmra.mxu0 %vm730_vm0, %v11345_v19 }
0x1491   : > { %v5015_v29 = vpop.f32.mrf.mxu0 }
0x1492   : > { %v5016_v14 = vadd.f32 %v8139_v27, %v5015_v29 }
0x1496   : > { %v4947_v22 = vpop.f32.mrf.mxu2  ;;  %v4981_v24 = vpop.f32.mrf.mxu3 }
0x1497   : > { %v4948_v25 = vadd.f32 %v8140_v20, %v4947_v22  ;;  %v4982_v26 = vadd.f32 %v8141_v21, %v4981_v24 }
0x1499   : > { %5026 = vrot.lane.b32.xlu2 %v4982_v26, %s12780_s23  ;;  %5029 = vrot.lane.b32.xlu1 %v4982_v26, %s12781_s5 }
0x149a   : > { %5021 = vrot.lane.b32.xlu0 %v4948_v25, %s12781_s5 }
0x14a1   : > { %5032 = vrot.lane.b32.xlu1 %v4982_v26, %s12785_s3  ;;  %5019 = vrot.lane.b32.xlu2 %v4948_v25, %s12780_s23 }
0x14a2   : > { %5039 = vrot.lane.b32.xlu0 %v5016_v14, %s12781_s5  ;;  %s12786_s5 = sld [smem:[#allocation4_spill]] }
0x14a8   : > { %s678_s21 = scalar_lea.vmem %s12788_s24, %s12786_s5 }
0x14a9   : > { %5023 = vrot.lane.b32.xlu1 %v4948_v25, %s12785_s3 }
0x14f3   : > { %v5027_v9 = vpop.permute.xlu2 %5026 }
0x14fb   : > { %v5020_v35 = vpop.permute.xlu2 %5019 }
0x150b   : > { %v5030_v30 = vpop.permute.xlu1 %5029 }
0x150c   : > { %v8095_v32 = vpack.i.bf16 %v5027_v9, %v5030_v30  ;;  %v5022_v28 = vpop.permute.xlu0 %5021 }
0x150e   : > { %8096 = vxpose.xlu2.b32.start.end [1/1] (short) (narrow) %v8095_v32, 16 }
0x1513   : > { %v5033_v33 = vpop.permute.xlu1 %5032 }
0x1514   : > { %v8107_v34 = vpack.i.bf16 %v5033_v33, %v4982_v26  ;;  %v5040_v63 = vpop.permute.xlu0 %5039 }
0x1516   : > { %8108 = vxpose.xlu1.b32.start.end [1/1] (short) (narrow) %v8107_v34, 16 }
0x151b   : > { %v5024_v39 = vpop.permute.xlu1 %5023 }
0x15a7   : > { %v8097_v36 = vpop.trf.xlu2 }
0x15a8   : > { %v8101_v40 = vunpack.i.h.bf16 %v8097_v36  ;;  %v8098_v41 = vunpack.i.l.bf16 %v8097_v36 }
0x15af   : > { %v8102_v37 = vpop.trf.xlu2 }
0x15b0   : > { %v8106_v38 = vunpack.i.h.bf16 %v8102_v37  ;;  %v8103_v43 = vunpack.i.l.bf16 %v8102_v37 }
0x15b2   : > { %5211 = vmatpush.msrb.mxu2 %v8106_v38  ;;  %5233 = vmatpush.msra.mxu3 %v8103_v43 }
0x15b4   : > { %5212 = vmatpush.msrb.mxu2 %v8101_v40  ;;  %5234 = vmatpush.msra.mxu3 %v8098_v41 }
0x15b5   : > { %7611 = vmatmul.msk.f32.vlgmr.msrb.gmra.mxu2 %vm973_vm1, %v5020_v35  ;;  %7612 = vmatmul.msk.f32.vlgmr.msra.gmra.mxu3 %vm973_vm1, %v5022_v28 }
0x15ba   : > { %v8109_v42 = vpop.trf.xlu1 }
0x15bb   : > { %v8110_v47 = vunpack.i.l.bf16 %v8109_v42  ;;  %v8113_v48 = vunpack.i.h.bf16 %v8109_v42 }
0x15c2   : > { %v8114_v44 = vpop.trf.xlu1 }
0x15c3   : > { %v8118_v45 = vunpack.i.h.bf16 %v8114_v44  ;;  %v8115_v46 = vunpack.i.l.bf16 %v8114_v44 }
0x15c5   : > { %5189 = vmatpush.msrb.mxu1 %v8115_v46  ;;  %5255 = vmatpush.msrb.mxu0 %v8118_v45 }
0x15c7   : > { %5190 = vmatpush.msrb.mxu1 %v8110_v47  ;;  %5256 = vmatpush.msrb.mxu0 %v8113_v48 }
0x15c8   : > { %7610 = vmatmul.msk.f32.vlgmr.msrb.gmra.mxu1 %vm973_vm1, %v4948_v25  ;;  %7613 = vmatmul.msk.f32.vlgmr.msrb.gmra.mxu0 %vm973_vm1, %v5024_v39 }
0x1638   : > { %v5214_v49 = vpop.f32.mrf.mxu2  ;;  %v5236_v60 = vpop.f32.mrf.mxu3 }
0x1639   : > { %v5262_v50 = vmul.f32 0.25, %v5214_v49  ;;  %v5263_v61 = vmul.f32 0.25, %v5236_v60 }
0x163b   : > { %v5268_v55 = vsel %vm1066_vm2, %v5262_v50, -inf  ;;  %v5271_v62 = vsel %vm1066_vm2, %v5263_v61, -inf }
0x163c   : > { %5269 = vmax.xlane.f32.xlu2 %v5268_v55 }
0x1645   : > { %v5192_v51 = vpop.f32.mrf.mxu1  ;;  %v5258_v52 = vpop.f32.mrf.mxu0 }
0x1646   : > { %v5261_v53 = vmul.f32 0.25, %v5192_v51  ;;  %v5264_v54 = vmul.f32 0.25, %v5258_v52 }
0x1648   : > { %v5274_v57 = vsel %vm1066_vm2, %v5264_v54, -inf  ;;  %v5265_v58 = vsel %vm1066_vm2, %v5261_v53, -inf }
0x1649   : > { %5275 = vmax.xlane.f32.xlu1 %v5274_v57  ;;  %5266 = vmax.xlane.f32.xlu0 %v5265_v58 }
0x1651   : > { %5272 = vmax.xlane.f32.xlu0 %v5271_v62 }
0x1662   : > { %5042 = vrot.lane.b32.xlu1 %v5016_v14, %s12785_s3 }
0x1665   : > { %5036 = vrot.lane.b32.xlu0 %v5016_v14, %s12780_s23  ;;  %5373 = vxpose.xlu2.b32.start.end [1/1] (short) (narrow) %v5040_v63, 16 }
0x1697   : > { %5309 = vxpose.xlu1.b32.start.end [1/1] (short) (narrow) %v5016_v14, 16 }
0x16af   : > { %v5270_v1 = vpop.xlane.xlu2 %5269 }
0x16b0   : > { %v5278_v4 = vsub.f32 %v5262_v50, %v5270_v1 }
0x16b2   : > { %v5283_v7 = vmul.f32 1.442695, %v5278_v4 }
0x16bc   : > { %v5267_v0 = vpop.xlane.xlu0 %5266  ;;  %v5276_v13 = vpop.xlane.xlu1 %5275 }
0x16bd   : > { %v5277_v8 = vsub.f32 %v5261_v53, %v5267_v0  ;;  %v5280_v15 = vsub.f32 %v5264_v54, %v5276_v13 }
0x16bf   : > { %v5281_v11 = vmul.f32 1.442695, %v5277_v8  ;;  %v5287_v59 = vmul.f32 1.442695, %v5280_v15 }
0x16c4   : > { %v5273_v2 = vpop.xlane.xlu0 %5272 }
0x16c5   : > { %v5279_v3 = vsub.f32 %v5263_v61, %v5273_v2 }
0x16c7   : > { %v5285_v6 = vmul.f32 1.442695, %v5279_v3 }
0x16c9   : > { %8192 = vpow2.f32 %v5285_v6 }
0x16ca   : > { %8194 = vpow2.f32 %v5283_v7 }
0x16cb   : > { %8196 = vpow2.f32 %v5281_v11 }
0x16cc   : > { %8198 = vpow2.f32 %v5287_v59 }
0x16cf   : > { %v8193_v10 = vpop.eup %8192 }
0x16d0   : > { %v5295_v12 = vsel %vm1066_vm2, %v8193_v10, 0.0  ;;  %v8195_v16 = vpop.eup %8194 }
0x16d1   : > { %5296 = vadd.xlane.f32.xlu0 %v5295_v12  ;;  %v5292_v17 = vsel %vm1066_vm2, %v8195_v16, 0.0  ;;  %v8197_v18 = vpop.eup %8196 }
0x16d2   : > { %v5289_v20 = vsel %vm1066_vm2, %v8197_v18, 0.0  ;;  %v8199_v21 = vpop.eup %8198 }
0x16d3   : > { %v5298_v22 = vsel %vm1066_vm2, %v8199_v21, 0.0 }
0x16d4   : > { %v5043_v25 = vpop.permute.xlu1 %5042 }
0x16d7   : > { %v5037_v24 = vpop.permute.xlu0 %5036 }
0x16d9   : > { %5293 = vadd.xlane.f32.xlu0 %v5292_v17 }
0x16de   : > { %5290 = vadd.xlane.f32.xlu2 %v5289_v20 }
0x16e6   : > { %5299 = vadd.xlane.f32.xlu2 %v5298_v22 }
0x16fe   : > { %v5389_v26 = vpop.trf.xlu2 }
0x1702   : > { %5341 = vxpose.xlu0.b32.start.end [1/1] (short) (narrow) %v5037_v24, 16 }
0x1706   : > { %v5390_v29 = vpop.trf.xlu2 }
0x170f   : > { %5405 = vxpose.xlu2.b32.start.end [1/1] (short) (narrow) %v5043_v25, 16 }
0x173b   : > { %v5325_v39 = vpop.trf.xlu1 }
0x1743   : > { %v5326_v40 = vpop.trf.xlu1 }
0x1744   : > { %v5297_v27 = vpop.xlane.xlu0 %5296 }
0x1745   : > { %8200 = vrcp.f32 %v5297_v27 }
0x174b   : > { %v8201_v14 = vpop.eup %8200 }
0x174c   : > { %v5307_v9 = vmul.f32 %v8201_v14, %v8193_v10  ;;  %v5294_v30 = vpop.xlane.xlu0 %5293 }
0x174d   : > { %8202 = vrcp.f32 %v5294_v30 }
0x174e   : > { %7620 = vmatpush.xpose.msk.msrb.mxu3 %vm1066_vm2, %v5307_v9 }
0x1751   : > { %v5291_v32 = vpop.xlane.xlu2 %5290  ;;  %7621 = vmatmul.msk.f32.vlgmr.msrb.gmra.mxu3 %vm1066_vm2, %v5389_v26 }
0x1752   : > { %8204 = vrcp.f32 %v5291_v32 }
0x1753   : > { %v8203_v33 = vpop.eup %8202 }
0x1754   : > { %v5306_v34 = vmul.f32 %v8203_v33, %v8195_v16 }
0x1756   : > { %7617 = vmatpush.xpose.msk.msra.mxu2 %vm1066_vm2, %v5306_v34 }
0x1758   : > { %v8205_v35 = vpop.eup %8204 }
0x1759   : > { %v5305_v36 = vmul.f32 %v8205_v35, %v8197_v18  ;;  %v5300_v37 = vpop.xlane.xlu2 %5299  ;;  %7622 = vmatmul.msk.f32.gmra.mxu3 %vm1066_vm2, %v5390_v29 }
0x175a   : > { %8206 = vrcp.f32 %v5300_v37 }
0x175b   : > { %7614 = vmatpush.xpose.msk.msra.mxu1 %vm1066_vm2, %v5305_v36 }
0x175e   : > { %7615 = vmatmul.msk.f32.vlgmr.msra.gmra.mxu1 %vm1066_vm2, %v5325_v39 }
0x1760   : > { %v8207_v38 = vpop.eup %8206 }
0x1761   : > { %v5308_v43 = vmul.f32 %v8207_v38, %v8199_v21 }
0x1763   : > { %7623 = vmatpush.xpose.msk.msra.mxu0 %vm1066_vm2, %v5308_v43 }
0x1766   : > { %7616 = vmatmul.msk.f32.gmra.mxu1 %vm1066_vm2, %v5326_v40 }
0x17a6   : > { %v5357_v41 = vpop.trf.xlu0 }
0x17a7   : > { %7618 = vmatmul.msk.f32.vlgmr.msra.gmra.mxu2 %vm1066_vm2, %v5357_v41 }
0x17a8   : > { %v5421_v28 = vpop.trf.xlu2 }
0x17a9   : > { %7624 = vmatmul.msk.f32.vlgmr.msra.gmra.mxu0 %vm1066_vm2, %v5421_v28 }
0x17ae   : > { %v5358_v42 = vpop.trf.xlu0 }
0x17af   : > { %7619 = vmatmul.msk.f32.gmra.mxu2 %vm1066_vm2, %v5358_v42 }
0x17b0   : > { %v5422_v44 = vpop.trf.xlu2 }
0x17b1   : > { %7625 = vmatmul.msk.f32.gmra.mxu0 %vm1066_vm2, %v5422_v44 }
0x17d4   : > { %v5527_v45 = vpop.f32.mrf.mxu3 }
0x17d5   : > { %5629 = vxpose.xlu0.b32.start [1/2] (short) (narrow) %v5527_v45, 8 }
0x17db   : > { %v5463_v47 = vpop.f32.mrf.mxu1 }
0x17dc   : > { %v5530_v46 = vpop.f32.mrf.mxu3  ;;  %5565 = vxpose.xlu2.b32.start [1/2] (short) (narrow) %v5463_v47, 8 }
0x17dd   : > { %5630 = vxpose.xlu0.b32.end [2/2] (short) (narrow) %v5530_v46, 8 }
0x17e3   : > { %v5466_v48 = vpop.f32.mrf.mxu1 }
0x17e4   : > { %5566 = vxpose.xlu2.b32.end [2/2] (short) (narrow) %v5466_v48, 8 }
0x1826   : > { %v5559_v49 = vpop.f32.mrf.mxu0 }
0x1827   : > { %5661 = vxpose.xlu1.b32.start [1/2] (short) (narrow) %v5559_v49, 8 }
0x182a   : > { %v5495_v50 = vpop.f32.mrf.mxu2 }
0x182b   : > { %5597 = vxpose.xlu0.b32.start [1/2] (short) (narrow) %v5495_v50, 8 }
0x182e   : > { %v5562_v55 = vpop.f32.mrf.mxu0 }
0x182f   : > { %5662 = vxpose.xlu1.b32.end [2/2] (short) (narrow) %v5562_v55, 8 }
0x1832   : > { %v5498_v51 = vpop.f32.mrf.mxu2 }
0x1833   : > { %5598 = vxpose.xlu0.b32.end [2/2] (short) (narrow) %v5498_v51, 8 }
0x1875   : > { %v5581_v53 = vpop.trf.xlu2 }
0x1876   : > { %v5695_v57 = vrot.slane %v5581_v53, 4 }
0x1879   : > { %v5645_v52 = vpop.trf.xlu0 }
0x187a   : > { %v5693_v54 = vrot.slane %v5645_v52, 4  ;;  %v5696_v61 = vsel %vm1496_vm3, %v5645_v52, %v5695_v57 }
0x187b   : > { %v5704_v0 = vperm.slane %v5696_v61, %v8498_v23  ;;  %v7631_v61 = vld [vmem:[%s12732_s10 + $0xa8] sm:$0xff] }
0x187c   : > { %v5694_v58 = vsel %vm1496_vm3, %v5693_v54, %v5581_v53 }
0x187d   : > { %v5700_v63 = vperm.slane %v5694_v58, %v8498_v23  ;;  %v5731_v7 = vrot.slane %v5704_v0, 4 }
0x187f   : > { %v5719_v4 = vrot.slane %v5700_v63, 4 }
0x189a   : > { %8119 = vset.pattern.permute.xlu0 %v8223_v5 }
0x18cb   : > { %v5677_v60 = vpop.trf.xlu1 }
0x18cc   : > { %v5705_v62 = vrot.slane %v5677_v60, 4 }
0x18cf   : > { %v5613_v1 = vpop.trf.xlu0 }
0x18d0   : > { %v5706_v2 = vsel %vm1496_vm3, %v5705_v62, %v5613_v1  ;;  %v5707_v3 = vrot.slane %v5613_v1, 4  ;;  %v7630_v62 = vld [vmem:[%s12732_s10 + $0xa0] sm:$0xff]  ;;  %v7627_v1 = vld [vmem:[%s12732_s10 + $0x88] sm:$0xff] }
0x18d1   : > { %v5712_v5 = vperm.slane %v5706_v2, %v8498_v23  ;;  %v7626_v2 = vld [vmem:[%s12732_s10 + $0x80] sm:$0xff] }
0x18d2   : > { %v5708_v6 = vsel %vm1496_vm3, %v5677_v60, %v5707_v3  ;;  %v7633_v60 = vld [vmem:[%s12732_s10 + $0xb8] sm:$0xff] }
0x18d3   : > { %v5716_v8 = vperm.slane %v5708_v6, %v8498_v23  ;;  %v5717_v10 = vrot.slane %v5712_v5, 4  ;;  %v5720_v11 = vsel %vm1496_vm3, %v5712_v5, %v5719_v4  ;;  %5843 = vmatpush.msrb.mxu1 %v7633_v60  ;;  %v7741_v60 = vld [vmem:[%s12736_s14 + $0xb38] sm:$0xff] }
0x18d4   : > { %v5728_v12 = vperm.slane %v5720_v11, %v8503_v31 }
0x18d5   : > { %v5718_v13 = vsel %vm1496_vm3, %v5717_v10, %v5700_v63  ;;  %v5729_v15 = vrot.slane %v5716_v8, 4  ;;  %v5732_v16 = vsel %vm1496_vm3, %v5716_v8, %v5731_v7  ;;  %v7629_v63 = vld [vmem:[%s12732_s10 + $0x98] sm:$0xff]  ;;  %v8142_v10 = vld [vmem:[%s12733_s11 + $0x2] ss:$0 sm:$0xff] }
0x18d6   : > { %v5724_v59 = vperm.slane %v5718_v13, %v8503_v31  ;;  %v5740_v17 = vperm.slane %v5732_v16, %v8503_v31  ;;  %v5743_v18 = vrot.slane %v5728_v12, 4  ;;  %v7750_v16 = vld [vmem:[%s12736_s14 + $0xb80] sm:$0xff] }
0x18d7   : > { %v5730_v20 = vsel %vm1496_vm3, %v5729_v15, %v5704_v0  ;;  %v7628_v0 = vld [vmem:[%s12732_s10 + $0x90] sm:$0xff]  ;;  %6067 = vmatpush.msrb.mxu2 %v7750_v16 }
0x18d8   : > { %v5736_v21 = vperm.slane %v5730_v20, %v8503_v31  ;;  %v5741_v22 = vrot.slane %v5724_v59, 4  ;;  %v5744_v24 = vsel %vm1496_vm3, 0.0, %v5743_v18  ;;  %v5747_v25 = vrot.slane %v5740_v17, 4  ;;  %v7752_v17 = vld [vmem:[%s12736_s14 + $0xb90] sm:$0xff] }
0x18d9   : > { %v5749_v26 = vsel %vm1496_vm3, %v5743_v18, %v5724_v59  ;;  %v5754_v27 = vrot.slane %v5744_v24, 4  ;;  %v7751_v59 = vld [vmem:[%s12736_s14 + $0xb88] sm:$0xff]  ;;  %6107 = vmatpush.msrb.mxu0 %v7752_v17  ;;  %v7660_v16 = vld [vmem:[%s12736_s14 + $0x8b0] sm:$0xff]  ;;  %v7642_v17 = vld [vmem:[%s12736_s14 + $0x820] sm:$0xff] }
0x18da   : > { %v5742_v29 = vsel %vm1496_vm3, 0.0, %v5741_v22  ;;  %v5745_v14 = vrot.slane %v5736_v21, 4  ;;  %v5748_v9 = vsel %vm1496_vm3, 0.0, %v5747_v25  ;;  %v5753_v30 = vperm.slane %v5749_v26, %v8498_v23  ;;  %6087 = vmatpush.msra.mxu3 %v7751_v59  ;;  %v7735_v26 = vld [vmem:[%s12736_s14 + $0xb08] sm:$0xff]  ;;  %v7661_v59 = vld [vmem:[%s12736_s14 + $0x8b8] sm:$0xff] }
0x18db   : > { %v5765_v32 = vrot.slane %v5748_v9, 4  ;;  %v5755_v33 = vsel %vm1496_vm3, %v5754_v27, %v5742_v29  ;;  %v5760_v34 = vsel %vm1496_vm3, %v5747_v25, %v5736_v21  ;;  %v7734_v25 = vld [vmem:[%s12736_s14 + $0xb00] sm:$0xff]  ;;  %v7736_v27 = vld [vmem:[%s12736_s14 + $0xb10] sm:$0xff]  ;;  %v7737_v29 = vld [vmem:[%s12736_s14 + $0xb18] sm:$0xff] }
0x18dc   : > { %v5746_v35 = vsel %vm1496_vm3, 0.0, %v5745_v14  ;;  %v5759_v36 = vperm.slane %v5755_v33, %v8498_v23  ;;  %v5764_v37 = vperm.slane %v5760_v34, %v8498_v23  ;;  %v5773_v38 = vrot.slane %v5753_v30, 4  ;;  %6068 = vmatpush.msrb.mxu2 %v7734_v25  ;;  %6088 = vmatpush.msra.mxu3 %v7735_v26  ;;  %v7718_v14 = vld [vmem:[%s12736_s14 + $0xa80] sm:$0xff]  ;;  %v7719_v9 = vld [vmem:[%s12736_s14 + $0xa88] sm:$0xff] }
0x18dd   : > { %v5766_v43 = vsel %vm1496_vm3, %v5765_v32, %v5746_v35  ;;  %6108 = vmatpush.msrb.mxu0 %v7736_v27  ;;  %v7721_v32 = vld [vmem:[%s12736_s14 + $0xa98] sm:$0xff]  ;;  %v7702_v33 = vld [vmem:[%s12736_s14 + $0xa00] sm:$0xff]  ;;  %v7703_v34 = vld [vmem:[%s12736_s14 + $0xa08] sm:$0xff] }
0x18de   : > { %v5770_v39 = vperm.slane %v5766_v43, %v8498_v23  ;;  %v5774_v40 = vsel %vm1496_vm3, %v5759_v36, %v5773_v38  ;;  %v5785_v41 = vrot.slane %v5764_v37, 4  ;;  %v5771_v28 = vrot.slane %v5759_v36, 4  ;;  %6069 = vmatpush.msrb.mxu2 %v7718_v14  ;;  %6089 = vmatpush.msra.mxu3 %v7719_v9  ;;  %v7704_v35 = vld [vmem:[%s12736_s14 + $0xa10] sm:$0xff]  ;;  %v7705_v36 = vld [vmem:[%s12736_s14 + $0xa18] sm:$0xff]  ;;  %v7687_v38 = vld [vmem:[%s12736_s14 + $0x988] sm:$0xff] }
0x18df   : > { %v5782_v42 = vperm.slane %v5774_v40, %v8503_v31  ;;  %v7688_v43 = vld [vmem:[%s12736_s14 + $0x990] sm:$0xff]  ;;  %v7670_v40 = vld [vmem:[%s12736_s14 + $0x900] sm:$0xff] }
0x18e0   : > { %v5786_v44 = vsel %vm1496_vm3, %v5770_v39, %v5785_v41  ;;  %v5772_v45 = vsel %vm1496_vm3, %v5771_v28, %v5753_v30  ;;  %v5783_v46 = vrot.slane %v5770_v39, 4  ;;  %v7720_v30 = vld [vmem:[%s12736_s14 + $0xa90] sm:$0xff]  ;;  %6070 = vmatpush.msrb.mxu2 %v7702_v33  ;;  %6090 = vmatpush.msra.mxu3 %v7703_v34  ;;  %v7689_v39 = vld [vmem:[%s12736_s14 + $0x998] sm:$0xff]  ;;  %v7671_v41 = vld [vmem:[%s12736_s14 + $0x908] sm:$0xff] }
0x18e1   : > { %v5794_v47 = vperm.slane %v5786_v44, %v8503_v31  ;;  %v5801_v48 = vrot.slane %v5782_v42, 4  ;;  %v5778_v49 = vperm.slane %v5772_v45, %v8503_v31  ;;  %6109 = vmatpush.msrb.mxu0 %v7720_v30  ;;  %v7672_v28 = vld [vmem:[%s12736_s14 + $0x910] sm:$0xff]  ;;  %v7654_v44 = vld [vmem:[%s12736_s14 + $0x880] sm:$0xff]  ;;  %v7655_v45 = vld [vmem:[%s12736_s14 + $0x888] sm:$0xff] }
0x18e2   : > { %v5784_v50 = vsel %vm1496_vm3, %v5783_v46, %v5764_v37  ;;  %v7686_v37 = vld [vmem:[%s12736_s14 + $0x980] sm:$0xff]  ;;  %6091 = vmatpush.msra.mxu3 %v7687_v38  ;;  %v7656_v46 = vld [vmem:[%s12736_s14 + $0x890] sm:$0xff] }
0x18e3   : > { %v5802_v23 = vsel %vm1496_vm3, %v5794_v47, %v5801_v48  ;;  %v5799_v55 = vrot.slane %v5794_v47, 4  ;;  %v5790_v51 = vperm.slane %v5784_v50, %v8503_v31  ;;  %v5797_v52 = vrot.slane %v5778_v49, 4  ;;  %v7632_v31 = vld [vmem:[%s12732_s10 + $0xb0] sm:$0xff]  ;;  %6110 = vmatpush.msrb.mxu0 %v7704_v35  ;;  %6071 = vmatpush.msrb.mxu2 %v7686_v37  ;;  %v7657_v47 = vld [vmem:[%s12736_s14 + $0x898] sm:$0xff]  ;;  %v7638_v48 = vld [vmem:[%s12736_s14 + $0x800] sm:$0xff] }
0x18e4   : > { %5812 = vrot.lane.b32.xlu0 %v5802_v23, %s12783_s4  ;;  %5844 = vmatpush.msrb.mxu1 %v7632_v31  ;;  %v7640_v50 = vld [vmem:[%s12736_s14 + $0x810] sm:$0xff]  ;;  %v7641_v23 = vld [vmem:[%s12736_s14 + $0x818] sm:$0xff]  ;;  %v7722_v31 = vld [vmem:[%s12736_s14 + $0xaa0] sm:$0xff] }
0x18e5   : > { %v5800_v53 = vsel %vm1496_vm3, %v5799_v55, %v5782_v42  ;;  %v5795_v54 = vrot.slane %v5790_v51, 4  ;;  %v5798_v57 = vsel %vm1496_vm3, %v5790_v51, %v5797_v52  ;;  %6111 = vmatpush.msrb.mxu0 %v7688_v43  ;;  %6072 = vmatpush.msrb.mxu2 %v7670_v40  ;;  %v7673_v42 = vld [vmem:[%s12736_s14 + $0x918] sm:$0xff]  ;;  %v7754_v55 = vld [vmem:[%s12736_s14 + $0xba0] sm:$0xff]  ;;  %v7755_v51 = vld [vmem:[%s12736_s14 + $0xba8] sm:$0xff] }
0x18e6   : > { %5808 = vrot.lane.b32.xlu1 %v5800_v53, %s12782_s25  ;;  %5804 = vrot.lane.b32.xlu2 %v5798_v57, %s12784_s0  ;;  %v7756_v52 = vld [vmem:[%s12736_s14 + $0xbb0] sm:$0xff]  ;;  %v7757_v53 = vld [vmem:[%s12736_s14 + $0xbb8] sm:$0xff]  ;;  %s12787_s0 = sld [smem:[#allocation12_spill]] }
0x18e7   : > { %v5796_v58 = vsel %vm1496_vm3, %v5795_v54, %v5778_v49  ;;  %5845 = vmatpush.msrb.mxu1 %v7631_v61  ;;  %6092 = vmatpush.msra.mxu3 %v7671_v41  ;;  %v7639_v49 = vld [vmem:[%s12736_s14 + $0x808] sm:$0xff]  ;;  %v7738_v54 = vld [vmem:[%s12736_s14 + $0xb20] sm:$0xff] }
0x18e8   : > { %6112 = vmatpush.msrb.mxu0 %v7672_v28  ;;  %6073 = vmatpush.msrb.mxu2 %v7654_v44  ;;  %v7739_v57 = vld [vmem:[%s12736_s14 + $0xb28] sm:$0xff]  ;;  %v8144_v34 = vld [vmem:[%s12735_s13 + $0x2] ss:$0 sm:$0xff]  ;;  %v7744_v28 = vld [vmem:[%s12736_s14 + $0xb50] sm:$0xff] }
0x18e9   : > { %5846 = vmatpush.msrb.mxu1 %v7630_v62  ;;  %6093 = vmatpush.msra.mxu3 %v7655_v45  ;;  %v7723_v61 = vld [vmem:[%s12736_s14 + $0xaa8] sm:$0xff]  ;;  %v7724_v62 = vld [vmem:[%s12736_s14 + $0xab0] sm:$0xff]  ;;  %v7758_v38 = vld [vmem:[%s12736_s14 + $0xbc0] sm:$0xff] }
0x18ea   : > { %6113 = vmatpush.msrb.mxu0 %v7656_v46  ;;  %6074 = vmatpush.msrb.mxu2 %v7638_v48  ;;  %v7759_v43 = vld [vmem:[%s12736_s14 + $0xbc8] sm:$0xff]  ;;  %v7742_v40 = vld [vmem:[%s12736_s14 + $0xb40] sm:$0xff]  ;;  %v7728_v46 = vld [vmem:[%s12736_s14 + $0xad0] sm:$0xff] }
0x18eb   : > { %5847 = vmatpush.msrb.mxu1 %v7629_v63  ;;  %6094 = vmatpush.msra.mxu3 %v7639_v49  ;;  %v7725_v63 = vld [vmem:[%s12736_s14 + $0xab8] sm:$0xff]  ;;  %v7743_v41 = vld [vmem:[%s12736_s14 + $0xb48] sm:$0xff]  ;;  %v7726_v44 = vld [vmem:[%s12736_s14 + $0xac0] sm:$0xff] }
0x18ec   : > { %6114 = vmatpush.msrb.mxu0 %v7640_v50  ;;  %6147 = vmatpush.msra.mxu2 %v7754_v55  ;;  %v7727_v45 = vld [vmem:[%s12736_s14 + $0xac8] sm:$0xff]  ;;  %v7710_v48 = vld [vmem:[%s12736_s14 + $0xa40] sm:$0xff]  ;;  %v7712_v50 = vld [vmem:[%s12736_s14 + $0xa50] sm:$0xff] }
0x18ed   : > { %5848 = vmatpush.msrb.mxu1 %v7628_v0  ;;  %6167 = vmatpush.msrb.mxu3 %v7755_v51  ;;  %v7706_v0 = vld [vmem:[%s12736_s14 + $0xa20] sm:$0xff]  ;;  %v7711_v49 = vld [vmem:[%s12736_s14 + $0xa48] sm:$0xff] }
0x18ee   : > { %6187 = vmatpush.msra.mxu0 %v7756_v52  ;;  %6148 = vmatpush.msra.mxu2 %v7738_v54  ;;  %v7694_v55 = vld [vmem:[%s12736_s14 + $0x9c0] sm:$0xff]  ;;  %v7695_v51 = vld [vmem:[%s12736_s14 + $0x9c8] sm:$0xff]  ;;  %v7696_v52 = vld [vmem:[%s12736_s14 + $0x9d0] sm:$0xff] }
0x18ef   : > { %5849 = vmatpush.msrb.mxu1 %v7627_v1  ;;  %6168 = vmatpush.msrb.mxu3 %v7739_v57  ;;  %v7707_v1 = vld [vmem:[%s12736_s14 + $0xa28] sm:$0xff]  ;;  %v7678_v54 = vld [vmem:[%s12736_s14 + $0x940] sm:$0xff] }
0x18f0   : > { %6149 = vmatpush.msra.mxu2 %v7722_v31  ;;  %v7679_v57 = vld [vmem:[%s12736_s14 + $0x948] sm:$0xff]  ;;  %v7662_v31 = vld [vmem:[%s12736_s14 + $0x8c0] sm:$0xff] }
0x18f1   : > { %5850 = vmatpush.msrb.mxu1 %v7626_v2  ;;  %6169 = vmatpush.msrb.mxu3 %v7723_v61  ;;  %v7708_v2 = vld [vmem:[%s12736_s14 + $0xa30] sm:$0xff]  ;;  %v7663_v61 = vld [vmem:[%s12736_s14 + $0x8c8] sm:$0xff] }
0x18f2   : > { %6150 = vmatpush.msra.mxu2 %v7706_v0  ;;  %v7646_v0 = vld [vmem:[%s12736_s14 + $0x840] sm:$0xff] }
0x18f3   : > { %6170 = vmatpush.msrb.mxu3 %v7707_v1  ;;  %v7647_v1 = vld [vmem:[%s12736_s14 + $0x848] sm:$0xff] }
0x1940   : > { %v5805_v3 = vpop.permute.xlu2 %5804 }
0x1941   : > { %v5815_v4 = vsel %vm973_vm1, %v5796_v58, %v5805_v3  ;;  %v7740_v58 = vld [vmem:[%s12736_s14 + $0xb30] sm:$0xff]  ;;  %v7709_v3 = vld [vmem:[%s12736_s14 + $0xa38] sm:$0xff] }
0x1942   : > { %6188 = vmatpush.msra.mxu0 %v7740_v58  ;;  %v7680_v58 = vld [vmem:[%s12736_s14 + $0x950] sm:$0xff] }
0x1944   : > { %6189 = vmatpush.msra.mxu0 %v7724_v62  ;;  %v7664_v62 = vld [vmem:[%s12736_s14 + $0x8d0] sm:$0xff] }
0x1946   : > { %6190 = vmatpush.msra.mxu0 %v7708_v2  ;;  %v7648_v2 = vld [vmem:[%s12736_s14 + $0x850] sm:$0xff] }
0x1956   : > { %v5813_v6 = vpop.permute.xlu0 %5812 }
0x1958   : > { %v5809_v5 = vpop.permute.xlu1 %5808 }
0x1959   : > { %v5816_v7 = vsel %vm1619_vm4, %v5815_v4, %v5809_v5  ;;  %v7690_v4 = vld [vmem:[%s12736_s14 + $0x9a0] sm:$0xff]  ;;  %v7691_v5 = vld [vmem:[%s12736_s14 + $0x9a8] sm:$0xff] }
0x195a   : > { %v5817_v8 = vsel %vm1621_vm5, %v5816_v7, %v5813_v6  ;;  %v7692_v6 = vld [vmem:[%s12736_s14 + $0x9b0] sm:$0xff]  ;;  %v7693_v7 = vld [vmem:[%s12736_s14 + $0x9b8] sm:$0xff]  ;;  %6151 = vmatpush.msra.mxu2 %v7690_v4  ;;  %6171 = vmatpush.msrb.mxu3 %v7691_v5  ;;  %v7762_v4 = vld [vmem:[%s12736_s14 + $0xbe0] sm:$0xff] }
0x195b   : > { %7635 = vmatmul.msk.f32.vlgmr.msrb.gmra.mxu1 %vm730_vm0, %v5817_v8  ;;  %v7674_v8 = vld [vmem:[%s12736_s14 + $0x920] sm:$0xff]  ;;  %6191 = vmatpush.msra.mxu0 %v7692_v6  ;;  %v7763_v5 = vld [vmem:[%s12736_s14 + $0xbe8] sm:$0xff]  ;;  %v7764_v6 = vld [vmem:[%s12736_s14 + $0xbf0] sm:$0xff] }
0x195c   : > { %6152 = vmatpush.msra.mxu2 %v7674_v8  ;;  %v7746_v8 = vld [vmem:[%s12736_s14 + $0xb60] sm:$0xff] }
0x19d8   : > { %v5852_v11 = vpop.f32.mrf.mxu1 }
0x19d9   : > { %v5853_v12 = vadd.f32 %v8142_v10, %v5852_v11  ;;  %v7675_v10 = vld [vmem:[%s12736_s14 + $0x928] sm:$0xff]  ;;  %v7676_v11 = vld [vmem:[%s12736_s14 + $0x930] sm:$0xff] }
0x19da   : > { %6172 = vmatpush.msrb.mxu3 %v7675_v10  ;;  %6192 = vmatpush.msra.mxu0 %v7676_v11  ;;  %v7747_v10 = vld [vmem:[%s12736_s14 + $0xb68] sm:$0xff]  ;;  %v7748_v11 = vld [vmem:[%s12736_s14 + $0xb70] sm:$0xff] }
0x19db   : > { %v5855_v13 = vadd.f32 %v5853_v12, %v11345_v19  ;;  %v7753_v19 = vld [vmem:[%s12736_s14 + $0xb98] sm:$0xff] }
0x19dc   : > { %6127 = vmatpush.msra.mxu1 %v7753_v19  ;;  %v7677_v12 = vld [vmem:[%s12736_s14 + $0x938] sm:$0xff]  ;;  %v7643_v19 = vld [vmem:[%s12736_s14 + $0x828] sm:$0xff]  ;;  %6193 = vmatpush.msra.mxu0 %v7660_v16  ;;  %v7732_v16 = vld [vmem:[%s12736_s14 + $0xaf0] sm:$0xff] }
0x19dd   : > { %v5860_v15 = vsel %vm730_vm0, %v5855_v13, 0.0 }
0x19de   : > { %5861 = vadd.xlane.f32.xlu1 %v5860_v15  ;;  %6128 = vmatpush.msra.mxu1 %v7737_v29  ;;  %v7659_v15 = vld [vmem:[%s12736_s14 + $0x8a8] sm:$0xff] }
0x19df   : > { %6173 = vmatpush.msrb.mxu3 %v7659_v15  ;;  %v7731_v15 = vld [vmem:[%s12736_s14 + $0xae8] sm:$0xff] }
0x19e0   : > { %6129 = vmatpush.msra.mxu1 %v7721_v32  ;;  %v8143_v32 = vld [vmem:[%s12734_s12 + $0x2] ss:$0 sm:$0xff] }
0x19e1   : > { %6174 = vmatpush.msrb.mxu3 %v7643_v19  ;;  %v7715_v19 = vld [vmem:[%s12736_s14 + $0xa68] sm:$0xff] }
0x19e2   : > { %6130 = vmatpush.msra.mxu1 %v7705_v36 }
0x19e4   : > { %6131 = vmatpush.msra.mxu1 %v7689_v39  ;;  %v7761_v39 = vld [vmem:[%s12736_s14 + $0xbd8] sm:$0xff] }
0x19e6   : > { %6132 = vmatpush.msra.mxu1 %v7673_v42  ;;  %v7745_v42 = vld [vmem:[%s12736_s14 + $0xb58] sm:$0xff] }
0x19e8   : > { %6133 = vmatpush.msra.mxu1 %v7657_v47  ;;  %v7729_v47 = vld [vmem:[%s12736_s14 + $0xad8] sm:$0xff] }
0x19ea   : > { %6134 = vmatpush.msra.mxu1 %v7641_v23  ;;  %v7713_v23 = vld [vmem:[%s12736_s14 + $0xa58] sm:$0xff] }
0x19ec   : > { %6207 = vmatpush.msrb.mxu1 %v7757_v53  ;;  %v7697_v53 = vld [vmem:[%s12736_s14 + $0x9d8] sm:$0xff] }
0x19ee   : > { %6208 = vmatpush.msrb.mxu1 %v7741_v60  ;;  %v7681_v60 = vld [vmem:[%s12736_s14 + $0x958] sm:$0xff] }
0x19f0   : > { %6209 = vmatpush.msrb.mxu1 %v7725_v63  ;;  %v7665_v63 = vld [vmem:[%s12736_s14 + $0x8d8] sm:$0xff] }
0x19f2   : > { %6210 = vmatpush.msrb.mxu1 %v7709_v3  ;;  %v7649_v3 = vld [vmem:[%s12736_s14 + $0x858] sm:$0xff] }
0x19f4   : > { %6211 = vmatpush.msrb.mxu1 %v7693_v7  ;;  %v7765_v7 = vld [vmem:[%s12736_s14 + $0xbf8] sm:$0xff] }
0x19f6   : > { %6212 = vmatpush.msrb.mxu1 %v7677_v12  ;;  %v7749_v12 = vld [vmem:[%s12736_s14 + $0xb78] sm:$0xff] }
0x19f8   : > { %6213 = vmatpush.msrb.mxu1 %v7661_v59  ;;  %v7733_v59 = vld [vmem:[%s12736_s14 + $0xaf8] sm:$0xff] }
0x1a51   : > { %v5862_v18 = vpop.xlane.xlu1 %5861 }
0x1a52   : > { %v5863_v20 = vmul.f32 %v5862_v18, %v8589_v56  ;;  %v7644_v18 = vld [vmem:[%s12736_s14 + $0x830] sm:$0xff] }
0x1a53   : > { %6194 = vmatpush.msra.mxu0 %v7644_v18  ;;  %v7716_v18 = vld [vmem:[%s12736_s14 + $0xa70] sm:$0xff] }
0x1a54   : > { %v11485_v21 = vsub.f32 %v5855_v13, %v5863_v20  ;;  %v7658_v13 = vld [vmem:[%s12736_s14 + $0x8a0] sm:$0xff]  ;;  %v7645_v20 = vld [vmem:[%s12736_s14 + $0x838] sm:$0xff] }
0x1a55   : > { %6153 = vmatpush.msra.mxu2 %v7658_v13  ;;  %6214 = vmatpush.msrb.mxu1 %v7645_v20  ;;  %v7730_v13 = vld [vmem:[%s12736_s14 + $0xae0] sm:$0xff]  ;;  %v7717_v20 = vld [vmem:[%s12736_s14 + $0xa78] sm:$0xff] }
0x1a56   : > { %v5865_v22 = vmul.f32 %v11485_v21, %v11485_v21 }
0x1a57   : > { %6154 = vmatpush.msra.mxu2 %v7642_v17  ;;  %v7714_v17 = vld [vmem:[%s12736_s14 + $0xa60] sm:$0xff] }
0x1a58   : > { %v5866_v24 = vsel %vm730_vm0, %v5865_v22, 0.0 }
0x1a59   : > { %5867 = vadd.xlane.f32.xlu2 %v5866_v24 }
0x1acc   : > { %v5868_v22 = vpop.xlane.xlu2 %5867 }
0x1acd   : > { %v5869_v24 = vmul.f32 %v5868_v22, %v8589_v56  ;;  %v7698_v22 = vld [vmem:[%s12736_s14 + $0x9e0] sm:$0xff] }
0x1acf   : > { %v5870_v25 = vadd.f32 1e-05, %v5869_v24  ;;  %v7699_v24 = vld [vmem:[%s12736_s14 + $0x9e8] sm:$0xff] }
0x1ad1   : > { %8208 = vrsqrt.f32 %v5870_v25  ;;  %vm5877_vm2 = vweird.f32 %v5870_v25 }
0x1ad7   : > { %v8209_v26 = vpop.eup %8208 }
0x1ad8   : > { %v5872_v27 = vmul.f32 %v8209_v26, %v5870_v25  ;;  %vm5878_vm1 = vweird.f32 %v8209_v26  ;;  %v7700_v25 = vld [vmem:[%s12736_s14 + $0x9f0] sm:$0xff] }
0x1ad9   : > { %vm5879_vm3 = vmor %vm5877_vm2, %vm5878_vm1 }
0x1ada   : > { %v5873_v29 = vmul.f32 %v8209_v26, %v5872_v27  ;;  %v7682_v27 = vld [vmem:[%s12736_s14 + $0x960] sm:$0xff] }
0x1adc   : > { %v5874_v14 = vmul.f32 0.5, %v5873_v29  ;;  %v7683_v29 = vld [vmem:[%s12736_s14 + $0x968] sm:$0xff] }
0x1ade   : > { %v5875_v9 = vsub.f32 1.5, %v5874_v14  ;;  %v7684_v14 = vld [vmem:[%s12736_s14 + $0x970] sm:$0xff] }
0x1ae0   : > { %v5876_v30 = vmul.f32 %v8209_v26, %v5875_v9  ;;  %v7685_v9 = vld [vmem:[%s12736_s14 + $0x978] sm:$0xff] }
0x1ae2   : > { %v5880_v33 = vsel %vm5879_vm3, %v8209_v26, %v5876_v30  ;;  %v7701_v26 = vld [vmem:[%s12736_s14 + $0x9f8] sm:$0xff]  ;;  %v7666_v30 = vld [vmem:[%s12736_s14 + $0x8e0] sm:$0xff] }
0x1ae3   : > { %v5881_v35 = vmul.f32 %v5880_v33, %v11485_v21  ;;  %v7760_v21 = vld [vmem:[%s12736_s14 + $0xbd0] sm:$0xff] }
0x1ae4   : > { %v7668_v33 = vld [vmem:[%s12736_s14 + $0x8f0] sm:$0xff] }
0x1ae5   : > { %v5885_v36 = vmul.f32 %v8143_v32, %v5881_v35  ;;  %v7667_v32 = vld [vmem:[%s12736_s14 + $0x8e8] sm:$0xff]  ;;  %v7650_v35 = vld [vmem:[%s12736_s14 + $0x860] sm:$0xff] }
0x1ae7   : > { %v11678_v37 = vadd.f32 %v8144_v34, %v5885_v36  ;;  %v7669_v34 = vld [vmem:[%s12736_s14 + $0x8f8] sm:$0xff]  ;;  %v7651_v36 = vld [vmem:[%s12736_s14 + $0x868] sm:$0xff] }
0x1ae9   : > { %7768 = vmatmul.msk.f32.vlgmr.msrb.gmra.mxu2 %vm730_vm0, %v11678_v37  ;;  %7769 = vmatmul.msk.f32.vlgmr.msra.gmra.mxu3 %vm730_vm0, %v11678_v37 }
0x1aea   : > { %7770 = vmatmul.msk.f32.vlgmr.msrb.gmra.mxu0 %vm730_vm0, %v11678_v37  ;;  %7771 = vmatmul.msk.f32.vlgmr.msra.gmra.mxu1 %vm730_vm0, %v11678_v37 }
0x1aeb   : > { %6227 = vmatpush.msrb.mxu2 %v7758_v38  ;;  %6247 = vmatpush.msra.mxu3 %v7759_v43  ;;  %v7652_v38 = vld [vmem:[%s12736_s14 + $0x870] sm:$0xff]  ;;  %v7653_v43 = vld [vmem:[%s12736_s14 + $0x878] sm:$0xff] }
0x1aec   : > { %6267 = vmatpush.msrb.mxu0 %v7760_v21  ;;  %6287 = vmatpush.msra.mxu1 %v7761_v39  ;;  %v7831_v21 = vld [vmem:[%s12738_s16 + $0x1178] sm:$0xff] }
0x1aed   : > { %6228 = vmatpush.msrb.mxu2 %v7742_v40  ;;  %6248 = vmatpush.msra.mxu3 %v7743_v41  ;;  %v7847_v39 = vld [vmem:[%s12738_s16 + $0x11f8] sm:$0xff] }
0x1aee   : > { %6268 = vmatpush.msrb.mxu0 %v7744_v28  ;;  %6288 = vmatpush.msra.mxu1 %v7745_v42  ;;  %v7799_v40 = vld [vmem:[%s12738_s16 + $0x1078] sm:$0xff]  ;;  %v7830_v28 = vld [vmem:[%s12738_s16 + $0x1170] sm:$0xff] }
0x1aef   : > { %6229 = vmatpush.msrb.mxu2 %v7726_v44  ;;  %6249 = vmatpush.msra.mxu3 %v7727_v45  ;;  %v7815_v41 = vld [vmem:[%s12738_s16 + $0x10f8] sm:$0xff]  ;;  %v7846_v42 = vld [vmem:[%s12738_s16 + $0x11f0] sm:$0xff] }
0x1af0   : > { %6269 = vmatpush.msrb.mxu0 %v7728_v46  ;;  %6289 = vmatpush.msra.mxu1 %v7729_v47  ;;  %v7798_v44 = vld [vmem:[%s12738_s16 + $0x1070] sm:$0xff]  ;;  %v7829_v46 = vld [vmem:[%s12738_s16 + $0x1168] sm:$0xff] }
0x1af1   : > { %6230 = vmatpush.msrb.mxu2 %v7710_v48  ;;  %6250 = vmatpush.msra.mxu3 %v7711_v49  ;;  %v7814_v45 = vld [vmem:[%s12738_s16 + $0x10f0] sm:$0xff]  ;;  %v7845_v47 = vld [vmem:[%s12738_s16 + $0x11e8] sm:$0xff] }
0x1af2   : > { %6270 = vmatpush.msrb.mxu0 %v7712_v50  ;;  %6290 = vmatpush.msra.mxu1 %v7713_v23  ;;  %v7797_v48 = vld [vmem:[%s12738_s16 + $0x1068] sm:$0xff]  ;;  %v7828_v50 = vld [vmem:[%s12738_s16 + $0x1160] sm:$0xff] }
0x1af3   : > { %7772 = vmatmul.msk.f32.vlgmr.msra.gmra.mxu2 %vm730_vm0, %v11678_v37  ;;  %7773 = vmatmul.msk.f32.vlgmr.msrb.gmra.mxu3 %vm730_vm0, %v11678_v37  ;;  %v7813_v49 = vld [vmem:[%s12738_s16 + $0x10e8] sm:$0xff]  ;;  %v7844_v23 = vld [vmem:[%s12738_s16 + $0x11e0] sm:$0xff] }
0x1af4   : > { %7774 = vmatmul.msk.f32.vlgmr.msra.gmra.mxu0 %vm730_vm0, %v11678_v37  ;;  %7775 = vmatmul.msk.f32.vlgmr.msrb.gmra.mxu1 %vm730_vm0, %v11678_v37 }
0x1af5   : > { %6231 = vmatpush.msrb.mxu2 %v7694_v55  ;;  %6251 = vmatpush.msra.mxu3 %v7695_v51  ;;  %v7796_v55 = vld [vmem:[%s12738_s16 + $0x1060] sm:$0xff] }
0x1af6   : > { %6271 = vmatpush.msrb.mxu0 %v7696_v52  ;;  %6291 = vmatpush.msra.mxu1 %v7697_v53  ;;  %v7812_v51 = vld [vmem:[%s12738_s16 + $0x10e0] sm:$0xff]  ;;  %v7827_v52 = vld [vmem:[%s12738_s16 + $0x1158] sm:$0xff] }
0x1af7   : > { %6232 = vmatpush.msrb.mxu2 %v7678_v54  ;;  %6252 = vmatpush.msra.mxu3 %v7679_v57  ;;  %v7843_v53 = vld [vmem:[%s12738_s16 + $0x11d8] sm:$0xff] }
0x1af8   : > { %6272 = vmatpush.msrb.mxu0 %v7680_v58  ;;  %6292 = vmatpush.msra.mxu1 %v7681_v60  ;;  %v7795_v54 = vld [vmem:[%s12738_s16 + $0x1058] sm:$0xff]  ;;  %v7826_v58 = vld [vmem:[%s12738_s16 + $0x1150] sm:$0xff] }
0x1af9   : > { %6233 = vmatpush.msrb.mxu2 %v7662_v31  ;;  %6253 = vmatpush.msra.mxu3 %v7663_v61  ;;  %v7811_v57 = vld [vmem:[%s12738_s16 + $0x10d8] sm:$0xff]  ;;  %v7842_v60 = vld [vmem:[%s12738_s16 + $0x11d0] sm:$0xff] }
0x1afa   : > { %6273 = vmatpush.msrb.mxu0 %v7664_v62  ;;  %6293 = vmatpush.msra.mxu1 %v7665_v63  ;;  %v7794_v31 = vld [vmem:[%s12738_s16 + $0x1050] sm:$0xff]  ;;  %v7825_v62 = vld [vmem:[%s12738_s16 + $0x1148] sm:$0xff] }
0x1afb   : > { %6234 = vmatpush.msrb.mxu2 %v7646_v0  ;;  %6254 = vmatpush.msra.mxu3 %v7647_v1  ;;  %v7810_v61 = vld [vmem:[%s12738_s16 + $0x10d0] sm:$0xff]  ;;  %v7841_v63 = vld [vmem:[%s12738_s16 + $0x11c8] sm:$0xff] }
0x1afc   : > { %6274 = vmatpush.msrb.mxu0 %v7648_v2  ;;  %6294 = vmatpush.msra.mxu1 %v7649_v3  ;;  %v7793_v0 = vld [vmem:[%s12738_s16 + $0x1048] sm:$0xff]  ;;  %v7824_v2 = vld [vmem:[%s12738_s16 + $0x1140] sm:$0xff] }
0x1afd   : > { %6307 = vmatpush.msra.mxu2 %v7762_v4  ;;  %6327 = vmatpush.msrb.mxu3 %v7763_v5  ;;  %v7809_v1 = vld [vmem:[%s12738_s16 + $0x10c8] sm:$0xff]  ;;  %v7840_v3 = vld [vmem:[%s12738_s16 + $0x11c0] sm:$0xff] }
0x1afe   : > { %6347 = vmatpush.msra.mxu0 %v7764_v6  ;;  %6367 = vmatpush.msrb.mxu1 %v7765_v7  ;;  %v7792_v4 = vld [vmem:[%s12738_s16 + $0x1040] sm:$0xff]  ;;  %v7823_v6 = vld [vmem:[%s12738_s16 + $0x1138] sm:$0xff] }
0x1aff   : > { %7776 = vmatmul.msk.f32.vlgmr.msrb.gmra.mxu2 %vm730_vm0, %v11678_v37  ;;  %7777 = vmatmul.msk.f32.vlgmr.msra.gmra.mxu3 %vm730_vm0, %v11678_v37  ;;  %v7808_v5 = vld [vmem:[%s12738_s16 + $0x10c0] sm:$0xff]  ;;  %v7839_v7 = vld [vmem:[%s12738_s16 + $0x11b8] sm:$0xff] }
0x1b00   : > { %7778 = vmatmul.msk.f32.vlgmr.msrb.gmra.mxu0 %vm730_vm0, %v11678_v37  ;;  %7779 = vmatmul.msk.f32.vlgmr.msra.gmra.mxu1 %vm730_vm0, %v11678_v37 }
0x1b01   : > { %6308 = vmatpush.msra.mxu2 %v7746_v8  ;;  %6328 = vmatpush.msrb.mxu3 %v7747_v10  ;;  %v7791_v8 = vld [vmem:[%s12738_s16 + $0x1038] sm:$0xff] }
0x1b02   : > { %6348 = vmatpush.msra.mxu0 %v7748_v11  ;;  %6368 = vmatpush.msrb.mxu1 %v7749_v12  ;;  %v7807_v10 = vld [vmem:[%s12738_s16 + $0x10b8] sm:$0xff]  ;;  %v7822_v11 = vld [vmem:[%s12738_s16 + $0x1130] sm:$0xff] }
0x1b03   : > { %6309 = vmatpush.msra.mxu2 %v7730_v13  ;;  %6329 = vmatpush.msrb.mxu3 %v7731_v15  ;;  %v7838_v12 = vld [vmem:[%s12738_s16 + $0x11b0] sm:$0xff] }
0x1b04   : > { %6349 = vmatpush.msra.mxu0 %v7732_v16  ;;  %6369 = vmatpush.msrb.mxu1 %v7733_v59  ;;  %v7790_v13 = vld [vmem:[%s12738_s16 + $0x1030] sm:$0xff]  ;;  %v7821_v16 = vld [vmem:[%s12738_s16 + $0x1128] sm:$0xff] }
0x1b05   : > { %6310 = vmatpush.msra.mxu2 %v7714_v17  ;;  %6330 = vmatpush.msrb.mxu3 %v7715_v19  ;;  %v7806_v15 = vld [vmem:[%s12738_s16 + $0x10b0] sm:$0xff]  ;;  %v7837_v59 = vld [vmem:[%s12738_s16 + $0x11a8] sm:$0xff] }
0x1b06   : > { %6350 = vmatpush.msra.mxu0 %v7716_v18  ;;  %6370 = vmatpush.msrb.mxu1 %v7717_v20  ;;  %v7789_v17 = vld [vmem:[%s12738_s16 + $0x1028] sm:$0xff]  ;;  %v7820_v18 = vld [vmem:[%s12738_s16 + $0x1120] sm:$0xff] }
0x1b07   : > { %6311 = vmatpush.msra.mxu2 %v7698_v22  ;;  %6331 = vmatpush.msrb.mxu3 %v7699_v24  ;;  %v7805_v19 = vld [vmem:[%s12738_s16 + $0x10a8] sm:$0xff]  ;;  %v7836_v20 = vld [vmem:[%s12738_s16 + $0x11a0] sm:$0xff] }
0x1b08   : > { %6351 = vmatpush.msra.mxu0 %v7700_v25  ;;  %6371 = vmatpush.msrb.mxu1 %v7701_v26  ;;  %v7788_v22 = vld [vmem:[%s12738_s16 + $0x1020] sm:$0xff]  ;;  %v7819_v25 = vld [vmem:[%s12738_s16 + $0x1118] sm:$0xff] }
0x1b09   : > { %6312 = vmatpush.msra.mxu2 %v7682_v27  ;;  %6332 = vmatpush.msrb.mxu3 %v7683_v29  ;;  %v7804_v24 = vld [vmem:[%s12738_s16 + $0x10a0] sm:$0xff]  ;;  %v7835_v26 = vld [vmem:[%s12738_s16 + $0x1198] sm:$0xff] }
0x1b0a   : > { %6352 = vmatpush.msra.mxu0 %v7684_v14  ;;  %6372 = vmatpush.msrb.mxu1 %v7685_v9  ;;  %v7787_v27 = vld [vmem:[%s12738_s16 + $0x1018] sm:$0xff]  ;;  %v7818_v14 = vld [vmem:[%s12738_s16 + $0x1110] sm:$0xff] }
0x1b0b   : > { %6313 = vmatpush.msra.mxu2 %v7666_v30  ;;  %6333 = vmatpush.msrb.mxu3 %v7667_v32  ;;  %v7803_v29 = vld [vmem:[%s12738_s16 + $0x1098] sm:$0xff]  ;;  %v7834_v9 = vld [vmem:[%s12738_s16 + $0x1190] sm:$0xff] }
0x1b0c   : > { %6353 = vmatpush.msra.mxu0 %v7668_v33  ;;  %6373 = vmatpush.msrb.mxu1 %v7669_v34  ;;  %v7786_v30 = vld [vmem:[%s12738_s16 + $0x1010] sm:$0xff]  ;;  %v7817_v33 = vld [vmem:[%s12738_s16 + $0x1108] sm:$0xff] }
0x1b0d   : > { %6314 = vmatpush.msra.mxu2 %v7650_v35  ;;  %6334 = vmatpush.msrb.mxu3 %v7651_v36  ;;  %v7802_v32 = vld [vmem:[%s12738_s16 + $0x1090] sm:$0xff]  ;;  %v7833_v34 = vld [vmem:[%s12738_s16 + $0x1188] sm:$0xff] }
0x1b0e   : > { %6354 = vmatpush.msra.mxu0 %v7652_v38  ;;  %6374 = vmatpush.msrb.mxu1 %v7653_v43  ;;  %v7785_v35 = vld [vmem:[%s12738_s16 + $0x1008] sm:$0xff]  ;;  %v7816_v38 = vld [vmem:[%s12738_s16 + $0x1100] sm:$0xff] }
0x1b0f   : > { %7780 = vmatmul.msk.f32.vlgmr.msra.gmra.mxu2 %vm730_vm0, %v11678_v37  ;;  %7781 = vmatmul.msk.f32.vlgmr.msrb.gmra.mxu3 %vm730_vm0, %v11678_v37  ;;  %v7801_v36 = vld [vmem:[%s12738_s16 + $0x1088] sm:$0xff]  ;;  %v7832_v43 = vld [vmem:[%s12738_s16 + $0x1180] sm:$0xff] }
0x1b10   : > { %7782 = vmatmul.msk.f32.vlgmr.msra.gmra.mxu0 %vm730_vm0, %v11678_v37  ;;  %7783 = vmatmul.msk.f32.vlgmr.msrb.gmra.mxu1 %vm730_vm0, %v11678_v37 }
0x1b11   : > { %6697 = vmatpush.msrb.mxu0 %v7831_v21  ;;  %6717 = vmatpush.msra.mxu1 %v7847_v39  ;;  %v7895_v21 = vld [vmem:[%s12738_s16 + $0x1378] sm:$0xff] }
0x1b12   : > { %6657 = vmatpush.msrb.mxu2 %v7799_v40  ;;  %6677 = vmatpush.msra.mxu3 %v7815_v41  ;;  %v7911_v39 = vld [vmem:[%s12738_s16 + $0x13f8] sm:$0xff]  ;;  %v7784_v40 = vld [vmem:[%s12738_s16 + $0x1000] sm:$0xff] }
0x1b13   : > { %6698 = vmatpush.msrb.mxu0 %v7830_v28  ;;  %6718 = vmatpush.msra.mxu1 %v7846_v42  ;;  %v7800_v41 = vld [vmem:[%s12738_s16 + $0x1080] sm:$0xff]  ;;  %v7894_v28 = vld [vmem:[%s12738_s16 + $0x1370] sm:$0xff] }
0x1b14   : > { %6658 = vmatpush.msrb.mxu2 %v7798_v44  ;;  %6678 = vmatpush.msra.mxu3 %v7814_v45  ;;  %v7910_v42 = vld [vmem:[%s12738_s16 + $0x13f0] sm:$0xff]  ;;  %v7863_v44 = vld [vmem:[%s12738_s16 + $0x1278] sm:$0xff] }
0x1b15   : > { %6699 = vmatpush.msrb.mxu0 %v7829_v46  ;;  %6719 = vmatpush.msra.mxu1 %v7845_v47  ;;  %v7879_v45 = vld [vmem:[%s12738_s16 + $0x12f8] sm:$0xff]  ;;  %v7893_v46 = vld [vmem:[%s12738_s16 + $0x1368] sm:$0xff] }
0x1b16   : > { %6659 = vmatpush.msrb.mxu2 %v7797_v48  ;;  %6679 = vmatpush.msra.mxu3 %v7813_v49  ;;  %v7909_v47 = vld [vmem:[%s12738_s16 + $0x13e8] sm:$0xff]  ;;  %v7862_v48 = vld [vmem:[%s12738_s16 + $0x1270] sm:$0xff] }
0x1b17   : > { %6700 = vmatpush.msrb.mxu0 %v7828_v50  ;;  %6720 = vmatpush.msra.mxu1 %v7844_v23  ;;  %v7878_v49 = vld [vmem:[%s12738_s16 + $0x12f0] sm:$0xff]  ;;  %v7892_v50 = vld [vmem:[%s12738_s16 + $0x1360] sm:$0xff] }
0x1b18   : > { %6660 = vmatpush.msrb.mxu2 %v7796_v55  ;;  %6680 = vmatpush.msra.mxu3 %v7812_v51  ;;  %v7908_v23 = vld [vmem:[%s12738_s16 + $0x13e0] sm:$0xff]  ;;  %v7861_v55 = vld [vmem:[%s12738_s16 + $0x1268] sm:$0xff] }
0x1b19   : > { %6701 = vmatpush.msrb.mxu0 %v7827_v52  ;;  %6721 = vmatpush.msra.mxu1 %v7843_v53  ;;  %v7877_v51 = vld [vmem:[%s12738_s16 + $0x12e8] sm:$0xff]  ;;  %v7891_v52 = vld [vmem:[%s12738_s16 + $0x1358] sm:$0xff] }
0x1b1a   : > { %6661 = vmatpush.msrb.mxu2 %v7795_v54  ;;  %6681 = vmatpush.msra.mxu3 %v7811_v57  ;;  %v7907_v53 = vld [vmem:[%s12738_s16 + $0x13d8] sm:$0xff]  ;;  %v7860_v54 = vld [vmem:[%s12738_s16 + $0x1260] sm:$0xff] }
0x1b1b   : > { %6702 = vmatpush.msrb.mxu0 %v7826_v58  ;;  %6722 = vmatpush.msra.mxu1 %v7842_v60  ;;  %v7876_v57 = vld [vmem:[%s12738_s16 + $0x12e0] sm:$0xff]  ;;  %v7890_v58 = vld [vmem:[%s12738_s16 + $0x1350] sm:$0xff] }
0x1b1c   : > { %6662 = vmatpush.msrb.mxu2 %v7794_v31  ;;  %6682 = vmatpush.msra.mxu3 %v7810_v61  ;;  %v7906_v60 = vld [vmem:[%s12738_s16 + $0x13d0] sm:$0xff]  ;;  %v7859_v31 = vld [vmem:[%s12738_s16 + $0x1258] sm:$0xff] }
0x1b1d   : > { %6703 = vmatpush.msrb.mxu0 %v7825_v62  ;;  %6723 = vmatpush.msra.mxu1 %v7841_v63  ;;  %v7875_v61 = vld [vmem:[%s12738_s16 + $0x12d8] sm:$0xff]  ;;  %v7889_v62 = vld [vmem:[%s12738_s16 + $0x1348] sm:$0xff] }
0x1b1e   : > { %6663 = vmatpush.msrb.mxu2 %v7793_v0  ;;  %6683 = vmatpush.msra.mxu3 %v7809_v1  ;;  %v7905_v63 = vld [vmem:[%s12738_s16 + $0x13c8] sm:$0xff]  ;;  %v7858_v0 = vld [vmem:[%s12738_s16 + $0x1250] sm:$0xff] }
0x1b1f   : > { %6704 = vmatpush.msrb.mxu0 %v7824_v2  ;;  %6724 = vmatpush.msra.mxu1 %v7840_v3  ;;  %v7874_v1 = vld [vmem:[%s12738_s16 + $0x12d0] sm:$0xff]  ;;  %v7888_v2 = vld [vmem:[%s12738_s16 + $0x1340] sm:$0xff] }
0x1b20   : > { %6664 = vmatpush.msrb.mxu2 %v7792_v4  ;;  %6684 = vmatpush.msra.mxu3 %v7808_v5  ;;  %v7904_v3 = vld [vmem:[%s12738_s16 + $0x13c0] sm:$0xff]  ;;  %v7857_v4 = vld [vmem:[%s12738_s16 + $0x1248] sm:$0xff] }
0x1b21   : > { %6705 = vmatpush.msrb.mxu0 %v7823_v6  ;;  %6725 = vmatpush.msra.mxu1 %v7839_v7  ;;  %v7873_v5 = vld [vmem:[%s12738_s16 + $0x12c8] sm:$0xff]  ;;  %v7887_v6 = vld [vmem:[%s12738_s16 + $0x1338] sm:$0xff] }
0x1b22   : > { %6665 = vmatpush.msrb.mxu2 %v7791_v8  ;;  %6685 = vmatpush.msra.mxu3 %v7807_v10  ;;  %v7903_v7 = vld [vmem:[%s12738_s16 + $0x13b8] sm:$0xff]  ;;  %v7856_v8 = vld [vmem:[%s12738_s16 + $0x1240] sm:$0xff] }
0x1b23   : > { %6706 = vmatpush.msrb.mxu0 %v7822_v11  ;;  %6726 = vmatpush.msra.mxu1 %v7838_v12  ;;  %v7872_v10 = vld [vmem:[%s12738_s16 + $0x12c0] sm:$0xff]  ;;  %v7886_v11 = vld [vmem:[%s12738_s16 + $0x1330] sm:$0xff] }
0x1b24   : > { %6666 = vmatpush.msrb.mxu2 %v7790_v13  ;;  %6686 = vmatpush.msra.mxu3 %v7806_v15  ;;  %v7902_v12 = vld [vmem:[%s12738_s16 + $0x13b0] sm:$0xff]  ;;  %v7855_v13 = vld [vmem:[%s12738_s16 + $0x1238] sm:$0xff] }
0x1b25   : > { %6707 = vmatpush.msrb.mxu0 %v7821_v16  ;;  %6727 = vmatpush.msra.mxu1 %v7837_v59  ;;  %v7871_v15 = vld [vmem:[%s12738_s16 + $0x12b8] sm:$0xff]  ;;  %v7885_v16 = vld [vmem:[%s12738_s16 + $0x1328] sm:$0xff] }
0x1b26   : > { %6667 = vmatpush.msrb.mxu2 %v7789_v17  ;;  %6687 = vmatpush.msra.mxu3 %v7805_v19  ;;  %v7901_v59 = vld [vmem:[%s12738_s16 + $0x13a8] sm:$0xff]  ;;  %v7854_v17 = vld [vmem:[%s12738_s16 + $0x1230] sm:$0xff] }
0x1b27   : > { %6708 = vmatpush.msrb.mxu0 %v7820_v18  ;;  %6728 = vmatpush.msra.mxu1 %v7836_v20  ;;  %v7870_v19 = vld [vmem:[%s12738_s16 + $0x12b0] sm:$0xff]  ;;  %v7884_v18 = vld [vmem:[%s12738_s16 + $0x1320] sm:$0xff] }
0x1b28   : > { %6668 = vmatpush.msrb.mxu2 %v7788_v22  ;;  %6688 = vmatpush.msra.mxu3 %v7804_v24  ;;  %v7900_v20 = vld [vmem:[%s12738_s16 + $0x13a0] sm:$0xff]  ;;  %v7883_v22 = vld [vmem:[%s12738_s16 + $0x1318] sm:$0xff] }
0x1b29   : > { %6709 = vmatpush.msrb.mxu0 %v7819_v25  ;;  %6729 = vmatpush.msra.mxu1 %v7835_v26  ;;  %v7899_v24 = vld [vmem:[%s12738_s16 + $0x1398] sm:$0xff]  ;;  %v7853_v25 = vld [vmem:[%s12738_s16 + $0x1228] sm:$0xff] }
0x1b2a   : > { %6669 = vmatpush.msrb.mxu2 %v7787_v27  ;;  %6689 = vmatpush.msra.mxu3 %v7803_v29  ;;  %v7869_v26 = vld [vmem:[%s12738_s16 + $0x12a8] sm:$0xff]  ;;  %v7882_v27 = vld [vmem:[%s12738_s16 + $0x1310] sm:$0xff] }
0x1b2b   : > { %6710 = vmatpush.msrb.mxu0 %v7818_v14  ;;  %6730 = vmatpush.msra.mxu1 %v7834_v9  ;;  %v7898_v29 = vld [vmem:[%s12738_s16 + $0x1390] sm:$0xff]  ;;  %v7852_v14 = vld [vmem:[%s12738_s16 + $0x1220] sm:$0xff] }
0x1b2c   : > { %6670 = vmatpush.msrb.mxu2 %v7786_v30  ;;  %6690 = vmatpush.msra.mxu3 %v7802_v32  ;;  %v7868_v9 = vld [vmem:[%s12738_s16 + $0x12a0] sm:$0xff]  ;;  %v7881_v30 = vld [vmem:[%s12738_s16 + $0x1308] sm:$0xff] }
0x1b2d   : > { %6711 = vmatpush.msrb.mxu0 %v7817_v33  ;;  %6731 = vmatpush.msra.mxu1 %v7833_v34  ;;  %v7897_v32 = vld [vmem:[%s12738_s16 + $0x1388] sm:$0xff]  ;;  %v7851_v33 = vld [vmem:[%s12738_s16 + $0x1218] sm:$0xff] }
0x1b2e   : > { %6671 = vmatpush.msrb.mxu2 %v7785_v35  ;;  %6691 = vmatpush.msra.mxu3 %v7801_v36  ;;  %v7867_v34 = vld [vmem:[%s12738_s16 + $0x1298] sm:$0xff]  ;;  %v7880_v35 = vld [vmem:[%s12738_s16 + $0x1300] sm:$0xff] }
0x1b2f   : > { %6712 = vmatpush.msrb.mxu0 %v7816_v38  ;;  %6732 = vmatpush.msra.mxu1 %v7832_v43  ;;  %v7896_v36 = vld [vmem:[%s12738_s16 + $0x1380] sm:$0xff]  ;;  %v7850_v38 = vld [vmem:[%s12738_s16 + $0x1210] sm:$0xff] }
0x1b30   : > { %6672 = vmatpush.msrb.mxu2 %v7784_v40  ;;  %6692 = vmatpush.msra.mxu3 %v7800_v41  ;;  %v7866_v43 = vld [vmem:[%s12738_s16 + $0x1290] sm:$0xff]  ;;  %v7848_v40 = vld [vmem:[%s12738_s16 + $0x1200] sm:$0xff] }
0x1b31   : > { %6777 = vmatpush.msra.mxu0 %v7895_v21  ;;  %6797 = vmatpush.msrb.mxu1 %v7911_v39  ;;  %v7849_v21 = vld [vmem:[%s12738_s16 + $0x1208] sm:$0xff]  ;;  %v7864_v41 = vld [vmem:[%s12738_s16 + $0x1280] sm:$0xff] }
0x1b32   : > { %6737 = vmatpush.msra.mxu2 %v7863_v44  ;;  %6757 = vmatpush.msrb.mxu3 %v7879_v45  ;;  %v7865_v39 = vld [vmem:[%s12738_s16 + $0x1288] sm:$0xff] }
0x1b33   : > { %6778 = vmatpush.msra.mxu0 %v7894_v28  ;;  %6798 = vmatpush.msrb.mxu1 %v7910_v42  ;;  %v12291_v28 = vld [vmem:[%s12737_s15 + $0x20] sm:$0xff] }
0x1b34   : > { %6738 = vmatpush.msra.mxu2 %v7862_v48  ;;  %6758 = vmatpush.msrb.mxu3 %v7878_v49  ;;  %v6026_v42 = vperm.slane %v12291_v28, 2  ;;  %v6027_v44 = vperm.slane %v12291_v28, 3  ;;  %v6024_v49 = vperm.slane %v12291_v28, 0 }
0x1b35   : > { %6779 = vmatpush.msra.mxu0 %v7893_v46  ;;  %6799 = vmatpush.msrb.mxu1 %v7909_v47 }
0x1b36   : > { %6739 = vmatpush.msra.mxu2 %v7861_v55  ;;  %6759 = vmatpush.msrb.mxu3 %v7877_v51  ;;  %v7959_v51 = vld [vmem:[%s12738_s16 + $0x1578] sm:$0xff] }
0x1b37   : > { %6780 = vmatpush.msra.mxu0 %v7892_v50  ;;  %6800 = vmatpush.msrb.mxu1 %v7908_v23  ;;  %v6025_v50 = vperm.slane %v12291_v28, 1 }
0x1b38   : > { %6740 = vmatpush.msra.mxu2 %v7860_v54  ;;  %6760 = vmatpush.msrb.mxu3 %v7876_v57  ;;  %v7958_v57 = vld [vmem:[%s12738_s16 + $0x1570] sm:$0xff] }
0x1b39   : > { %6781 = vmatpush.msra.mxu0 %v7891_v52  ;;  %6801 = vmatpush.msrb.mxu1 %v7907_v53  ;;  %v7975_v52 = vld [vmem:[%s12738_s16 + $0x15f8] sm:$0xff] }
0x1b3a   : > { %6741 = vmatpush.msra.mxu2 %v7859_v31  ;;  %6761 = vmatpush.msrb.mxu3 %v7875_v61  ;;  %v6030_v61 = vperm.slane %v12291_v28, 6 }
0x1b3b   : > { %6782 = vmatpush.msra.mxu0 %v7890_v58  ;;  %6802 = vmatpush.msrb.mxu1 %v7906_v60  ;;  %v7974_v58 = vld [vmem:[%s12738_s16 + $0x15f0] sm:$0xff] }
0x1b3c   : > { %6742 = vmatpush.msra.mxu2 %v7858_v0  ;;  %6762 = vmatpush.msrb.mxu3 %v7874_v1  ;;  %v7973_v0 = vld [vmem:[%s12738_s16 + $0x15e8] sm:$0xff] }
0x1b3d   : > { %6783 = vmatpush.msra.mxu0 %v7889_v62  ;;  %6803 = vmatpush.msrb.mxu1 %v7905_v63  ;;  %v6031_v62 = vperm.slane %v12291_v28, 7  ;;  %v7957_v63 = vld [vmem:[%s12738_s16 + $0x1568] sm:$0xff] }
0x1b3e   : > { %6743 = vmatpush.msra.mxu2 %v7857_v4  ;;  %6763 = vmatpush.msrb.mxu3 %v7873_v5  ;;  %v7943_v4 = vld [vmem:[%s12738_s16 + $0x14f8] sm:$0xff] }
0x1b3f   : > { %6784 = vmatpush.msra.mxu0 %v7888_v2  ;;  %6804 = vmatpush.msrb.mxu1 %v7904_v3  ;;  %v7927_v3 = vld [vmem:[%s12738_s16 + $0x1478] sm:$0xff] }
0x1b40   : > { %6744 = vmatpush.msra.mxu2 %v7856_v8  ;;  %6764 = vmatpush.msrb.mxu3 %v7872_v10  ;;  %v7972_v8 = vld [vmem:[%s12738_s16 + $0x15e0] sm:$0xff] }
0x1b41   : > { %6785 = vmatpush.msra.mxu0 %v7887_v6  ;;  %6805 = vmatpush.msrb.mxu1 %v7903_v7  ;;  %v7956_v7 = vld [vmem:[%s12738_s16 + $0x1560] sm:$0xff] }
0x1b42   : > { %6745 = vmatpush.msra.mxu2 %v7855_v13  ;;  %6765 = vmatpush.msrb.mxu3 %v7871_v15  ;;  %v7942_v13 = vld [vmem:[%s12738_s16 + $0x14f0] sm:$0xff]  ;;  %v6028_v15 = vperm.slane %v12291_v28, 4 }
0x1b43   : > { %6786 = vmatpush.msra.mxu0 %v7886_v11  ;;  %6806 = vmatpush.msrb.mxu1 %v7902_v12  ;;  %v7926_v12 = vld [vmem:[%s12738_s16 + $0x1470] sm:$0xff] }
0x1b44   : > { %6746 = vmatpush.msra.mxu2 %v7854_v17  ;;  %6766 = vmatpush.msrb.mxu3 %v7870_v19  ;;  %v7955_v19 = vld [vmem:[%s12738_s16 + $0x1558] sm:$0xff] }
0x1b45   : > { %6787 = vmatpush.msra.mxu0 %v7885_v16  ;;  %6807 = vmatpush.msrb.mxu1 %v7901_v59  ;;  %v6029_v16 = vperm.slane %v12291_v28, 5  ;;  %v7967_v28 = vld [vmem:[%s12738_s16 + $0x15b8] sm:$0xff] }
0x1b46   : > { %6747 = vmatpush.msra.mxu2 %v7853_v25  ;;  %6767 = vmatpush.msrb.mxu3 %v7869_v26  ;;  %v7954_v26 = vld [vmem:[%s12738_s16 + $0x1550] sm:$0xff] }
0x1b47   : > { %6788 = vmatpush.msra.mxu0 %v7884_v18  ;;  %6808 = vmatpush.msrb.mxu1 %v7900_v20  ;;  %v7971_v18 = vld [vmem:[%s12738_s16 + $0x15d8] sm:$0xff]  ;;  %v7925_v20 = vld [vmem:[%s12738_s16 + $0x1468] sm:$0xff] }
0x1b48   : > { %6748 = vmatpush.msra.mxu2 %v7852_v14  ;;  %6768 = vmatpush.msrb.mxu3 %v7868_v9  ;;  %v7924_v9 = vld [vmem:[%s12738_s16 + $0x1460] sm:$0xff] }
0x1b49   : > { %6789 = vmatpush.msra.mxu0 %v7883_v22  ;;  %6809 = vmatpush.msrb.mxu1 %v7899_v24  ;;  %v7941_v22 = vld [vmem:[%s12738_s16 + $0x14e8] sm:$0xff] }
0x1b4a   : > { %6749 = vmatpush.msra.mxu2 %v7851_v33  ;;  %6769 = vmatpush.msrb.mxu3 %v7867_v34  ;;  %v7969_v33 = vld [vmem:[%s12738_s16 + $0x15c8] sm:$0xff] }
0x1b4b   : > { %6790 = vmatpush.msra.mxu0 %v7882_v27  ;;  %6810 = vmatpush.msrb.mxu1 %v7898_v29  ;;  %v7970_v27 = vld [vmem:[%s12738_s16 + $0x15d0] sm:$0xff] }
0x1b4c   : > { %6750 = vmatpush.msra.mxu2 %v7850_v38  ;;  %6770 = vmatpush.msrb.mxu3 %v7866_v43  ;;  %v7939_v38 = vld [vmem:[%s12738_s16 + $0x14d8] sm:$0xff]  ;;  %v7952_v43 = vld [vmem:[%s12738_s16 + $0x1540] sm:$0xff] }
0x1b4d   : > { %6791 = vmatpush.msra.mxu0 %v7881_v30  ;;  %6811 = vmatpush.msrb.mxu1 %v7897_v32  ;;  %v7940_v30 = vld [vmem:[%s12738_s16 + $0x14e0] sm:$0xff]  ;;  %v7953_v32 = vld [vmem:[%s12738_s16 + $0x1548] sm:$0xff] }
0x1b4e   : > { %6751 = vmatpush.msra.mxu2 %v7849_v21  ;;  %6771 = vmatpush.msrb.mxu3 %v7865_v39  ;;  %v7968_v21 = vld [vmem:[%s12738_s16 + $0x15c0] sm:$0xff]  ;;  %v7922_v39 = vld [vmem:[%s12738_s16 + $0x1450] sm:$0xff] }
0x1b4f   : > { %6792 = vmatpush.msra.mxu0 %v7880_v35  ;;  %6812 = vmatpush.msrb.mxu1 %v7896_v36  ;;  %v7923_v36 = vld [vmem:[%s12738_s16 + $0x1458] sm:$0xff] }
0x1b50   : > { %6752 = vmatpush.msra.mxu2 %v7848_v40  ;;  %6772 = vmatpush.msrb.mxu3 %v7864_v41  ;;  %v7938_v40 = vld [vmem:[%s12738_s16 + $0x14d0] sm:$0xff]  ;;  %v7951_v41 = vld [vmem:[%s12738_s16 + $0x1538] sm:$0xff] }
0x1b67   : > { %v6116_v45 = vpop.f32.mrf.mxu0  ;;  %v6136_v46 = vpop.f32.mrf.mxu1 }
0x1b68   : > { %v6117_v47 = vadd.f32 %v6116_v45, %v6026_v42  ;;  %v6137_v48 = vadd.f32 %v6136_v46, %v6027_v44  ;;  %v7921_v42 = vld [vmem:[%s12738_s16 + $0x1448] sm:$0xff]  ;;  %v7950_v45 = vld [vmem:[%s12738_s16 + $0x1530] sm:$0xff] }
0x1b69   : > { %v7937_v44 = vld [vmem:[%s12738_s16 + $0x14c8] sm:$0xff]  ;;  %v7966_v46 = vld [vmem:[%s12738_s16 + $0x15b0] sm:$0xff] }
0x1b6a   : > { %v6381_v23 = vmax.f32 %v6117_v47, 0.0  ;;  %v6382_v55 = vmax.f32 %v6137_v48, 0.0  ;;  %v7920_v47 = vld [vmem:[%s12738_s16 + $0x1440] sm:$0xff] }
0x1b6b   : > { %v7936_v48 = vld [vmem:[%s12738_s16 + $0x14c0] sm:$0xff] }
0x1b6c   : > { %6713 = vmatmul.f32.vlgmr.msrb.gmra.mxu0 %v6381_v23  ;;  %6733 = vmatmul.f32.vlgmr.msra.gmra.mxu1 %v6382_v55  ;;  %v6076_v53 = vpop.f32.mrf.mxu2  ;;  %v6096_v54 = vpop.f32.mrf.mxu3  ;;  %v12418_v23 = vld [vmem:[%s12737_s15 + $0x28] sm:$0xff]  ;;  %v7919_v55 = vld [vmem:[%s12738_s16 + $0x1438] sm:$0xff] }
0x1b6d   : > { %6857 = vmatpush.msrb.mxu0 %v7959_v51  ;;  %6877 = vmatpush.msra.mxu1 %v7975_v52  ;;  %v6077_v60 = vadd.f32 %v6076_v53, %v6024_v49  ;;  %v6097_v31 = vadd.f32 %v6096_v54, %v6025_v50  ;;  %v7949_v49 = vld [vmem:[%s12738_s16 + $0x1528] sm:$0xff]  ;;  %v7935_v51 = vld [vmem:[%s12738_s16 + $0x14b8] sm:$0xff]  ;;  %v7948_v52 = vld [vmem:[%s12738_s16 + $0x1520] sm:$0xff] }
0x1b6e   : > { %v7965_v50 = vld [vmem:[%s12738_s16 + $0x15a8] sm:$0xff]  ;;  %v7964_v53 = vld [vmem:[%s12738_s16 + $0x15a0] sm:$0xff]  ;;  %v7918_v54 = vld [vmem:[%s12738_s16 + $0x1430] sm:$0xff] }
0x1b6f   : > { %v6379_v1 = vmax.f32 %v6077_v60, 0.0  ;;  %v6380_v2 = vmax.f32 %v6097_v31, 0.0  ;;  %6858 = vmatpush.msrb.mxu0 %v7958_v57  ;;  %6878 = vmatpush.msra.mxu1 %v7974_v58  ;;  %v7934_v57 = vld [vmem:[%s12738_s16 + $0x14b0] sm:$0xff]  ;;  %v6034_v58 = vperm.slane %v12418_v23, 2  ;;  %v6035_v60 = vperm.slane %v12418_v23, 3  ;;  %v7947_v31 = vld [vmem:[%s12738_s16 + $0x1518] sm:$0xff] }
0x1b71   : > { %v6196_v5 = vpop.f32.mrf.mxu0  ;;  %v6216_v6 = vpop.f32.mrf.mxu1  ;;  %6859 = vmatpush.msrb.mxu0 %v7957_v63  ;;  %6879 = vmatpush.msra.mxu1 %v7973_v0  ;;  %v7917_v0 = vld [vmem:[%s12738_s16 + $0x1428] sm:$0xff] }
0x1b72   : > { %v6197_v10 = vadd.f32 %v6196_v5, %v6030_v61  ;;  %v6217_v11 = vadd.f32 %v6216_v6, %v6031_v62  ;;  %6673 = vmatmul.f32.vlgmr.msrb.gmra.mxu2 %v6379_v1  ;;  %6693 = vmatmul.f32.vlgmr.msra.gmra.mxu3 %v6380_v2  ;;  %v7963_v61 = vld [vmem:[%s12738_s16 + $0x1598] sm:$0xff]  ;;  %v7933_v1 = vld [vmem:[%s12738_s16 + $0x14a8] sm:$0xff]  ;;  %v7946_v2 = vld [vmem:[%s12738_s16 + $0x1510] sm:$0xff] }
0x1b73   : > { %6817 = vmatpush.msrb.mxu2 %v7927_v3  ;;  %6837 = vmatpush.msra.mxu3 %v7943_v4  ;;  %v7962_v3 = vld [vmem:[%s12738_s16 + $0x1590] sm:$0xff]  ;;  %v7916_v4 = vld [vmem:[%s12738_s16 + $0x1420] sm:$0xff] }
0x1b74   : > { %v6385_v59 = vmax.f32 %v6197_v10, 0.0  ;;  %v6386_v17 = vmax.f32 %v6217_v11, 0.0  ;;  %6860 = vmatpush.msrb.mxu0 %v7956_v7  ;;  %6880 = vmatpush.msra.mxu1 %v7972_v8  ;;  %v7932_v5 = vld [vmem:[%s12738_s16 + $0x14a0] sm:$0xff]  ;;  %v7945_v8 = vld [vmem:[%s12738_s16 + $0x1508] sm:$0xff]  ;;  %v7915_v11 = vld [vmem:[%s12738_s16 + $0x1418] sm:$0xff] }
0x1b75   : > { %6818 = vmatpush.msrb.mxu2 %v7926_v12  ;;  %6838 = vmatpush.msra.mxu3 %v7942_v13  ;;  %v7961_v10 = vld [vmem:[%s12738_s16 + $0x1588] sm:$0xff]  ;;  %v7931_v12 = vld [vmem:[%s12738_s16 + $0x1498] sm:$0xff]  ;;  %v7944_v13 = vld [vmem:[%s12738_s16 + $0x1500] sm:$0xff] }
0x1b76   : > { %6793 = vmatmul.f32.vlgmr.msra.gmra.mxu0 %v6385_v59  ;;  %6813 = vmatmul.f32.vlgmr.msrb.gmra.mxu1 %v6386_v17  ;;  %v6156_v24 = vpop.f32.mrf.mxu2  ;;  %v6176_v25 = vpop.f32.mrf.mxu3  ;;  %v6033_v59 = vperm.slane %v12418_v23, 1 }
0x1b77   : > { %6861 = vmatpush.msrb.mxu0 %v7955_v19  ;;  %6881 = vmatpush.msra.mxu1 %v7971_v18  ;;  %v6157_v29 = vadd.f32 %v6156_v24, %v6028_v15  ;;  %v6177_v14 = vadd.f32 %v6176_v25, %v6029_v16  ;;  %v7960_v15 = vld [vmem:[%s12738_s16 + $0x1580] sm:$0xff]  ;;  %v6032_v16 = vperm.slane %v12418_v23, 0  ;;  %v8039_v24 = vld [vmem:[%s12738_s16 + $0x17f8] sm:$0xff]  ;;  %v7914_v25 = vld [vmem:[%s12738_s16 + $0x1410] sm:$0xff] }
0x1b78   : > { %6819 = vmatpush.msrb.mxu2 %v7925_v20  ;;  %6839 = vmatpush.msra.mxu3 %v7941_v22  ;;  %v8023_v22 = vld [vmem:[%s12738_s16 + $0x1778] sm:$0xff] }
0x1b79   : > { %v6383_v34 = vmax.f32 %v6157_v29, 0.0  ;;  %v6384_v35 = vmax.f32 %v6177_v14, 0.0  ;;  %6862 = vmatpush.msrb.mxu0 %v7954_v26  ;;  %6882 = vmatpush.msra.mxu1 %v7970_v27  ;;  %v7930_v26 = vld [vmem:[%s12738_s16 + $0x1490] sm:$0xff] }
0x1b7a   : > { %6820 = vmatpush.msrb.mxu2 %v7924_v9  ;;  %6840 = vmatpush.msra.mxu3 %v7940_v30  ;;  %v8022_v27 = vld [vmem:[%s12738_s16 + $0x1770] sm:$0xff]  ;;  %v7913_v30 = vld [vmem:[%s12738_s16 + $0x1408] sm:$0xff] }
0x1b7b   : > { %6863 = vmatpush.msrb.mxu0 %v7953_v32  ;;  %6883 = vmatpush.msra.mxu1 %v7969_v33  ;;  %v8038_v29 = vld [vmem:[%s12738_s16 + $0x17f0] sm:$0xff]  ;;  %v7929_v32 = vld [vmem:[%s12738_s16 + $0x1488] sm:$0xff] }
0x1b7c   : > { %6753 = vmatmul.f32.vlgmr.msra.gmra.mxu2 %v6383_v34  ;;  %6773 = vmatmul.f32.vlgmr.msrb.gmra.mxu3 %v6384_v35  ;;  %v8021_v33 = vld [vmem:[%s12738_s16 + $0x1768] sm:$0xff]  ;;  %v7912_v35 = vld [vmem:[%s12738_s16 + $0x1400] sm:$0xff] }
0x1b7d   : > { %6821 = vmatpush.msrb.mxu2 %v7923_v36  ;;  %6841 = vmatpush.msra.mxu3 %v7939_v38  ;;  %v6276_v62 = vpop.f32.mrf.mxu0  ;;  %v6296_v63 = vpop.f32.mrf.mxu1  ;;  %v8037_v34 = vld [vmem:[%s12738_s16 + $0x17e8] sm:$0xff]  ;;  %v7928_v36 = vld [vmem:[%s12738_s16 + $0x1480] sm:$0xff] }
0x1b7e   : > { %6864 = vmatpush.msrb.mxu0 %v7952_v43  ;;  %6884 = vmatpush.msra.mxu1 %v7968_v21  ;;  %v6277_v6 = vadd.f32 %v6276_v62, %v6034_v58  ;;  %v6297_v7 = vadd.f32 %v6296_v63, %v6035_v60  ;;  %v7991_v21 = vld [vmem:[%s12738_s16 + $0x1678] sm:$0xff]  ;;  %v8032_v58 = vld [vmem:[%s12738_s16 + $0x17c0] sm:$0xff]  ;;  %v7986_v60 = vld [vmem:[%s12738_s16 + $0x1650] sm:$0xff] }
0x1b7f   : > { %6822 = vmatpush.msrb.mxu2 %v7922_v39  ;;  %6842 = vmatpush.msra.mxu3 %v7938_v40  ;;  %v8007_v39 = vld [vmem:[%s12738_s16 + $0x16f8] sm:$0xff]  ;;  %v8020_v40 = vld [vmem:[%s12738_s16 + $0x1760] sm:$0xff]  ;;  %v7985_v63 = vld [vmem:[%s12738_s16 + $0x1648] sm:$0xff] }
0x1b80   : > { %6865 = vmatpush.msrb.mxu0 %v7951_v41  ;;  %6885 = vmatpush.msra.mxu1 %v7967_v28  ;;  %v6389_v17 = vmax.f32 %v6277_v6, 0.0  ;;  %v6390_v19 = vmax.f32 %v6297_v7, 0.0  ;;  %v8036_v41 = vld [vmem:[%s12738_s16 + $0x17e0] sm:$0xff]  ;;  %v7990_v28 = vld [vmem:[%s12738_s16 + $0x1670] sm:$0xff]  ;;  %v8031_v62 = vld [vmem:[%s12738_s16 + $0x17b8] sm:$0xff] }
0x1b81   : > { %6823 = vmatpush.msrb.mxu2 %v7921_v42  ;;  %6843 = vmatpush.msra.mxu3 %v7937_v44  ;;  %v8006_v42 = vld [vmem:[%s12738_s16 + $0x16f0] sm:$0xff]  ;;  %v8019_v44 = vld [vmem:[%s12738_s16 + $0x1758] sm:$0xff]  ;;  %v8029_v6 = vld [vmem:[%s12738_s16 + $0x17a8] sm:$0xff] }
0x1b82   : > { %6866 = vmatpush.msrb.mxu0 %v7950_v45  ;;  %6886 = vmatpush.msra.mxu1 %v7966_v46  ;;  %v6236_v18 = vpop.f32.mrf.mxu2  ;;  %v6256_v20 = vpop.f32.mrf.mxu3  ;;  %v8035_v45 = vld [vmem:[%s12738_s16 + $0x17d8] sm:$0xff]  ;;  %v7989_v46 = vld [vmem:[%s12738_s16 + $0x1668] sm:$0xff] }
0x1b83   : > { %6824 = vmatpush.msrb.mxu2 %v7920_v47  ;;  %6844 = vmatpush.msra.mxu3 %v7936_v48  ;;  %v6237_v14 = vadd.f32 %v6236_v18, %v6032_v16  ;;  %v6257_v9 = vadd.f32 %v6256_v20, %v6033_v59  ;;  %v8005_v47 = vld [vmem:[%s12738_s16 + $0x16e8] sm:$0xff]  ;;  %v8018_v48 = vld [vmem:[%s12738_s16 + $0x1750] sm:$0xff]  ;;  %v7983_v7 = vld [vmem:[%s12738_s16 + $0x1638] sm:$0xff]  ;;  %v6039_v16 = vperm.slane %v12418_v23, 7 }
0x1b84   : > { %6867 = vmatpush.msrb.mxu0 %v7949_v49  ;;  %6887 = vmatpush.msra.mxu1 %v7965_v50  ;;  %v8034_v49 = vld [vmem:[%s12738_s16 + $0x17d0] sm:$0xff]  ;;  %v7988_v50 = vld [vmem:[%s12738_s16 + $0x1660] sm:$0xff]  ;;  %v8011_v59 = vld [vmem:[%s12738_s16 + $0x1718] sm:$0xff] }
0x1b85   : > { %6825 = vmatpush.msrb.mxu2 %v7919_v55  ;;  %6845 = vmatpush.msra.mxu3 %v7935_v51  ;;  %v6387_v38 = vmax.f32 %v6237_v14, 0.0  ;;  %v6388_v43 = vmax.f32 %v6257_v9, 0.0  ;;  %v8004_v55 = vld [vmem:[%s12738_s16 + $0x16e0] sm:$0xff]  ;;  %v8017_v51 = vld [vmem:[%s12738_s16 + $0x1748] sm:$0xff] }
0x1b86   : > { %6868 = vmatpush.msrb.mxu0 %v7948_v52  ;;  %6888 = vmatpush.msra.mxu1 %v7964_v53  ;;  %v8033_v52 = vld [vmem:[%s12738_s16 + $0x17c8] sm:$0xff]  ;;  %v7987_v53 = vld [vmem:[%s12738_s16 + $0x1658] sm:$0xff] }
0x1b87   : > { %6826 = vmatpush.msrb.mxu2 %v7918_v54  ;;  %6846 = vmatpush.msra.mxu3 %v7934_v57  ;;  %v8003_v54 = vld [vmem:[%s12738_s16 + $0x16d8] sm:$0xff]  ;;  %v8016_v57 = vld [vmem:[%s12738_s16 + $0x1740] sm:$0xff]  ;;  %v7981_v20 = vld [vmem:[%s12738_s16 + $0x1628] sm:$0xff] }
0x1b88   : > { %6869 = vmatpush.msrb.mxu0 %v7947_v31  ;;  %6889 = vmatpush.msra.mxu1 %v7963_v61  ;;  %v8002_v31 = vld [vmem:[%s12738_s16 + $0x16d0] sm:$0xff]  ;;  %v8015_v61 = vld [vmem:[%s12738_s16 + $0x1738] sm:$0xff]  ;;  %v8009_v9 = vld [vmem:[%s12738_s16 + $0x1708] sm:$0xff] }
0x1b89   : > { %6827 = vmatpush.msrb.mxu2 %v7917_v0  ;;  %6847 = vmatpush.msra.mxu3 %v7933_v1  ;;  %v8001_v0 = vld [vmem:[%s12738_s16 + $0x16c8] sm:$0xff]  ;;  %v8014_v1 = vld [vmem:[%s12738_s16 + $0x1730] sm:$0xff] }
0x1b8a   : > { %6870 = vmatpush.msrb.mxu0 %v7946_v2  ;;  %6890 = vmatpush.msra.mxu1 %v7962_v3  ;;  %v8030_v2 = vld [vmem:[%s12738_s16 + $0x17b0] sm:$0xff]  ;;  %v7984_v3 = vld [vmem:[%s12738_s16 + $0x1640] sm:$0xff] }
0x1b8b   : > { %6828 = vmatpush.msrb.mxu2 %v7916_v4  ;;  %6848 = vmatpush.msra.mxu3 %v7932_v5  ;;  %v8000_v4 = vld [vmem:[%s12738_s16 + $0x16c0] sm:$0xff]  ;;  %v8013_v5 = vld [vmem:[%s12738_s16 + $0x1728] sm:$0xff] }
0x1b8c   : > { %6871 = vmatpush.msrb.mxu0 %v7945_v8  ;;  %6891 = vmatpush.msra.mxu1 %v7961_v10  ;;  %v7999_v8 = vld [vmem:[%s12738_s16 + $0x16b8] sm:$0xff]  ;;  %v8012_v10 = vld [vmem:[%s12738_s16 + $0x1720] sm:$0xff] }
0x1b8d   : > { %6829 = vmatpush.msrb.mxu2 %v7915_v11  ;;  %6849 = vmatpush.msra.mxu3 %v7931_v12  ;;  %v8028_v11 = vld [vmem:[%s12738_s16 + $0x17a0] sm:$0xff]  ;;  %v7982_v12 = vld [vmem:[%s12738_s16 + $0x1630] sm:$0xff]  ;;  %v6376_v18 = vpop.f32.mrf.mxu1 }
0x1b8e   : > { %6872 = vmatpush.msrb.mxu0 %v7944_v13  ;;  %6892 = vmatpush.msra.mxu1 %v7960_v15  ;;  %v7998_v13 = vld [vmem:[%s12738_s16 + $0x16b0] sm:$0xff]  ;;  %v6038_v15 = vperm.slane %v12418_v23, 6  ;;  %v6377_v14 = vadd.f32 %v6376_v18, %v6039_v16 }
0x1b8f   : > { %6873 = vmatmul.f32.vlgmr.msrb.gmra.mxu0 %v6389_v17  ;;  %6893 = vmatmul.f32.vlgmr.msra.gmra.mxu1 %v6390_v19  ;;  %v8027_v17 = vld [vmem:[%s12738_s16 + $0x1798] sm:$0xff]  ;;  %v6356_v19 = vpop.f32.mrf.mxu0 }
0x1b90   : > { %6937 = vmatpush.msra.mxu0 %v8023_v22  ;;  %6957 = vmatpush.msrb.mxu1 %v8039_v24  ;;  %v7997_v22 = vld [vmem:[%s12738_s16 + $0x16a8] sm:$0xff]  ;;  %v8010_v24 = vld [vmem:[%s12738_s16 + $0x1710] sm:$0xff] }
0x1b91   : > { %6830 = vmatpush.msrb.mxu2 %v7914_v25  ;;  %6850 = vmatpush.msra.mxu3 %v7930_v26  ;;  %v8026_v25 = vld [vmem:[%s12738_s16 + $0x1790] sm:$0xff]  ;;  %v7980_v26 = vld [vmem:[%s12738_s16 + $0x1620] sm:$0xff] }
0x1b92   : > { %6938 = vmatpush.msra.mxu0 %v8022_v27  ;;  %6958 = vmatpush.msrb.mxu1 %v8038_v29  ;;  %v7996_v27 = vld [vmem:[%s12738_s16 + $0x16a0] sm:$0xff]  ;;  %v6357_v29 = vadd.f32 %v6356_v19, %v6038_v15 }
0x1b93   : > { %6831 = vmatpush.msrb.mxu2 %v7913_v30  ;;  %6851 = vmatpush.msra.mxu3 %v7929_v32  ;;  %v8025_v30 = vld [vmem:[%s12738_s16 + $0x1788] sm:$0xff]  ;;  %v7979_v32 = vld [vmem:[%s12738_s16 + $0x1618] sm:$0xff] }
0x1b94   : > { %6939 = vmatpush.msra.mxu0 %v8021_v33  ;;  %6959 = vmatpush.msrb.mxu1 %v8037_v34  ;;  %v7995_v33 = vld [vmem:[%s12738_s16 + $0x1698] sm:$0xff]  ;;  %v6036_v34 = vperm.slane %v12418_v23, 4 }
0x1b95   : > { %6832 = vmatpush.msrb.mxu2 %v7912_v35  ;;  %6852 = vmatpush.msra.mxu3 %v7928_v36  ;;  %v6037_v35 = vperm.slane %v12418_v23, 5  ;;  %v8008_v36 = vld [vmem:[%s12738_s16 + $0x1700] sm:$0xff]  ;;  %v7978_v23 = vld [vmem:[%s12738_s16 + $0x1610] sm:$0xff] }
0x1b96   : > { %6833 = vmatmul.f32.vlgmr.msrb.gmra.mxu2 %v6387_v38  ;;  %6853 = vmatmul.f32.vlgmr.msra.gmra.mxu3 %v6388_v43  ;;  %v8024_v38 = vld [vmem:[%s12738_s16 + $0x1780] sm:$0xff]  ;;  %v6316_v43 = vpop.f32.mrf.mxu2 }
0x1b97   : > { %6897 = vmatpush.msra.mxu2 %v7991_v21  ;;  %6917 = vmatpush.msrb.mxu3 %v8007_v39  ;;  %v6336_v21 = vpop.f32.mrf.mxu3  ;;  %v6393_v39 = vmax.f32 %v6357_v29, 0.0 }
0x1b98   : > { %6940 = vmatpush.msra.mxu0 %v8020_v40  ;;  %6960 = vmatpush.msrb.mxu1 %v8036_v41  ;;  %v6394_v40 = vmax.f32 %v6377_v14, 0.0  ;;  %v7994_v41 = vld [vmem:[%s12738_s16 + $0x1690] sm:$0xff] }
0x1b99   : > { %6898 = vmatpush.msra.mxu2 %v7990_v28  ;;  %6918 = vmatpush.msrb.mxu3 %v8006_v42  ;;  %v6317_v28 = vadd.f32 %v6316_v43, %v6036_v34  ;;  %v6337_v42 = vadd.f32 %v6336_v21, %v6037_v35  ;;  %v8146_v43 = vld [vmem:[%s12740_s18 + $0x2] ss:$0 sm:$0xff] }
0x1b9a   : > { %6941 = vmatpush.msra.mxu0 %v8019_v44  ;;  %6961 = vmatpush.msrb.mxu1 %v8035_v45  ;;  %v7977_v44 = vld [vmem:[%s12738_s16 + $0x1608] sm:$0xff] }
0x1b9b   : > { %6899 = vmatpush.msra.mxu2 %v7989_v46  ;;  %6919 = vmatpush.msrb.mxu3 %v8005_v47  ;;  %v7993_v45 = vld [vmem:[%s12738_s16 + $0x1688] sm:$0xff]  ;;  %v7976_v46 = vld [vmem:[%s12738_s16 + $0x1600] sm:$0xff] }
0x1b9c   : > { %6942 = vmatpush.msra.mxu0 %v8018_v48  ;;  %6962 = vmatpush.msrb.mxu1 %v8034_v49  ;;  %v7992_v47 = vld [vmem:[%s12738_s16 + $0x1680] sm:$0xff]  ;;  %v6391_v48 = vmax.f32 %v6317_v28, 0.0  ;;  %v6392_v49 = vmax.f32 %v6337_v42, 0.0 }
0x1b9d   : > { %6900 = vmatpush.msra.mxu2 %v7988_v50  ;;  %6920 = vmatpush.msrb.mxu3 %v8004_v55  ;;  %v8145_v50 = vld [vmem:[%s12739_s17 + $0x2] ss:$0 sm:$0xff] }
0x1b9e   : > { %6943 = vmatpush.msra.mxu0 %v8017_v51  ;;  %6963 = vmatpush.msrb.mxu1 %v8033_v52 }
0x1b9f   : > { %6901 = vmatpush.msra.mxu2 %v7987_v53  ;;  %6921 = vmatpush.msrb.mxu3 %v8003_v54 }
0x1ba0   : > { %6944 = vmatpush.msra.mxu0 %v8016_v57  ;;  %6964 = vmatpush.msrb.mxu1 %v8032_v58 }
0x1ba1   : > { %6902 = vmatpush.msra.mxu2 %v7986_v60  ;;  %6922 = vmatpush.msrb.mxu3 %v8002_v31 }
0x1ba2   : > { %6945 = vmatpush.msra.mxu0 %v8015_v61  ;;  %6965 = vmatpush.msrb.mxu1 %v8031_v62 }
0x1ba3   : > { %6903 = vmatpush.msra.mxu2 %v7985_v63  ;;  %6923 = vmatpush.msrb.mxu3 %v8001_v0 }
0x1ba4   : > { %6946 = vmatpush.msra.mxu0 %v8014_v1  ;;  %6966 = vmatpush.msrb.mxu1 %v8030_v2 }
0x1ba5   : > { %6904 = vmatpush.msra.mxu2 %v7984_v3  ;;  %6924 = vmatpush.msrb.mxu3 %v8000_v4 }
0x1ba6   : > { %6947 = vmatpush.msra.mxu0 %v8013_v5  ;;  %6967 = vmatpush.msrb.mxu1 %v8029_v6 }
0x1ba7   : > { %6905 = vmatpush.msra.mxu2 %v7983_v7  ;;  %6925 = vmatpush.msrb.mxu3 %v7999_v8 }
0x1ba8   : > { %6948 = vmatpush.msra.mxu0 %v8012_v10  ;;  %6968 = vmatpush.msrb.mxu1 %v8028_v11 }
0x1ba9   : > { %6906 = vmatpush.msra.mxu2 %v7982_v12  ;;  %6926 = vmatpush.msrb.mxu3 %v7998_v13 }
0x1baa   : > { %6949 = vmatpush.msra.mxu0 %v8011_v59  ;;  %6969 = vmatpush.msrb.mxu1 %v8027_v17 }
0x1bab   : > { %6907 = vmatpush.msra.mxu2 %v7981_v20  ;;  %6927 = vmatpush.msrb.mxu3 %v7997_v22 }
0x1bac   : > { %6950 = vmatpush.msra.mxu0 %v8010_v24  ;;  %6970 = vmatpush.msrb.mxu1 %v8026_v25 }
0x1bad   : > { %6908 = vmatpush.msra.mxu2 %v7980_v26  ;;  %6928 = vmatpush.msrb.mxu3 %v7996_v27 }
0x1bae   : > { %6951 = vmatpush.msra.mxu0 %v8009_v9  ;;  %6971 = vmatpush.msrb.mxu1 %v8025_v30 }
0x1baf   : > { %6909 = vmatpush.msra.mxu2 %v7979_v32  ;;  %6929 = vmatpush.msrb.mxu3 %v7995_v33 }
0x1bb0   : > { %6952 = vmatpush.msra.mxu0 %v8008_v36  ;;  %6972 = vmatpush.msrb.mxu1 %v8024_v38 }
0x1bb1   : > { %6953 = vmatmul.f32.vlgmr.msra.gmra.mxu0 %v6393_v39  ;;  %6973 = vmatmul.f32.vlgmr.msrb.gmra.mxu1 %v6394_v40 }
0x1bb2   : > { %6910 = vmatpush.msra.mxu2 %v7978_v23  ;;  %6930 = vmatpush.msrb.mxu3 %v7994_v41  ;;  %v8148_v23 = vld [vmem:[%s12787_s0] ss:$0 sm:$0xff] }
0x1bb4   : > { %6911 = vmatpush.msra.mxu2 %v7977_v44  ;;  %6931 = vmatpush.msrb.mxu3 %v7993_v45  ;;  %v8149_v44 = vld [vmem:[#allocation2] ss:$0 sm:$0xff] }
0x1bb6   : > { %6912 = vmatpush.msra.mxu2 %v7976_v46  ;;  %6932 = vmatpush.msrb.mxu3 %v7992_v47 }
0x1bb7   : > { %6913 = vmatmul.f32.vlgmr.msra.gmra.mxu2 %v6391_v48  ;;  %6933 = vmatmul.f32.vlgmr.msrb.gmra.mxu3 %v6392_v49 }
0x1be9   : > { %v6714_v54 = vpop.f32.mrf.mxu0  ;;  %v6734_v58 = vpop.f32.mrf.mxu1 }
0x1bf3   : > { %v6794_v0 = vpop.f32.mrf.mxu0  ;;  %v6814_v2 = vpop.f32.mrf.mxu1 }
0x1bf5   : > { %v6674_v55 = vpop.f32.mrf.mxu2  ;;  %v6694_v52 = vpop.f32.mrf.mxu3 }
0x1bf6   : > { %v6675_v51 = vadd.f32 %v8145_v50, %v6674_v55 }
0x1bf8   : > { %v6695_v53 = vadd.f32 %v6694_v52, %v6675_v51 }
0x1bfa   : > { %v6715_v57 = vadd.f32 %v6714_v54, %v6695_v53 }
0x1bfc   : > { %v6735_v60 = vadd.f32 %v6734_v58, %v6715_v57 }
0x1bff   : > { %v6754_v31 = vpop.f32.mrf.mxu2  ;;  %v6774_v62 = vpop.f32.mrf.mxu3 }
0x1c00   : > { %v6755_v61 = vadd.f32 %v6754_v31, %v6735_v60 }
0x1c02   : > { %v6775_v63 = vadd.f32 %v6774_v62, %v6755_v61 }
0x1c04   : > { %v6795_v1 = vadd.f32 %v6794_v0, %v6775_v63 }
0x1c06   : > { %v6815_v4 = vadd.f32 %v6814_v2, %v6795_v1 }
0x1c0c   : > { %v6874_v8 = vpop.f32.mrf.mxu0  ;;  %v6894_v11 = vpop.f32.mrf.mxu1 }
0x1c19   : > { %v6834_v3 = vpop.f32.mrf.mxu2  ;;  %v6854_v6 = vpop.f32.mrf.mxu3 }
0x1c1a   : > { %v6835_v5 = vadd.f32 %v6834_v3, %v6815_v4 }
0x1c1c   : > { %v6855_v7 = vadd.f32 %v6854_v6, %v6835_v5 }
0x1c1e   : > { %v6875_v10 = vadd.f32 %v6874_v8, %v6855_v7 }
0x1c20   : > { %v6895_v12 = vadd.f32 %v6894_v11, %v6875_v10 }
0x1c2e   : > { %v6954_v17 = vpop.f32.mrf.mxu0  ;;  %v6974_v18 = vpop.f32.mrf.mxu1 }
0x1c3a   : > { %v6914_v13 = vpop.f32.mrf.mxu2  ;;  %v6934_v16 = vpop.f32.mrf.mxu3 }
0x1c3b   : > { %v6915_v15 = vadd.f32 %v6914_v13, %v6895_v12 }
0x1c3d   : > { %v6935_v59 = vadd.f32 %v6934_v16, %v6915_v15 }
0x1c3f   : > { %v6955_v19 = vadd.f32 %v6954_v17, %v6935_v59 }
0x1c41   : > { %v6975_v20 = vadd.f32 %v6974_v18, %v6955_v19 }
0x1c43   : > { %v6977_v22 = vadd.f32 %v6975_v20, %v11678_v37 }
0x1c45   : > { %v6982_v24 = vsel %vm730_vm0, %v6977_v22, 0.0 }
0x1c46   : > { %6983 = vadd.xlane.f32.xlu0 %v6982_v24 }
0x1cb9   : > { %v6984_v25 = vpop.xlane.xlu0 %6983 }
0x1cba   : > { %v6985_v26 = vmul.f32 %v6984_v25, %v8589_v56 }
0x1cbc   : > { %v6986_v27 = vsub.f32 %v6977_v22, %v6985_v26 }
0x1cbe   : > { %v6987_v29 = vmul.f32 %v6986_v27, %v6986_v27 }
0x1cc0   : > { %v6988_v14 = vsel %vm730_vm0, %v6987_v29, 0.0  ;;  %vm7017_vm0 = vcmask 523271  }
0x1cc1   : > { %6989 = vadd.xlane.f32.xlu1 %v6988_v14 }
0x1d34   : > { %v6990_v9 = vpop.xlane.xlu1 %6989 }
0x1d35   : > { %v6991_v30 = vmul.f32 %v6990_v9, %v8589_v56  ;;  %v8147_v56 = vld [vmem:[%s12741_s19 + $0x2] ss:$0 sm:$0xff] }
0x1d37   : > { %v6992_v32 = vadd.f32 1e-05, %v6991_v30 }
0x1d39   : > { %8210 = vrsqrt.f32 %v6992_v32  ;;  %vm6999_vm5 = vweird.f32 %v6992_v32 }
0x1d3f   : > { %v8211_v33 = vpop.eup %8210 }
0x1d40   : > { %v6994_v34 = vmul.f32 %v8211_v33, %v6992_v32  ;;  %vm7000_vm4 = vweird.f32 %v8211_v33 }
0x1d41   : > { %vm7001_vm9 = vmor %vm6999_vm5, %vm7000_vm4 }
0x1d42   : > { %v6995_v35 = vmul.f32 %v8211_v33, %v6994_v34 }
0x1d44   : > { %v6996_v37 = vmul.f32 0.5, %v6995_v35 }
0x1d46   : > { %v6997_v36 = vsub.f32 1.5, %v6996_v37 }
0x1d48   : > { %v6998_v38 = vmul.f32 %v8211_v33, %v6997_v36 }
0x1d4a   : > { %v7002_v21 = vsel %vm7001_vm9, %v8211_v33, %v6998_v38 }
0x1d4b   : > { %v7003_v39 = vmul.f32 %v7002_v21, %v6986_v27 }
0x1d4d   : > { %v7007_v40 = vmul.f32 %v8146_v43, %v7003_v39 }
0x1d4f   : > { %v7011_v41 = vadd.f32 %v8147_v56, %v7007_v40 }
0x1d51   : > { %v7016_v28 = vmul.f32 %v8148_v23, %v7011_v41 }
0x1d53   : > { %v7018_v42 = vsel %vm7017_vm0, %v7016_v28, 0.0 }
0x1d54   : > { %7019 = vadd.xlane.f32.xlu1 %v7018_v42 }
0x1dc7   : > { %v7020_v45 = vpop.xlane.xlu1 %7019 }
0x1dc8   : > { %v7025_v46 = vadd.f32 %v8149_v44, %v7020_v45 }
0x1dca   : > { %7027 = vst.msk [vmem:[%s678_s21 - $0x7] sm:$0x80] %vm7026_vm10, %v7025_v46 }
0x1dcb PF: > { %s12789_s27 = sld [smem:[#allocation3_spill]] }
0x1dd1   : > { %s34_s29 = sadd.s32 1, %s12789_s27  }
0x1dd2   : > { %p31_p4 = scmp.ge.s32.totalorder %s34_s29, 4  }
0x1dd4   :  { %33 = sbr.rel (!%p31_p4) target bundleno = 10 (0xa), region = 170 }

</bundles_post_ra>
